<compile_context>
chip_gen: v7x
topology: tpu7x:2x2x1
jax: 0.10.0
libtpu: 0.0.40
codegen_flags: <defaults>
</compile_context>

<pallas_src>
import functools

import jax
import jax.numpy as jnp
from jax.experimental import pallas as pl
from jax.experimental.pallas import tpu as pltpu

EPS = 1e-5      # BatchNorm2d default eps
BORDER = 8      # tile-aligned halo border for the in-kernel padded scratch buffers


# ----------------------------------------------------------------------------
# Fused Pallas kernel: whole Inception block for one image (NHWC, stride=1)
# ----------------------------------------------------------------------------
def _inception_kernel(x_ref, w1_ref, w3_ref, w5_ref, w4_ref,
                      sc_pre_ref, sh_pre_ref, sc_post_ref, sh_post_ref,
                      o_ref, pad2_ref, pad3_ref, padp_ref,
                      *, c1, c2r, c3r, k2, k5, kp, p2, p5, pp):
    """x_ref: (1,H,W,Cin).  o_ref: (1,H,W,C1+C2+C3+C4) (channel order = torch.cat)."""
    _, h, w, cin = x_ref.shape
    c2 = w3_ref.shape[-1]
    c3 = w5_ref.shape[-1]
    c4 = w4_ref.shape[-1]
    hw = h * w
    f32 = jnp.float32
    bf16 = jnp.bfloat16

    x_hwc = x_ref[0]                                   # (h, w, cin) f32
    xf = x_hwc.reshape(hw, cin)

    # ---- branch1 + branch2-reduce + branch3-reduce: one fused 1x1 matmul -------
    pre = jnp.dot(xf.astype(bf16), w1_ref[...],
                  preferred_element_type=f32)          # (hw, c1+c2r+c3r)
    pre = jnp.maximum(pre * sc_pre_ref[...] + sh_pre_ref[...], 0.0)
    y1 = pre[:, :c1]                                   # branch1 output
    y2r = pre[:, c1:c1 + c2r]                          # branch2 reduced maps
    y3r = pre[:, c1 + c2r:c1 + c2r + c3r]              # branch3 reduced maps

    sc_post = sc_post_ref[...]
    sh_post = sh_post_ref[...]

    # ---- branch2: 3x3 conv (zero pad p2) on the reduced maps -------------------
    pad2_ref[...] = jnp.zeros_like(pad2_ref)
    pad2_ref[BORDER:BORDER + h, BORDER:BORDER + w, :] = y2r.reshape(h, w, c2r)
    acc2 = jnp.zeros((hw, c2), f32)
    for dy in range(k2):
        for dx in range(k2):
            tap = pad2_ref[BORDER - p2 + dy:BORDER - p2 + dy + h,
                           BORDER - p2 + dx:BORDER - p2 + dx + w, :]
            acc2 = acc2 + jnp.dot(tap.reshape(hw, c2r).astype(bf16),
                                  w3_ref[dy * k2 + dx],
                                  preferred_element_type=f32)
    y2 = jnp.maximum(acc2 * sc_post[:, :c2] + sh_post[:, :c2], 0.0)

    # ---- branch3: 5x5 conv (zero pad p5) on the reduced maps -------------------
    pad3_ref[...] = jnp.zeros_like(pad3_ref)
    pad3_ref[BORDER:BORDER + h, BORDER:BORDER + w, :] = y3r.reshape(h, w, c3r)
    acc3 = jnp.zeros((hw, c3), f32)
    for dy in range(k5):
        for dx in range(k5):
            tap = pad3_ref[BORDER - p5 + dy:BORDER - p5 + dy + h,
                           BORDER - p5 + dx:BORDER - p5 + dx + w, :]
            acc3 = acc3 + jnp.dot(tap.reshape(hw, c3r).astype(bf16),
                                  w5_ref[dy * k5 + dx],
                                  preferred_element_type=f32)
    y3 = jnp.maximum(acc3 * sc_post[:, c2:c2 + c3] + sh_post[:, c2:c2 + c3], 0.0)

    # ---- branch4: maxpool (kp, pad pp, stride 1, -inf pad) then 1x1 conv -------
    padp_ref[...] = jnp.full(padp_ref.shape, -jnp.inf, padp_ref.dtype)
    padp_ref[BORDER:BORDER + h, BORDER:BORDER + w, :] = x_hwc
    pooled = jnp.full((h, w, cin), -jnp.inf, f32)
    for dy in range(kp):
        for dx in range(kp):
            pooled = jnp.maximum(
                pooled,
                padp_ref[BORDER - pp + dy:BORDER - pp + dy + h,
                         BORDER - pp + dx:BORDER - pp + dx + w, :])
    acc4 = jnp.dot(pooled.reshape(hw, cin).astype(bf16), w4_ref[...],
                   preferred_element_type=f32)
    y4 = jnp.maximum(acc4 * sc_post[:, c2 + c3:] + sh_post[:, c2 + c3:], 0.0)

    # ---- channel concat (torch.cat dim=1) and single store ---------------------
    out = jnp.concatenate([y1, y2, y3, y4], axis=-1)   # (hw, c1+c2+c3+c4)
    o_ref[...] = out.reshape(1, h, w, out.shape[-1]).astype(o_ref.dtype)


# ----------------------------------------------------------------------------
# Wrapper: weight/BN folding + single pallas_call
# ----------------------------------------------------------------------------
def _fold_bn(p):
    scale = p["gamma"] / jnp.sqrt(p["var"] + EPS)
    shift = p["beta"] + (p["bias"] - p["mean"]) * scale
    return scale.astype(jnp.float32), shift.astype(jnp.float32)


def _conv_taps(w):
    """torch Conv2d weight (Cout, Cin, KH, KW) -> (KH*KW, Cin, Cout) bf16 taps."""
    cout, cin, kh, kw = w.shape
    return jnp.transpose(w, (2, 3, 1, 0)).reshape(kh * kw, cin, cout).astype(jnp.bfloat16)


def inception_block(x_nchw, params, *, stride_tup=(1, 1, 1), pad_tup=(1, 2, 1),
                    pool_type="max", pool_kernel=3):
    """Forward of Inception_block; NCHW in / NCHW out like the PyTorch module."""
    assert stride_tup == (1, 1, 1), "TODO(synk): only stride=1 (module default) supported"
    assert pool_type == "max", "TODO(synk): pool_type='L2' not implemented"

    n, cin, h, w = x_nchw.shape
    b1, b2r, b2 = params["b1"], params["b2_red"], params["b2"]
    b3r, b3, b4 = params["b3_red"], params["b3"], params["b4"]
    c1, c2r, c2 = b1["w"].shape[0], b2r["w"].shape[0], b2["w"].shape[0]
    c3r, c3, c4 = b3r["w"].shape[0], b3["w"].shape[0], b4["w"].shape[0]
    k2, k5 = b2["w"].shape[2], b3["w"].shape[2]
    p2, p5, pp = pad_tup
    # Default config preserves spatial size on every branch (needed for the concat).
    assert 2 * p2 - k2 + 1 == 0 and 2 * p5 - k5 + 1 == 0 and 2 * pp - pool_kernel + 1 == 0

    # Merge the three shared-input 1x1 convs into one (Cin, c1+c2r+c3r) weight.
    w1 = jnp.concatenate([_conv_taps(b1["w"])[0],
                          _conv_taps(b2r["w"])[0],
                          _conv_taps(b3r["w"])[0]], axis=-1)
    w3 = _conv_taps(b2["w"])                  # (k2*k2, c2r, c2)
    w5 = _conv_taps(b3["w"])                  # (k5*k5, c3r, c3)
    w4 = _conv_taps(b4["w"])[0]               # (cin, c4)

    s1, t1 = _fold_bn(b1); s2r, t2r = _fold_bn(b2r); s3r, t3r = _fold_bn(b3r)
    s2, t2 = _fold_bn(b2); s3, t3 = _fold_bn(b3); s4, t4 = _fold_bn(b4)
    sc_pre = jnp.concatenate([s1, s2r, s3r])[None, :]
    sh_pre = jnp.concatenate([t1, t2r, t3r])[None, :]
    sc_post = jnp.concatenate([s2, s3, s4])[None, :]
    sh_post = jnp.concatenate([t2, t3, t4])[None, :]

    x_nhwc = jnp.transpose(x_nchw, (0, 2, 3, 1))       # channels -> lane dimension
    c_out = c1 + c2 + c3 + c4

    kernel = functools.partial(
        _inception_kernel, c1=c1, c2r=c2r, c3r=c3r,
        k2=k2, k5=k5, kp=pool_kernel, p2=p2, p5=p5, pp=pp)

    out_nhwc = pl.pallas_call(
        kernel,
        out_shape=jax.ShapeDtypeStruct((n, h, w, c_out), x_nchw.dtype),
        grid=(n,),
        in_specs=[
            pl.BlockSpec((1, h, w, cin), lambda b: (b, 0, 0, 0)),
            pl.BlockSpec(w1.shape, lambda b: (0, 0)),
            pl.BlockSpec(w3.shape, lambda b: (0, 0, 0)),
            pl.BlockSpec(w5.shape, lambda b: (0, 0, 0)),
            pl.BlockSpec(w4.shape, lambda b: (0, 0)),
            pl.BlockSpec(sc_pre.shape, lambda b: (0, 0)),
            pl.BlockSpec(sh_pre.shape, lambda b: (0, 0)),
            pl.BlockSpec(sc_post.shape, lambda b: (0, 0)),
            pl.BlockSpec(sh_post.shape, lambda b: (0, 0)),
        ],
        out_specs=pl.BlockSpec((1, h, w, c_out), lambda b: (b, 0, 0, 0)),
        scratch_shapes=[
            pltpu.VMEM((h + 2 * BORDER, w + 2 * BORDER, c2r), jnp.float32),
            pltpu.VMEM((h + 2 * BORDER, w + 2 * BORDER, c3r), jnp.float32),
            pltpu.VMEM((h + 2 * BORDER, w + 2 * BORDER, cin), jnp.float32),
        ],
        compiler_params=pltpu.CompilerParams(dimension_semantics=("parallel",)),
    )(x_nhwc, w1, w3, w5, w4, sc_pre, sh_pre, sc_post, sh_post)

    return jnp.transpose(out_nhwc, (0, 3, 1, 2))       # NHWC -> NCHW


# ----------------------------------------------------------------------------
# Pure-JAX reference (eval-mode BN), used only for a sanity check in __main__
# ----------------------------------------------------------------------------
def _ref_conv_block(x, p, padding):
    y = jax.lax.conv_general_dilated(
        x, p["w"], window_strides=(1, 1),
        padding=[(padding, padding), (padding, padding)],
        dimension_numbers=("NCHW", "OIHW", "NCHW"))
    y = y + p["bias"][None, :, None, None]
    scale = p["gamma"] / jnp.sqrt(p["var"] + EPS)
    y = (y - p["mean"][None, :, None, None]) * scale[None, :, None, None] \
        + p["beta"][None, :, None, None]
    return jnp.maximum(y, 0.0)


def _ref_inception(x, params, pad_tup=(1, 2, 1), pool_kernel=3):
    o1 = _ref_conv_block(x, params["b1"], 0)
    o2 = _ref_conv_block(_ref_conv_block(x, params["b2_red"], 0), params["b2"], pad_tup[0])
    o3 = _ref_conv_block(_ref_conv_block(x, params["b3_red"], 0), params["b3"], pad_tup[1])
    pooled = jax.lax.reduce_window(
        x, -jnp.inf, jax.lax.max,
        (1, 1, pool_kernel, pool_kernel), (1, 1, 1, 1),
        [(0, 0), (0, 0), (pad_tup[2], pad_tup[2]), (pad_tup[2], pad_tup[2])])
    o4 = _ref_conv_block(pooled, params["b4"], 0)
    return jnp.concatenate([o1, o2, o3, o4], axis=1)


# ----------------------------------------------------------------------------
# Deterministic parameter construction + harness
# ----------------------------------------------------------------------------
def make_conv_bn_params(key, cin, cout, k):
    k0, k1, k2, k3, k4, k5 = jax.random.split(key, 6)
    return dict(
        w=0.1 * jax.random.normal(k0, (cout, cin, k, k), jnp.float32),
        bias=0.1 * jax.random.normal(k1, (cout,), jnp.float32),
        gamma=1.0 + 0.1 * jax.random.normal(k2, (cout,), jnp.float32),
        beta=0.1 * jax.random.normal(k3, (cout,), jnp.float32),
        mean=0.1 * jax.random.normal(k4, (cout,), jnp.float32),
        var=0.5 + 0.25 * jnp.abs(jax.random.normal(k5, (cout,), jnp.float32)),
    )


if __name__ == "__main__":
    key = jax.random.PRNGKey(0)
    kx, k1, k2a, k2b, k3a, k3b, k4 = jax.random.split(key, 7)

    in_channels = 4
    # (out_1x1, red_3x3, out_3x3, red_5x5, out_5x5, out_pool)
    filter_num = (8, 4, 8, 4, 8, 8)

    params = {
        "b1":     make_conv_bn_params(k1,  in_channels,   filter_num[0], 1),
        "b2_red": make_conv_bn_params(k2a, in_channels,   filter_num[1], 1),
        "b2":     make_conv_bn_params(k2b, filter_num[1], filter_num[2], 3),
        "b3_red": make_conv_bn_params(k3a, in_channels,   filter_num[3], 1),
        "b3":     make_conv_bn_params(k3b, filter_num[3], filter_num[4], 5),
        "b4":     make_conv_bn_params(k4,  in_channels,   filter_num[5], 1),
    }

    x = jax.random.normal(kx, (2, in_channels, 16, 16), jnp.float32)  # NCHW

    fwd = jax.jit(inception_block)
    out = jax.block_until_ready(fwd(x, params))

    expected_c = filter_num[0] + filter_num[2] + filter_num[4] + filter_num[5]
    assert out.shape == (2, expected_c, 16, 16), out.shape
    assert bool(jnp.all(jnp.isfinite(out)))

    # Sanity check vs. pure-XLA reference (loose tol: bf16 MXU inputs, f32 accum).
    ref = _ref_inception(x, params)
    max_err = float(jnp.max(jnp.abs(out - ref)))
    assert max_err < 5e-2, max_err

    print("KERNEL_OK")
</pallas_src>

<mosaic_0001>
module attributes {stable_mosaic.version = 11 : i64} {
  func.func @_inception_kernel(%arg0: i32, %arg1: memref<1x16x16x4xf32, #tpu.memory_space<vmem>>, %arg2: memref<4x16xbf16, #tpu.memory_space<vmem>>, %arg3: memref<9x4x8xbf16, #tpu.memory_space<vmem>>, %arg4: memref<25x4x8xbf16, #tpu.memory_space<vmem>>, %arg5: memref<4x8xbf16, #tpu.memory_space<vmem>>, %arg6: memref<1x16xf32, #tpu.memory_space<vmem>>, %arg7: memref<1x16xf32, #tpu.memory_space<vmem>>, %arg8: memref<1x24xf32, #tpu.memory_space<vmem>>, %arg9: memref<1x24xf32, #tpu.memory_space<vmem>>, %arg10: memref<1x16x16x32xf32, #tpu.memory_space<vmem>>, %arg11: memref<32x32x4xf32, #tpu.memory_space<vmem>>, %arg12: memref<32x32x4xf32, #tpu.memory_space<vmem>>, %arg13: memref<32x32x4xf32, #tpu.memory_space<vmem>>) attributes {dimension_semantics = [#tpu.dimension_semantics<parallel>], iteration_bounds = array<i64: 2>, scalar_prefetch = 0 : i64, scratch_operands = 3 : i64, tpu.core_type = #tpu.core_type<tc>, window_params = [{transform_indices = @transform_0, window_bounds = array<i64: 1, 16, 16, 4>}, {pipeline_mode = #tpu.pipeline_mode<synchronous>, transform_indices = @transform_1, window_bounds = array<i64: 4, 16>}, {pipeline_mode = #tpu.pipeline_mode<synchronous>, transform_indices = @transform_2, window_bounds = array<i64: 9, 4, 8>}, {pipeline_mode = #tpu.pipeline_mode<synchronous>, transform_indices = @transform_3, window_bounds = array<i64: 25, 4, 8>}, {pipeline_mode = #tpu.pipeline_mode<synchronous>, transform_indices = @transform_4, window_bounds = array<i64: 4, 8>}, {pipeline_mode = #tpu.pipeline_mode<synchronous>, transform_indices = @transform_5, window_bounds = array<i64: 1, 16>}, {pipeline_mode = #tpu.pipeline_mode<synchronous>, transform_indices = @transform_6, window_bounds = array<i64: 1, 16>}, {pipeline_mode = #tpu.pipeline_mode<synchronous>, transform_indices = @transform_7, window_bounds = array<i64: 1, 24>}, {pipeline_mode = #tpu.pipeline_mode<synchronous>, transform_indices = @transform_8, window_bounds = array<i64: 1, 24>}, {transform_indices = @transform_9, window_bounds = array<i64: 1, 16, 16, 32>}]} {
    %c0 = arith.constant 0 : index
    %c0_0 = arith.constant 0 : index
    %c0_1 = arith.constant 0 : index
    %c0_2 = arith.constant 0 : index
    %0 = vector.load %arg1[%c0, %c0_0, %c0_1, %c0_2] : memref<1x16x16x4xf32, #tpu.memory_space<vmem>>, vector<1x16x16x4xf32>
    %1 = vector.shape_cast %0 : vector<1x16x16x4xf32> to vector<16x16x4xf32>
    %2 = vector.shape_cast %1 : vector<16x16x4xf32> to vector<256x4xf32>
    %3 = arith.truncf %2 : vector<256x4xf32> to vector<256x4xbf16>
    %c0_3 = arith.constant 0 : index
    %c0_4 = arith.constant 0 : index
    %4 = vector.load %arg2[%c0_3, %c0_4] : memref<4x16xbf16, #tpu.memory_space<vmem>>, vector<4x16xbf16>
    %cst = arith.constant dense<0.000000e+00> : vector<256x16xf32>
    %5 = tpu.matmul %3, %4, %cst {dimension_numbers = #tpu.dot_dimension_numbers<[1], [0], [0], [1], [0, 0, 1, 1], [], []>} : vector<256x4xbf16>, vector<4x16xbf16>, vector<256x16xf32> -> vector<256x16xf32>
    %c0_5 = arith.constant 0 : index
    %c0_6 = arith.constant 0 : index
    %6 = vector.load %arg6[%c0_5, %c0_6] : memref<1x16xf32, #tpu.memory_space<vmem>>, vector<1x16xf32>
    %7 = vector.broadcast %6 : vector<1x16xf32> to vector<256x16xf32>
    %8 = arith.mulf %5, %7 : vector<256x16xf32>
    %c0_7 = arith.constant 0 : index
    %c0_8 = arith.constant 0 : index
    %9 = vector.load %arg7[%c0_7, %c0_8] : memref<1x16xf32, #tpu.memory_space<vmem>>, vector<1x16xf32>
    %10 = vector.broadcast %9 : vector<1x16xf32> to vector<256x16xf32>
    %11 = arith.addf %8, %10 : vector<256x16xf32>
    %cst_9 = arith.constant 0.000000e+00 : f32
    %12 = vector.broadcast %cst_9 : f32 to vector<256x16xf32>
    %13 = arith.maximumf %11, %12 : vector<256x16xf32>
    %14 = vector.extract_strided_slice %13 {offsets = [0, 0], sizes = [256, 8], strides = [1, 1]} : vector<256x16xf32> to vector<256x8xf32>
    %15 = vector.extract_strided_slice %13 {offsets = [0, 8], sizes = [256, 4], strides = [1, 1]} : vector<256x16xf32> to vector<256x4xf32>
    %16 = vector.extract_strided_slice %13 {offsets = [0, 12], sizes = [256, 4], strides = [1, 1]} : vector<256x16xf32> to vector<256x4xf32>
    %c0_10 = arith.constant 0 : index
    %c0_11 = arith.constant 0 : index
    %17 = vector.load %arg8[%c0_10, %c0_11] : memref<1x24xf32, #tpu.memory_space<vmem>>, vector<1x24xf32>
    %c0_12 = arith.constant 0 : index
    %c0_13 = arith.constant 0 : index
    %18 = vector.load %arg9[%c0_12, %c0_13] : memref<1x24xf32, #tpu.memory_space<vmem>>, vector<1x24xf32>
    %cst_14 = arith.constant 0.000000e+00 : f32
    %19 = vector.broadcast %cst_14 : f32 to vector<32x32x4xf32>
    %c0_15 = arith.constant 0 : index
    %c0_16 = arith.constant 0 : index
    %c0_17 = arith.constant 0 : index
    %20 = vector.load %arg11[%c0_15, %c0_16, %c0_17] : memref<32x32x4xf32, #tpu.memory_space<vmem>>, vector<32x32x4xf32>
    tpu.vector_store %arg11[%c0_15, %c0_16, %c0_17], %19 {strides = array<i32>} : memref<32x32x4xf32, #tpu.memory_space<vmem>>, vector<32x32x4xf32>,
    %21 = vector.shape_cast %15 : vector<256x4xf32> to vector<16x16x4xf32>
    %c8 = arith.constant 8 : index
    %c8_18 = arith.constant 8 : index
    %c0_19 = arith.constant 0 : index
    %22 = vector.load %arg11[%c8, %c8_18, %c0_19] : memref<32x32x4xf32, #tpu.memory_space<vmem>>, vector<16x16x4xf32>
    tpu.vector_store %arg11[%c8, %c8_18, %c0_19], %21 {strides = array<i32>} : memref<32x32x4xf32, #tpu.memory_space<vmem>>, vector<16x16x4xf32>,
    %cst_20 = arith.constant 0.000000e+00 : f32
    %23 = vector.broadcast %cst_20 : f32 to vector<256x8xf32>
    %c7 = arith.constant 7 : index
    %c7_21 = arith.constant 7 : index
    %c0_22 = arith.constant 0 : index
    %24 = vector.load %arg11[%c7, %c7_21, %c0_22] : memref<32x32x4xf32, #tpu.memory_space<vmem>>, vector<16x16x4xf32>
    %25 = vector.shape_cast %24 : vector<16x16x4xf32> to vector<256x4xf32>
    %26 = arith.truncf %25 : vector<256x4xf32> to vector<256x4xbf16>
    %c0_23 = arith.constant 0 : index
    %c0_24 = arith.constant 0 : index
    %c0_25 = arith.constant 0 : index
    %27 = vector.load %arg3[%c0_23, %c0_24, %c0_25] : memref<9x4x8xbf16, #tpu.memory_space<vmem>>, vector<1x4x8xbf16>
    %28 = vector.shape_cast %27 : vector<1x4x8xbf16> to vector<4x8xbf16>
    %cst_26 = arith.constant dense<0.000000e+00> : vector<256x8xf32>
    %29 = tpu.matmul %26, %28, %cst_26 {dimension_numbers = #tpu.dot_dimension_numbers<[1], [0], [0], [1], [0, 0, 1, 1], [], []>} : vector<256x4xbf16>, vector<4x8xbf16>, vector<256x8xf32> -> vector<256x8xf32>
    %30 = arith.addf %23, %29 : vector<256x8xf32>
    %c7_27 = arith.constant 7 : index
    %c8_28 = arith.constant 8 : index
    %c0_29 = arith.constant 0 : index
    %31 = vector.load %arg11[%c7_27, %c8_28, %c0_29] : memref<32x32x4xf32, #tpu.memory_space<vmem>>, vector<16x16x4xf32>
    %32 = vector.shape_cast %31 : vector<16x16x4xf32> to vector<256x4xf32>
    %33 = arith.truncf %32 : vector<256x4xf32> to vector<256x4xbf16>
    %c1 = arith.constant 1 : index
    %c0_30 = arith.constant 0 : index
    %c0_31 = arith.constant 0 : index
    %34 = vector.load %arg3[%c1, %c0_30, %c0_31] : memref<9x4x8xbf16, #tpu.memory_space<vmem>>, vector<1x4x8xbf16>
    %35 = vector.shape_cast %34 : vector<1x4x8xbf16> to vector<4x8xbf16>
    %cst_32 = arith.constant dense<0.000000e+00> : vector<256x8xf32>
    %36 = tpu.matmul %33, %35, %cst_32 {dimension_numbers = #tpu.dot_dimension_numbers<[1], [0], [0], [1], [0, 0, 1, 1], [], []>} : vector<256x4xbf16>, vector<4x8xbf16>, vector<256x8xf32> -> vector<256x8xf32>
    %37 = arith.addf %30, %36 : vector<256x8xf32>
    %c7_33 = arith.constant 7 : index
    %c9 = arith.constant 9 : index
    %c0_34 = arith.constant 0 : index
    %38 = vector.load %arg11[%c7_33, %c9, %c0_34] : memref<32x32x4xf32, #tpu.memory_space<vmem>>, vector<16x16x4xf32>
    %39 = vector.shape_cast %38 : vector<16x16x4xf32> to vector<256x4xf32>
    %40 = arith.truncf %39 : vector<256x4xf32> to vector<256x4xbf16>
    %c2 = arith.constant 2 : index
    %c0_35 = arith.constant 0 : index
    %c0_36 = arith.constant 0 : index
    %41 = vector.load %arg3[%c2, %c0_35, %c0_36] : memref<9x4x8xbf16, #tpu.memory_space<vmem>>, vector<1x4x8xbf16>
    %42 = vector.shape_cast %41 : vector<1x4x8xbf16> to vector<4x8xbf16>
    %cst_37 = arith.constant dense<0.000000e+00> : vector<256x8xf32>
    %43 = tpu.matmul %40, %42, %cst_37 {dimension_numbers = #tpu.dot_dimension_numbers<[1], [0], [0], [1], [0, 0, 1, 1], [], []>} : vector<256x4xbf16>, vector<4x8xbf16>, vector<256x8xf32> -> vector<256x8xf32>
    %44 = arith.addf %37, %43 : vector<256x8xf32>
    %c8_38 = arith.constant 8 : index
    %c7_39 = arith.constant 7 : index
    %c0_40 = arith.constant 0 : index
    %45 = vector.load %arg11[%c8_38, %c7_39, %c0_40] : memref<32x32x4xf32, #tpu.memory_space<vmem>>, vector<16x16x4xf32>
    %46 = vector.shape_cast %45 : vector<16x16x4xf32> to vector<256x4xf32>
    %47 = arith.truncf %46 : vector<256x4xf32> to vector<256x4xbf16>
    %c3 = arith.constant 3 : index
    %c0_41 = arith.constant 0 : index
    %c0_42 = arith.constant 0 : index
    %48 = vector.load %arg3[%c3, %c0_41, %c0_42] : memref<9x4x8xbf16, #tpu.memory_space<vmem>>, vector<1x4x8xbf16>
    %49 = vector.shape_cast %48 : vector<1x4x8xbf16> to vector<4x8xbf16>
    %cst_43 = arith.constant dense<0.000000e+00> : vector<256x8xf32>
    %50 = tpu.matmul %47, %49, %cst_43 {dimension_numbers = #tpu.dot_dimension_numbers<[1], [0], [0], [1], [0, 0, 1, 1], [], []>} : vector<256x4xbf16>, vector<4x8xbf16>, vector<256x8xf32> -> vector<256x8xf32>
    %51 = arith.addf %44, %50 : vector<256x8xf32>
    %c8_44 = arith.constant 8 : index
    %c8_45 = arith.constant 8 : index
    %c0_46 = arith.constant 0 : index
    %52 = vector.load %arg11[%c8_44, %c8_45, %c0_46] : memref<32x32x4xf32, #tpu.memory_space<vmem>>, vector<16x16x4xf32>
    %53 = vector.shape_cast %52 : vector<16x16x4xf32> to vector<256x4xf32>
    %54 = arith.truncf %53 : vector<256x4xf32> to vector<256x4xbf16>
    %c4 = arith.constant 4 : index
    %c0_47 = arith.constant 0 : index
    %c0_48 = arith.constant 0 : index
    %55 = vector.load %arg3[%c4, %c0_47, %c0_48] : memref<9x4x8xbf16, #tpu.memory_space<vmem>>, vector<1x4x8xbf16>
    %56 = vector.shape_cast %55 : vector<1x4x8xbf16> to vector<4x8xbf16>
    %cst_49 = arith.constant dense<0.000000e+00> : vector<256x8xf32>
    %57 = tpu.matmul %54, %56, %cst_49 {dimension_numbers = #tpu.dot_dimension_numbers<[1], [0], [0], [1], [0, 0, 1, 1], [], []>} : vector<256x4xbf16>, vector<4x8xbf16>, vector<256x8xf32> -> vector<256x8xf32>
    %58 = arith.addf %51, %57 : vector<256x8xf32>
    %c8_50 = arith.constant 8 : index
    %c9_51 = arith.constant 9 : index
    %c0_52 = arith.constant 0 : index
    %59 = vector.load %arg11[%c8_50, %c9_51, %c0_52] : memref<32x32x4xf32, #tpu.memory_space<vmem>>, vector<16x16x4xf32>
    %60 = vector.shape_cast %59 : vector<16x16x4xf32> to vector<256x4xf32>
    %61 = arith.truncf %60 : vector<256x4xf32> to vector<256x4xbf16>
    %c5 = arith.constant 5 : index
    %c0_53 = arith.constant 0 : index
    %c0_54 = arith.constant 0 : index
    %62 = vector.load %arg3[%c5, %c0_53, %c0_54] : memref<9x4x8xbf16, #tpu.memory_space<vmem>>, vector<1x4x8xbf16>
    %63 = vector.shape_cast %62 : vector<1x4x8xbf16> to vector<4x8xbf16>
    %cst_55 = arith.constant dense<0.000000e+00> : vector<256x8xf32>
    %64 = tpu.matmul %61, %63, %cst_55 {dimension_numbers = #tpu.dot_dimension_numbers<[1], [0], [0], [1], [0, 0, 1, 1], [], []>} : vector<256x4xbf16>, vector<4x8xbf16>, vector<256x8xf32> -> vector<256x8xf32>
    %65 = arith.addf %58, %64 : vector<256x8xf32>
    %c9_56 = arith.constant 9 : index
    %c7_57 = arith.constant 7 : index
    %c0_58 = arith.constant 0 : index
    %66 = vector.load %arg11[%c9_56, %c7_57, %c0_58] : memref<32x32x4xf32, #tpu.memory_space<vmem>>, vector<16x16x4xf32>
    %67 = vector.shape_cast %66 : vector<16x16x4xf32> to vector<256x4xf32>
    %68 = arith.truncf %67 : vector<256x4xf32> to vector<256x4xbf16>
    %c6 = arith.constant 6 : index
    %c0_59 = arith.constant 0 : index
    %c0_60 = arith.constant 0 : index
    %69 = vector.load %arg3[%c6, %c0_59, %c0_60] : memref<9x4x8xbf16, #tpu.memory_space<vmem>>, vector<1x4x8xbf16>
    %70 = vector.shape_cast %69 : vector<1x4x8xbf16> to vector<4x8xbf16>
    %cst_61 = arith.constant dense<0.000000e+00> : vector<256x8xf32>
    %71 = tpu.matmul %68, %70, %cst_61 {dimension_numbers = #tpu.dot_dimension_numbers<[1], [0], [0], [1], [0, 0, 1, 1], [], []>} : vector<256x4xbf16>, vector<4x8xbf16>, vector<256x8xf32> -> vector<256x8xf32>
    %72 = arith.addf %65, %71 : vector<256x8xf32>
    %c9_62 = arith.constant 9 : index
    %c8_63 = arith.constant 8 : index
    %c0_64 = arith.constant 0 : index
    %73 = vector.load %arg11[%c9_62, %c8_63, %c0_64] : memref<32x32x4xf32, #tpu.memory_space<vmem>>, vector<16x16x4xf32>
    %74 = vector.shape_cast %73 : vector<16x16x4xf32> to vector<256x4xf32>
    %75 = arith.truncf %74 : vector<256x4xf32> to vector<256x4xbf16>
    %c7_65 = arith.constant 7 : index
    %c0_66 = arith.constant 0 : index
    %c0_67 = arith.constant 0 : index
    %76 = vector.load %arg3[%c7_65, %c0_66, %c0_67] : memref<9x4x8xbf16, #tpu.memory_space<vmem>>, vector<1x4x8xbf16>
    %77 = vector.shape_cast %76 : vector<1x4x8xbf16> to vector<4x8xbf16>
    %cst_68 = arith.constant dense<0.000000e+00> : vector<256x8xf32>
    %78 = tpu.matmul %75, %77, %cst_68 {dimension_numbers = #tpu.dot_dimension_numbers<[1], [0], [0], [1], [0, 0, 1, 1], [], []>} : vector<256x4xbf16>, vector<4x8xbf16>, vector<256x8xf32> -> vector<256x8xf32>
    %79 = arith.addf %72, %78 : vector<256x8xf32>
    %c9_69 = arith.constant 9 : index
    %c9_70 = arith.constant 9 : index
    %c0_71 = arith.constant 0 : index
    %80 = vector.load %arg11[%c9_69, %c9_70, %c0_71] : memref<32x32x4xf32, #tpu.memory_space<vmem>>, vector<16x16x4xf32>
    %81 = vector.shape_cast %80 : vector<16x16x4xf32> to vector<256x4xf32>
    %82 = arith.truncf %81 : vector<256x4xf32> to vector<256x4xbf16>
    %c8_72 = arith.constant 8 : index
    %c0_73 = arith.constant 0 : index
    %c0_74 = arith.constant 0 : index
    %83 = vector.load %arg3[%c8_72, %c0_73, %c0_74] : memref<9x4x8xbf16, #tpu.memory_space<vmem>>, vector<1x4x8xbf16>
    %84 = vector.shape_cast %83 : vector<1x4x8xbf16> to vector<4x8xbf16>
    %cst_75 = arith.constant dense<0.000000e+00> : vector<256x8xf32>
    %85 = tpu.matmul %82, %84, %cst_75 {dimension_numbers = #tpu.dot_dimension_numbers<[1], [0], [0], [1], [0, 0, 1, 1], [], []>} : vector<256x4xbf16>, vector<4x8xbf16>, vector<256x8xf32> -> vector<256x8xf32>
    %86 = arith.addf %79, %85 : vector<256x8xf32>
    %87 = vector.extract_strided_slice %17 {offsets = [0, 0], sizes = [1, 8], strides = [1, 1]} : vector<1x24xf32> to vector<1x8xf32>
    %88 = vector.broadcast %87 : vector<1x8xf32> to vector<256x8xf32>
    %89 = arith.mulf %86, %88 : vector<256x8xf32>
    %90 = vector.extract_strided_slice %18 {offsets = [0, 0], sizes = [1, 8], strides = [1, 1]} : vector<1x24xf32> to vector<1x8xf32>
    %91 = vector.broadcast %90 : vector<1x8xf32> to vector<256x8xf32>
    %92 = arith.addf %89, %91 : vector<256x8xf32>
    %cst_76 = arith.constant 0.000000e+00 : f32
    %93 = vector.broadcast %cst_76 : f32 to vector<256x8xf32>
    %94 = arith.maximumf %92, %93 : vector<256x8xf32>
    %cst_77 = arith.constant 0.000000e+00 : f32
    %95 = vector.broadcast %cst_77 : f32 to vector<32x32x4xf32>
    %c0_78 = arith.constant 0 : index
    %c0_79 = arith.constant 0 : index
    %c0_80 = arith.constant 0 : index
    %96 = vector.load %arg12[%c0_78, %c0_79, %c0_80] : memref<32x32x4xf32, #tpu.memory_space<vmem>>, vector<32x32x4xf32>
    tpu.vector_store %arg12[%c0_78, %c0_79, %c0_80], %95 {strides = array<i32>} : memref<32x32x4xf32, #tpu.memory_space<vmem>>, vector<32x32x4xf32>,
    %97 = vector.shape_cast %16 : vector<256x4xf32> to vector<16x16x4xf32>
    %c8_81 = arith.constant 8 : index
    %c8_82 = arith.constant 8 : index
    %c0_83 = arith.constant 0 : index
    %98 = vector.load %arg12[%c8_81, %c8_82, %c0_83] : memref<32x32x4xf32, #tpu.memory_space<vmem>>, vector<16x16x4xf32>
    tpu.vector_store %arg12[%c8_81, %c8_82, %c0_83], %97 {strides = array<i32>} : memref<32x32x4xf32, #tpu.memory_space<vmem>>, vector<16x16x4xf32>,
    %cst_84 = arith.constant 0.000000e+00 : f32
    %99 = vector.broadcast %cst_84 : f32 to vector<256x8xf32>
    %c6_85 = arith.constant 6 : index
    %c6_86 = arith.constant 6 : index
    %c0_87 = arith.constant 0 : index
    %100 = vector.load %arg12[%c6_85, %c6_86, %c0_87] : memref<32x32x4xf32, #tpu.memory_space<vmem>>, vector<16x16x4xf32>
    %101 = vector.shape_cast %100 : vector<16x16x4xf32> to vector<256x4xf32>
    %102 = arith.truncf %101 : vector<256x4xf32> to vector<256x4xbf16>
    %c0_88 = arith.constant 0 : index
    %c0_89 = arith.constant 0 : index
    %c0_90 = arith.constant 0 : index
    %103 = vector.load %arg4[%c0_88, %c0_89, %c0_90] : memref<25x4x8xbf16, #tpu.memory_space<vmem>>, vector<1x4x8xbf16>
    %104 = vector.shape_cast %103 : vector<1x4x8xbf16> to vector<4x8xbf16>
    %cst_91 = arith.constant dense<0.000000e+00> : vector<256x8xf32>
    %105 = tpu.matmul %102, %104, %cst_91 {dimension_numbers = #tpu.dot_dimension_numbers<[1], [0], [0], [1], [0, 0, 1, 1], [], []>} : vector<256x4xbf16>, vector<4x8xbf16>, vector<256x8xf32> -> vector<256x8xf32>
    %106 = arith.addf %99, %105 : vector<256x8xf32>
    %c6_92 = arith.constant 6 : index
    %c7_93 = arith.constant 7 : index
    %c0_94 = arith.constant 0 : index
    %107 = vector.load %arg12[%c6_92, %c7_93, %c0_94] : memref<32x32x4xf32, #tpu.memory_space<vmem>>, vector<16x16x4xf32>
    %108 = vector.shape_cast %107 : vector<16x16x4xf32> to vector<256x4xf32>
    %109 = arith.truncf %108 : vector<256x4xf32> to vector<256x4xbf16>
    %c1_95 = arith.constant 1 : index
    %c0_96 = arith.constant 0 : index
    %c0_97 = arith.constant 0 : index
    %110 = vector.load %arg4[%c1_95, %c0_96, %c0_97] : memref<25x4x8xbf16, #tpu.memory_space<vmem>>, vector<1x4x8xbf16>
    %111 = vector.shape_cast %110 : vector<1x4x8xbf16> to vector<4x8xbf16>
    %cst_98 = arith.constant dense<0.000000e+00> : vector<256x8xf32>
    %112 = tpu.matmul %109, %111, %cst_98 {dimension_numbers = #tpu.dot_dimension_numbers<[1], [0], [0], [1], [0, 0, 1, 1], [], []>} : vector<256x4xbf16>, vector<4x8xbf16>, vector<256x8xf32> -> vector<256x8xf32>
    %113 = arith.addf %106, %112 : vector<256x8xf32>
    %c6_99 = arith.constant 6 : index
    %c8_100 = arith.constant 8 : index
    %c0_101 = arith.constant 0 : index
    %114 = vector.load %arg12[%c6_99, %c8_100, %c0_101] : memref<32x32x4xf32, #tpu.memory_space<vmem>>, vector<16x16x4xf32>
    %115 = vector.shape_cast %114 : vector<16x16x4xf32> to vector<256x4xf32>
    %116 = arith.truncf %115 : vector<256x4xf32> to vector<256x4xbf16>
    %c2_102 = arith.constant 2 : index
    %c0_103 = arith.constant 0 : index
    %c0_104 = arith.constant 0 : index
    %117 = vector.load %arg4[%c2_102, %c0_103, %c0_104] : memref<25x4x8xbf16, #tpu.memory_space<vmem>>, vector<1x4x8xbf16>
    %118 = vector.shape_cast %117 : vector<1x4x8xbf16> to vector<4x8xbf16>
    %cst_105 = arith.constant dense<0.000000e+00> : vector<256x8xf32>
    %119 = tpu.matmul %116, %118, %cst_105 {dimension_numbers = #tpu.dot_dimension_numbers<[1], [0], [0], [1], [0, 0, 1, 1], [], []>} : vector<256x4xbf16>, vector<4x8xbf16>, vector<256x8xf32> -> vector<256x8xf32>
    %120 = arith.addf %113, %119 : vector<256x8xf32>
    %c6_106 = arith.constant 6 : index
    %c9_107 = arith.constant 9 : index
    %c0_108 = arith.constant 0 : index
    %121 = vector.load %arg12[%c6_106, %c9_107, %c0_108] : memref<32x32x4xf32, #tpu.memory_space<vmem>>, vector<16x16x4xf32>
    %122 = vector.shape_cast %121 : vector<16x16x4xf32> to vector<256x4xf32>
    %123 = arith.truncf %122 : vector<256x4xf32> to vector<256x4xbf16>
    %c3_109 = arith.constant 3 : index
    %c0_110 = arith.constant 0 : index
    %c0_111 = arith.constant 0 : index
    %124 = vector.load %arg4[%c3_109, %c0_110, %c0_111] : memref<25x4x8xbf16, #tpu.memory_space<vmem>>, vector<1x4x8xbf16>
    %125 = vector.shape_cast %124 : vector<1x4x8xbf16> to vector<4x8xbf16>
    %cst_112 = arith.constant dense<0.000000e+00> : vector<256x8xf32>
    %126 = tpu.matmul %123, %125, %cst_112 {dimension_numbers = #tpu.dot_dimension_numbers<[1], [0], [0], [1], [0, 0, 1, 1], [], []>} : vector<256x4xbf16>, vector<4x8xbf16>, vector<256x8xf32> -> vector<256x8xf32>
    %127 = arith.addf %120, %126 : vector<256x8xf32>
    %c6_113 = arith.constant 6 : index
    %c10 = arith.constant 10 : index
    %c0_114 = arith.constant 0 : index
    %128 = vector.load %arg12[%c6_113, %c10, %c0_114] : memref<32x32x4xf32, #tpu.memory_space<vmem>>, vector<16x16x4xf32>
    %129 = vector.shape_cast %128 : vector<16x16x4xf32> to vector<256x4xf32>
    %130 = arith.truncf %129 : vector<256x4xf32> to vector<256x4xbf16>
    %c4_115 = arith.constant 4 : index
    %c0_116 = arith.constant 0 : index
    %c0_117 = arith.constant 0 : index
    %131 = vector.load %arg4[%c4_115, %c0_116, %c0_117] : memref<25x4x8xbf16, #tpu.memory_space<vmem>>, vector<1x4x8xbf16>
    %132 = vector.shape_cast %131 : vector<1x4x8xbf16> to vector<4x8xbf16>
    %cst_118 = arith.constant dense<0.000000e+00> : vector<256x8xf32>
    %133 = tpu.matmul %130, %132, %cst_118 {dimension_numbers = #tpu.dot_dimension_numbers<[1], [0], [0], [1], [0, 0, 1, 1], [], []>} : vector<256x4xbf16>, vector<4x8xbf16>, vector<256x8xf32> -> vector<256x8xf32>
    %134 = arith.addf %127, %133 : vector<256x8xf32>
    %c7_119 = arith.constant 7 : index
    %c6_120 = arith.constant 6 : index
    %c0_121 = arith.constant 0 : index
    %135 = vector.load %arg12[%c7_119, %c6_120, %c0_121] : memref<32x32x4xf32, #tpu.memory_space<vmem>>, vector<16x16x4xf32>
    %136 = vector.shape_cast %135 : vector<16x16x4xf32> to vector<256x4xf32>
    %137 = arith.truncf %136 : vector<256x4xf32> to vector<256x4xbf16>
    %c5_122 = arith.constant 5 : index
    %c0_123 = arith.constant 0 : index
    %c0_124 = arith.constant 0 : index
    %138 = vector.load %arg4[%c5_122, %c0_123, %c0_124] : memref<25x4x8xbf16, #tpu.memory_space<vmem>>, vector<1x4x8xbf16>
    %139 = vector.shape_cast %138 : vector<1x4x8xbf16> to vector<4x8xbf16>
    %cst_125 = arith.constant dense<0.000000e+00> : vector<256x8xf32>
    %140 = tpu.matmul %137, %139, %cst_125 {dimension_numbers = #tpu.dot_dimension_numbers<[1], [0], [0], [1], [0, 0, 1, 1], [], []>} : vector<256x4xbf16>, vector<4x8xbf16>, vector<256x8xf32> -> vector<256x8xf32>
    %141 = arith.addf %134, %140 : vector<256x8xf32>
    %c7_126 = arith.constant 7 : index
    %c7_127 = arith.constant 7 : index
    %c0_128 = arith.constant 0 : index
    %142 = vector.load %arg12[%c7_126, %c7_127, %c0_128] : memref<32x32x4xf32, #tpu.memory_space<vmem>>, vector<16x16x4xf32>
    %143 = vector.shape_cast %142 : vector<16x16x4xf32> to vector<256x4xf32>
    %144 = arith.truncf %143 : vector<256x4xf32> to vector<256x4xbf16>
    %c6_129 = arith.constant 6 : index
    %c0_130 = arith.constant 0 : index
    %c0_131 = arith.constant 0 : index
    %145 = vector.load %arg4[%c6_129, %c0_130, %c0_131] : memref<25x4x8xbf16, #tpu.memory_space<vmem>>, vector<1x4x8xbf16>
    %146 = vector.shape_cast %145 : vector<1x4x8xbf16> to vector<4x8xbf16>
    %cst_132 = arith.constant dense<0.000000e+00> : vector<256x8xf32>
    %147 = tpu.matmul %144, %146, %cst_132 {dimension_numbers = #tpu.dot_dimension_numbers<[1], [0], [0], [1], [0, 0, 1, 1], [], []>} : vector<256x4xbf16>, vector<4x8xbf16>, vector<256x8xf32> -> vector<256x8xf32>
    %148 = arith.addf %141, %147 : vector<256x8xf32>
    %c7_133 = arith.constant 7 : index
    %c8_134 = arith.constant 8 : index
    %c0_135 = arith.constant 0 : index
    %149 = vector.load %arg12[%c7_133, %c8_134, %c0_135] : memref<32x32x4xf32, #tpu.memory_space<vmem>>, vector<16x16x4xf32>
    %150 = vector.shape_cast %149 : vector<16x16x4xf32> to vector<256x4xf32>
    %151 = arith.truncf %150 : vector<256x4xf32> to vector<256x4xbf16>
    %c7_136 = arith.constant 7 : index
    %c0_137 = arith.constant 0 : index
    %c0_138 = arith.constant 0 : index
    %152 = vector.load %arg4[%c7_136, %c0_137, %c0_138] : memref<25x4x8xbf16, #tpu.memory_space<vmem>>, vector<1x4x8xbf16>
    %153 = vector.shape_cast %152 : vector<1x4x8xbf16> to vector<4x8xbf16>
    %cst_139 = arith.constant dense<0.000000e+00> : vector<256x8xf32>
    %154 = tpu.matmul %151, %153, %cst_139 {dimension_numbers = #tpu.dot_dimension_numbers<[1], [0], [0], [1], [0, 0, 1, 1], [], []>} : vector<256x4xbf16>, vector<4x8xbf16>, vector<256x8xf32> -> vector<256x8xf32>
    %155 = arith.addf %148, %154 : vector<256x8xf32>
    %c7_140 = arith.constant 7 : index
    %c9_141 = arith.constant 9 : index
    %c0_142 = arith.constant 0 : index
    %156 = vector.load %arg12[%c7_140, %c9_141, %c0_142] : memref<32x32x4xf32, #tpu.memory_space<vmem>>, vector<16x16x4xf32>
    %157 = vector.shape_cast %156 : vector<16x16x4xf32> to vector<256x4xf32>
    %158 = arith.truncf %157 : vector<256x4xf32> to vector<256x4xbf16>
    %c8_143 = arith.constant 8 : index
    %c0_144 = arith.constant 0 : index
    %c0_145 = arith.constant 0 : index
    %159 = vector.load %arg4[%c8_143, %c0_144, %c0_145] : memref<25x4x8xbf16, #tpu.memory_space<vmem>>, vector<1x4x8xbf16>
    %160 = vector.shape_cast %159 : vector<1x4x8xbf16> to vector<4x8xbf16>
    %cst_146 = arith.constant dense<0.000000e+00> : vector<256x8xf32>
    %161 = tpu.matmul %158, %160, %cst_146 {dimension_numbers = #tpu.dot_dimension_numbers<[1], [0], [0], [1], [0, 0, 1, 1], [], []>} : vector<256x4xbf16>, vector<4x8xbf16>, vector<256x8xf32> -> vector<256x8xf32>
    %162 = arith.addf %155, %161 : vector<256x8xf32>
    %c7_147 = arith.constant 7 : index
    %c10_148 = arith.constant 10 : index
    %c0_149 = arith.constant 0 : index
    %163 = vector.load %arg12[%c7_147, %c10_148, %c0_149] : memref<32x32x4xf32, #tpu.memory_space<vmem>>, vector<16x16x4xf32>
    %164 = vector.shape_cast %163 : vector<16x16x4xf32> to vector<256x4xf32>
    %165 = arith.truncf %164 : vector<256x4xf32> to vector<256x4xbf16>
    %c9_150 = arith.constant 9 : index
    %c0_151 = arith.constant 0 : index
    %c0_152 = arith.constant 0 : index
    %166 = vector.load %arg4[%c9_150, %c0_151, %c0_152] : memref<25x4x8xbf16, #tpu.memory_space<vmem>>, vector<1x4x8xbf16>
    %167 = vector.shape_cast %166 : vector<1x4x8xbf16> to vector<4x8xbf16>
    %cst_153 = arith.constant dense<0.000000e+00> : vector<256x8xf32>
    %168 = tpu.matmul %165, %167, %cst_153 {dimension_numbers = #tpu.dot_dimension_numbers<[1], [0], [0], [1], [0, 0, 1, 1], [], []>} : vector<256x4xbf16>, vector<4x8xbf16>, vector<256x8xf32> -> vector<256x8xf32>
    %169 = arith.addf %162, %168 : vector<256x8xf32>
    %c8_154 = arith.constant 8 : index
    %c6_155 = arith.constant 6 : index
    %c0_156 = arith.constant 0 : index
    %170 = vector.load %arg12[%c8_154, %c6_155, %c0_156] : memref<32x32x4xf32, #tpu.memory_space<vmem>>, vector<16x16x4xf32>
    %171 = vector.shape_cast %170 : vector<16x16x4xf32> to vector<256x4xf32>
    %172 = arith.truncf %171 : vector<256x4xf32> to vector<256x4xbf16>
    %c10_157 = arith.constant 10 : index
    %c0_158 = arith.constant 0 : index
    %c0_159 = arith.constant 0 : index
    %173 = vector.load %arg4[%c10_157, %c0_158, %c0_159] : memref<25x4x8xbf16, #tpu.memory_space<vmem>>, vector<1x4x8xbf16>
    %174 = vector.shape_cast %173 : vector<1x4x8xbf16> to vector<4x8xbf16>
    %cst_160 = arith.constant dense<0.000000e+00> : vector<256x8xf32>
    %175 = tpu.matmul %172, %174, %cst_160 {dimension_numbers = #tpu.dot_dimension_numbers<[1], [0], [0], [1], [0, 0, 1, 1], [], []>} : vector<256x4xbf16>, vector<4x8xbf16>, vector<256x8xf32> -> vector<256x8xf32>
    %176 = arith.addf %169, %175 : vector<256x8xf32>
    %c8_161 = arith.constant 8 : index
    %c7_162 = arith.constant 7 : index
    %c0_163 = arith.constant 0 : index
    %177 = vector.load %arg12[%c8_161, %c7_162, %c0_163] : memref<32x32x4xf32, #tpu.memory_space<vmem>>, vector<16x16x4xf32>
    %178 = vector.shape_cast %177 : vector<16x16x4xf32> to vector<256x4xf32>
    %179 = arith.truncf %178 : vector<256x4xf32> to vector<256x4xbf16>
    %c11 = arith.constant 11 : index
    %c0_164 = arith.constant 0 : index
    %c0_165 = arith.constant 0 : index
    %180 = vector.load %arg4[%c11, %c0_164, %c0_165] : memref<25x4x8xbf16, #tpu.memory_space<vmem>>, vector<1x4x8xbf16>
    %181 = vector.shape_cast %180 : vector<1x4x8xbf16> to vector<4x8xbf16>
    %cst_166 = arith.constant dense<0.000000e+00> : vector<256x8xf32>
    %182 = tpu.matmul %179, %181, %cst_166 {dimension_numbers = #tpu.dot_dimension_numbers<[1], [0], [0], [1], [0, 0, 1, 1], [], []>} : vector<256x4xbf16>, vector<4x8xbf16>, vector<256x8xf32> -> vector<256x8xf32>
    %183 = arith.addf %176, %182 : vector<256x8xf32>
    %c8_167 = arith.constant 8 : index
    %c8_168 = arith.constant 8 : index
    %c0_169 = arith.constant 0 : index
    %184 = vector.load %arg12[%c8_167, %c8_168, %c0_169] : memref<32x32x4xf32, #tpu.memory_space<vmem>>, vector<16x16x4xf32>
    %185 = vector.shape_cast %184 : vector<16x16x4xf32> to vector<256x4xf32>
    %186 = arith.truncf %185 : vector<256x4xf32> to vector<256x4xbf16>
    %c12 = arith.constant 12 : index
    %c0_170 = arith.constant 0 : index
    %c0_171 = arith.constant 0 : index
    %187 = vector.load %arg4[%c12, %c0_170, %c0_171] : memref<25x4x8xbf16, #tpu.memory_space<vmem>>, vector<1x4x8xbf16>
    %188 = vector.shape_cast %187 : vector<1x4x8xbf16> to vector<4x8xbf16>
    %cst_172 = arith.constant dense<0.000000e+00> : vector<256x8xf32>
    %189 = tpu.matmul %186, %188, %cst_172 {dimension_numbers = #tpu.dot_dimension_numbers<[1], [0], [0], [1], [0, 0, 1, 1], [], []>} : vector<256x4xbf16>, vector<4x8xbf16>, vector<256x8xf32> -> vector<256x8xf32>
    %190 = arith.addf %183, %189 : vector<256x8xf32>
    %c8_173 = arith.constant 8 : index
    %c9_174 = arith.constant 9 : index
    %c0_175 = arith.constant 0 : index
    %191 = vector.load %arg12[%c8_173, %c9_174, %c0_175] : memref<32x32x4xf32, #tpu.memory_space<vmem>>, vector<16x16x4xf32>
    %192 = vector.shape_cast %191 : vector<16x16x4xf32> to vector<256x4xf32>
    %193 = arith.truncf %192 : vector<256x4xf32> to vector<256x4xbf16>
    %c13 = arith.constant 13 : index
    %c0_176 = arith.constant 0 : index
    %c0_177 = arith.constant 0 : index
    %194 = vector.load %arg4[%c13, %c0_176, %c0_177] : memref<25x4x8xbf16, #tpu.memory_space<vmem>>, vector<1x4x8xbf16>
    %195 = vector.shape_cast %194 : vector<1x4x8xbf16> to vector<4x8xbf16>
    %cst_178 = arith.constant dense<0.000000e+00> : vector<256x8xf32>
    %196 = tpu.matmul %193, %195, %cst_178 {dimension_numbers = #tpu.dot_dimension_numbers<[1], [0], [0], [1], [0, 0, 1, 1], [], []>} : vector<256x4xbf16>, vector<4x8xbf16>, vector<256x8xf32> -> vector<256x8xf32>
    %197 = arith.addf %190, %196 : vector<256x8xf32>
    %c8_179 = arith.constant 8 : index
    %c10_180 = arith.constant 10 : index
    %c0_181 = arith.constant 0 : index
    %198 = vector.load %arg12[%c8_179, %c10_180, %c0_181] : memref<32x32x4xf32, #tpu.memory_space<vmem>>, vector<16x16x4xf32>
    %199 = vector.shape_cast %198 : vector<16x16x4xf32> to vector<256x4xf32>
    %200 = arith.truncf %199 : vector<256x4xf32> to vector<256x4xbf16>
    %c14 = arith.constant 14 : index
    %c0_182 = arith.constant 0 : index
    %c0_183 = arith.constant 0 : index
    %201 = vector.load %arg4[%c14, %c0_182, %c0_183] : memref<25x4x8xbf16, #tpu.memory_space<vmem>>, vector<1x4x8xbf16>
    %202 = vector.shape_cast %201 : vector<1x4x8xbf16> to vector<4x8xbf16>
    %cst_184 = arith.constant dense<0.000000e+00> : vector<256x8xf32>
    %203 = tpu.matmul %200, %202, %cst_184 {dimension_numbers = #tpu.dot_dimension_numbers<[1], [0], [0], [1], [0, 0, 1, 1], [], []>} : vector<256x4xbf16>, vector<4x8xbf16>, vector<256x8xf32> -> vector<256x8xf32>
    %204 = arith.addf %197, %203 : vector<256x8xf32>
    %c9_185 = arith.constant 9 : index
    %c6_186 = arith.constant 6 : index
    %c0_187 = arith.constant 0 : index
    %205 = vector.load %arg12[%c9_185, %c6_186, %c0_187] : memref<32x32x4xf32, #tpu.memory_space<vmem>>, vector<16x16x4xf32>
    %206 = vector.shape_cast %205 : vector<16x16x4xf32> to vector<256x4xf32>
    %207 = arith.truncf %206 : vector<256x4xf32> to vector<256x4xbf16>
    %c15 = arith.constant 15 : index
    %c0_188 = arith.constant 0 : index
    %c0_189 = arith.constant 0 : index
    %208 = vector.load %arg4[%c15, %c0_188, %c0_189] : memref<25x4x8xbf16, #tpu.memory_space<vmem>>, vector<1x4x8xbf16>
    %209 = vector.shape_cast %208 : vector<1x4x8xbf16> to vector<4x8xbf16>
    %cst_190 = arith.constant dense<0.000000e+00> : vector<256x8xf32>
    %210 = tpu.matmul %207, %209, %cst_190 {dimension_numbers = #tpu.dot_dimension_numbers<[1], [0], [0], [1], [0, 0, 1, 1], [], []>} : vector<256x4xbf16>, vector<4x8xbf16>, vector<256x8xf32> -> vector<256x8xf32>
    %211 = arith.addf %204, %210 : vector<256x8xf32>
    %c9_191 = arith.constant 9 : index
    %c7_192 = arith.constant 7 : index
    %c0_193 = arith.constant 0 : index
    %212 = vector.load %arg12[%c9_191, %c7_192, %c0_193] : memref<32x32x4xf32, #tpu.memory_space<vmem>>, vector<16x16x4xf32>
    %213 = vector.shape_cast %212 : vector<16x16x4xf32> to vector<256x4xf32>
    %214 = arith.truncf %213 : vector<256x4xf32> to vector<256x4xbf16>
    %c16 = arith.constant 16 : index
    %c0_194 = arith.constant 0 : index
    %c0_195 = arith.constant 0 : index
    %215 = vector.load %arg4[%c16, %c0_194, %c0_195] : memref<25x4x8xbf16, #tpu.memory_space<vmem>>, vector<1x4x8xbf16>
    %216 = vector.shape_cast %215 : vector<1x4x8xbf16> to vector<4x8xbf16>
    %cst_196 = arith.constant dense<0.000000e+00> : vector<256x8xf32>
    %217 = tpu.matmul %214, %216, %cst_196 {dimension_numbers = #tpu.dot_dimension_numbers<[1], [0], [0], [1], [0, 0, 1, 1], [], []>} : vector<256x4xbf16>, vector<4x8xbf16>, vector<256x8xf32> -> vector<256x8xf32>
    %218 = arith.addf %211, %217 : vector<256x8xf32>
    %c9_197 = arith.constant 9 : index
    %c8_198 = arith.constant 8 : index
    %c0_199 = arith.constant 0 : index
    %219 = vector.load %arg12[%c9_197, %c8_198, %c0_199] : memref<32x32x4xf32, #tpu.memory_space<vmem>>, vector<16x16x4xf32>
    %220 = vector.shape_cast %219 : vector<16x16x4xf32> to vector<256x4xf32>
    %221 = arith.truncf %220 : vector<256x4xf32> to vector<256x4xbf16>
    %c17 = arith.constant 17 : index
    %c0_200 = arith.constant 0 : index
    %c0_201 = arith.constant 0 : index
    %222 = vector.load %arg4[%c17, %c0_200, %c0_201] : memref<25x4x8xbf16, #tpu.memory_space<vmem>>, vector<1x4x8xbf16>
    %223 = vector.shape_cast %222 : vector<1x4x8xbf16> to vector<4x8xbf16>
    %cst_202 = arith.constant dense<0.000000e+00> : vector<256x8xf32>
    %224 = tpu.matmul %221, %223, %cst_202 {dimension_numbers = #tpu.dot_dimension_numbers<[1], [0], [0], [1], [0, 0, 1, 1], [], []>} : vector<256x4xbf16>, vector<4x8xbf16>, vector<256x8xf32> -> vector<256x8xf32>
    %225 = arith.addf %218, %224 : vector<256x8xf32>
    %c9_203 = arith.constant 9 : index
    %c9_204 = arith.constant 9 : index
    %c0_205 = arith.constant 0 : index
    %226 = vector.load %arg12[%c9_203, %c9_204, %c0_205] : memref<32x32x4xf32, #tpu.memory_space<vmem>>, vector<16x16x4xf32>
    %227 = vector.shape_cast %226 : vector<16x16x4xf32> to vector<256x4xf32>
    %228 = arith.truncf %227 : vector<256x4xf32> to vector<256x4xbf16>
    %c18 = arith.constant 18 : index
    %c0_206 = arith.constant 0 : index
    %c0_207 = arith.constant 0 : index
    %229 = vector.load %arg4[%c18, %c0_206, %c0_207] : memref<25x4x8xbf16, #tpu.memory_space<vmem>>, vector<1x4x8xbf16>
    %230 = vector.shape_cast %229 : vector<1x4x8xbf16> to vector<4x8xbf16>
    %cst_208 = arith.constant dense<0.000000e+00> : vector<256x8xf32>
    %231 = tpu.matmul %228, %230, %cst_208 {dimension_numbers = #tpu.dot_dimension_numbers<[1], [0], [0], [1], [0, 0, 1, 1], [], []>} : vector<256x4xbf16>, vector<4x8xbf16>, vector<256x8xf32> -> vector<256x8xf32>
    %232 = arith.addf %225, %231 : vector<256x8xf32>
    %c9_209 = arith.constant 9 : index
    %c10_210 = arith.constant 10 : index
    %c0_211 = arith.constant 0 : index
    %233 = vector.load %arg12[%c9_209, %c10_210, %c0_211] : memref<32x32x4xf32, #tpu.memory_space<vmem>>, vector<16x16x4xf32>
    %234 = vector.shape_cast %233 : vector<16x16x4xf32> to vector<256x4xf32>
    %235 = arith.truncf %234 : vector<256x4xf32> to vector<256x4xbf16>
    %c19 = arith.constant 19 : index
    %c0_212 = arith.constant 0 : index
    %c0_213 = arith.constant 0 : index
    %236 = vector.load %arg4[%c19, %c0_212, %c0_213] : memref<25x4x8xbf16, #tpu.memory_space<vmem>>, vector<1x4x8xbf16>
    %237 = vector.shape_cast %236 : vector<1x4x8xbf16> to vector<4x8xbf16>
    %cst_214 = arith.constant dense<0.000000e+00> : vector<256x8xf32>
    %238 = tpu.matmul %235, %237, %cst_214 {dimension_numbers = #tpu.dot_dimension_numbers<[1], [0], [0], [1], [0, 0, 1, 1], [], []>} : vector<256x4xbf16>, vector<4x8xbf16>, vector<256x8xf32> -> vector<256x8xf32>
    %239 = arith.addf %232, %238 : vector<256x8xf32>
    %c10_215 = arith.constant 10 : index
    %c6_216 = arith.constant 6 : index
    %c0_217 = arith.constant 0 : index
    %240 = vector.load %arg12[%c10_215, %c6_216, %c0_217] : memref<32x32x4xf32, #tpu.memory_space<vmem>>, vector<16x16x4xf32>
    %241 = vector.shape_cast %240 : vector<16x16x4xf32> to vector<256x4xf32>
    %242 = arith.truncf %241 : vector<256x4xf32> to vector<256x4xbf16>
    %c20 = arith.constant 20 : index
    %c0_218 = arith.constant 0 : index
    %c0_219 = arith.constant 0 : index
    %243 = vector.load %arg4[%c20, %c0_218, %c0_219] : memref<25x4x8xbf16, #tpu.memory_space<vmem>>, vector<1x4x8xbf16>
    %244 = vector.shape_cast %243 : vector<1x4x8xbf16> to vector<4x8xbf16>
    %cst_220 = arith.constant dense<0.000000e+00> : vector<256x8xf32>
    %245 = tpu.matmul %242, %244, %cst_220 {dimension_numbers = #tpu.dot_dimension_numbers<[1], [0], [0], [1], [0, 0, 1, 1], [], []>} : vector<256x4xbf16>, vector<4x8xbf16>, vector<256x8xf32> -> vector<256x8xf32>
    %246 = arith.addf %239, %245 : vector<256x8xf32>
    %c10_221 = arith.constant 10 : index
    %c7_222 = arith.constant 7 : index
    %c0_223 = arith.constant 0 : index
    %247 = vector.load %arg12[%c10_221, %c7_222, %c0_223] : memref<32x32x4xf32, #tpu.memory_space<vmem>>, vector<16x16x4xf32>
    %248 = vector.shape_cast %247 : vector<16x16x4xf32> to vector<256x4xf32>
    %249 = arith.truncf %248 : vector<256x4xf32> to vector<256x4xbf16>
    %c21 = arith.constant 21 : index
    %c0_224 = arith.constant 0 : index
    %c0_225 = arith.constant 0 : index
    %250 = vector.load %arg4[%c21, %c0_224, %c0_225] : memref<25x4x8xbf16, #tpu.memory_space<vmem>>, vector<1x4x8xbf16>
    %251 = vector.shape_cast %250 : vector<1x4x8xbf16> to vector<4x8xbf16>
    %cst_226 = arith.constant dense<0.000000e+00> : vector<256x8xf32>
    %252 = tpu.matmul %249, %251, %cst_226 {dimension_numbers = #tpu.dot_dimension_numbers<[1], [0], [0], [1], [0, 0, 1, 1], [], []>} : vector<256x4xbf16>, vector<4x8xbf16>, vector<256x8xf32> -> vector<256x8xf32>
    %253 = arith.addf %246, %252 : vector<256x8xf32>
    %c10_227 = arith.constant 10 : index
    %c8_228 = arith.constant 8 : index
    %c0_229 = arith.constant 0 : index
    %254 = vector.load %arg12[%c10_227, %c8_228, %c0_229] : memref<32x32x4xf32, #tpu.memory_space<vmem>>, vector<16x16x4xf32>
    %255 = vector.shape_cast %254 : vector<16x16x4xf32> to vector<256x4xf32>
    %256 = arith.truncf %255 : vector<256x4xf32> to vector<256x4xbf16>
    %c22 = arith.constant 22 : index
    %c0_230 = arith.constant 0 : index
    %c0_231 = arith.constant 0 : index
    %257 = vector.load %arg4[%c22, %c0_230, %c0_231] : memref<25x4x8xbf16, #tpu.memory_space<vmem>>, vector<1x4x8xbf16>
    %258 = vector.shape_cast %257 : vector<1x4x8xbf16> to vector<4x8xbf16>
    %cst_232 = arith.constant dense<0.000000e+00> : vector<256x8xf32>
    %259 = tpu.matmul %256, %258, %cst_232 {dimension_numbers = #tpu.dot_dimension_numbers<[1], [0], [0], [1], [0, 0, 1, 1], [], []>} : vector<256x4xbf16>, vector<4x8xbf16>, vector<256x8xf32> -> vector<256x8xf32>
    %260 = arith.addf %253, %259 : vector<256x8xf32>
    %c10_233 = arith.constant 10 : index
    %c9_234 = arith.constant 9 : index
    %c0_235 = arith.constant 0 : index
    %261 = vector.load %arg12[%c10_233, %c9_234, %c0_235] : memref<32x32x4xf32, #tpu.memory_space<vmem>>, vector<16x16x4xf32>
    %262 = vector.shape_cast %261 : vector<16x16x4xf32> to vector<256x4xf32>
    %263 = arith.truncf %262 : vector<256x4xf32> to vector<256x4xbf16>
    %c23 = arith.constant 23 : index
    %c0_236 = arith.constant 0 : index
    %c0_237 = arith.constant 0 : index
    %264 = vector.load %arg4[%c23, %c0_236, %c0_237] : memref<25x4x8xbf16, #tpu.memory_space<vmem>>, vector<1x4x8xbf16>
    %265 = vector.shape_cast %264 : vector<1x4x8xbf16> to vector<4x8xbf16>
    %cst_238 = arith.constant dense<0.000000e+00> : vector<256x8xf32>
    %266 = tpu.matmul %263, %265, %cst_238 {dimension_numbers = #tpu.dot_dimension_numbers<[1], [0], [0], [1], [0, 0, 1, 1], [], []>} : vector<256x4xbf16>, vector<4x8xbf16>, vector<256x8xf32> -> vector<256x8xf32>
    %267 = arith.addf %260, %266 : vector<256x8xf32>
    %c10_239 = arith.constant 10 : index
    %c10_240 = arith.constant 10 : index
    %c0_241 = arith.constant 0 : index
    %268 = vector.load %arg12[%c10_239, %c10_240, %c0_241] : memref<32x32x4xf32, #tpu.memory_space<vmem>>, vector<16x16x4xf32>
    %269 = vector.shape_cast %268 : vector<16x16x4xf32> to vector<256x4xf32>
    %270 = arith.truncf %269 : vector<256x4xf32> to vector<256x4xbf16>
    %c24 = arith.constant 24 : index
    %c0_242 = arith.constant 0 : index
    %c0_243 = arith.constant 0 : index
    %271 = vector.load %arg4[%c24, %c0_242, %c0_243] : memref<25x4x8xbf16, #tpu.memory_space<vmem>>, vector<1x4x8xbf16>
    %272 = vector.shape_cast %271 : vector<1x4x8xbf16> to vector<4x8xbf16>
    %cst_244 = arith.constant dense<0.000000e+00> : vector<256x8xf32>
    %273 = tpu.matmul %270, %272, %cst_244 {dimension_numbers = #tpu.dot_dimension_numbers<[1], [0], [0], [1], [0, 0, 1, 1], [], []>} : vector<256x4xbf16>, vector<4x8xbf16>, vector<256x8xf32> -> vector<256x8xf32>
    %274 = arith.addf %267, %273 : vector<256x8xf32>
    %275 = vector.extract_strided_slice %17 {offsets = [0, 8], sizes = [1, 8], strides = [1, 1]} : vector<1x24xf32> to vector<1x8xf32>
    %276 = vector.broadcast %275 : vector<1x8xf32> to vector<256x8xf32>
    %277 = arith.mulf %274, %276 : vector<256x8xf32>
    %278 = vector.extract_strided_slice %18 {offsets = [0, 8], sizes = [1, 8], strides = [1, 1]} : vector<1x24xf32> to vector<1x8xf32>
    %279 = vector.broadcast %278 : vector<1x8xf32> to vector<256x8xf32>
    %280 = arith.addf %277, %279 : vector<256x8xf32>
    %cst_245 = arith.constant 0.000000e+00 : f32
    %281 = vector.broadcast %cst_245 : f32 to vector<256x8xf32>
    %282 = arith.maximumf %280, %281 : vector<256x8xf32>
    %cst_246 = arith.constant 0xFF800000 : f32
    %283 = vector.broadcast %cst_246 : f32 to vector<32x32x4xf32>
    %c0_247 = arith.constant 0 : index
    %c0_248 = arith.constant 0 : index
    %c0_249 = arith.constant 0 : index
    %284 = vector.load %arg13[%c0_247, %c0_248, %c0_249] : memref<32x32x4xf32, #tpu.memory_space<vmem>>, vector<32x32x4xf32>
    tpu.vector_store %arg13[%c0_247, %c0_248, %c0_249], %283 {strides = array<i32>} : memref<32x32x4xf32, #tpu.memory_space<vmem>>, vector<32x32x4xf32>,
    %c8_250 = arith.constant 8 : index
    %c8_251 = arith.constant 8 : index
    %c0_252 = arith.constant 0 : index
    %285 = vector.load %arg13[%c8_250, %c8_251, %c0_252] : memref<32x32x4xf32, #tpu.memory_space<vmem>>, vector<16x16x4xf32>
    tpu.vector_store %arg13[%c8_250, %c8_251, %c0_252], %1 {strides = array<i32>} : memref<32x32x4xf32, #tpu.memory_space<vmem>>, vector<16x16x4xf32>,
    %cst_253 = arith.constant 0xFF800000 : f32
    %286 = vector.broadcast %cst_253 : f32 to vector<16x16x4xf32>
    %c7_254 = arith.constant 7 : index
    %c7_255 = arith.constant 7 : index
    %c0_256 = arith.constant 0 : index
    %287 = vector.load %arg13[%c7_254, %c7_255, %c0_256] : memref<32x32x4xf32, #tpu.memory_space<vmem>>, vector<16x16x4xf32>
    %288 = arith.maximumf %286, %287 : vector<16x16x4xf32>
    %c7_257 = arith.constant 7 : index
    %c8_258 = arith.constant 8 : index
    %c0_259 = arith.constant 0 : index
    %289 = vector.load %arg13[%c7_257, %c8_258, %c0_259] : memref<32x32x4xf32, #tpu.memory_space<vmem>>, vector<16x16x4xf32>
    %290 = arith.maximumf %288, %289 : vector<16x16x4xf32>
    %c7_260 = arith.constant 7 : index
    %c9_261 = arith.constant 9 : index
    %c0_262 = arith.constant 0 : index
    %291 = vector.load %arg13[%c7_260, %c9_261, %c0_262] : memref<32x32x4xf32, #tpu.memory_space<vmem>>, vector<16x16x4xf32>
    %292 = arith.maximumf %290, %291 : vector<16x16x4xf32>
    %c8_263 = arith.constant 8 : index
    %c7_264 = arith.constant 7 : index
    %c0_265 = arith.constant 0 : index
    %293 = vector.load %arg13[%c8_263, %c7_264, %c0_265] : memref<32x32x4xf32, #tpu.memory_space<vmem>>, vector<16x16x4xf32>
    %294 = arith.maximumf %292, %293 : vector<16x16x4xf32>
    %c8_266 = arith.constant 8 : index
    %c8_267 = arith.constant 8 : index
    %c0_268 = arith.constant 0 : index
    %295 = vector.load %arg13[%c8_266, %c8_267, %c0_268] : memref<32x32x4xf32, #tpu.memory_space<vmem>>, vector<16x16x4xf32>
    %296 = arith.maximumf %294, %295 : vector<16x16x4xf32>
    %c8_269 = arith.constant 8 : index
    %c9_270 = arith.constant 9 : index
    %c0_271 = arith.constant 0 : index
    %297 = vector.load %arg13[%c8_269, %c9_270, %c0_271] : memref<32x32x4xf32, #tpu.memory_space<vmem>>, vector<16x16x4xf32>
    %298 = arith.maximumf %296, %297 : vector<16x16x4xf32>
    %c9_272 = arith.constant 9 : index
    %c7_273 = arith.constant 7 : index
    %c0_274 = arith.constant 0 : index
    %299 = vector.load %arg13[%c9_272, %c7_273, %c0_274] : memref<32x32x4xf32, #tpu.memory_space<vmem>>, vector<16x16x4xf32>
    %300 = arith.maximumf %298, %299 : vector<16x16x4xf32>
    %c9_275 = arith.constant 9 : index
    %c8_276 = arith.constant 8 : index
    %c0_277 = arith.constant 0 : index
    %301 = vector.load %arg13[%c9_275, %c8_276, %c0_277] : memref<32x32x4xf32, #tpu.memory_space<vmem>>, vector<16x16x4xf32>
    %302 = arith.maximumf %300, %301 : vector<16x16x4xf32>
    %c9_278 = arith.constant 9 : index
    %c9_279 = arith.constant 9 : index
    %c0_280 = arith.constant 0 : index
    %303 = vector.load %arg13[%c9_278, %c9_279, %c0_280] : memref<32x32x4xf32, #tpu.memory_space<vmem>>, vector<16x16x4xf32>
    %304 = arith.maximumf %302, %303 : vector<16x16x4xf32>
    %305 = vector.shape_cast %304 : vector<16x16x4xf32> to vector<256x4xf32>
    %306 = arith.truncf %305 : vector<256x4xf32> to vector<256x4xbf16>
    %c0_281 = arith.constant 0 : index
    %c0_282 = arith.constant 0 : index
    %307 = vector.load %arg5[%c0_281, %c0_282] : memref<4x8xbf16, #tpu.memory_space<vmem>>, vector<4x8xbf16>
    %cst_283 = arith.constant dense<0.000000e+00> : vector<256x8xf32>
    %308 = tpu.matmul %306, %307, %cst_283 {dimension_numbers = #tpu.dot_dimension_numbers<[1], [0], [0], [1], [0, 0, 1, 1], [], []>} : vector<256x4xbf16>, vector<4x8xbf16>, vector<256x8xf32> -> vector<256x8xf32>
    %309 = vector.extract_strided_slice %17 {offsets = [0, 16], sizes = [1, 8], strides = [1, 1]} : vector<1x24xf32> to vector<1x8xf32>
    %310 = vector.broadcast %309 : vector<1x8xf32> to vector<256x8xf32>
    %311 = arith.mulf %308, %310 : vector<256x8xf32>
    %312 = vector.extract_strided_slice %18 {offsets = [0, 16], sizes = [1, 8], strides = [1, 1]} : vector<1x24xf32> to vector<1x8xf32>
    %313 = vector.broadcast %312 : vector<1x8xf32> to vector<256x8xf32>
    %314 = arith.addf %311, %313 : vector<256x8xf32>
    %cst_284 = arith.constant 0.000000e+00 : f32
    %315 = vector.broadcast %cst_284 : f32 to vector<256x8xf32>
    %316 = arith.maximumf %314, %315 : vector<256x8xf32>
    %317 = tpu.concatenate %14, %94, %282, %316 in 1 : vector<256x8xf32>, vector<256x8xf32>, vector<256x8xf32>, vector<256x8xf32> -> vector<256x32xf32>
    %318 = vector.shape_cast %317 : vector<256x32xf32> to vector<1x16x16x32xf32>
    %c0_285 = arith.constant 0 : index
    %c0_286 = arith.constant 0 : index
    %c0_287 = arith.constant 0 : index
    %c0_288 = arith.constant 0 : index
    %319 = vector.load %arg10[%c0_285, %c0_286, %c0_287, %c0_288] : memref<1x16x16x32xf32, #tpu.memory_space<vmem>>, vector<1x16x16x32xf32>
    tpu.vector_store %arg10[%c0_285, %c0_286, %c0_287, %c0_288], %318 {strides = array<i32>} : memref<1x16x16x32xf32, #tpu.memory_space<vmem>>, vector<1x16x16x32xf32>,
    return
  }
  func.func @transform_0(%arg0: i32) -> (i32, i32, i32, i32) {
    %c0_i32 = arith.constant 0 : i32
    %c0_i32_0 = arith.constant 0 : i32
    %c0_i32_1 = arith.constant 0 : i32
    %c0_i32_2 = arith.constant 0 : i32
    return %arg0, %c0_i32, %c0_i32_0, %c0_i32_1 : i32, i32, i32, i32
  }
  func.func @transform_1(%arg0: i32) -> (i32, i32) {
    %c0_i32 = arith.constant 0 : i32
    %c0_i32_0 = arith.constant 0 : i32
    %c0_i32_1 = arith.constant 0 : i32
    return %c0_i32, %c0_i32_0 : i32, i32
  }
  func.func @transform_2(%arg0: i32) -> (i32, i32, i32) {
    %c0_i32 = arith.constant 0 : i32
    %c0_i32_0 = arith.constant 0 : i32
    %c0_i32_1 = arith.constant 0 : i32
    %c0_i32_2 = arith.constant 0 : i32
    return %c0_i32, %c0_i32_0, %c0_i32_1 : i32, i32, i32
  }
  func.func @transform_3(%arg0: i32) -> (i32, i32, i32) {
    %c0_i32 = arith.constant 0 : i32
    %c0_i32_0 = arith.constant 0 : i32
    %c0_i32_1 = arith.constant 0 : i32
    %c0_i32_2 = arith.constant 0 : i32
    return %c0_i32, %c0_i32_0, %c0_i32_1 : i32, i32, i32
  }
  func.func @transform_4(%arg0: i32) -> (i32, i32) {
    %c0_i32 = arith.constant 0 : i32
    %c0_i32_0 = arith.constant 0 : i32
    %c0_i32_1 = arith.constant 0 : i32
    return %c0_i32, %c0_i32_0 : i32, i32
  }
  func.func @transform_5(%arg0: i32) -> (i32, i32) {
    %c0_i32 = arith.constant 0 : i32
    %c0_i32_0 = arith.constant 0 : i32
    %c0_i32_1 = arith.constant 0 : i32
    return %c0_i32, %c0_i32_0 : i32, i32
  }
  func.func @transform_6(%arg0: i32) -> (i32, i32) {
    %c0_i32 = arith.constant 0 : i32
    %c0_i32_0 = arith.constant 0 : i32
    %c0_i32_1 = arith.constant 0 : i32
    return %c0_i32, %c0_i32_0 : i32, i32
  }
  func.func @transform_7(%arg0: i32) -> (i32, i32) {
    %c0_i32 = arith.constant 0 : i32
    %c0_i32_0 = arith.constant 0 : i32
    %c0_i32_1 = arith.constant 0 : i32
    return %c0_i32, %c0_i32_0 : i32, i32
  }
  func.func @transform_8(%arg0: i32) -> (i32, i32) {
    %c0_i32 = arith.constant 0 : i32
    %c0_i32_0 = arith.constant 0 : i32
    %c0_i32_1 = arith.constant 0 : i32
    return %c0_i32, %c0_i32_0 : i32, i32
  }
  func.func @transform_9(%arg0: i32) -> (i32, i32, i32, i32) {
    %c0_i32 = arith.constant 0 : i32
    %c0_i32_0 = arith.constant 0 : i32
    %c0_i32_1 = arith.constant 0 : i32
    %c0_i32_2 = arith.constant 0 : i32
    return %arg0, %c0_i32, %c0_i32_0, %c0_i32_1 : i32, i32, i32, i32
  }
}

</mosaic_0001>

<bundles_post_ra>
// kernel: inception_block.1
= control target key start
LH: loop header
LB: loop body
LE: loop exit
PB: predicated region body
PF: predicated region fallthrough
CT: control target
= control target key end

     0   :  { %14 = vsyncpa [#allocation6], 0  ;;  %s20453_s0 = inlined_call_operand.vmem [shape: f32[2,16,16,4], index: 0, kind: input, shape index: {}]   ;;  %s20454_s1 = inlined_call_operand.vmem [shape: bf16[4,16], index: 1, kind: input, shape index: {}]   ;;  %s20455_s2 = inlined_call_operand.vmem [shape: bf16[9,4,8], index: 2, kind: input, shape index: {}]   ;;  %s20456_s3 = inlined_call_operand.vmem [shape: bf16[25,4,8], index: 3, kind: input, shape index: {}]   ;;  %s20457_s4 = inlined_call_operand.vmem [shape: bf16[4,8], index: 4, kind: input, shape index: {}]   ;;  %s20458_s5 = inlined_call_operand.vmem [shape: f32[1,16], index: 5, kind: input, shape index: {}]   ;;  %s20459_s6 = inlined_call_operand.vmem [shape: f32[1,16], index: 6, kind: input, shape index: {}]   ;;  %s20460_s7 = inlined_call_operand.vmem [shape: f32[1,24], index: 7, kind: input, shape index: {}]   ;;  %s20461_s8 = inlined_call_operand.vmem [shape: f32[1,24], index: 8, kind: input, shape index: {}]   ;;  %s20462_s9 = inlined_call_operand.hbm [shape: f32[2,16,16,32], index: 9, kind: output, shape index: {}]  }
   0x1   :  { %16 = vsyncpa [#allocation6 + $0x1], 0  ;;  %s16659_s30 = smov 0   ;;  %s16661_s10 = smov 0  }
   0x2   :  { %s16663_s11 = smov 0   ;;  %s16665_s12 = smov 0  }
   0x3 LB: > { %s16680_s13 = sadd.s32 4294967295, %s16597_s12   ;;  %s12965_s14 = sadd.s32 4294967294, %s16597_s12   ;;  %s16597_s12 = sphi %s16665_s12, %s20594_s12   ;;  %s16593_s11 = sphi %s16663_s11, %s20593_s11   ;;  %s16589_s10 = sphi %s16661_s10, %s20592_s10   ;;  %s16585_s30 = sphi %s16659_s30, %s20591_s30  }
   0x4   : > { %s16684_s15 = sadd.s32 1, %s16597_s12   ;;  %s223_s16 = sadd.s32 1, %s16593_s11 }
   0x5   : > { %s220_s17 = ssub.s32 %s16597_s12, %s16684_s15  ;;  %p233_p0 = scmp.ne.s32.totalorder %s16593_s11, %s16589_s10 }
   0x6   : > { %p221_p1 = scmp.eq.s32.totalorder %s220_s17, 0  ;;  %p234_p2 = scmp.eq.s32.totalorder %s16680_s13, 1 }
   0x7   : > { %p239_p3 = scmp.ne.s32.totalorder %s16589_s10, %s16585_s30  ;;  %p240_p4 = scmp.eq.s32.totalorder %s12965_s14, 1 }
   0x8   : > { %s16695_s18 = scalar_select %p221_p1, %s16593_s11, %s223_s16  }
   0x9   : > { %p16697_p5 = por %p234_p2, %p233_p0  ;;  %p16701_p6 = por %p240_p4, %p239_p3 }
   0xa   : > { %p12968_p7 = scmp.ge.s32.totalorder %s16597_s12, 1  ;;  %p290_p8 = scmp.lt.s32.totalorder %s16597_s12, 3 }
   0xc   : > { %p291_p9 = pnand %p12968_p7, %p290_p8 }
   0xe   : > { %294 = sbr.rel (%p291_p9) target bundleno = 1937 (0x791), region = 56 }
  0x15   : > { %v380_v0 = vld [vmem:[%s20454_s1] sm:$0x3]  ;;  %vm430_vm0 = vcmask 1041408   ;;  %p326_p10 = scmp.lt.s32.totalorder %s16680_s13, 1  ;;  %vm381_vm1 = vcmask 31744   ;;  %v16599_v2 = vmov -inf  }
  0x16   : > { %16451 = vmatprep.subr.msk.bf16.mxu1 %vm430_vm0, %v380_v0  ;;  %v16713_v1 = vsel %vm430_vm0, %v380_v0, 0  ;;  %11368 = vst.msk [vmem:[#allocation4 + $0x108] sm:$0xff] %vm381_vm1, %v16599_v2  ;;  %11369 = vst.msk [vmem:[#allocation4 + $0x110] sm:$0xff] %vm381_vm1, %v16599_v2  ;;  %v16600_v51 = vmov 0.0   ;;  %v17255_v52 = vld [vmem:[%s20458_s5] ss:$0 sm:$0xff] }
  0x17   : > { %11363 = vst.msk [vmem:[#allocation4 + $0xe0] sm:$0xff] %vm381_vm1, %v16599_v2  ;;  %11364 = vst.msk [vmem:[#allocation4 + $0xe8] sm:$0xff] %vm381_vm1, %v16599_v2  ;;  %14204 = vmatpush3.bf16.msra.mxu1 %v16713_v1  ;;  %s327_s23 = scalar_select %p326_p10, %s16680_s13, 1  ;;  %v17260_v54 = vld [vmem:[%s20459_s6] ss:$0 sm:$0xff]  ;;  %vm12757_vm2 = vcmask 64512  }
  0x18   : > { %11365 = vst.msk [vmem:[#allocation4 + $0xf0] sm:$0xff] %vm381_vm1, %v16599_v2  ;;  %11366 = vst.msk [vmem:[#allocation4 + $0xf8] sm:$0xff] %vm381_vm1, %v16599_v2  ;;  %v12990_v55 = vld [vmem:[%s20455_s2 + $0x2] sm:$0x3]  ;;  %s16602_s29 = smov 120   ;;  %s16604_s28 = smov 8  }
  0x19   : > { %11367 = vst.msk [vmem:[#allocation4 + $0x100] sm:$0xff] %vm381_vm1, %v16599_v2  ;;  %11370 = vst.msk [vmem:[#allocation4 + $0x118] sm:$0xff] %vm381_vm1, %v16599_v2  ;;  %s13589_s24 = sshll.u32 %s327_s23, 8  ;;  %16452 = vmatprep.subr.msk.bf16.mxu1 %vm430_vm0, %v12990_v55  ;;  %v1145_v63 = vsel %vm430_vm0, %v12990_v55, 0  ;;  %s16605_s16 = smov 24   ;;  %vm12790_vm3 = vcmask 130048  }
  0x1a   : > { %11371 = vst.msk [vmem:[#allocation4 + $0x120] sm:$0xff] %vm381_vm1, %v16599_v2  ;;  %11372 = vst.msk [vmem:[#allocation4 + $0x128] sm:$0xff] %vm381_vm1, %v16599_v2  ;;  %s16866_s27 = scalar_lea.vmem %s20453_s0, %s13589_s24  ;;  %s16601_s24 = smov 116   ;;  %vm12823_vm4 = vcmask 195584   ;;  %vm12856_vm5 = vcmask 261120  }
  0x1b   : > { %11373 = vst.msk [vmem:[#allocation4 + $0x130] sm:$0xff] %vm381_vm1, %v16599_v2  ;;  %11374 = vst.msk [vmem:[#allocation4 + $0x138] sm:$0xff] %vm381_vm1, %v16599_v2  ;;  %v332_v3 = vld [vmem:[%s16866_s27] sm:$0xff]  ;;  %v333_v4 = vld [vmem:[%s16866_s27 + $0x8] sm:$0xff]  ;;  %s323_s17 = sand.u32 1, %s16589_s10   ;;  %s13590_s23 = sshll.u32 %s16680_s13, 12 }
  0x1c   : > { %11375 = vst.msk [vmem:[#allocation4 + $0x140] sm:$0xff] %vm381_vm1, %v16599_v2  ;;  %11376 = vst.msk [vmem:[#allocation4 + $0x148] sm:$0xff] %vm381_vm1, %v16599_v2  ;;  %v334_v5 = vld [vmem:[%s16866_s27 + $0x10] sm:$0xff]  ;;  %v364_v6 = vpack.c.bf16 %v333_v4, %v332_v3  ;;  %v335_v7 = vld [vmem:[%s16866_s27 + $0x18] sm:$0xff]  ;;  %s12969_s21 = sshll.u32 %s323_s17, 8  ;;  %s20400_s26 = scalar_lea.hbm %s20462_s9, %s13590_s23 }
  0x1d   : > { %11377 = vst.msk [vmem:[#allocation4 + $0x150] sm:$0xff] %vm381_vm1, %v16599_v2  ;;  %11378 = vst.msk [vmem:[#allocation4 + $0x158] sm:$0xff] %vm381_vm1, %v16599_v2  ;;  %v336_v8 = vld [vmem:[%s16866_s27 + $0x20] sm:$0xff]  ;;  %v337_v9 = vld [vmem:[%s16866_s27 + $0x28] sm:$0xff]  ;;  %v365_v10 = vpack.c.bf16 %v335_v7, %v334_v5  ;;  %s20159_s22 = scalar_lea.vmem [#allocation5], %s12969_s21 }
  0x1e   : > { %11379 = vst.msk [vmem:[#allocation4 + $0x160] sm:$0xff] %vm381_vm1, %v16599_v2  ;;  %11380 = vst.msk [vmem:[#allocation4 + $0x168] sm:$0xff] %vm381_vm1, %v16599_v2  ;;  %v366_v11 = vpack.c.bf16 %v337_v9, %v336_v8  ;;  %v338_v12 = vld [vmem:[%s16866_s27 + $0x30] sm:$0xff]  ;;  %v339_v13 = vld [vmem:[%s16866_s27 + $0x38] sm:$0xff]  ;;  %14205 = vmatprep.mubr.msk.bf16.mxu1 %vm381_vm1, %v364_v6 }
  0x1f   : > { %11381 = vst.msk [vmem:[#allocation4 + $0x170] sm:$0xff] %vm381_vm1, %v16599_v2  ;;  %11382 = vst.msk [vmem:[#allocation4 + $0x178] sm:$0xff] %vm381_vm1, %v16599_v2  ;;  %v340_v14 = vld [vmem:[%s16866_s27 + $0x40] sm:$0xff]  ;;  %v341_v15 = vld [vmem:[%s16866_s27 + $0x48] sm:$0xff]  ;;  %14206 = vmatmul.mubr.msk.bf16.vlgmr.msra.gmra.mrb[0].mxu1 %vm381_vm1, %v365_v10  ;;  %v367_v30 = vpack.c.bf16 %v339_v13, %v338_v12 }
  0x20   : > { %11383 = vst.msk [vmem:[#allocation4 + $0x180] sm:$0xff] %vm381_vm1, %v16599_v2  ;;  %11384 = vst.msk [vmem:[#allocation4 + $0x188] sm:$0xff] %vm381_vm1, %v16599_v2  ;;  %v342_v16 = vld [vmem:[%s16866_s27 + $0x50] sm:$0xff]  ;;  %v343_v17 = vld [vmem:[%s16866_s27 + $0x58] sm:$0xff]  ;;  %14209 = vmatprep.mubr.msk.bf16.mxu1 %vm381_vm1, %v366_v11  ;;  %v368_v34 = vpack.c.bf16 %v341_v15, %v340_v14  ;;  %14238 = vmatpush3.bf16.msra.mxu1 %v1145_v63 }
  0x21   : > { %11385 = vst.msk [vmem:[#allocation4 + $0x190] sm:$0xff] %vm381_vm1, %v16599_v2  ;;  %11386 = vst.msk [vmem:[#allocation4 + $0x198] sm:$0xff] %vm381_vm1, %v16599_v2  ;;  %v344_v18 = vld [vmem:[%s16866_s27 + $0x60] sm:$0xff]  ;;  %v345_v19 = vld [vmem:[%s16866_s27 + $0x68] sm:$0xff]  ;;  %v369_v40 = vpack.c.bf16 %v343_v17, %v342_v16 }
  0x22   : > { %11387 = vst.msk [vmem:[#allocation4 + $0x1a0] sm:$0xff] %vm381_vm1, %v16599_v2  ;;  %11388 = vst.msk [vmem:[#allocation4 + $0x1a8] sm:$0xff] %vm381_vm1, %v16599_v2  ;;  %v346_v20 = vld [vmem:[%s16866_s27 + $0x70] sm:$0xff]  ;;  %v347_v21 = vld [vmem:[%s16866_s27 + $0x78] sm:$0xff]  ;;  %v370_v41 = vpack.c.bf16 %v345_v19, %v344_v18 }
  0x23   : > { %11389 = vst.msk [vmem:[#allocation4 + $0x1b0] sm:$0xff] %vm381_vm1, %v16599_v2  ;;  %11390 = vst.msk [vmem:[#allocation4 + $0x1b8] sm:$0xff] %vm381_vm1, %v16599_v2  ;;  %v348_v22 = vld [vmem:[%s16866_s27 + $0x80] sm:$0xff]  ;;  %v349_v23 = vld [vmem:[%s16866_s27 + $0x88] sm:$0xff]  ;;  %v371_v42 = vpack.c.bf16 %v347_v21, %v346_v20 }
  0x24   : > { %11391 = vst.msk [vmem:[#allocation4 + $0x1c0] sm:$0xff] %vm381_vm1, %v16599_v2  ;;  %11392 = vst.msk [vmem:[#allocation4 + $0x1c8] sm:$0xff] %vm381_vm1, %v16599_v2  ;;  %v350_v24 = vld [vmem:[%s16866_s27 + $0x90] sm:$0xff]  ;;  %v351_v25 = vld [vmem:[%s16866_s27 + $0x98] sm:$0xff]  ;;  %v372_v43 = vpack.c.bf16 %v349_v23, %v348_v22 }
  0x25   : > { %11393 = vst.msk [vmem:[#allocation4 + $0x1d0] sm:$0xff] %vm381_vm1, %v16599_v2  ;;  %11394 = vst.msk [vmem:[#allocation4 + $0x1d8] sm:$0xff] %vm381_vm1, %v16599_v2  ;;  %v352_v26 = vld [vmem:[%s16866_s27 + $0xa0] sm:$0xff]  ;;  %v353_v27 = vld [vmem:[%s16866_s27 + $0xa8] sm:$0xff]  ;;  %v373_v44 = vpack.c.bf16 %v351_v25, %v350_v24 }
  0x26   : > { %11395 = vst.msk [vmem:[#allocation4 + $0x1e0] sm:$0xff] %vm381_vm1, %v16599_v2  ;;  %11396 = vst.msk [vmem:[#allocation4 + $0x1e8] sm:$0xff] %vm381_vm1, %v16599_v2  ;;  %v354_v28 = vld [vmem:[%s16866_s27 + $0xb0] sm:$0xff]  ;;  %v355_v29 = vld [vmem:[%s16866_s27 + $0xb8] sm:$0xff]  ;;  %v374_v45 = vpack.c.bf16 %v353_v27, %v352_v26 }
  0x27   : > { %11397 = vst.msk [vmem:[#allocation4 + $0x1f0] sm:$0xff] %vm381_vm1, %v16599_v2  ;;  %11398 = vst.msk [vmem:[#allocation4 + $0x1f8] sm:$0xff] %vm381_vm1, %v16599_v2  ;;  %v356_v31 = vld [vmem:[%s16866_s27 + $0xc0] sm:$0xff]  ;;  %v357_v32 = vld [vmem:[%s16866_s27 + $0xc8] sm:$0xff]  ;;  %14210 = vmatmul.mubr.msk.bf16.gmra.mrb[4].mxu1 %vm381_vm1, %v367_v30  ;;  %v375_v46 = vpack.c.bf16 %v355_v29, %v354_v28 }
  0x28   : > { %11399 = vst.msk [vmem:[#allocation4 + $0x200] sm:$0xff] %vm381_vm1, %v16599_v2  ;;  %11400 = vst.msk [vmem:[#allocation4 + $0x208] sm:$0xff] %vm381_vm1, %v16599_v2  ;;  %v358_v33 = vld [vmem:[%s16866_s27 + $0xd0] sm:$0xff]  ;;  %v359_v35 = vld [vmem:[%s16866_s27 + $0xd8] sm:$0xff]  ;;  %14213 = vmatprep.mubr.msk.bf16.mxu1 %vm381_vm1, %v368_v34  ;;  %v376_v47 = vpack.c.bf16 %v357_v32, %v356_v31 }
  0x29   : > { %11401 = vst.msk [vmem:[#allocation4 + $0x210] sm:$0xff] %vm381_vm1, %v16599_v2  ;;  %11402 = vst.msk [vmem:[#allocation4 + $0x218] sm:$0xff] %vm381_vm1, %v16599_v2  ;;  %v360_v36 = vld [vmem:[%s16866_s27 + $0xe0] sm:$0xff]  ;;  %v361_v37 = vld [vmem:[%s16866_s27 + $0xe8] sm:$0xff]  ;;  %v377_v48 = vpack.c.bf16 %v359_v35, %v358_v33 }
  0x2a   : > { %11403 = vst.msk [vmem:[#allocation4 + $0x220] sm:$0xff] %vm381_vm1, %v16599_v2  ;;  %11404 = vst.msk [vmem:[#allocation4 + $0x228] sm:$0xff] %vm381_vm1, %v16599_v2  ;;  %v362_v38 = vld [vmem:[%s16866_s27 + $0xf0] sm:$0xff]  ;;  %v363_v39 = vld [vmem:[%s16866_s27 + $0xf8] sm:$0xff]  ;;  %v378_v49 = vpack.c.bf16 %v361_v37, %v360_v36  ;;  %s20411_s27 = scalar_lea.sflag [#allocation6], %s323_s17 }
  0x2b   : > { %11405 = vst.msk [vmem:[#allocation4 + $0x230] sm:$0xff] %vm381_vm1, %v16599_v2  ;;  %11406 = vst.msk [vmem:[#allocation4 + $0x238] sm:$0xff] %vm381_vm1, %v16599_v2  ;;  %v379_v50 = vpack.c.bf16 %v363_v39, %v362_v38 }
  0x2c   : > { %11407 = vst.msk [vmem:[#allocation4 + $0x240] sm:$0xff] %vm381_vm1, %v16599_v2  ;;  %11408 = vst.msk [vmem:[#allocation4 + $0x248] sm:$0xff] %vm381_vm1, %v16599_v2 }
  0x2d   : > { %11409 = vst.msk [vmem:[#allocation4 + $0x250] sm:$0xff] %vm381_vm1, %v16599_v2  ;;  %11410 = vst.msk [vmem:[#allocation4 + $0x258] sm:$0xff] %vm381_vm1, %v16599_v2 }
  0x2e   : > { %11411 = vst.msk [vmem:[#allocation4 + $0x260] sm:$0xff] %vm381_vm1, %v16599_v2  ;;  %11412 = vst.msk [vmem:[#allocation4 + $0x268] sm:$0xff] %vm381_vm1, %v16599_v2 }
  0x2f   : > { %11413 = vst.msk [vmem:[#allocation4 + $0x270] sm:$0xff] %vm381_vm1, %v16599_v2  ;;  %11414 = vst.msk [vmem:[#allocation4 + $0x278] sm:$0xff] %vm381_vm1, %v16599_v2  ;;  %14214 = vmatmul.mubr.msk.bf16.gmra.mrb[8].mxu1 %vm381_vm1, %v369_v40 }
  0x30   : > { %11415 = vst.msk [vmem:[#allocation4 + $0x280] sm:$0xff] %vm381_vm1, %v16599_v2  ;;  %11416 = vst.msk [vmem:[#allocation4 + $0x288] sm:$0xff] %vm381_vm1, %v16599_v2  ;;  %14217 = vmatprep.mubr.msk.bf16.mxu1 %vm381_vm1, %v370_v41 }
  0x31   : > { %11417 = vst.msk [vmem:[#allocation4 + $0x290] sm:$0xff] %vm381_vm1, %v16599_v2  ;;  %11418 = vst.msk [vmem:[#allocation4 + $0x298] sm:$0xff] %vm381_vm1, %v16599_v2 }
  0x32   : > { %11419 = vst.msk [vmem:[#allocation4 + $0x2a0] sm:$0xff] %vm381_vm1, %v16599_v2  ;;  %11420 = vst.msk [vmem:[#allocation4 + $0x2a8] sm:$0xff] %vm381_vm1, %v16599_v2 }
  0x33   : > { %11421 = vst.msk [vmem:[#allocation4 + $0x2b0] sm:$0xff] %vm381_vm1, %v16599_v2  ;;  %11422 = vst.msk [vmem:[#allocation4 + $0x2b8] sm:$0xff] %vm381_vm1, %v16599_v2 }
  0x34   : > { %11423 = vst.msk [vmem:[#allocation4 + $0x2c0] sm:$0xff] %vm381_vm1, %v16599_v2  ;;  %11424 = vst.msk [vmem:[#allocation4 + $0x2c8] sm:$0xff] %vm381_vm1, %v16599_v2 }
  0x35   : > { %11425 = vst.msk [vmem:[#allocation4 + $0x2d0] sm:$0xff] %vm381_vm1, %v16599_v2  ;;  %11426 = vst.msk [vmem:[#allocation4 + $0x2d8] sm:$0xff] %vm381_vm1, %v16599_v2 }
  0x36   : > { %11427 = vst.msk [vmem:[#allocation4 + $0x2e0] sm:$0xff] %vm381_vm1, %v16599_v2  ;;  %11428 = vst.msk [vmem:[#allocation4 + $0x2e8] sm:$0xff] %vm381_vm1, %v16599_v2 }
  0x37   : > { %11429 = vst.msk [vmem:[#allocation4 + $0x2f0] sm:$0xff] %vm381_vm1, %v16599_v2  ;;  %11430 = vst.msk [vmem:[#allocation4 + $0x2f8] sm:$0xff] %vm381_vm1, %v16599_v2  ;;  %14218 = vmatmul.mubr.msk.bf16.gmra.mrb[12].mxu1 %vm381_vm1, %v371_v42 }
  0x38   : > { %11431 = vst.msk [vmem:[#allocation4 + $0x300] sm:$0xff] %vm381_vm1, %v16599_v2  ;;  %11432 = vst.msk [vmem:[#allocation4 + $0x308] sm:$0xff] %vm381_vm1, %v16599_v2  ;;  %14221 = vmatprep.mubr.msk.bf16.mxu1 %vm381_vm1, %v372_v43 }
  0x39   : > { %11433 = vst.msk [vmem:[#allocation4 + $0x310] sm:$0xff] %vm381_vm1, %v16599_v2  ;;  %11434 = vst.msk [vmem:[#allocation4 + $0x318] sm:$0xff] %vm381_vm1, %v16599_v2  ;;  %v13262_v2 = vld [vmem:[%s20456_s3 + $0xe] sm:$0x3] }
  0x3a   : > { %11464 = vst.msk [vmem:[#allocation4 + $0x108] sm:$0xff] %vm381_vm1, %v332_v3  ;;  %11465 = vst.msk [vmem:[#allocation4 + $0x110] sm:$0xff] %vm381_vm1, %v333_v4  ;;  %16468 = vmatprep.subr.msk.bf16.mxu0 %vm430_vm0, %v13262_v2 }
  0x3b   : > { %11466 = vst.msk [vmem:[#allocation4 + $0x128] sm:$0xff] %vm381_vm1, %v334_v5  ;;  %11467 = vst.msk [vmem:[#allocation4 + $0x130] sm:$0xff] %vm381_vm1, %v335_v7  ;;  %v6038_v5 = vsel %vm430_vm0, %v13262_v2, 0 }
  0x3c   : > { %11468 = vst.msk [vmem:[#allocation4 + $0x148] sm:$0xff] %vm381_vm1, %v336_v8  ;;  %11469 = vst.msk [vmem:[#allocation4 + $0x150] sm:$0xff] %vm381_vm1, %v337_v9  ;;  %14782 = vmatpush3.bf16.msra.mxu0 %v6038_v5 }
  0x3d   : > { %11470 = vst.msk [vmem:[#allocation4 + $0x168] sm:$0xff] %vm381_vm1, %v338_v12  ;;  %11471 = vst.msk [vmem:[#allocation4 + $0x170] sm:$0xff] %vm381_vm1, %v339_v13 }
  0x3e   : > { %11472 = vst.msk [vmem:[#allocation4 + $0x188] sm:$0xff] %vm381_vm1, %v340_v14  ;;  %11473 = vst.msk [vmem:[#allocation4 + $0x190] sm:$0xff] %vm381_vm1, %v341_v15 }
  0x3f   : > { %11474 = vst.msk [vmem:[#allocation4 + $0x1a8] sm:$0xff] %vm381_vm1, %v342_v16  ;;  %11475 = vst.msk [vmem:[#allocation4 + $0x1b0] sm:$0xff] %vm381_vm1, %v343_v17  ;;  %14222 = vmatmul.mubr.msk.bf16.gmra.mrb[16].mxu1 %vm381_vm1, %v373_v44 }
  0x40   : > { %11476 = vst.msk [vmem:[#allocation4 + $0x1c8] sm:$0xff] %vm381_vm1, %v344_v18  ;;  %11477 = vst.msk [vmem:[#allocation4 + $0x1d0] sm:$0xff] %vm381_vm1, %v345_v19  ;;  %14225 = vmatprep.mubr.msk.bf16.mxu1 %vm381_vm1, %v374_v45 }
  0x41   : > { %11478 = vst.msk [vmem:[#allocation4 + $0x1e8] sm:$0xff] %vm381_vm1, %v346_v20  ;;  %11479 = vst.msk [vmem:[#allocation4 + $0x1f0] sm:$0xff] %vm381_vm1, %v347_v21 }
  0x42   : > { %11480 = vst.msk [vmem:[#allocation4 + $0x208] sm:$0xff] %vm381_vm1, %v348_v22  ;;  %11481 = vst.msk [vmem:[#allocation4 + $0x210] sm:$0xff] %vm381_vm1, %v349_v23 }
  0x43   : > { %11482 = vst.msk [vmem:[#allocation4 + $0x228] sm:$0xff] %vm381_vm1, %v350_v24  ;;  %11483 = vst.msk [vmem:[#allocation4 + $0x230] sm:$0xff] %vm381_vm1, %v351_v25 }
  0x44   : > { %11484 = vst.msk [vmem:[#allocation4 + $0x248] sm:$0xff] %vm381_vm1, %v352_v26  ;;  %11485 = vst.msk [vmem:[#allocation4 + $0x250] sm:$0xff] %vm381_vm1, %v353_v27 }
  0x45   : > { %11486 = vst.msk [vmem:[#allocation4 + $0x268] sm:$0xff] %vm381_vm1, %v354_v28  ;;  %11487 = vst.msk [vmem:[#allocation4 + $0x270] sm:$0xff] %vm381_vm1, %v355_v29 }
  0x46   : > { %11488 = vst.msk [vmem:[#allocation4 + $0x288] sm:$0xff] %vm381_vm1, %v356_v31  ;;  %11489 = vst.msk [vmem:[#allocation4 + $0x290] sm:$0xff] %vm381_vm1, %v357_v32 }
  0x47   : > { %11490 = vst.msk [vmem:[#allocation4 + $0x2a8] sm:$0xff] %vm381_vm1, %v358_v33  ;;  %11491 = vst.msk [vmem:[#allocation4 + $0x2b0] sm:$0xff] %vm381_vm1, %v359_v35  ;;  %14226 = vmatmul.mubr.msk.bf16.gmra.mrb[20].mxu1 %vm381_vm1, %v375_v46 }
  0x48   : > { %11492 = vst.msk [vmem:[#allocation4 + $0x2c8] sm:$0xff] %vm381_vm1, %v360_v36  ;;  %11493 = vst.msk [vmem:[#allocation4 + $0x2d0] sm:$0xff] %vm381_vm1, %v361_v37  ;;  %14229 = vmatprep.mubr.msk.bf16.mxu1 %vm381_vm1, %v376_v47 }
  0x49   : > { %11494 = vst.msk [vmem:[#allocation4 + $0x2e8] sm:$0xff] %vm381_vm1, %v362_v38  ;;  %11495 = vst.msk [vmem:[#allocation4 + $0x2f0] sm:$0xff] %vm381_vm1, %v363_v39 }
  0x4a   : > { %3724 = vst.msk [vmem:[#allocation3 + $0x128] sm:$0xff] %vm381_vm1, %v16600_v51  ;;  %735 = vst.msk [vmem:[#allocation2 + $0xe0] sm:$0xff] %vm381_vm1, %v16600_v51 }
  0x4b   : > { %736 = vst.msk [vmem:[#allocation2 + $0xe8] sm:$0xff] %vm381_vm1, %v16600_v51  ;;  %737 = vst.msk [vmem:[#allocation2 + $0xf0] sm:$0xff] %vm381_vm1, %v16600_v51 }
  0x4c   : > { %738 = vst.msk [vmem:[#allocation2 + $0xf8] sm:$0xff] %vm381_vm1, %v16600_v51  ;;  %739 = vst.msk [vmem:[#allocation2 + $0x100] sm:$0xff] %vm381_vm1, %v16600_v51 }
  0x4d   : > { %740 = vst.msk [vmem:[#allocation2 + $0x108] sm:$0xff] %vm381_vm1, %v16600_v51  ;;  %741 = vst.msk [vmem:[#allocation2 + $0x110] sm:$0xff] %vm381_vm1, %v16600_v51 }
  0x4e   : > { %742 = vst.msk [vmem:[#allocation2 + $0x118] sm:$0xff] %vm381_vm1, %v16600_v51  ;;  %743 = vst.msk [vmem:[#allocation2 + $0x120] sm:$0xff] %vm381_vm1, %v16600_v51 }
  0x4f   : > { %14230 = vmatmul.mubr.msk.bf16.gmra.mrb[24].mxu1 %vm381_vm1, %v377_v48  ;;  %744 = vst.msk [vmem:[#allocation2 + $0x128] sm:$0xff] %vm381_vm1, %v16600_v51  ;;  %745 = vst.msk [vmem:[#allocation2 + $0x130] sm:$0xff] %vm381_vm1, %v16600_v51 }
  0x50   : > { %14233 = vmatprep.mubr.msk.bf16.mxu1 %vm381_vm1, %v378_v49  ;;  %746 = vst.msk [vmem:[#allocation2 + $0x138] sm:$0xff] %vm381_vm1, %v16600_v51  ;;  %747 = vst.msk [vmem:[#allocation2 + $0x140] sm:$0xff] %vm381_vm1, %v16600_v51 }
  0x51   : > { %748 = vst.msk [vmem:[#allocation2 + $0x148] sm:$0xff] %vm381_vm1, %v16600_v51  ;;  %749 = vst.msk [vmem:[#allocation2 + $0x150] sm:$0xff] %vm381_vm1, %v16600_v51 }
  0x52   : > { %750 = vst.msk [vmem:[#allocation2 + $0x158] sm:$0xff] %vm381_vm1, %v16600_v51  ;;  %751 = vst.msk [vmem:[#allocation2 + $0x160] sm:$0xff] %vm381_vm1, %v16600_v51 }
  0x53   : > { %752 = vst.msk [vmem:[#allocation2 + $0x168] sm:$0xff] %vm381_vm1, %v16600_v51  ;;  %753 = vst.msk [vmem:[#allocation2 + $0x170] sm:$0xff] %vm381_vm1, %v16600_v51 }
  0x54   : > { %754 = vst.msk [vmem:[#allocation2 + $0x178] sm:$0xff] %vm381_vm1, %v16600_v51  ;;  %755 = vst.msk [vmem:[#allocation2 + $0x180] sm:$0xff] %vm381_vm1, %v16600_v51 }
  0x55   : > { %756 = vst.msk [vmem:[#allocation2 + $0x188] sm:$0xff] %vm381_vm1, %v16600_v51  ;;  %757 = vst.msk [vmem:[#allocation2 + $0x190] sm:$0xff] %vm381_vm1, %v16600_v51 }
  0x56   : > { %758 = vst.msk [vmem:[#allocation2 + $0x198] sm:$0xff] %vm381_vm1, %v16600_v51  ;;  %759 = vst.msk [vmem:[#allocation2 + $0x1a0] sm:$0xff] %vm381_vm1, %v16600_v51 }
  0x57   : > { %14234 = vmatmul.mubr.msk.bf16.gmra.mrb[28].mxu1 %vm381_vm1, %v379_v50  ;;  %760 = vst.msk [vmem:[#allocation2 + $0x1a8] sm:$0xff] %vm381_vm1, %v16600_v51  ;;  %761 = vst.msk [vmem:[#allocation2 + $0x1b0] sm:$0xff] %vm381_vm1, %v16600_v51 }
  0x58   : > { %762 = vst.msk [vmem:[#allocation2 + $0x1b8] sm:$0xff] %vm381_vm1, %v16600_v51  ;;  %763 = vst.msk [vmem:[#allocation2 + $0x1c0] sm:$0xff] %vm381_vm1, %v16600_v51 }
  0x59   : > { %764 = vst.msk [vmem:[#allocation2 + $0x1c8] sm:$0xff] %vm381_vm1, %v16600_v51  ;;  %765 = vst.msk [vmem:[#allocation2 + $0x1d0] sm:$0xff] %vm381_vm1, %v16600_v51 }
  0x5a   : > { %766 = vst.msk [vmem:[#allocation2 + $0x1d8] sm:$0xff] %vm381_vm1, %v16600_v51  ;;  %767 = vst.msk [vmem:[#allocation2 + $0x1e0] sm:$0xff] %vm381_vm1, %v16600_v51 }
  0x5b   : > { %768 = vst.msk [vmem:[#allocation2 + $0x1e8] sm:$0xff] %vm381_vm1, %v16600_v51  ;;  %769 = vst.msk [vmem:[#allocation2 + $0x1f0] sm:$0xff] %vm381_vm1, %v16600_v51 }
  0x5c   : > { %770 = vst.msk [vmem:[#allocation2 + $0x1f8] sm:$0xff] %vm381_vm1, %v16600_v51  ;;  %771 = vst.msk [vmem:[#allocation2 + $0x200] sm:$0xff] %vm381_vm1, %v16600_v51 }
  0x5d   : > { %772 = vst.msk [vmem:[#allocation2 + $0x208] sm:$0xff] %vm381_vm1, %v16600_v51  ;;  %773 = vst.msk [vmem:[#allocation2 + $0x210] sm:$0xff] %vm381_vm1, %v16600_v51 }
  0x5e   : > { %774 = vst.msk [vmem:[#allocation2 + $0x218] sm:$0xff] %vm381_vm1, %v16600_v51  ;;  %775 = vst.msk [vmem:[#allocation2 + $0x220] sm:$0xff] %vm381_vm1, %v16600_v51 }
  0x5f   : > { %776 = vst.msk [vmem:[#allocation2 + $0x228] sm:$0xff] %vm381_vm1, %v16600_v51  ;;  %777 = vst.msk [vmem:[#allocation2 + $0x230] sm:$0xff] %vm381_vm1, %v16600_v51 }
  0x60   : > { %778 = vst.msk [vmem:[#allocation2 + $0x238] sm:$0xff] %vm381_vm1, %v16600_v51  ;;  %779 = vst.msk [vmem:[#allocation2 + $0x240] sm:$0xff] %vm381_vm1, %v16600_v51 }
  0x61   : > { %780 = vst.msk [vmem:[#allocation2 + $0x248] sm:$0xff] %vm381_vm1, %v16600_v51  ;;  %781 = vst.msk [vmem:[#allocation2 + $0x250] sm:$0xff] %vm381_vm1, %v16600_v51 }
  0x62   : > { %782 = vst.msk [vmem:[#allocation2 + $0x258] sm:$0xff] %vm381_vm1, %v16600_v51  ;;  %783 = vst.msk [vmem:[#allocation2 + $0x260] sm:$0xff] %vm381_vm1, %v16600_v51 }
  0x63   : > { %784 = vst.msk [vmem:[#allocation2 + $0x268] sm:$0xff] %vm381_vm1, %v16600_v51  ;;  %785 = vst.msk [vmem:[#allocation2 + $0x270] sm:$0xff] %vm381_vm1, %v16600_v51 }
  0x64   : > { %786 = vst.msk [vmem:[#allocation2 + $0x278] sm:$0xff] %vm381_vm1, %v16600_v51  ;;  %787 = vst.msk [vmem:[#allocation2 + $0x280] sm:$0xff] %vm381_vm1, %v16600_v51 }
  0x65   : > { %788 = vst.msk [vmem:[#allocation2 + $0x288] sm:$0xff] %vm381_vm1, %v16600_v51  ;;  %789 = vst.msk [vmem:[#allocation2 + $0x290] sm:$0xff] %vm381_vm1, %v16600_v51 }
  0x66   : > { %790 = vst.msk [vmem:[#allocation2 + $0x298] sm:$0xff] %vm381_vm1, %v16600_v51  ;;  %791 = vst.msk [vmem:[#allocation2 + $0x2a0] sm:$0xff] %vm381_vm1, %v16600_v51 }
  0x67   : > { %792 = vst.msk [vmem:[#allocation2 + $0x2a8] sm:$0xff] %vm381_vm1, %v16600_v51  ;;  %793 = vst.msk [vmem:[#allocation2 + $0x2b0] sm:$0xff] %vm381_vm1, %v16600_v51 }
  0x68   : > { %794 = vst.msk [vmem:[#allocation2 + $0x2b8] sm:$0xff] %vm381_vm1, %v16600_v51  ;;  %795 = vst.msk [vmem:[#allocation2 + $0x2c0] sm:$0xff] %vm381_vm1, %v16600_v51 }
  0x69   : > { %796 = vst.msk [vmem:[#allocation2 + $0x2c8] sm:$0xff] %vm381_vm1, %v16600_v51  ;;  %797 = vst.msk [vmem:[#allocation2 + $0x2d0] sm:$0xff] %vm381_vm1, %v16600_v51 }
  0x6a   : > { %798 = vst.msk [vmem:[#allocation2 + $0x2d8] sm:$0xff] %vm381_vm1, %v16600_v51  ;;  %799 = vst.msk [vmem:[#allocation2 + $0x2e0] sm:$0xff] %vm381_vm1, %v16600_v51 }
  0x6b   : > { %800 = vst.msk [vmem:[#allocation2 + $0x2e8] sm:$0xff] %vm381_vm1, %v16600_v51  ;;  %801 = vst.msk [vmem:[#allocation2 + $0x2f0] sm:$0xff] %vm381_vm1, %v16600_v51 }
  0x6c   : > { %802 = vst.msk [vmem:[#allocation2 + $0x2f8] sm:$0xff] %vm381_vm1, %v16600_v51  ;;  %803 = vst.msk [vmem:[#allocation2 + $0x300] sm:$0xff] %vm381_vm1, %v16600_v51 }
  0x6d   : > { %804 = vst.msk [vmem:[#allocation2 + $0x308] sm:$0xff] %vm381_vm1, %v16600_v51  ;;  %805 = vst.msk [vmem:[#allocation2 + $0x310] sm:$0xff] %vm381_vm1, %v16600_v51 }
  0x6e   : > { %806 = vst.msk [vmem:[#allocation2 + $0x318] sm:$0xff] %vm381_vm1, %v16600_v51  ;;  %3711 = vst.msk [vmem:[#allocation3 + $0xc0] sm:$0xff] %vm381_vm1, %v16600_v51 }
  0x6f   : > { %3712 = vst.msk [vmem:[#allocation3 + $0xc8] sm:$0xff] %vm381_vm1, %v16600_v51  ;;  %3713 = vst.msk [vmem:[#allocation3 + $0xd0] sm:$0xff] %vm381_vm1, %v16600_v51 }
  0x70   : > { %3714 = vst.msk [vmem:[#allocation3 + $0xd8] sm:$0xff] %vm381_vm1, %v16600_v51  ;;  %3715 = vst.msk [vmem:[#allocation3 + $0xe0] sm:$0xff] %vm381_vm1, %v16600_v51 }
  0x71   : > { %3716 = vst.msk [vmem:[#allocation3 + $0xe8] sm:$0xff] %vm381_vm1, %v16600_v51  ;;  %3717 = vst.msk [vmem:[#allocation3 + $0xf0] sm:$0xff] %vm381_vm1, %v16600_v51 }
  0x72   : > { %3718 = vst.msk [vmem:[#allocation3 + $0xf8] sm:$0xff] %vm381_vm1, %v16600_v51  ;;  %3719 = vst.msk [vmem:[#allocation3 + $0x100] sm:$0xff] %vm381_vm1, %v16600_v51 }
  0x73   : > { %3720 = vst.msk [vmem:[#allocation3 + $0x108] sm:$0xff] %vm381_vm1, %v16600_v51  ;;  %3721 = vst.msk [vmem:[#allocation3 + $0x110] sm:$0xff] %vm381_vm1, %v16600_v51 }
  0x74   : > { %3722 = vst.msk [vmem:[#allocation3 + $0x118] sm:$0xff] %vm381_vm1, %v16600_v51  ;;  %3723 = vst.msk [vmem:[#allocation3 + $0x120] sm:$0xff] %vm381_vm1, %v16600_v51 }
  0x75   : > { %3725 = vst.msk [vmem:[#allocation3 + $0x130] sm:$0xff] %vm381_vm1, %v16600_v51  ;;  %3726 = vst.msk [vmem:[#allocation3 + $0x138] sm:$0xff] %vm381_vm1, %v16600_v51 }
  0x76   : > { %3727 = vst.msk [vmem:[#allocation3 + $0x140] sm:$0xff] %vm381_vm1, %v16600_v51  ;;  %3728 = vst.msk [vmem:[#allocation3 + $0x148] sm:$0xff] %vm381_vm1, %v16600_v51 }
  0x77   : > { %3729 = vst.msk [vmem:[#allocation3 + $0x150] sm:$0xff] %vm381_vm1, %v16600_v51  ;;  %3730 = vst.msk [vmem:[#allocation3 + $0x158] sm:$0xff] %vm381_vm1, %v16600_v51 }
  0x78   : > { %3731 = vst.msk [vmem:[#allocation3 + $0x160] sm:$0xff] %vm381_vm1, %v16600_v51  ;;  %3732 = vst.msk [vmem:[#allocation3 + $0x168] sm:$0xff] %vm381_vm1, %v16600_v51  ;;  %v5939_v6 = vld [vmem:[#allocation3 + $0xe8] sm:$0xff]  ;;  %v5940_v7 = vld [vmem:[#allocation3 + $0xf0] sm:$0xff] }
  0x79   : > { %3733 = vst.msk [vmem:[#allocation3 + $0x170] sm:$0xff] %vm381_vm1, %v16600_v51  ;;  %3734 = vst.msk [vmem:[#allocation3 + $0x178] sm:$0xff] %vm381_vm1, %v16600_v51  ;;  %v5971_v10 = vpack.c.bf16 %v5940_v7, %v5939_v6 }
  0x7a   : > { %3735 = vst.msk [vmem:[#allocation3 + $0x180] sm:$0xff] %vm381_vm1, %v16600_v51  ;;  %3736 = vst.msk [vmem:[#allocation3 + $0x188] sm:$0xff] %vm381_vm1, %v16600_v51 }
  0x7b   : > { %3737 = vst.msk [vmem:[#allocation3 + $0x190] sm:$0xff] %vm381_vm1, %v16600_v51  ;;  %3738 = vst.msk [vmem:[#allocation3 + $0x198] sm:$0xff] %vm381_vm1, %v16600_v51  ;;  %14783 = vmatprep.mubr.msk.bf16.mxu0 %vm381_vm1, %v5971_v10 }
  0x7c   : > { %3739 = vst.msk [vmem:[#allocation3 + $0x1a0] sm:$0xff] %vm381_vm1, %v16600_v51  ;;  %3740 = vst.msk [vmem:[#allocation3 + $0x1a8] sm:$0xff] %vm381_vm1, %v16600_v51 }
  0x7d   : > { %3741 = vst.msk [vmem:[#allocation3 + $0x1b0] sm:$0xff] %vm381_vm1, %v16600_v51  ;;  %3742 = vst.msk [vmem:[#allocation3 + $0x1b8] sm:$0xff] %vm381_vm1, %v16600_v51 }
  0x7e   : > { %3743 = vst.msk [vmem:[#allocation3 + $0x1c0] sm:$0xff] %vm381_vm1, %v16600_v51  ;;  %3744 = vst.msk [vmem:[#allocation3 + $0x1c8] sm:$0xff] %vm381_vm1, %v16600_v51 }
  0x7f   : > { %3745 = vst.msk [vmem:[#allocation3 + $0x1d0] sm:$0xff] %vm381_vm1, %v16600_v51  ;;  %3746 = vst.msk [vmem:[#allocation3 + $0x1d8] sm:$0xff] %vm381_vm1, %v16600_v51 }
  0x80   : > { %3747 = vst.msk [vmem:[#allocation3 + $0x1e0] sm:$0xff] %vm381_vm1, %v16600_v51  ;;  %3748 = vst.msk [vmem:[#allocation3 + $0x1e8] sm:$0xff] %vm381_vm1, %v16600_v51 }
  0x81   : > { %3749 = vst.msk [vmem:[#allocation3 + $0x1f0] sm:$0xff] %vm381_vm1, %v16600_v51  ;;  %3750 = vst.msk [vmem:[#allocation3 + $0x1f8] sm:$0xff] %vm381_vm1, %v16600_v51 }
  0x82   : > { %3751 = vst.msk [vmem:[#allocation3 + $0x200] sm:$0xff] %vm381_vm1, %v16600_v51  ;;  %3752 = vst.msk [vmem:[#allocation3 + $0x208] sm:$0xff] %vm381_vm1, %v16600_v51 }
  0x83   : > { %3753 = vst.msk [vmem:[#allocation3 + $0x210] sm:$0xff] %vm381_vm1, %v16600_v51  ;;  %3754 = vst.msk [vmem:[#allocation3 + $0x218] sm:$0xff] %vm381_vm1, %v16600_v51 }
  0x84   : > { %3755 = vst.msk [vmem:[#allocation3 + $0x220] sm:$0xff] %vm381_vm1, %v16600_v51  ;;  %3756 = vst.msk [vmem:[#allocation3 + $0x228] sm:$0xff] %vm381_vm1, %v16600_v51 }
  0x85   : > { %3757 = vst.msk [vmem:[#allocation3 + $0x230] sm:$0xff] %vm381_vm1, %v16600_v51  ;;  %3758 = vst.msk [vmem:[#allocation3 + $0x238] sm:$0xff] %vm381_vm1, %v16600_v51 }
  0x86   : > { %3759 = vst.msk [vmem:[#allocation3 + $0x240] sm:$0xff] %vm381_vm1, %v16600_v51  ;;  %3760 = vst.msk [vmem:[#allocation3 + $0x248] sm:$0xff] %vm381_vm1, %v16600_v51 }
  0x87   : > { %3761 = vst.msk [vmem:[#allocation3 + $0x250] sm:$0xff] %vm381_vm1, %v16600_v51  ;;  %3762 = vst.msk [vmem:[#allocation3 + $0x258] sm:$0xff] %vm381_vm1, %v16600_v51 }
  0x88   : > { %3763 = vst.msk [vmem:[#allocation3 + $0x260] sm:$0xff] %vm381_vm1, %v16600_v51  ;;  %3764 = vst.msk [vmem:[#allocation3 + $0x268] sm:$0xff] %vm381_vm1, %v16600_v51 }
  0x89   : > { %3765 = vst.msk [vmem:[#allocation3 + $0x270] sm:$0xff] %vm381_vm1, %v16600_v51  ;;  %3766 = vst.msk [vmem:[#allocation3 + $0x278] sm:$0xff] %vm381_vm1, %v16600_v51 }
  0x8a   : > { %3767 = vst.msk [vmem:[#allocation3 + $0x280] sm:$0xff] %vm381_vm1, %v16600_v51  ;;  %3768 = vst.msk [vmem:[#allocation3 + $0x288] sm:$0xff] %vm381_vm1, %v16600_v51 }
  0x8b   : > { %3769 = vst.msk [vmem:[#allocation3 + $0x290] sm:$0xff] %vm381_vm1, %v16600_v51  ;;  %3770 = vst.msk [vmem:[#allocation3 + $0x298] sm:$0xff] %vm381_vm1, %v16600_v51 }
  0x8c   : > { %3771 = vst.msk [vmem:[#allocation3 + $0x2a0] sm:$0xff] %vm381_vm1, %v16600_v51  ;;  %3772 = vst.msk [vmem:[#allocation3 + $0x2a8] sm:$0xff] %vm381_vm1, %v16600_v51 }
  0x8d   : > { %3773 = vst.msk [vmem:[#allocation3 + $0x2b0] sm:$0xff] %vm381_vm1, %v16600_v51  ;;  %3774 = vst.msk [vmem:[#allocation3 + $0x2b8] sm:$0xff] %vm381_vm1, %v16600_v51 }
  0x8e   : > { %3775 = vst.msk [vmem:[#allocation3 + $0x2c0] sm:$0xff] %vm381_vm1, %v16600_v51  ;;  %3776 = vst.msk [vmem:[#allocation3 + $0x2c8] sm:$0xff] %vm381_vm1, %v16600_v51 }
  0x8f   : > { %3777 = vst.msk [vmem:[#allocation3 + $0x2d0] sm:$0xff] %vm381_vm1, %v16600_v51  ;;  %3778 = vst.msk [vmem:[#allocation3 + $0x2d8] sm:$0xff] %vm381_vm1, %v16600_v51 }
  0x90   : > { %3779 = vst.msk [vmem:[#allocation3 + $0x2e0] sm:$0xff] %vm381_vm1, %v16600_v51  ;;  %3780 = vst.msk [vmem:[#allocation3 + $0x2e8] sm:$0xff] %vm381_vm1, %v16600_v51 }
  0x91   : > { %3781 = vst.msk [vmem:[#allocation3 + $0x2f0] sm:$0xff] %vm381_vm1, %v16600_v51  ;;  %3782 = vst.msk [vmem:[#allocation3 + $0x2f8] sm:$0xff] %vm381_vm1, %v16600_v51 }
  0x92   : > { %3783 = vst.msk [vmem:[#allocation3 + $0x300] sm:$0xff] %vm381_vm1, %v16600_v51  ;;  %3784 = vst.msk [vmem:[#allocation3 + $0x308] sm:$0xff] %vm381_vm1, %v16600_v51 }
  0x93   : > { %3785 = vst.msk [vmem:[#allocation3 + $0x310] sm:$0xff] %vm381_vm1, %v16600_v51  ;;  %3786 = vst.msk [vmem:[#allocation3 + $0x318] sm:$0xff] %vm381_vm1, %v16600_v51 }
  0x94   : > { %3787 = vst.msk [vmem:[#allocation3 + $0x320] sm:$0xff] %vm381_vm1, %v16600_v51  ;;  %3788 = vst.msk [vmem:[#allocation3 + $0x328] sm:$0xff] %vm381_vm1, %v16600_v51 }
  0x95   : > { %3789 = vst.msk [vmem:[#allocation3 + $0x330] sm:$0xff] %vm381_vm1, %v16600_v51  ;;  %3790 = vst.msk [vmem:[#allocation3 + $0x338] sm:$0xff] %vm381_vm1, %v16600_v51 }
  0xf2   : > { %v14207_v53 = vpop.f32.mrb[0].mxu1 }
  0xf3   : > { %v604_v56 = vmul.f32 %v14207_v53, %v17255_v52  ;;  %v468_v57 = vpop.f32.mrb[1].mxu1 }
  0xf4   : > { %v602_v58 = vmul.f32 %v17255_v52, %v468_v57  ;;  %v14208_v59 = vpop.f32.mrb[2].mxu1 }
  0xf5   : > { %v643_v60 = vadd.f32 %v17260_v54, %v604_v56  ;;  %v605_v61 = vmul.f32 %v14208_v59, %v17255_v52  ;;  %v471_v62 = vpop.f32.mrb[3].mxu1 }
  0xf6   : > { %v641_v0 = vadd.f32 %v17260_v54, %v602_v58  ;;  %v603_v1 = vmul.f32 %v17255_v52, %v471_v62 }
  0xf7   : > { %v17276_v3 = vmax.f32 %v643_v60, 0.0  ;;  %v644_v4 = vadd.f32 %v17260_v54, %v605_v61 }
  0xf8   : > { %v17281_v8 = vmax.f32 %v641_v0, 0.0  ;;  %v642_v9 = vadd.f32 %v17260_v54, %v603_v1 }
  0xf9   : > { %20496 = vst [vmem:[#allocation8_spill] sm:$0xff] %v17276_v3  ;;  %3819 = vrot.lane.b32.xlu1 %v17276_v3, %s16601_s24  ;;  %v17289_v12 = vmax.f32 %v644_v4, 0.0 }
  0xfa   : > { %20497 = vst [vmem:[#allocation9_spill] sm:$0xff] %v17281_v8  ;;  %3815 = vrot.lane.b32.xlu0 %v17281_v8, %s16601_s24  ;;  %v14211_v11 = vpop.f32.mrb[4].mxu1  ;;  %v17291_v14 = vmax.f32 %v642_v9, 0.0 }
  0xfb   : > { %20498 = vst [vmem:[#allocation10_spill] sm:$0xff] %v17289_v12  ;;  %v484_v13 = vpop.f32.mrb[5].mxu1  ;;  %v608_v15 = vmul.f32 %v14211_v11, %v17255_v52 }
  0xfc   : > { %20499 = vst [vmem:[#allocation11_spill] sm:$0xff] %v17291_v14  ;;  %v606_v16 = vmul.f32 %v17255_v52, %v484_v13  ;;  %v14212_v17 = vpop.f32.mrb[6].mxu1 }
  0xfd   : > { %3821 = vrot.lane.b32.xlu1 %v17289_v12, %s16601_s24  ;;  %v487_v18 = vpop.f32.mrb[7].mxu1  ;;  %v609_v20 = vmul.f32 %v14212_v17, %v17255_v52  ;;  %v647_v22 = vadd.f32 %v17260_v54, %v608_v15 }
  0xfe   : > { %v645_v19 = vadd.f32 %v17260_v54, %v606_v16  ;;  %v607_v21 = vmul.f32 %v17255_v52, %v487_v18  ;;  %3817 = vrot.lane.b32.xlu0 %v17291_v14, %s16601_s24 }
  0xff   : > { %v648_v25 = vadd.f32 %v17260_v54, %v609_v20  ;;  %v17311_v29 = vmax.f32 %v647_v22, 0.0 }
 0x100   : > { %v17303_v23 = vmax.f32 %v645_v19, 0.0  ;;  %v646_v24 = vadd.f32 %v17260_v54, %v607_v21 }
 0x101   : > { %20502 = vst [vmem:[#allocation14_spill] sm:$0xff] %v17311_v29  ;;  %v17317_v34 = vmax.f32 %v648_v25, 0.0 }
 0x102   : > { %20500 = vst [vmem:[#allocation12_spill] sm:$0xff] %v17303_v23  ;;  %v17307_v26 = vmax.f32 %v646_v24, 0.0  ;;  %3823 = vrot.lane.b32.xlu0 %v17303_v23, %s16601_s24  ;;  %v14215_v27 = vpop.f32.mrb[8].mxu1 }
 0x103   : > { %v500_v28 = vpop.f32.mrb[9].mxu1  ;;  %v612_v30 = vmul.f32 %v14215_v27, %v17255_v52  ;;  %20503 = vst [vmem:[#allocation15_spill] sm:$0xff] %v17317_v34 }
 0x104   : > { %20501 = vst [vmem:[#allocation13_spill] sm:$0xff] %v17307_v26  ;;  %v610_v31 = vmul.f32 %v17255_v52, %v500_v28  ;;  %3825 = vrot.lane.b32.xlu1 %v17307_v26, %s16601_s24  ;;  %v14216_v32 = vpop.f32.mrb[10].mxu1 }
 0x105   : > { %v503_v33 = vpop.f32.mrb[11].mxu1  ;;  %v613_v36 = vmul.f32 %v14216_v32, %v17255_v52  ;;  %v651_v38 = vadd.f32 %v17260_v54, %v612_v30 }
 0x106   : > { %v649_v35 = vadd.f32 %v17260_v54, %v610_v31  ;;  %v611_v37 = vmul.f32 %v17255_v52, %v503_v33  ;;  %3827 = vrot.lane.b32.xlu0 %v17311_v29, %s16601_s24 }
 0x107   : > { %v652_v41 = vadd.f32 %v17260_v54, %v613_v36  ;;  %v17335_v45 = vmax.f32 %v651_v38, 0.0 }
 0x108   : > { %v17325_v39 = vmax.f32 %v649_v35, 0.0  ;;  %v650_v40 = vadd.f32 %v17260_v54, %v611_v37  ;;  %3829 = vrot.lane.b32.xlu1 %v17317_v34, %s16601_s24 }
 0x109   : > { %20506 = vst [vmem:[#allocation18_spill] sm:$0xff] %v17335_v45  ;;  %v17341_v50 = vmax.f32 %v652_v41, 0.0 }
 0x10a   : > { %20504 = vst [vmem:[#allocation16_spill] sm:$0xff] %v17325_v39  ;;  %v17331_v42 = vmax.f32 %v650_v40, 0.0  ;;  %3831 = vrot.lane.b32.xlu0 %v17325_v39, %s16601_s24  ;;  %v14219_v43 = vpop.f32.mrb[12].mxu1 }
 0x10b   : > { %v516_v44 = vpop.f32.mrb[13].mxu1  ;;  %v616_v46 = vmul.f32 %v14219_v43, %v17255_v52  ;;  %20507 = vst [vmem:[#allocation19_spill] sm:$0xff] %v17341_v50 }
 0x10c   : > { %20505 = vst [vmem:[#allocation17_spill] sm:$0xff] %v17331_v42  ;;  %v614_v47 = vmul.f32 %v17255_v52, %v516_v44  ;;  %3833 = vrot.lane.b32.xlu1 %v17331_v42, %s16601_s24  ;;  %v14220_v48 = vpop.f32.mrb[14].mxu1 }
 0x10d   : > { %v519_v49 = vpop.f32.mrb[15].mxu1  ;;  %v617_v53 = vmul.f32 %v14220_v48, %v17255_v52  ;;  %v655_v56 = vadd.f32 %v17260_v54, %v616_v46 }
 0x10e   : > { %v653_v51 = vadd.f32 %v17260_v54, %v614_v47  ;;  %v615_v55 = vmul.f32 %v17255_v52, %v519_v49  ;;  %3835 = vrot.lane.b32.xlu0 %v17335_v45, %s16601_s24 }
 0x10f   : > { %v656_v59 = vadd.f32 %v17260_v54, %v617_v53  ;;  %v17359_v63 = vmax.f32 %v655_v56, 0.0 }
 0x110   : > { %v17349_v57 = vmax.f32 %v653_v51, 0.0  ;;  %v654_v58 = vadd.f32 %v17260_v54, %v615_v55  ;;  %3837 = vrot.lane.b32.xlu1 %v17341_v50, %s16601_s24 }
 0x111   : > { %20510 = vst [vmem:[#allocation22_spill] sm:$0xff] %v17359_v63  ;;  %v17365_v5 = vmax.f32 %v656_v59, 0.0 }
 0x112   : > { %20508 = vst [vmem:[#allocation20_spill] sm:$0xff] %v17349_v57  ;;  %v17355_v60 = vmax.f32 %v654_v58, 0.0  ;;  %3839 = vrot.lane.b32.xlu0 %v17349_v57, %s16601_s24  ;;  %v14223_v61 = vpop.f32.mrb[16].mxu1 }
 0x113   : > { %v532_v62 = vpop.f32.mrb[17].mxu1  ;;  %v620_v0 = vmul.f32 %v14223_v61, %v17255_v52  ;;  %20511 = vst [vmem:[#allocation23_spill] sm:$0xff] %v17365_v5 }
 0x114   : > { %20509 = vst [vmem:[#allocation21_spill] sm:$0xff] %v17355_v60  ;;  %v618_v1 = vmul.f32 %v17255_v52, %v532_v62  ;;  %3841 = vrot.lane.b32.xlu1 %v17355_v60, %s16601_s24  ;;  %v14224_v2 = vpop.f32.mrb[18].mxu1 }
 0x115   : > { %v535_v4 = vpop.f32.mrb[19].mxu1  ;;  %v621_v7 = vmul.f32 %v14224_v2, %v17255_v52  ;;  %v659_v10 = vadd.f32 %v17260_v54, %v620_v0 }
 0x116   : > { %v657_v6 = vadd.f32 %v17260_v54, %v618_v1  ;;  %v619_v9 = vmul.f32 %v17255_v52, %v535_v4  ;;  %3843 = vrot.lane.b32.xlu0 %v17359_v63, %s16601_s24 }
 0x117   : > { %v660_v15 = vadd.f32 %v17260_v54, %v621_v7  ;;  %v17383_v19 = vmax.f32 %v659_v10, 0.0 }
 0x118   : > { %v17373_v11 = vmax.f32 %v657_v6, 0.0  ;;  %v658_v13 = vadd.f32 %v17260_v54, %v619_v9  ;;  %3845 = vrot.lane.b32.xlu1 %v17365_v5, %s16601_s24 }
 0x119   : > { %20514 = vst [vmem:[#allocation26_spill] sm:$0xff] %v17383_v19  ;;  %v17389_v25 = vmax.f32 %v660_v15, 0.0 }
 0x11a   : > { %20512 = vst [vmem:[#allocation24_spill] sm:$0xff] %v17373_v11  ;;  %v17379_v16 = vmax.f32 %v658_v13, 0.0  ;;  %3847 = vrot.lane.b32.xlu0 %v17373_v11, %s16601_s24  ;;  %v14227_v17 = vpop.f32.mrb[20].mxu1 }
 0x11b   : > { %v548_v18 = vpop.f32.mrb[21].mxu1  ;;  %v624_v20 = vmul.f32 %v14227_v17, %v17255_v52  ;;  %20515 = vst [vmem:[#allocation27_spill] sm:$0xff] %v17389_v25 }
 0x11c   : > { %20513 = vst [vmem:[#allocation25_spill] sm:$0xff] %v17379_v16  ;;  %v622_v21 = vmul.f32 %v17255_v52, %v548_v18  ;;  %3849 = vrot.lane.b32.xlu1 %v17379_v16, %s16601_s24  ;;  %v14228_v22 = vpop.f32.mrb[22].mxu1  ;;  %v17449_v18 = vld [vmem:[%s20456_s3 + $0x10] sm:$0x3] }
 0x11d   : > { %v551_v24 = vpop.f32.mrb[23].mxu1  ;;  %v625_v28 = vmul.f32 %v14228_v22, %v17255_v52  ;;  %v663_v31 = vadd.f32 %v17260_v54, %v624_v20  ;;  %16469 = vmatprep.subr.msk.bf16.mxu0 %vm430_vm0, %v17449_v18  ;;  %v1047_v22 = vld [vmem:[#allocation2 + $0xf0] sm:$0xff] }
 0x11e   : > { %v661_v27 = vadd.f32 %v17260_v54, %v622_v21  ;;  %v623_v30 = vmul.f32 %v17255_v52, %v551_v24  ;;  %3851 = vrot.lane.b32.xlu0 %v17383_v19, %s16601_s24 }
 0x11f   : > { %v664_v35 = vadd.f32 %v17260_v54, %v625_v28  ;;  %v17407_v40 = vmax.f32 %v663_v31, 0.0  ;;  %v17465_v28 = vld [vmem:[%s20455_s2] sm:$0x3] }
 0x120   : > { %v17397_v32 = vmax.f32 %v661_v27, 0.0  ;;  %v662_v33 = vadd.f32 %v17260_v54, %v623_v30  ;;  %3853 = vrot.lane.b32.xlu1 %v17389_v25, %s16601_s24  ;;  %16453 = vmatprep.subr.msk.bf16.mxu1 %vm430_vm0, %v17465_v28 }
 0x121   : > { %20518 = vst [vmem:[#allocation30_spill] sm:$0xff] %v17407_v40  ;;  %v17413_v47 = vmax.f32 %v664_v35, 0.0 }
 0x122   : > { %20516 = vst [vmem:[#allocation28_spill] sm:$0xff] %v17397_v32  ;;  %v17403_v36 = vmax.f32 %v662_v33, 0.0  ;;  %3855 = vrot.lane.b32.xlu0 %v17397_v32, %s16601_s24  ;;  %v14231_v37 = vpop.f32.mrb[24].mxu1 }
 0x123   : > { %v564_v38 = vpop.f32.mrb[25].mxu1  ;;  %v628_v41 = vmul.f32 %v14231_v37, %v17255_v52  ;;  %20519 = vst [vmem:[#allocation31_spill] sm:$0xff] %v17413_v47 }
 0x124   : > { %20517 = vst [vmem:[#allocation29_spill] sm:$0xff] %v17403_v36  ;;  %v626_v43 = vmul.f32 %v17255_v52, %v564_v38  ;;  %3857 = vrot.lane.b32.xlu1 %v17403_v36, %s16601_s24  ;;  %v14232_v44 = vpop.f32.mrb[26].mxu1 }
 0x125   : > { %v567_v46 = vpop.f32.mrb[27].mxu1  ;;  %v629_v49 = vmul.f32 %v14232_v44, %v17255_v52  ;;  %v667_v53 = vadd.f32 %v17260_v54, %v628_v41 }
 0x126   : > { %v665_v48 = vadd.f32 %v17260_v54, %v626_v43  ;;  %v627_v51 = vmul.f32 %v17255_v52, %v567_v46  ;;  %3859 = vrot.lane.b32.xlu0 %v17407_v40, %s16601_s24 }
 0x127   : > { %v668_v58 = vadd.f32 %v17260_v54, %v629_v49  ;;  %v17432_v1 = vmax.f32 %v667_v53, 0.0  ;;  %v6332_v53 = vsel %vm430_vm0, %v17449_v18, 0 }
 0x128   : > { %v17421_v55 = vmax.f32 %v665_v48, 0.0  ;;  %v666_v56 = vadd.f32 %v17260_v54, %v627_v51  ;;  %3861 = vrot.lane.b32.xlu1 %v17413_v47, %s16601_s24 }
 0x129   : > { %20522 = vst [vmem:[#allocation34_spill] sm:$0xff] %v17432_v1  ;;  %v17439_v10 = vmax.f32 %v668_v58, 0.0 }
 0x12a   : > { %20520 = vst [vmem:[#allocation32_spill] sm:$0xff] %v17421_v55  ;;  %v17427_v59 = vmax.f32 %v666_v56, 0.0  ;;  %3863 = vrot.lane.b32.xlu0 %v17421_v55, %s16601_s24  ;;  %v14235_v61 = vpop.f32.mrb[28].mxu1 }
 0x12b   : > { %v632_v62 = vmul.f32 %v14235_v61, %v17255_v52  ;;  %v580_v0 = vpop.f32.mrb[29].mxu1  ;;  %20523 = vst [vmem:[#allocation35_spill] sm:$0xff] %v17439_v10  ;;  %v17556_v61 = vld [vmem:[%s20456_s3 + $0x12] sm:$0x3] }
 0x12c   : > { %20521 = vst [vmem:[#allocation33_spill] sm:$0xff] %v17427_v59  ;;  %v630_v2 = vmul.f32 %v17255_v52, %v580_v0  ;;  %3865 = vrot.lane.b32.xlu1 %v17427_v59, %s16601_s24  ;;  %v14236_v4 = vpop.f32.mrb[30].mxu1 }
 0x12d   : > { %v671_v6 = vadd.f32 %v17260_v54, %v632_v62  ;;  %v633_v7 = vmul.f32 %v14236_v4, %v17255_v52  ;;  %v583_v9 = vpop.f32.mrb[31].mxu1 }
 0x12e   : > { %v669_v13 = vadd.f32 %v17260_v54, %v630_v2  ;;  %v631_v15 = vmul.f32 %v17255_v52, %v583_v9  ;;  %3867 = vrot.lane.b32.xlu0 %v17432_v1, %s16601_s24  ;;  %v1046_v52 = vld [vmem:[#allocation2 + $0xe8] sm:$0xff] }
 0x12f   : > { %v672_v17 = vadd.f32 %v17260_v54, %v633_v7  ;;  %v1078_v27 = vpack.c.bf16 %v1047_v22, %v1046_v52  ;;  %v17532_v33 = vmax.f32 %v671_v6, 0.0 }
 0x130   : > { %v17451_v20 = vmax.f32 %v669_v13, 0.0  ;;  %v670_v21 = vadd.f32 %v17260_v54, %v631_v15  ;;  %3869 = vrot.lane.b32.xlu1 %v17439_v10, %s16601_s24 }
 0x131   : > { %14239 = vmatprep.mubr.msk.bf16.mxu1 %vm381_vm1, %v1078_v27  ;;  %20526 = vst [vmem:[#allocation38_spill] sm:$0xff] %v17532_v33  ;;  %v17538_v37 = vmax.f32 %v672_v17, 0.0 }
 0x132   : > { %20524 = vst [vmem:[#allocation36_spill] sm:$0xff] %v17451_v20  ;;  %v17458_v24 = vmax.f32 %v670_v21, 0.0  ;;  %3871 = vrot.lane.b32.xlu0 %v17451_v20, %s16601_s24 }
 0x134   : > { %20525 = vst [vmem:[#allocation37_spill] sm:$0xff] %v17458_v24  ;;  %3873 = vrot.lane.b32.xlu1 %v17458_v24, %s16601_s24 }
 0x136   : > { %867 = vrot.lane.b32.xlu0 %v17281_v8, %s16602_s29 }
 0x138   : > { %869 = vrot.lane.b32.xlu1 %v17291_v14, %s16602_s29  ;;  %v19231_v14 = vld [vmem:[#allocation4 + $0x1a9] sm:$0xff] }
 0x13a   : > { %871 = vrot.lane.b32.xlu0 %v17276_v3, %s16602_s29 }
 0x13c   : > { %873 = vrot.lane.b32.xlu1 %v17289_v12, %s16602_s29 }
 0x13e   : > { %875 = vrot.lane.b32.xlu0 %v17303_v23, %s16602_s29 }
 0x140   : > { %877 = vrot.lane.b32.xlu1 %v17307_v26, %s16602_s29  ;;  %v19179_v26 = vld [vmem:[#allocation4 + $0x190] sm:$0xff] }
 0x142   : > { %879 = vrot.lane.b32.xlu0 %v17311_v29, %s16602_s29 }
 0x144   : > { %881 = vrot.lane.b32.xlu1 %v17317_v34, %s16602_s29 }
 0x146   : > { %883 = vrot.lane.b32.xlu0 %v17325_v39, %s16602_s29  ;;  %v19169_v39 = vld [vmem:[#allocation4 + $0x169] sm:$0xff] }
 0x148   : > { %885 = vrot.lane.b32.xlu1 %v17331_v42, %s16602_s29 }
 0x14a   : > { %887 = vrot.lane.b32.xlu0 %v17335_v45, %s16602_s29 }
 0x14c   : > { %889 = vrot.lane.b32.xlu1 %v17341_v50, %s16602_s29 }
 0x14e   : > { %891 = vrot.lane.b32.xlu0 %v17349_v57, %s16602_s29 }
 0x150   : > { %893 = vrot.lane.b32.xlu1 %v17355_v60, %s16602_s29 }
 0x152   : > { %895 = vrot.lane.b32.xlu0 %v17359_v63, %s16602_s29 }
 0x154   : > { %897 = vrot.lane.b32.xlu1 %v17365_v5, %s16602_s29 }
 0x156   : > { %899 = vrot.lane.b32.xlu0 %v17373_v11, %s16602_s29 }
 0x158   : > { %901 = vrot.lane.b32.xlu1 %v17379_v16, %s16602_s29 }
 0x15a   : > { %903 = vrot.lane.b32.xlu0 %v17383_v19, %s16602_s29 }
 0x15c   : > { %905 = vrot.lane.b32.xlu1 %v17389_v25, %s16602_s29 }
 0x15e   : > { %907 = vrot.lane.b32.xlu0 %v17397_v32, %s16602_s29 }
 0x160   : > { %909 = vrot.lane.b32.xlu1 %v17403_v36, %s16602_s29 }
 0x162   : > { %911 = vrot.lane.b32.xlu0 %v17407_v40, %s16602_s29 }
 0x164   : > { %913 = vrot.lane.b32.xlu1 %v17413_v47, %s16602_s29 }
 0x166   : > { %915 = vrot.lane.b32.xlu0 %v17421_v55, %s16602_s29 }
 0x168   : > { %917 = vrot.lane.b32.xlu1 %v17427_v59, %s16602_s29 }
 0x16a   : > { %919 = vrot.lane.b32.xlu0 %v17432_v1, %s16602_s29 }
 0x16b   : > { %v3820_v54 = vpop.permute.xlu1 %3819 }
 0x16c   : > { %3914 = vst.msk [vmem:[#allocation3 + $0x128] sm:$0xff] %vm381_vm1, %v3820_v54  ;;  %v3816_v30 = vpop.permute.xlu0 %3815  ;;  %921 = vrot.lane.b32.xlu1 %v17439_v10, %s16602_s29 }
 0x16d   : > { %3912 = vst.msk [vmem:[#allocation3 + $0x108] sm:$0xff] %vm381_vm1, %v3816_v30 }
 0x16e   : > { %923 = vrot.lane.b32.xlu0 %v17451_v20, %s16602_s29 }
 0x16f   : > { %v3822_v31 = vpop.permute.xlu1 %3821 }
 0x170   : > { %3915 = vst.msk [vmem:[#allocation3 + $0x130] sm:$0xff] %vm381_vm1, %v3822_v31  ;;  %v3818_v35 = vpop.permute.xlu0 %3817  ;;  %925 = vrot.lane.b32.xlu1 %v17458_v24, %s16602_s29 }
 0x171   : > { %3913 = vst.msk [vmem:[#allocation3 + $0x110] sm:$0xff] %vm381_vm1, %v3818_v35 }
 0x172   : > { %3875 = vrot.lane.b32.xlu0 %v17532_v33, %s16601_s24 }
 0x173   : > { %v5943_v51 = vld [vmem:[#allocation3 + $0x128] sm:$0xff] }
 0x174   : > { %v3824_v38 = vpop.permute.xlu0 %3823  ;;  %3877 = vrot.lane.b32.xlu1 %v17538_v37, %s16601_s24  ;;  %v5941_v46 = vld [vmem:[#allocation3 + $0x108] sm:$0xff]  ;;  %s12903_s24 = sshll.u32 %s20159_s22, 4  ;;  %s20404_s24 = int_to_ptr.vmem [resolvable:$true] %s12903_s24 }
 0x175   : > { %3916 = vst.msk [vmem:[#allocation3 + $0x148] sm:$0xff] %vm381_vm1, %v3824_v38  ;;  %v7115_v11 = vld [vmem:[#allocation3 + $0x107] sm:$0xff]  ;;  %s16535_s14 = scalar_lea.vmem %s20404_s24, 4096 }
 0x176   : > { %v3826_v41 = vpop.permute.xlu1 %3825  ;;  %927 = vrot.lane.b32.xlu0 %v17532_v33, %s16602_s29  ;;  %v8880_v19 = vld [vmem:[#allocation3 + $0x128] sm:$0xff]  ;;  %p16536_p11 = scmp.ne.s32.totalorder %s20404_s24, %s16535_s14 }
 0x177   : > { %3917 = vst.msk [vmem:[#allocation3 + $0x150] sm:$0xff] %vm381_vm1, %v3826_v41  ;;  %v5944_v43 = vld [vmem:[#allocation3 + $0x130] sm:$0xff] }
 0x178   : > { %v3828_v44 = vpop.permute.xlu0 %3827  ;;  %929 = vrot.lane.b32.xlu1 %v17538_v37, %s16602_s29  ;;  %v5942_v48 = vld [vmem:[#allocation3 + $0x110] sm:$0xff]  ;;  %v5973_v58 = vpack.c.bf16 %v5944_v43, %v5943_v51  ;;  %p16537_p12 = pnand %p16536_p11, %p16697_p5 }
 0x179   : > { %3918 = vst.msk [vmem:[#allocation3 + $0x168] sm:$0xff] %vm381_vm1, %v3828_v44  ;;  %v5972_v49 = vpack.c.bf16 %v5942_v48, %v5941_v46  ;;  %v8881_v25 = vld [vmem:[#allocation3 + $0x130] sm:$0xff] }
 0x17a   : > { %v3830_v56 = vpop.permute.xlu1 %3829  ;;  %p16538_p13 = pneg %p16537_p12 }
 0x17b   : > { %3919 = vst.msk [vmem:[#allocation3 + $0x170] sm:$0xff] %vm381_vm1, %v3830_v56  ;;  %14784 = vmatmul.mubr.msk.bf16.vlgmr.msra.gmra.mrb[0].mxu0 %vm381_vm1, %v5972_v49 }
 0x17c   : > { %14787 = vmatprep.mubr.msk.bf16.mxu0 %vm381_vm1, %v5973_v58  ;;  %v3832_v62 = vpop.permute.xlu0 %3831  ;;  %14816 = vmatpush3.bf16.msra.mxu0 %v6332_v53  ;;  %v5945_v6 = vld [vmem:[#allocation3 + $0x148] sm:$0xff] }
 0x17d   : > { %3920 = vst.msk [vmem:[#allocation3 + $0x188] sm:$0xff] %vm381_vm1, %v3832_v62  ;;  %16470 = vmatprep.subr.msk.bf16.mxu0 %vm430_vm0, %v17556_v61 }
 0x17e   : > { %v3834_v0 = vpop.permute.xlu1 %3833  ;;  %v5946_v2 = vld [vmem:[#allocation3 + $0x150] sm:$0xff] }
 0x17f   : > { %3921 = vst.msk [vmem:[#allocation3 + $0x190] sm:$0xff] %vm381_vm1, %v3834_v0  ;;  %v5974_v7 = vpack.c.bf16 %v5946_v2, %v5945_v6  ;;  %v19194_v23 = vld [vmem:[#allocation3 + $0x14a] sm:$0xff] }
 0x180   : > { %v3836_v4 = vpop.permute.xlu0 %3835  ;;  %v5947_v13 = vld [vmem:[#allocation3 + $0x168] sm:$0xff] }
 0x181   : > { %3922 = vst.msk [vmem:[#allocation3 + $0x1a8] sm:$0xff] %vm381_vm1, %v3836_v4 }
 0x182   : > { %v3838_v9 = vpop.permute.xlu1 %3837  ;;  %v5948_v15 = vld [vmem:[#allocation3 + $0x170] sm:$0xff] }
 0x183   : > { %3923 = vst.msk [vmem:[#allocation3 + $0x1b0] sm:$0xff] %vm381_vm1, %v3838_v9  ;;  %14788 = vmatmul.mubr.msk.bf16.gmra.mrb[4].mxu0 %vm381_vm1, %v5974_v7  ;;  %v5975_v17 = vpack.c.bf16 %v5948_v15, %v5947_v13 }
 0x184   : > { %v3840_v18 = vpop.permute.xlu0 %3839  ;;  %v5949_v27 = vld [vmem:[#allocation3 + $0x188] sm:$0xff] }
 0x185   : > { %3924 = vst.msk [vmem:[#allocation3 + $0x1c8] sm:$0xff] %vm381_vm1, %v3840_v18  ;;  %14791 = vmatprep.mubr.msk.bf16.mxu0 %vm381_vm1, %v5975_v17 }
 0x186   : > { %v3842_v21 = vpop.permute.xlu1 %3841  ;;  %v5950_v52 = vld [vmem:[#allocation3 + $0x190] sm:$0xff] }
 0x187   : > { %3925 = vst.msk [vmem:[#allocation3 + $0x1d0] sm:$0xff] %vm381_vm1, %v3842_v21  ;;  %v5976_v54 = vpack.c.bf16 %v5950_v52, %v5949_v27 }
 0x188   : > { %v3844_v22 = vpop.permute.xlu0 %3843  ;;  %v5951_v31 = vld [vmem:[#allocation3 + $0x1a8] sm:$0xff] }
 0x189   : > { %3926 = vst.msk [vmem:[#allocation3 + $0x1e8] sm:$0xff] %vm381_vm1, %v3844_v22 }
 0x18a   : > { %v3846_v30 = vpop.permute.xlu1 %3845  ;;  %v5952_v35 = vld [vmem:[#allocation3 + $0x1b0] sm:$0xff] }
 0x18b   : > { %3927 = vst.msk [vmem:[#allocation3 + $0x1f0] sm:$0xff] %vm381_vm1, %v3846_v30  ;;  %14792 = vmatmul.mubr.msk.bf16.gmra.mrb[8].mxu0 %vm381_vm1, %v5976_v54  ;;  %v5977_v38 = vpack.c.bf16 %v5952_v35, %v5951_v31  ;;  %v6832_v24 = vld [vmem:[#allocation3 + $0x1ae] sm:$0xff] }
 0x18c   : > { %v3848_v41 = vpop.permute.xlu0 %3847  ;;  %v5953_v48 = vld [vmem:[#allocation3 + $0x1c8] sm:$0xff] }
 0x18d   : > { %3928 = vst.msk [vmem:[#allocation3 + $0x208] sm:$0xff] %vm381_vm1, %v3848_v41  ;;  %14795 = vmatprep.mubr.msk.bf16.mxu0 %vm381_vm1, %v5977_v38 }
 0x18e   : > { %v3850_v43 = vpop.permute.xlu1 %3849  ;;  %v5954_v44 = vld [vmem:[#allocation3 + $0x1d0] sm:$0xff] }
 0x18f   : > { %3929 = vst.msk [vmem:[#allocation3 + $0x210] sm:$0xff] %vm381_vm1, %v3850_v43  ;;  %v5978_v49 = vpack.c.bf16 %v5954_v44, %v5953_v48 }
 0x190   : > { %v3852_v46 = vpop.permute.xlu0 %3851  ;;  %v5955_v53 = vld [vmem:[#allocation3 + $0x1e8] sm:$0xff] }
 0x191   : > { %3930 = vst.msk [vmem:[#allocation3 + $0x228] sm:$0xff] %vm381_vm1, %v3852_v46 }
 0x192   : > { %v3854_v51 = vpop.permute.xlu1 %3853  ;;  %v5956_v56 = vld [vmem:[#allocation3 + $0x1f0] sm:$0xff] }
 0x193   : > { %3931 = vst.msk [vmem:[#allocation3 + $0x230] sm:$0xff] %vm381_vm1, %v3854_v51  ;;  %14796 = vmatmul.mubr.msk.bf16.gmra.mrb[12].mxu0 %vm381_vm1, %v5978_v49  ;;  %v5979_v58 = vpack.c.bf16 %v5956_v56, %v5955_v53 }
 0x194   : > { %v3856_v62 = vpop.permute.xlu0 %3855  ;;  %v5957_v6 = vld [vmem:[#allocation3 + $0x208] sm:$0xff] }
 0x195   : > { %3932 = vst.msk [vmem:[#allocation3 + $0x248] sm:$0xff] %vm381_vm1, %v3856_v62  ;;  %14799 = vmatprep.mubr.msk.bf16.mxu0 %vm381_vm1, %v5979_v58 }
 0x196   : > { %v3858_v0 = vpop.permute.xlu1 %3857  ;;  %v5958_v2 = vld [vmem:[#allocation3 + $0x210] sm:$0xff] }
 0x197   : > { %3933 = vst.msk [vmem:[#allocation3 + $0x250] sm:$0xff] %vm381_vm1, %v3858_v0  ;;  %v5980_v7 = vpack.c.bf16 %v5958_v2, %v5957_v6  ;;  %v6233_v0 = vld [vmem:[#allocation3 + $0xe9] sm:$0xff]  ;;  %v6234_v2 = vld [vmem:[#allocation3 + $0xf1] sm:$0xff] }
 0x198   : > { %v3860_v4 = vpop.permute.xlu0 %3859  ;;  %v5959_v13 = vld [vmem:[#allocation3 + $0x228] sm:$0xff] }
 0x199   : > { %3934 = vst.msk [vmem:[#allocation3 + $0x268] sm:$0xff] %vm381_vm1, %v3860_v4 }
 0x19a   : > { %v3862_v9 = vpop.permute.xlu1 %3861  ;;  %v5960_v15 = vld [vmem:[#allocation3 + $0x230] sm:$0xff] }
 0x19b   : > { %3935 = vst.msk [vmem:[#allocation3 + $0x270] sm:$0xff] %vm381_vm1, %v3862_v9  ;;  %14800 = vmatmul.mubr.msk.bf16.gmra.mrb[16].mxu0 %vm381_vm1, %v5980_v7  ;;  %v5981_v17 = vpack.c.bf16 %v5960_v15, %v5959_v13  ;;  %v6265_v13 = vpack.c.bf16 %v6234_v2, %v6233_v0 }
 0x19c   : > { %v3864_v18 = vpop.permute.xlu0 %3863  ;;  %v5961_v27 = vld [vmem:[#allocation3 + $0x248] sm:$0xff] }
 0x19d   : > { %3936 = vst.msk [vmem:[#allocation3 + $0x288] sm:$0xff] %vm381_vm1, %v3864_v18  ;;  %14803 = vmatprep.mubr.msk.bf16.mxu0 %vm381_vm1, %v5981_v17 }
 0x19e   : > { %v3866_v21 = vpop.permute.xlu1 %3865  ;;  %v5962_v52 = vld [vmem:[#allocation3 + $0x250] sm:$0xff] }
 0x19f   : > { %3937 = vst.msk [vmem:[#allocation3 + $0x290] sm:$0xff] %vm381_vm1, %v3866_v21  ;;  %v5982_v54 = vpack.c.bf16 %v5962_v52, %v5961_v27 }
 0x1a0   : > { %v3868_v22 = vpop.permute.xlu0 %3867  ;;  %v5963_v31 = vld [vmem:[#allocation3 + $0x268] sm:$0xff] }
 0x1a1   : > { %3938 = vst.msk [vmem:[#allocation3 + $0x2a8] sm:$0xff] %vm381_vm1, %v3868_v22  ;;  %v1357_v22 = vsel %vm430_vm0, %v17465_v28, 0 }
 0x1a2   : > { %v3870_v30 = vpop.permute.xlu1 %3869  ;;  %v5964_v35 = vld [vmem:[#allocation3 + $0x270] sm:$0xff] }
 0x1a3   : > { %3939 = vst.msk [vmem:[#allocation3 + $0x2b0] sm:$0xff] %vm381_vm1, %v3870_v30  ;;  %14804 = vmatmul.mubr.msk.bf16.gmra.mrb[20].mxu0 %vm381_vm1, %v5982_v54  ;;  %v5983_v38 = vpack.c.bf16 %v5964_v35, %v5963_v31  ;;  %v17610_v54 = vld [vmem:[%s20455_s2 + $0x4] sm:$0x3]  ;;  %v6235_v30 = vld [vmem:[#allocation3 + $0x109] sm:$0xff] }
 0x1a4   : > { %v3872_v41 = vpop.permute.xlu0 %3871  ;;  %v5965_v48 = vld [vmem:[#allocation3 + $0x288] sm:$0xff] }
 0x1a5   : > { %3940 = vst.msk [vmem:[#allocation3 + $0x2c8] sm:$0xff] %vm381_vm1, %v3872_v41  ;;  %14807 = vmatprep.mubr.msk.bf16.mxu0 %vm381_vm1, %v5983_v38  ;;  %v6236_v41 = vld [vmem:[#allocation3 + $0x111] sm:$0xff] }
 0x1a6   : > { %v3874_v43 = vpop.permute.xlu1 %3873  ;;  %v5966_v44 = vld [vmem:[#allocation3 + $0x290] sm:$0xff] }
 0x1a7   : > { %3941 = vst.msk [vmem:[#allocation3 + $0x2d0] sm:$0xff] %vm381_vm1, %v3874_v43  ;;  %v5984_v49 = vpack.c.bf16 %v5966_v44, %v5965_v48  ;;  %v6237_v43 = vld [vmem:[#allocation3 + $0x129] sm:$0xff]  ;;  %v6238_v44 = vld [vmem:[#allocation3 + $0x131] sm:$0xff]  ;;  %v6266_v48 = vpack.c.bf16 %v6236_v41, %v6235_v30 }
 0x1a8   : > { %v868_v46 = vpop.permute.xlu0 %867  ;;  %v5967_v53 = vld [vmem:[#allocation3 + $0x2a8] sm:$0xff] }
 0x1a9   : > { %964 = vst.msk [vmem:[#allocation2 + $0x108] sm:$0xff] %vm381_vm1, %v868_v46 }
 0x1aa   : > { %v870_v51 = vpop.permute.xlu1 %869  ;;  %v5968_v56 = vld [vmem:[#allocation3 + $0x2b0] sm:$0xff] }
 0x1ab   : > { %965 = vst.msk [vmem:[#allocation2 + $0x110] sm:$0xff] %vm381_vm1, %v870_v51  ;;  %14808 = vmatmul.mubr.msk.bf16.gmra.mrb[24].mxu0 %vm381_vm1, %v5984_v49  ;;  %v5985_v58 = vpack.c.bf16 %v5968_v56, %v5967_v53  ;;  %v6626_v49 = vsel %vm430_vm0, %v17556_v61, 0  ;;  %v6267_v53 = vpack.c.bf16 %v6238_v44, %v6237_v43  ;;  %v6239_v61 = vld [vmem:[#allocation3 + $0x149] sm:$0xff]  ;;  %v6244_v44 = vld [vmem:[#allocation3 + $0x191] sm:$0xff] }
 0x1ac   : > { %v872_v62 = vpop.permute.xlu0 %871  ;;  %v5969_v9 = vld [vmem:[#allocation3 + $0x2c8] sm:$0xff] }
 0x1ad   : > { %966 = vst.msk [vmem:[#allocation2 + $0x128] sm:$0xff] %vm381_vm1, %v872_v62  ;;  %14811 = vmatprep.mubr.msk.bf16.mxu0 %vm381_vm1, %v5985_v58  ;;  %v17624_v62 = vld [vmem:[%s20456_s3 + $0x14] sm:$0x3] }
 0x1ae   : > { %v874_v4 = vpop.permute.xlu1 %873  ;;  %v5970_v6 = vld [vmem:[#allocation3 + $0x2d0] sm:$0xff] }
 0x1af   : > { %967 = vst.msk [vmem:[#allocation2 + $0x130] sm:$0xff] %vm381_vm1, %v874_v4  ;;  %v5986_v15 = vpack.c.bf16 %v5970_v6, %v5969_v9  ;;  %v6240_v9 = vld [vmem:[#allocation3 + $0x151] sm:$0xff] }
 0x1b0   : > { %v876_v7 = vpop.permute.xlu0 %875  ;;  %v1048_v18 = vld [vmem:[#allocation2 + $0x108] sm:$0xff] }
 0x1b1   : > { %968 = vst.msk [vmem:[#allocation2 + $0x148] sm:$0xff] %vm381_vm1, %v876_v7 }
 0x1b2   : > { %v878_v17 = vpop.permute.xlu1 %877  ;;  %v1049_v21 = vld [vmem:[#allocation2 + $0x110] sm:$0xff] }
 0x1b3   : > { %969 = vst.msk [vmem:[#allocation2 + $0x150] sm:$0xff] %vm381_vm1, %v878_v17  ;;  %14812 = vmatmul.mubr.msk.bf16.gmra.mrb[28].mxu0 %vm381_vm1, %v5986_v15  ;;  %v1079_v52 = vpack.c.bf16 %v1049_v21, %v1048_v18  ;;  %v6241_v15 = vld [vmem:[#allocation3 + $0x169] sm:$0xff]  ;;  %v6242_v17 = vld [vmem:[#allocation3 + $0x171] sm:$0xff]  ;;  %v6268_v21 = vpack.c.bf16 %v6240_v9, %v6239_v61 }
 0x1b4   : > { %v880_v27 = vpop.permute.xlu0 %879  ;;  %14817 = vmatprep.mubr.msk.bf16.mxu0 %vm381_vm1, %v6265_v13  ;;  %v1050_v35 = vld [vmem:[#allocation2 + $0x128] sm:$0xff]  ;;  %v1523_v33 = vld [vmem:[#allocation2 + $0x111] sm:$0xff] }
 0x1b5   : > { %970 = vst.msk [vmem:[#allocation2 + $0x168] sm:$0xff] %vm381_vm1, %v880_v27  ;;  %14240 = vmatmul.mubr.msk.bf16.vlgmr.msra.gmra.mrb[32].mxu1 %vm381_vm1, %v1079_v52 }
 0x1b6   : > { %14272 = vmatpush3.bf16.msra.mxu1 %v1357_v22  ;;  %v882_v31 = vpop.permute.xlu1 %881  ;;  %v1051_v38 = vld [vmem:[#allocation2 + $0x130] sm:$0xff]  ;;  %v6269_v22 = vpack.c.bf16 %v6242_v17, %v6241_v15 }
 0x1b7   : > { %971 = vst.msk [vmem:[#allocation2 + $0x170] sm:$0xff] %vm381_vm1, %v882_v31  ;;  %v1080_v28 = vpack.c.bf16 %v1051_v38, %v1050_v35  ;;  %16454 = vmatprep.subr.msk.bf16.mxu1 %vm430_vm0, %v17610_v54  ;;  %v6243_v38 = vld [vmem:[#allocation3 + $0x189] sm:$0xff]  ;;  %v6248_v15 = vld [vmem:[#allocation3 + $0x1d1] sm:$0xff] }
 0x1b8   : > { %v884_v46 = vpop.permute.xlu0 %883  ;;  %v1052_v56 = vld [vmem:[#allocation2 + $0x148] sm:$0xff] }
 0x1b9   : > { %972 = vst.msk [vmem:[#allocation2 + $0x188] sm:$0xff] %vm381_vm1, %v884_v46  ;;  %14243 = vmatprep.mubr.msk.bf16.mxu1 %vm381_vm1, %v1080_v28 }
 0x1ba   : > { %v886_v51 = vpop.permute.xlu1 %885  ;;  %v1053_v58 = vld [vmem:[#allocation2 + $0x150] sm:$0xff] }
 0x1bb   : > { %973 = vst.msk [vmem:[#allocation2 + $0x190] sm:$0xff] %vm381_vm1, %v886_v51  ;;  %14818 = vmatmul.mubr.msk.bf16.vlgmr.msra.gmra.mrb[0].mxu0 %vm381_vm1, %v6266_v48  ;;  %v1081_v0 = vpack.c.bf16 %v1053_v58, %v1052_v56  ;;  %v6245_v48 = vld [vmem:[#allocation3 + $0x1a9] sm:$0xff] }
 0x1bc   : > { %v888_v2 = vpop.permute.xlu0 %887  ;;  %14821 = vmatprep.mubr.msk.bf16.mxu0 %vm381_vm1, %v6267_v53  ;;  %14850 = vmatpush3.bf16.msra.mxu0 %v6626_v49  ;;  %v1054_v6 = vld [vmem:[#allocation2 + $0x168] sm:$0xff]  ;;  %v6246_v49 = vld [vmem:[#allocation3 + $0x1b1] sm:$0xff]  ;;  %v6270_v53 = vpack.c.bf16 %v6244_v44, %v6243_v38 }
 0x1bd   : > { %974 = vst.msk [vmem:[#allocation2 + $0x1a8] sm:$0xff] %vm381_vm1, %v888_v2  ;;  %14244 = vmatmul.mubr.msk.bf16.gmra.mrb[36].mxu1 %vm381_vm1, %v1081_v0  ;;  %16471 = vmatprep.subr.msk.bf16.mxu0 %vm430_vm0, %v17624_v62  ;;  %v6271_v58 = vpack.c.bf16 %v6246_v49, %v6245_v48  ;;  %v6252_v48 = vld [vmem:[#allocation3 + $0x211] sm:$0xff] }
 0x1be   : > { %v890_v4 = vpop.permute.xlu1 %889  ;;  %v1055_v7 = vld [vmem:[#allocation2 + $0x170] sm:$0xff] }
 0x1bf   : > { %975 = vst.msk [vmem:[#allocation2 + $0x1b0] sm:$0xff] %vm381_vm1, %v890_v4  ;;  %v1082_v13 = vpack.c.bf16 %v1055_v7, %v1054_v6  ;;  %v6247_v6 = vld [vmem:[#allocation3 + $0x1c9] sm:$0xff] }
 0x1c0   : > { %v892_v18 = vpop.permute.xlu0 %891  ;;  %v1056_v27 = vld [vmem:[#allocation2 + $0x188] sm:$0xff] }
 0x1c1   : > { %976 = vst.msk [vmem:[#allocation2 + $0x1c8] sm:$0xff] %vm381_vm1, %v892_v18  ;;  %14247 = vmatprep.mubr.msk.bf16.mxu1 %vm381_vm1, %v1082_v13  ;;  %v6249_v18 = vld [vmem:[#allocation3 + $0x1e9] sm:$0xff] }
 0x1c2   : > { %v894_v52 = vpop.permute.xlu1 %893  ;;  %v1057_v30 = vld [vmem:[#allocation2 + $0x190] sm:$0xff] }
 0x1c3   : > { %977 = vst.msk [vmem:[#allocation2 + $0x1d0] sm:$0xff] %vm381_vm1, %v894_v52  ;;  %14822 = vmatmul.mubr.msk.bf16.gmra.mrb[4].mxu0 %vm381_vm1, %v6268_v21  ;;  %v1083_v31 = vpack.c.bf16 %v1057_v30, %v1056_v27  ;;  %v6250_v21 = vld [vmem:[#allocation3 + $0x1f1] sm:$0xff] }
 0x1c4   : > { %v896_v35 = vpop.permute.xlu0 %895  ;;  %14825 = vmatprep.mubr.msk.bf16.mxu0 %vm381_vm1, %v6269_v22  ;;  %v1058_v28 = vld [vmem:[#allocation2 + $0x1a8] sm:$0xff]  ;;  %v6272_v22 = vpack.c.bf16 %v6248_v15, %v6247_v6  ;;  %v6273_v30 = vpack.c.bf16 %v6250_v21, %v6249_v18  ;;  %v6256_v18 = vld [vmem:[#allocation3 + $0x251] sm:$0xff] }
 0x1c5   : > { %978 = vst.msk [vmem:[#allocation2 + $0x1e8] sm:$0xff] %vm381_vm1, %v896_v35  ;;  %14248 = vmatmul.mubr.msk.bf16.gmra.mrb[40].mxu1 %vm381_vm1, %v1083_v31 }
 0x1c6   : > { %v898_v41 = vpop.permute.xlu1 %897  ;;  %v1059_v43 = vld [vmem:[#allocation2 + $0x1b0] sm:$0xff] }
 0x1c7   : > { %979 = vst.msk [vmem:[#allocation2 + $0x1f0] sm:$0xff] %vm381_vm1, %v898_v41  ;;  %v1084_v46 = vpack.c.bf16 %v1059_v43, %v1058_v28  ;;  %v6251_v28 = vld [vmem:[#allocation3 + $0x209] sm:$0xff] }
 0x1c8   : > { %v900_v51 = vpop.permute.xlu0 %899  ;;  %v1060_v0 = vld [vmem:[#allocation2 + $0x1c8] sm:$0xff] }
 0x1c9   : > { %980 = vst.msk [vmem:[#allocation2 + $0x208] sm:$0xff] %vm381_vm1, %v900_v51  ;;  %14251 = vmatprep.mubr.msk.bf16.mxu1 %vm381_vm1, %v1084_v46  ;;  %v6253_v51 = vld [vmem:[#allocation3 + $0x229] sm:$0xff] }
 0x1ca   : > { %v902_v56 = vpop.permute.xlu1 %901  ;;  %v1061_v2 = vld [vmem:[#allocation2 + $0x1d0] sm:$0xff] }
 0x1cb   : > { %981 = vst.msk [vmem:[#allocation2 + $0x210] sm:$0xff] %vm381_vm1, %v902_v56  ;;  %14826 = vmatmul.mubr.msk.bf16.gmra.mrb[8].mxu0 %vm381_vm1, %v6270_v53  ;;  %v1085_v61 = vpack.c.bf16 %v1061_v2, %v1060_v0  ;;  %v6254_v53 = vld [vmem:[#allocation3 + $0x231] sm:$0xff]  ;;  %v1534_v20 = vld [vmem:[#allocation2 + $0x1c9] sm:$0xff] }
 0x1cc   : > { %v904_v4 = vpop.permute.xlu0 %903  ;;  %14829 = vmatprep.mubr.msk.bf16.mxu0 %vm381_vm1, %v6271_v58  ;;  %v1062_v9 = vld [vmem:[#allocation2 + $0x1e8] sm:$0xff]  ;;  %v6274_v58 = vpack.c.bf16 %v6252_v48, %v6251_v28  ;;  %v6275_v2 = vpack.c.bf16 %v6254_v53, %v6253_v51  ;;  %v6260_v53 = vld [vmem:[#allocation3 + $0x291] sm:$0xff] }
 0x1cd   : > { %982 = vst.msk [vmem:[#allocation2 + $0x228] sm:$0xff] %vm381_vm1, %v904_v4  ;;  %14252 = vmatmul.mubr.msk.bf16.gmra.mrb[44].mxu1 %vm381_vm1, %v1085_v61  ;;  %v1535_v59 = vld [vmem:[#allocation2 + $0x1d1] sm:$0xff] }
 0x1ce   : > { %v906_v7 = vpop.permute.xlu1 %905  ;;  %v1063_v13 = vld [vmem:[#allocation2 + $0x1f0] sm:$0xff] }
 0x1cf   : > { %983 = vst.msk [vmem:[#allocation2 + $0x230] sm:$0xff] %vm381_vm1, %v906_v7  ;;  %v1086_v17 = vpack.c.bf16 %v1063_v13, %v1062_v9  ;;  %v6255_v9 = vld [vmem:[#allocation3 + $0x249] sm:$0xff] }
 0x1d0   : > { %v908_v52 = vpop.permute.xlu0 %907  ;;  %v1064_v31 = vld [vmem:[#allocation2 + $0x208] sm:$0xff] }
 0x1d1   : > { %984 = vst.msk [vmem:[#allocation2 + $0x248] sm:$0xff] %vm381_vm1, %v908_v52  ;;  %14255 = vmatprep.mubr.msk.bf16.mxu1 %vm381_vm1, %v1086_v17  ;;  %v6257_v52 = vld [vmem:[#allocation3 + $0x269] sm:$0xff] }
 0x1d2   : > { %v910_v27 = vpop.permute.xlu1 %909  ;;  %v1065_v35 = vld [vmem:[#allocation2 + $0x210] sm:$0xff] }
 0x1d3   : > { %985 = vst.msk [vmem:[#allocation2 + $0x250] sm:$0xff] %vm381_vm1, %v910_v27  ;;  %14830 = vmatmul.mubr.msk.bf16.gmra.mrb[12].mxu0 %vm381_vm1, %v6272_v22  ;;  %v1087_v38 = vpack.c.bf16 %v1065_v35, %v1064_v31  ;;  %v6258_v22 = vld [vmem:[#allocation3 + $0x271] sm:$0xff]  ;;  %v1538_v55 = vld [vmem:[#allocation2 + $0x209] sm:$0xff] }
 0x1d4   : > { %v912_v41 = vpop.permute.xlu0 %911  ;;  %14833 = vmatprep.mubr.msk.bf16.mxu0 %vm381_vm1, %v6273_v30  ;;  %v1066_v44 = vld [vmem:[#allocation2 + $0x228] sm:$0xff]  ;;  %v6276_v30 = vpack.c.bf16 %v6256_v18, %v6255_v9  ;;  %v6277_v35 = vpack.c.bf16 %v6258_v22, %v6257_v52  ;;  %v6264_v22 = vld [vmem:[#allocation3 + $0x2d1] sm:$0xff] }
 0x1d5   : > { %986 = vst.msk [vmem:[#allocation2 + $0x268] sm:$0xff] %vm381_vm1, %v912_v41  ;;  %14256 = vmatmul.mubr.msk.bf16.gmra.mrb[48].mxu1 %vm381_vm1, %v1087_v38  ;;  %v6527_v18 = vld [vmem:[#allocation3 + $0xea] sm:$0xff] }
 0x1d6   : > { %v914_v43 = vpop.permute.xlu1 %913  ;;  %v1067_v46 = vld [vmem:[#allocation2 + $0x230] sm:$0xff] }
 0x1d7   : > { %987 = vst.msk [vmem:[#allocation2 + $0x270] sm:$0xff] %vm381_vm1, %v914_v43  ;;  %v1088_v49 = vpack.c.bf16 %v1067_v46, %v1066_v44  ;;  %v6259_v44 = vld [vmem:[#allocation3 + $0x289] sm:$0xff]  ;;  %v1539_v10 = vld [vmem:[#allocation2 + $0x211] sm:$0xff] }
 0x1d8   : > { %v916_v56 = vpop.permute.xlu0 %915  ;;  %v1068_v61 = vld [vmem:[#allocation2 + $0x248] sm:$0xff] }
 0x1d9   : > { %988 = vst.msk [vmem:[#allocation2 + $0x288] sm:$0xff] %vm381_vm1, %v916_v56  ;;  %14259 = vmatprep.mubr.msk.bf16.mxu1 %vm381_vm1, %v1088_v49  ;;  %v997_v46 = vld [vmem:[#allocation2 + $0xe7] sm:$0xff] }
 0x1da   : > { %v918_v0 = vpop.permute.xlu1 %917  ;;  %v1069_v4 = vld [vmem:[#allocation2 + $0x250] sm:$0xff] }
 0x1db   : > { %989 = vst.msk [vmem:[#allocation2 + $0x290] sm:$0xff] %vm381_vm1, %v918_v0  ;;  %14834 = vmatmul.mubr.msk.bf16.gmra.mrb[16].mxu0 %vm381_vm1, %v6274_v58  ;;  %v1089_v6 = vpack.c.bf16 %v1069_v4, %v1068_v61  ;;  %v6261_v58 = vld [vmem:[#allocation3 + $0x2a9] sm:$0xff]  ;;  %v6262_v0 = vld [vmem:[#allocation3 + $0x2b1] sm:$0xff]  ;;  %v6278_v4 = vpack.c.bf16 %v6260_v53, %v6259_v44 }
 0x1dc   : > { %v920_v7 = vpop.permute.xlu0 %919  ;;  %14837 = vmatprep.mubr.msk.bf16.mxu0 %vm381_vm1, %v6275_v2  ;;  %v1070_v15 = vld [vmem:[#allocation2 + $0x268] sm:$0xff]  ;;  %v1543_v36 = vld [vmem:[#allocation2 + $0x251] sm:$0xff] }
 0x1dd   : > { %990 = vst.msk [vmem:[#allocation2 + $0x2a8] sm:$0xff] %vm381_vm1, %v920_v7  ;;  %14260 = vmatmul.mubr.msk.bf16.gmra.mrb[52].mxu1 %vm381_vm1, %v1089_v6  ;;  %v998_v2 = vld [vmem:[#allocation2 + $0xef] sm:$0xff]  ;;  %v6279_v7 = vpack.c.bf16 %v6262_v0, %v6261_v58  ;;  %v6920_v0 = vsel %vm430_vm0, %v17624_v62, 0 }
 0x1de   : > { %v922_v13 = vpop.permute.xlu1 %921  ;;  %v1071_v17 = vld [vmem:[#allocation2 + $0x270] sm:$0xff] }
 0x1df   : > { %991 = vst.msk [vmem:[#allocation2 + $0x2b0] sm:$0xff] %vm381_vm1, %v922_v13  ;;  %v1090_v21 = vpack.c.bf16 %v1071_v17, %v1070_v15  ;;  %v1029_v15 = vpack.c.bf16 %v998_v2, %v997_v46  ;;  %v6263_v52 = vld [vmem:[#allocation3 + $0x2c9] sm:$0xff]  ;;  %v17692_v46 = vld [vmem:[%s20455_s2 + $0x6] sm:$0x3] }
 0x1e0   : > { %v924_v27 = vpop.permute.xlu0 %923  ;;  %v1072_v38 = vld [vmem:[#allocation2 + $0x288] sm:$0xff] }
 0x1e1   : > { %992 = vst.msk [vmem:[#allocation2 + $0x2c8] sm:$0xff] %vm381_vm1, %v924_v27  ;;  %14263 = vmatprep.mubr.msk.bf16.mxu1 %vm381_vm1, %v1090_v21  ;;  %v6528_v21 = vld [vmem:[#allocation3 + $0xf2] sm:$0xff]  ;;  %v6533_v62 = vld [vmem:[#allocation3 + $0x14a] sm:$0xff] }
 0x1e2   : > { %v926_v31 = vpop.permute.xlu1 %925  ;;  %v1073_v41 = vld [vmem:[#allocation2 + $0x290] sm:$0xff] }
 0x1e3   : > { %993 = vst.msk [vmem:[#allocation2 + $0x2d0] sm:$0xff] %vm381_vm1, %v926_v31  ;;  %14838 = vmatmul.mubr.msk.bf16.gmra.mrb[20].mxu0 %vm381_vm1, %v6276_v30  ;;  %v1091_v28 = vpack.c.bf16 %v1073_v41, %v1072_v38  ;;  %v1000_v27 = vld [vmem:[#allocation2 + $0x10f] sm:$0xff]  ;;  %v6559_v30 = vpack.c.bf16 %v6528_v21, %v6527_v18  ;;  %v6280_v31 = vpack.c.bf16 %v6264_v22, %v6263_v52  ;;  %v999_v38 = vld [vmem:[#allocation2 + $0x107] sm:$0xff] }
 0x1e4   : > { %v3876_v43 = vpop.permute.xlu0 %3875  ;;  %14841 = vmatprep.mubr.msk.bf16.mxu0 %vm381_vm1, %v6277_v35  ;;  %v1074_v49 = vld [vmem:[#allocation2 + $0x2a8] sm:$0xff]  ;;  %v17682_v41 = vpack.c.bf16 %v1000_v27, %v999_v38  ;;  %v1547_v47 = vld [vmem:[#allocation2 + $0x291] sm:$0xff] }
 0x1e5   : > { %3942 = vst.msk [vmem:[#allocation3 + $0x2e8] sm:$0xff] %vm381_vm1, %v3876_v43  ;;  %14264 = vmatmul.mubr.msk.bf16.gmra.mrb[56].mxu1 %vm381_vm1, %v1091_v28  ;;  %v1002_v35 = vld [vmem:[#allocation2 + $0x12f] sm:$0xff]  ;;  %v1619_v28 = vsel %vm430_vm0, %v17610_v54, 0  ;;  %v1001_v43 = vld [vmem:[#allocation2 + $0x127] sm:$0xff] }
 0x1e6   : > { %v3878_v48 = vpop.permute.xlu1 %3877  ;;  %v1075_v51 = vld [vmem:[#allocation2 + $0x2b0] sm:$0xff]  ;;  %v17686_v44 = vpack.c.bf16 %v1002_v35, %v1001_v43  ;;  %v1007_v27 = vld [vmem:[#allocation2 + $0x187] sm:$0xff] }
 0x1e7   : > { %3943 = vst.msk [vmem:[#allocation3 + $0x2f0] sm:$0xff] %vm381_vm1, %v3878_v48  ;;  %v1092_v56 = vpack.c.bf16 %v1075_v51, %v1074_v49  ;;  %v6529_v48 = vld [vmem:[#allocation3 + $0x10a] sm:$0xff]  ;;  %v6530_v49 = vld [vmem:[#allocation3 + $0x112] sm:$0xff] }
 0x1e8   : > { %v928_v61 = vpop.permute.xlu0 %927  ;;  %v1076_v9 = vld [vmem:[#allocation2 + $0x2c8] sm:$0xff]  ;;  %v6532_v51 = vld [vmem:[#allocation3 + $0x132] sm:$0xff] }
 0x1e9   : > { %994 = vst.msk [vmem:[#allocation2 + $0x2e8] sm:$0xff] %vm381_vm1, %v928_v61  ;;  %14267 = vmatprep.mubr.msk.bf16.mxu1 %vm381_vm1, %v1092_v56  ;;  %v6531_v54 = vld [vmem:[#allocation3 + $0x12a] sm:$0xff]  ;;  %v6560_v56 = vpack.c.bf16 %v6530_v49, %v6529_v48  ;;  %v6540_v48 = vld [vmem:[#allocation3 + $0x1b2] sm:$0xff] }
 0x1ea   : > { %v930_v6 = vpop.permute.xlu1 %929  ;;  %v1077_v13 = vld [vmem:[#allocation2 + $0x2d0] sm:$0xff]  ;;  %v6561_v2 = vpack.c.bf16 %v6532_v51, %v6531_v54  ;;  %v1003_v61 = vld [vmem:[#allocation2 + $0x147] sm:$0xff] }
 0x1eb   : > { %995 = vst.msk [vmem:[#allocation2 + $0x2f0] sm:$0xff] %vm381_vm1, %v930_v6  ;;  %14842 = vmatmul.mubr.msk.bf16.gmra.mrb[24].mxu0 %vm381_vm1, %v6278_v4  ;;  %v1093_v17 = vpack.c.bf16 %v1077_v13, %v1076_v9  ;;  %v1004_v53 = vld [vmem:[#allocation2 + $0x14f] sm:$0xff] }
 0x1ec   : > { %14845 = vmatprep.mubr.msk.bf16.mxu0 %vm381_vm1, %v6279_v7  ;;  %v1006_v58 = vld [vmem:[#allocation2 + $0x16f] sm:$0xff]  ;;  %v17708_v6 = vpack.c.bf16 %v1004_v53, %v1003_v61  ;;  %v1005_v7 = vld [vmem:[#allocation2 + $0x167] sm:$0xff] }
 0x1ed   : > { %14268 = vmatmul.mubr.msk.bf16.gmra.mrb[60].mxu1 %vm381_vm1, %v1093_v17  ;;  %v17705_v4 = vld [vmem:[%s20456_s3 + $0x16] sm:$0x3]  ;;  %v17711_v9 = vpack.c.bf16 %v1006_v58, %v1005_v7  ;;  %v6537_v38 = vld [vmem:[#allocation3 + $0x18a] sm:$0xff] }
 0x1ee   : > { %14273 = vmatprep.mubr.msk.bf16.mxu1 %vm381_vm1, %v1029_v15  ;;  %v6534_v13 = vld [vmem:[#allocation3 + $0x152] sm:$0xff]  ;;  %v6535_v15 = vld [vmem:[#allocation3 + $0x16a] sm:$0xff] }
 0x1ef   : > { %v6536_v17 = vld [vmem:[#allocation3 + $0x172] sm:$0xff]  ;;  %v6562_v21 = vpack.c.bf16 %v6534_v13, %v6533_v62  ;;  %v6539_v43 = vld [vmem:[#allocation3 + $0x1aa] sm:$0xff] }
 0x1f0   : > { %v1008_v18 = vld [vmem:[#allocation2 + $0x18f] sm:$0xff]  ;;  %v6563_v22 = vpack.c.bf16 %v6536_v17, %v6535_v15  ;;  %v6565_v53 = vpack.c.bf16 %v6540_v48, %v6539_v43 }
 0x1f1   : > { %v1010_v52 = vld [vmem:[#allocation2 + $0x1af] sm:$0xff] }
 0x1f2   : > { %v1012_v49 = vld [vmem:[#allocation2 + $0x1cf] sm:$0xff] }
 0x1f3   : > { %14846 = vmatmul.mubr.msk.bf16.gmra.mrb[28].mxu0 %vm381_vm1, %v6280_v31  ;;  %v1009_v31 = vld [vmem:[#allocation2 + $0x1a7] sm:$0xff]  ;;  %v1014_v51 = vld [vmem:[#allocation2 + $0x1ef] sm:$0xff] }
 0x1f4   : > { %14851 = vmatprep.mubr.msk.bf16.mxu0 %vm381_vm1, %v6559_v30  ;;  %v17720_v30 = vpack.c.bf16 %v1008_v18, %v1007_v27  ;;  %v17723_v35 = vpack.c.bf16 %v1010_v52, %v1009_v31  ;;  %v6541_v61 = vld [vmem:[#allocation3 + $0x1ca] sm:$0xff]  ;;  %v6542_v7 = vld [vmem:[#allocation3 + $0x1d2] sm:$0xff] }
 0x1f5   : > { %14274 = vmatmul.mubr.msk.bf16.vlgmr.msra.gmra.mrb[32].mxu1 %vm381_vm1, %v17682_v41  ;;  %v6543_v62 = vld [vmem:[#allocation3 + $0x1ea] sm:$0xff]  ;;  %v6544_v13 = vld [vmem:[#allocation3 + $0x1f2] sm:$0xff]  ;;  %v6566_v17 = vpack.c.bf16 %v6542_v7, %v6541_v61 }
 0x1f6   : > { %14306 = vmatpush3.bf16.msra.mxu1 %v1619_v28  ;;  %14277 = vmatprep.mubr.msk.bf16.mxu1 %vm381_vm1, %v17686_v44  ;;  %v6538_v28 = vld [vmem:[#allocation3 + $0x192] sm:$0xff]  ;;  %v1015_v52 = vld [vmem:[#allocation2 + $0x207] sm:$0xff] }
 0x1f7   : > { %16455 = vmatprep.subr.msk.bf16.mxu1 %vm430_vm0, %v17692_v46  ;;  %v6564_v54 = vpack.c.bf16 %v6538_v28, %v6537_v38  ;;  %v1016_v15 = vld [vmem:[#allocation2 + $0x20f] sm:$0xff]  ;;  %v1017_v27 = vld [vmem:[#allocation2 + $0x227] sm:$0xff] }
 0x1f8   : > { %v1018_v18 = vld [vmem:[#allocation2 + $0x22f] sm:$0xff]  ;;  %v1021_v61 = vld [vmem:[#allocation2 + $0x267] sm:$0xff] }
 0x1f9   : > { %v17743_v31 = vpack.c.bf16 %v1018_v18, %v1017_v27  ;;  %v6545_v38 = vld [vmem:[#allocation3 + $0x20a] sm:$0xff]  ;;  %v6546_v28 = vld [vmem:[#allocation3 + $0x212] sm:$0xff] }
 0x1fa   : > { %v6547_v43 = vld [vmem:[#allocation3 + $0x22a] sm:$0xff]  ;;  %v6548_v48 = vld [vmem:[#allocation3 + $0x232] sm:$0xff] }
 0x1fb   : > { %14852 = vmatmul.mubr.msk.bf16.vlgmr.msra.gmra.mrb[0].mxu0 %vm381_vm1, %v6560_v56  ;;  %v1011_v56 = vld [vmem:[#allocation2 + $0x1c7] sm:$0xff]  ;;  %v1024_v18 = vld [vmem:[#allocation2 + $0x28f] sm:$0xff] }
 0x1fc   : > { %14855 = vmatprep.mubr.msk.bf16.mxu0 %vm381_vm1, %v6561_v2  ;;  %14884 = vmatpush3.bf16.msra.mxu0 %v6920_v0  ;;  %v17730_v58 = vpack.c.bf16 %v1012_v49, %v1011_v56  ;;  %v1013_v0 = vld [vmem:[#allocation2 + $0x1e7] sm:$0xff]  ;;  %v1020_v49 = vld [vmem:[#allocation2 + $0x24f] sm:$0xff] }
 0x1fd   : > { %14278 = vmatmul.mubr.msk.bf16.gmra.mrb[36].mxu1 %vm381_vm1, %v17708_v6  ;;  %16472 = vmatprep.subr.msk.bf16.mxu0 %vm430_vm0, %v17705_v4  ;;  %v17733_v2 = vpack.c.bf16 %v1014_v51, %v1013_v0  ;;  %v1022_v51 = vld [vmem:[#allocation2 + $0x26f] sm:$0xff]  ;;  %v1019_v56 = vld [vmem:[#allocation2 + $0x247] sm:$0xff] }
 0x1fe   : > { %14281 = vmatprep.mubr.msk.bf16.mxu1 %vm381_vm1, %v17711_v9  ;;  %v17750_v0 = vpack.c.bf16 %v1020_v49, %v1019_v56  ;;  %v17753_v7 = vpack.c.bf16 %v1022_v51, %v1021_v61  ;;  %v6553_v49 = vld [vmem:[#allocation3 + $0x28a] sm:$0xff] }
 0x1ff   : > { %v6555_v51 = vld [vmem:[#allocation3 + $0x2aa] sm:$0xff] }
 0x200   : > { %v1520_v56 = vld [vmem:[#allocation2 + $0xe9] sm:$0xff]  ;;  %v1521_v61 = vld [vmem:[#allocation2 + $0xf1] sm:$0xff] }
 0x201   : > { %v1542_v1 = vld [vmem:[#allocation2 + $0x249] sm:$0xff]  ;;  %v1551_v16 = vld [vmem:[#allocation2 + $0x2d1] sm:$0xff] }
 0x202   : > { %v1546_v32 = vld [vmem:[#allocation2 + $0x289] sm:$0xff] }
 0x203   : > { %14856 = vmatmul.mubr.msk.bf16.gmra.mrb[4].mxu0 %vm381_vm1, %v6562_v21  ;;  %v6567_v21 = vpack.c.bf16 %v6544_v13, %v6543_v62  ;;  %v6549_v62 = vld [vmem:[#allocation3 + $0x24a] sm:$0xff]  ;;  %v6550_v13 = vld [vmem:[#allocation3 + $0x252] sm:$0xff] }
 0x204   : > { %14859 = vmatprep.mubr.msk.bf16.mxu0 %vm381_vm1, %v6563_v22  ;;  %v17740_v22 = vpack.c.bf16 %v1016_v15, %v1015_v52  ;;  %v6551_v15 = vld [vmem:[#allocation3 + $0x26a] sm:$0xff] }
 0x205   : > { %14282 = vmatmul.mubr.msk.bf16.gmra.mrb[40].mxu1 %vm381_vm1, %v17720_v30  ;;  %v1026_v52 = vld [vmem:[#allocation2 + $0x2af] sm:$0xff] }
 0x206   : > { %14285 = vmatprep.mubr.msk.bf16.mxu1 %vm381_vm1, %v17723_v35  ;;  %v1550_v40 = vld [vmem:[#allocation2 + $0x2c9] sm:$0xff] }
 0x20b   : > { %14860 = vmatmul.mubr.msk.bf16.gmra.mrb[8].mxu0 %vm381_vm1, %v6564_v54  ;;  %v6568_v54 = vpack.c.bf16 %v6546_v28, %v6545_v38  ;;  %v1023_v38 = vld [vmem:[#allocation2 + $0x287] sm:$0xff] }
 0x20c   : > { %14863 = vmatprep.mubr.msk.bf16.mxu0 %vm381_vm1, %v6565_v53  ;;  %v6569_v53 = vpack.c.bf16 %v6548_v48, %v6547_v43  ;;  %v17760_v28 = vpack.c.bf16 %v1024_v18, %v1023_v38  ;;  %v1025_v43 = vld [vmem:[#allocation2 + $0x2a7] sm:$0xff]  ;;  %v1552_v18 = vpack.c.bf16 %v1521_v61, %v1520_v56 }
 0x20d   : > { %14286 = vmatmul.mubr.msk.bf16.gmra.mrb[44].mxu1 %vm381_vm1, %v17730_v58  ;;  %v17763_v48 = vpack.c.bf16 %v1026_v52, %v1025_v43  ;;  %v6557_v52 = vld [vmem:[#allocation3 + $0x2ca] sm:$0xff] }
 0x20e   : > { %14289 = vmatprep.mubr.msk.bf16.mxu1 %vm381_vm1, %v17733_v2  ;;  %v6822_v38 = vld [vmem:[#allocation3 + $0x10e] sm:$0xff] }
 0x20f   : > { %v1522_v43 = vld [vmem:[#allocation2 + $0x109] sm:$0xff] }
 0x210   : > { %v17777_v61 = vpack.c.bf16 %v1523_v33, %v1522_v43  ;;  %v6824_v33 = vld [vmem:[#allocation3 + $0x12e] sm:$0xff] }
 0x211   : > { %v1528_v43 = vld [vmem:[#allocation2 + $0x169] sm:$0xff] }
 0x213   : > { %14864 = vmatmul.mubr.msk.bf16.gmra.mrb[12].mxu0 %vm381_vm1, %v6566_v17  ;;  %v6552_v17 = vld [vmem:[#allocation3 + $0x272] sm:$0xff] }
 0x214   : > { %14867 = vmatprep.mubr.msk.bf16.mxu0 %vm381_vm1, %v6567_v21  ;;  %v6570_v21 = vpack.c.bf16 %v6550_v13, %v6549_v62  ;;  %v6571_v27 = vpack.c.bf16 %v6552_v17, %v6551_v15  ;;  %v1028_v62 = vld [vmem:[#allocation2 + $0x2cf] sm:$0xff]  ;;  %v1027_v17 = vld [vmem:[#allocation2 + $0x2c7] sm:$0xff] }
 0x215   : > { %14290 = vmatmul.mubr.msk.bf16.gmra.mrb[48].mxu1 %vm381_vm1, %v17740_v22 }
 0x216   : > { %14293 = vmatprep.mubr.msk.bf16.mxu1 %vm381_vm1, %v17743_v31 }
 0x21b   : > { %14868 = vmatmul.mubr.msk.bf16.gmra.mrb[16].mxu0 %vm381_vm1, %v6568_v54  ;;  %v6554_v54 = vld [vmem:[#allocation3 + $0x292] sm:$0xff] }
 0x21c   : > { %14871 = vmatprep.mubr.msk.bf16.mxu0 %vm381_vm1, %v6569_v53  ;;  %v6556_v53 = vld [vmem:[#allocation3 + $0x2b2] sm:$0xff]  ;;  %v6572_v13 = vpack.c.bf16 %v6554_v54, %v6553_v49  ;;  %v6821_v54 = vld [vmem:[#allocation3 + $0x106] sm:$0xff] }
 0x21d   : > { %14294 = vmatmul.mubr.msk.bf16.gmra.mrb[52].mxu1 %vm381_vm1, %v17750_v0  ;;  %v6573_v15 = vpack.c.bf16 %v6556_v53, %v6555_v51  ;;  %v1524_v51 = vld [vmem:[#allocation2 + $0x129] sm:$0xff]  ;;  %v1525_v53 = vld [vmem:[#allocation2 + $0x131] sm:$0xff]  ;;  %v6853_v56 = vpack.c.bf16 %v6822_v38, %v6821_v54  ;;  %v7214_v54 = vsel %vm430_vm0, %v17705_v4, 0 }
 0x21e   : > { %14297 = vmatprep.mubr.msk.bf16.mxu1 %vm381_vm1, %v17753_v7  ;;  %v6825_v38 = vld [vmem:[#allocation3 + $0x146] sm:$0xff]  ;;  %v6828_v4 = vld [vmem:[#allocation3 + $0x16e] sm:$0xff] }
 0x223   : > { %14872 = vmatmul.mubr.msk.bf16.gmra.mrb[20].mxu0 %vm381_vm1, %v6570_v21  ;;  %v17770_v21 = vpack.c.bf16 %v1028_v62, %v1027_v17  ;;  %v1913_v62 = vsel %vm430_vm0, %v17692_v46, 0  ;;  %v6826_v17 = vld [vmem:[#allocation3 + $0x14e] sm:$0xff]  ;;  %v6823_v46 = vld [vmem:[#allocation3 + $0x126] sm:$0xff] }
 0x224   : > { %14875 = vmatprep.mubr.msk.bf16.mxu0 %vm381_vm1, %v6571_v27  ;;  %v6558_v27 = vld [vmem:[#allocation3 + $0x2d2] sm:$0xff] }
 0x225   : > { %14298 = vmatmul.mubr.msk.bf16.gmra.mrb[56].mxu1 %vm381_vm1, %v17760_v28  ;;  %v6574_v49 = vpack.c.bf16 %v6558_v27, %v6557_v52  ;;  %v1527_v52 = vld [vmem:[#allocation2 + $0x151] sm:$0xff]  ;;  %v6854_v27 = vpack.c.bf16 %v6824_v33, %v6823_v46  ;;  %v1530_v46 = vld [vmem:[#allocation2 + $0x189] sm:$0xff] }
 0x226   : > { %14301 = vmatprep.mubr.msk.bf16.mxu1 %vm381_vm1, %v17763_v48  ;;  %v6830_v33 = vld [vmem:[#allocation3 + $0x18e] sm:$0xff] }
 0x22b   : > { %14876 = vmatmul.mubr.msk.bf16.gmra.mrb[24].mxu0 %vm381_vm1, %v6572_v13  ;;  %v17782_v13 = vpack.c.bf16 %v1525_v53, %v1524_v51  ;;  %v6855_v51 = vpack.c.bf16 %v6826_v17, %v6825_v38  ;;  %v17800_v53 = vld [vmem:[%s20456_s3 + $0x18] sm:$0x3]  ;;  %v6827_v17 = vld [vmem:[#allocation3 + $0x166] sm:$0xff] }
 0x22c   : > { %14879 = vmatprep.mubr.msk.bf16.mxu0 %vm381_vm1, %v6573_v15  ;;  %v17787_v15 = vld [vmem:[%s20455_s2 + $0x8] sm:$0x3] }
 0x22d   : > { %14302 = vmatmul.mubr.msk.bf16.gmra.mrb[60].mxu1 %vm381_vm1, %v17770_v21  ;;  %v1532_v38 = vld [vmem:[#allocation2 + $0x1a9] sm:$0xff] }
 0x22e   : > { %14307 = vmatprep.mubr.msk.bf16.mxu1 %vm381_vm1, %v1552_v18  ;;  %v1526_v18 = vld [vmem:[#allocation2 + $0x149] sm:$0xff] }
 0x233   : > { %14880 = vmatmul.mubr.msk.bf16.gmra.mrb[28].mxu0 %vm381_vm1, %v6574_v49  ;;  %v1529_v49 = vld [vmem:[#allocation2 + $0x171] sm:$0xff] }
 0x234   : > { %14885 = vmatprep.mubr.msk.bf16.mxu0 %vm381_vm1, %v6853_v56  ;;  %v17803_v56 = vpack.c.bf16 %v1527_v52, %v1526_v18  ;;  %v1531_v18 = vld [vmem:[#allocation2 + $0x191] sm:$0xff]  ;;  %v6856_v52 = vpack.c.bf16 %v6828_v4, %v6827_v17  ;;  %v6831_v17 = vld [vmem:[#allocation3 + $0x1a6] sm:$0xff] }
 0x235   : > { %14308 = vmatmul.mubr.msk.bf16.vlgmr.msra.gmra.mrb[32].mxu1 %vm381_vm1, %v17777_v61  ;;  %v6834_v4 = vld [vmem:[#allocation3 + $0x1ce] sm:$0xff] }
 0x236   : > { %14340 = vmatpush3.bf16.msra.mxu1 %v1913_v62  ;;  %14311 = vmatprep.mubr.msk.bf16.mxu1 %vm381_vm1, %v17782_v13  ;;  %v17806_v62 = vpack.c.bf16 %v1529_v49, %v1528_v43  ;;  %v1533_v43 = vld [vmem:[#allocation2 + $0x1b1] sm:$0xff] }
 0x237   : > { %16456 = vmatprep.subr.msk.bf16.mxu1 %vm430_vm0, %v17787_v15 }
 0x23b   : > { %14886 = vmatmul.mubr.msk.bf16.vlgmr.msra.gmra.mrb[0].mxu0 %vm381_vm1, %v6854_v27  ;;  %v6829_v27 = vld [vmem:[#allocation3 + $0x186] sm:$0xff] }
 0x23c   : > { %14889 = vmatprep.mubr.msk.bf16.mxu0 %vm381_vm1, %v6855_v51  ;;  %14918 = vmatpush3.bf16.msra.mxu0 %v7214_v54  ;;  %v6857_v49 = vpack.c.bf16 %v6830_v33, %v6829_v27  ;;  %v17815_v54 = vpack.c.bf16 %v1531_v18, %v1530_v46  ;;  %v17818_v51 = vpack.c.bf16 %v1533_v43, %v1532_v38  ;;  %v6833_v27 = vld [vmem:[#allocation3 + $0x1c6] sm:$0xff]  ;;  %v1537_v46 = vld [vmem:[#allocation2 + $0x1f1] sm:$0xff] }
 0x23d   : > { %14312 = vmatmul.mubr.msk.bf16.gmra.mrb[36].mxu1 %vm381_vm1, %v17803_v56  ;;  %16473 = vmatprep.subr.msk.bf16.mxu0 %vm430_vm0, %v17800_v53  ;;  %v6858_v33 = vpack.c.bf16 %v6832_v24, %v6831_v17  ;;  %v6859_v18 = vpack.c.bf16 %v6834_v4, %v6833_v27  ;;  %v17825_v38 = vpack.c.bf16 %v1535_v59, %v1534_v20  ;;  %v6838_v24 = vld [vmem:[#allocation3 + $0x20e] sm:$0xff]  ;;  %v6835_v17 = vld [vmem:[#allocation3 + $0x1e6] sm:$0xff] }
 0x23e   : > { %14315 = vmatprep.mubr.msk.bf16.mxu1 %vm381_vm1, %v17806_v62  ;;  %v6837_v27 = vld [vmem:[#allocation3 + $0x206] sm:$0xff]  ;;  %v1541_v59 = vld [vmem:[#allocation2 + $0x231] sm:$0xff] }
 0x23f   : > { %v6861_v20 = vpack.c.bf16 %v6838_v24, %v6837_v27  ;;  %v6841_v27 = vld [vmem:[#allocation3 + $0x246] sm:$0xff] }
 0x243   : > { %14890 = vmatmul.mubr.msk.bf16.gmra.mrb[4].mxu0 %vm381_vm1, %v6856_v52  ;;  %v1536_v52 = vld [vmem:[#allocation2 + $0x1e9] sm:$0xff] }
 0x244   : > { %14893 = vmatprep.mubr.msk.bf16.mxu0 %vm381_vm1, %v6857_v49  ;;  %v17828_v43 = vpack.c.bf16 %v1537_v46, %v1536_v52  ;;  %v6836_v49 = vld [vmem:[#allocation3 + $0x1ee] sm:$0xff]  ;;  %v17835_v52 = vpack.c.bf16 %v1539_v10, %v1538_v55 }
 0x245   : > { %14316 = vmatmul.mubr.msk.bf16.gmra.mrb[40].mxu1 %vm381_vm1, %v17815_v54  ;;  %v6860_v4 = vpack.c.bf16 %v6836_v49, %v6835_v17  ;;  %v6842_v49 = vld [vmem:[#allocation3 + $0x24e] sm:$0xff]  ;;  %v6839_v17 = vld [vmem:[#allocation3 + $0x226] sm:$0xff] }
 0x246   : > { %14319 = vmatprep.mubr.msk.bf16.mxu1 %vm381_vm1, %v17818_v51  ;;  %v1545_v55 = vld [vmem:[#allocation2 + $0x271] sm:$0xff]  ;;  %v6863_v10 = vpack.c.bf16 %v6842_v49, %v6841_v27  ;;  %v6845_v27 = vld [vmem:[#allocation3 + $0x286] sm:$0xff] }
 0x24b   : > { %14894 = vmatmul.mubr.msk.bf16.gmra.mrb[8].mxu0 %vm381_vm1, %v6858_v33  ;;  %v1540_v33 = vld [vmem:[#allocation2 + $0x229] sm:$0xff] }
 0x24c   : > { %14897 = vmatprep.mubr.msk.bf16.mxu0 %vm381_vm1, %v6859_v18  ;;  %v17838_v46 = vpack.c.bf16 %v1541_v59, %v1540_v33  ;;  %v6840_v18 = vld [vmem:[#allocation3 + $0x22e] sm:$0xff]  ;;  %v17845_v33 = vpack.c.bf16 %v1543_v36, %v1542_v1 }
 0x24d   : > { %14320 = vmatmul.mubr.msk.bf16.gmra.mrb[44].mxu1 %vm381_vm1, %v17825_v38  ;;  %v6862_v24 = vpack.c.bf16 %v6840_v18, %v6839_v17  ;;  %v6846_v18 = vld [vmem:[#allocation3 + $0x28e] sm:$0xff]  ;;  %v6843_v17 = vld [vmem:[#allocation3 + $0x266] sm:$0xff] }
 0x24e   : > { %14323 = vmatprep.mubr.msk.bf16.mxu1 %vm381_vm1, %v17828_v43  ;;  %v1549_v36 = vld [vmem:[#allocation2 + $0x2b1] sm:$0xff]  ;;  %v6865_v1 = vpack.c.bf16 %v6846_v18, %v6845_v27  ;;  %v6849_v27 = vld [vmem:[#allocation3 + $0x2c6] sm:$0xff] }
 0x253   : > { %14898 = vmatmul.mubr.msk.bf16.gmra.mrb[12].mxu0 %vm381_vm1, %v6860_v4  ;;  %v1544_v4 = vld [vmem:[#allocation2 + $0x269] sm:$0xff] }
 0x254   : > { %14901 = vmatprep.mubr.msk.bf16.mxu0 %vm381_vm1, %v6861_v20  ;;  %v17848_v59 = vpack.c.bf16 %v1545_v55, %v1544_v4  ;;  %v6844_v20 = vld [vmem:[#allocation3 + $0x26e] sm:$0xff]  ;;  %v17855_v4 = vpack.c.bf16 %v1547_v47, %v1546_v32  ;;  %v17865_v32 = vpack.c.bf16 %v1551_v16, %v1550_v40  ;;  %v2207_v16 = vsel %vm430_vm0, %v17787_v15, 0  ;;  %v17879_v40 = vld [vmem:[%s20455_s2 + $0xa] sm:$0x3] }
 0x255   : > { %14324 = vmatmul.mubr.msk.bf16.gmra.mrb[48].mxu1 %vm381_vm1, %v17835_v52  ;;  %v6864_v49 = vpack.c.bf16 %v6844_v20, %v6843_v17  ;;  %v6850_v20 = vld [vmem:[#allocation3 + $0x2ce] sm:$0xff]  ;;  %v6847_v17 = vld [vmem:[#allocation3 + $0x2a6] sm:$0xff] }
 0x256   : > { %14327 = vmatprep.mubr.msk.bf16.mxu1 %vm381_vm1, %v17838_v46  ;;  %v6852_v47 = vld [vmem:[#allocation3 + $0x2ee] sm:$0xff] }
 0x257   : > { %v7117_v15 = vld [vmem:[#allocation3 + $0x127] sm:$0xff] }
 0x25b   : > { %14902 = vmatmul.mubr.msk.bf16.gmra.mrb[16].mxu0 %vm381_vm1, %v6862_v24  ;;  %v1548_v24 = vld [vmem:[#allocation2 + $0x2a9] sm:$0xff] }
 0x25c   : > { %14905 = vmatprep.mubr.msk.bf16.mxu0 %vm381_vm1, %v6863_v10  ;;  %v17858_v55 = vpack.c.bf16 %v1549_v36, %v1548_v24  ;;  %v6848_v10 = vld [vmem:[#allocation3 + $0x2ae] sm:$0xff]  ;;  %v6851_v36 = vld [vmem:[#allocation3 + $0x2e6] sm:$0xff] }
 0x25d   : > { %14328 = vmatmul.mubr.msk.bf16.gmra.mrb[52].mxu1 %vm381_vm1, %v17845_v33  ;;  %v6866_v18 = vpack.c.bf16 %v6848_v10, %v6847_v17  ;;  %v7116_v24 = vld [vmem:[#allocation3 + $0x10f] sm:$0xff]  ;;  %v7119_v17 = vld [vmem:[#allocation3 + $0x147] sm:$0xff] }
 0x25e   : > { %14331 = vmatprep.mubr.msk.bf16.mxu1 %vm381_vm1, %v17848_v59  ;;  %v7147_v10 = vpack.c.bf16 %v7116_v24, %v7115_v11  ;;  %v7118_v11 = vld [vmem:[#allocation3 + $0x12f] sm:$0xff]  ;;  %v7123_v24 = vld [vmem:[#allocation3 + $0x187] sm:$0xff] }
 0x263   : > { %14906 = vmatmul.mubr.msk.bf16.gmra.mrb[20].mxu0 %vm381_vm1, %v6864_v49  ;;  %v6867_v49 = vpack.c.bf16 %v6850_v20, %v6849_v27  ;;  %v7148_v20 = vpack.c.bf16 %v7118_v11, %v7117_v15  ;;  %v7129_v15 = vld [vmem:[#allocation3 + $0x1e7] sm:$0xff] }
 0x264   : > { %14909 = vmatprep.mubr.msk.bf16.mxu0 %vm381_vm1, %v6865_v1  ;;  %v6868_v1 = vpack.c.bf16 %v6852_v47, %v6851_v36 }
 0x265   : > { %14332 = vmatmul.mubr.msk.bf16.gmra.mrb[56].mxu1 %vm381_vm1, %v17855_v4 }
 0x266   : > { %14335 = vmatprep.mubr.msk.bf16.mxu1 %vm381_vm1, %v17858_v55 }
 0x26b   : > { %14910 = vmatmul.mubr.msk.bf16.gmra.mrb[24].mxu0 %vm381_vm1, %v6866_v18  ;;  %v7508_v18 = vsel %vm430_vm0, %v17800_v53, 0  ;;  %v7124_v53 = vld [vmem:[#allocation3 + $0x18f] sm:$0xff] }
 0x26c   : > { %14913 = vmatprep.mubr.msk.bf16.mxu0 %vm381_vm1, %v6867_v49  ;;  %v7121_v49 = vld [vmem:[#allocation3 + $0x167] sm:$0xff]  ;;  %v7151_v36 = vpack.c.bf16 %v7124_v53, %v7123_v24 }
 0x26d   : > { %14336 = vmatmul.mubr.msk.bf16.gmra.mrb[60].mxu1 %vm381_vm1, %v17865_v32  ;;  %v7139_v24 = vld [vmem:[#allocation3 + $0x287] sm:$0xff] }
 0x26e   : > { %14341 = vmatprep.mubr.msk.bf16.mxu1 %vm381_vm1, %v17682_v41  ;;  %v7120_v41 = vld [vmem:[#allocation3 + $0x14f] sm:$0xff] }
 0x26f   : > { %v7149_v27 = vpack.c.bf16 %v7120_v41, %v7119_v17  ;;  %v7132_v41 = vld [vmem:[#allocation3 + $0x20f] sm:$0xff] }
 0x273   : > { %14914 = vmatmul.mubr.msk.bf16.gmra.mrb[28].mxu0 %vm381_vm1, %v6868_v1  ;;  %v7128_v1 = vld [vmem:[#allocation3 + $0x1cf] sm:$0xff] }
 0x274   : > { %14919 = vmatprep.mubr.msk.bf16.mxu0 %vm381_vm1, %v7147_v10  ;;  %v7125_v10 = vld [vmem:[#allocation3 + $0x1a7] sm:$0xff] }
 0x275   : > { %14342 = vmatmul.mubr.msk.bf16.vlgmr.msra.gmra.mrb[32].mxu1 %vm381_vm1, %v17686_v44  ;;  %v17892_v44 = vld [vmem:[%s20456_s3 + $0x1a] sm:$0x3] }
 0x276   : > { %14374 = vmatpush3.bf16.msra.mxu1 %v2207_v16  ;;  %14345 = vmatprep.mubr.msk.bf16.mxu1 %vm381_vm1, %v17708_v6  ;;  %v7122_v6 = vld [vmem:[#allocation3 + $0x16f] sm:$0xff]  ;;  %v7127_v16 = vld [vmem:[#allocation3 + $0x1c7] sm:$0xff] }
 0x277   : > { %16457 = vmatprep.subr.msk.bf16.mxu1 %vm430_vm0, %v17879_v40  ;;  %v7150_v47 = vpack.c.bf16 %v7122_v6, %v7121_v49  ;;  %v7153_v11 = vpack.c.bf16 %v7128_v1, %v7127_v16  ;;  %v7135_v6 = vld [vmem:[#allocation3 + $0x247] sm:$0xff]  ;;  %v7140_v49 = vld [vmem:[#allocation3 + $0x28f] sm:$0xff] }
 0x278   : > { %v7141_v1 = vld [vmem:[#allocation3 + $0x2a7] sm:$0xff]  ;;  %v2109_v16 = vld [vmem:[#allocation2 + $0x110] sm:$0xff] }
 0x27b   : > { %14920 = vmatmul.mubr.msk.bf16.vlgmr.msra.gmra.mrb[0].mxu0 %vm381_vm1, %v7148_v20  ;;  %v7131_v20 = vld [vmem:[#allocation3 + $0x207] sm:$0xff] }
 0x27c   : > { %14923 = vmatprep.mubr.msk.bf16.mxu0 %vm381_vm1, %v7149_v27  ;;  %14952 = vmatpush3.bf16.msra.mxu0 %v7508_v18  ;;  %v7155_v17 = vpack.c.bf16 %v7132_v41, %v7131_v20  ;;  %v7136_v18 = vld [vmem:[#allocation3 + $0x24f] sm:$0xff]  ;;  %v7133_v27 = vld [vmem:[#allocation3 + $0x227] sm:$0xff] }
 0x27d   : > { %14346 = vmatmul.mubr.msk.bf16.gmra.mrb[36].mxu1 %vm381_vm1, %v17711_v9  ;;  %16474 = vmatprep.subr.msk.bf16.mxu0 %vm430_vm0, %v17892_v44  ;;  %v7126_v9 = vld [vmem:[#allocation3 + $0x1af] sm:$0xff]  ;;  %v7157_v53 = vpack.c.bf16 %v7136_v18, %v7135_v6  ;;  %v7145_v20 = vld [vmem:[#allocation3 + $0x2e7] sm:$0xff] }
 0x27e   : > { %14349 = vmatprep.mubr.msk.bf16.mxu1 %vm381_vm1, %v17720_v30  ;;  %v7152_v30 = vpack.c.bf16 %v7126_v9, %v7125_v10  ;;  %v7144_v9 = vld [vmem:[#allocation3 + $0x2cf] sm:$0xff] }
 0x27f   : > { %v7409_v18 = vld [vmem:[#allocation3 + $0x108] sm:$0xff] }
 0x280   : > { %v2110_v6 = vld [vmem:[#allocation2 + $0x128] sm:$0xff] }
 0x283   : > { %14924 = vmatmul.mubr.msk.bf16.gmra.mrb[4].mxu0 %vm381_vm1, %v7150_v47  ;;  %v7137_v47 = vld [vmem:[#allocation3 + $0x267] sm:$0xff] }
 0x284   : > { %14927 = vmatprep.mubr.msk.bf16.mxu0 %vm381_vm1, %v7151_v36  ;;  %v7159_v36 = vpack.c.bf16 %v7140_v49, %v7139_v24  ;;  %v2112_v49 = vld [vmem:[#allocation2 + $0x148] sm:$0xff]  ;;  %v7412_v24 = vld [vmem:[#allocation3 + $0x130] sm:$0xff] }
 0x285   : > { %14350 = vmatmul.mubr.msk.bf16.gmra.mrb[40].mxu1 %vm381_vm1, %v17723_v35  ;;  %v7130_v35 = vld [vmem:[#allocation3 + $0x1ef] sm:$0xff] }
 0x286   : > { %14353 = vmatprep.mubr.msk.bf16.mxu1 %vm381_vm1, %v17730_v58  ;;  %v7154_v58 = vpack.c.bf16 %v7130_v35, %v7129_v15  ;;  %v1844_v35 = vld [vmem:[#allocation2 + $0x2e7] sm:$0xff] }
 0x287   : > { %v2108_v15 = vld [vmem:[#allocation2 + $0x108] sm:$0xff] }
 0x28b   : > { %14928 = vmatmul.mubr.msk.bf16.gmra.mrb[8].mxu0 %vm381_vm1, %v7152_v30  ;;  %v7143_v30 = vld [vmem:[#allocation3 + $0x2c7] sm:$0xff] }
 0x28c   : > { %14931 = vmatprep.mubr.msk.bf16.mxu0 %vm381_vm1, %v7153_v11  ;;  %v7161_v11 = vpack.c.bf16 %v7144_v9, %v7143_v30 }
 0x28d   : > { %14354 = vmatmul.mubr.msk.bf16.gmra.mrb[44].mxu1 %vm381_vm1, %v17733_v2  ;;  %v7134_v2 = vld [vmem:[#allocation3 + $0x22f] sm:$0xff] }
 0x28e   : > { %14357 = vmatprep.mubr.msk.bf16.mxu1 %vm381_vm1, %v17740_v22  ;;  %v7156_v22 = vpack.c.bf16 %v7134_v2, %v7133_v27  ;;  %v2113_v27 = vld [vmem:[#allocation2 + $0x150] sm:$0xff] }
 0x293   : > { %14932 = vmatmul.mubr.msk.bf16.gmra.mrb[12].mxu0 %vm381_vm1, %v7154_v58  ;;  %v7410_v58 = vld [vmem:[#allocation3 + $0x110] sm:$0xff] }
 0x294   : > { %14935 = vmatprep.mubr.msk.bf16.mxu0 %vm381_vm1, %v7155_v17  ;;  %v2111_v17 = vld [vmem:[#allocation2 + $0x130] sm:$0xff] }
 0x295   : > { %14358 = vmatmul.mubr.msk.bf16.gmra.mrb[48].mxu1 %vm381_vm1, %v17743_v31  ;;  %v7138_v31 = vld [vmem:[#allocation3 + $0x26f] sm:$0xff] }
 0x296   : > { %14361 = vmatprep.mubr.msk.bf16.mxu1 %vm381_vm1, %v17750_v0  ;;  %v7158_v0 = vpack.c.bf16 %v7138_v31, %v7137_v47  ;;  %v2501_v31 = vsel %vm430_vm0, %v17879_v40, 0  ;;  %v17945_v47 = vpack.c.bf16 %v2113_v27, %v2112_v49  ;;  %v7411_v40 = vld [vmem:[#allocation3 + $0x128] sm:$0xff] }
 0x297   : > { %v7442_v9 = vpack.c.bf16 %v7412_v24, %v7411_v40  ;;  %v7420_v24 = vld [vmem:[#allocation3 + $0x1b0] sm:$0xff]  ;;  %v7419_v40 = vld [vmem:[#allocation3 + $0x1a8] sm:$0xff] }
 0x29b   : > { %14936 = vmatmul.mubr.msk.bf16.gmra.mrb[16].mxu0 %vm381_vm1, %v7156_v22  ;;  %v7441_v22 = vpack.c.bf16 %v7410_v58, %v7409_v18  ;;  %v7415_v58 = vld [vmem:[#allocation3 + $0x168] sm:$0xff]  ;;  %v2121_v18 = vld [vmem:[#allocation2 + $0x1d0] sm:$0xff] }
 0x29c   : > { %14939 = vmatprep.mubr.msk.bf16.mxu0 %vm381_vm1, %v7157_v53  ;;  %v17940_v53 = vpack.c.bf16 %v2111_v17, %v2110_v6 }
 0x29d   : > { %14362 = vmatmul.mubr.msk.bf16.gmra.mrb[52].mxu1 %vm381_vm1, %v17753_v7  ;;  %v7142_v7 = vld [vmem:[#allocation3 + $0x2af] sm:$0xff] }
 0x29e   : > { %14365 = vmatprep.mubr.msk.bf16.mxu1 %vm381_vm1, %v17760_v28  ;;  %v1845_v28 = vld [vmem:[#allocation2 + $0x2ef] sm:$0xff]  ;;  %v7160_v10 = vpack.c.bf16 %v7142_v7, %v7141_v1 }
 0x29f   : > { %v17933_v41 = vpack.c.bf16 %v1845_v28, %v1844_v35  ;;  %v2115_v7 = vld [vmem:[#allocation2 + $0x170] sm:$0xff]  ;;  %v7413_v1 = vld [vmem:[#allocation3 + $0x148] sm:$0xff] }
 0x2a0   : > { %v2117_v28 = vld [vmem:[#allocation2 + $0x190] sm:$0xff] }
 0x2a3   : > { %14940 = vmatmul.mubr.msk.bf16.gmra.mrb[20].mxu0 %vm381_vm1, %v7158_v0  ;;  %v17950_v0 = vld [vmem:[%s20455_s2 + $0xc] sm:$0x3] }
 0x2a4   : > { %14943 = vmatprep.mubr.msk.bf16.mxu0 %vm381_vm1, %v7159_v36  ;;  %v7414_v36 = vld [vmem:[#allocation3 + $0x150] sm:$0xff] }
 0x2a5   : > { %14366 = vmatmul.mubr.msk.bf16.gmra.mrb[56].mxu1 %vm381_vm1, %v17763_v48  ;;  %v2140_v48 = vpack.c.bf16 %v2109_v16, %v2108_v15  ;;  %v7443_v30 = vpack.c.bf16 %v7414_v36, %v7413_v1  ;;  %v2114_v16 = vld [vmem:[#allocation2 + $0x168] sm:$0xff]  ;;  %v7422_v36 = vld [vmem:[#allocation3 + $0x1d0] sm:$0xff] }
 0x2a6   : > { %14369 = vmatprep.mubr.msk.bf16.mxu1 %vm381_vm1, %v17770_v21  ;;  %v7146_v21 = vld [vmem:[#allocation3 + $0x2ef] sm:$0xff]  ;;  %v17966_v35 = vpack.c.bf16 %v2115_v7, %v2114_v16 }
 0x2a7   : > { %v7162_v2 = vpack.c.bf16 %v7146_v21, %v7145_v20  ;;  %v2116_v15 = vld [vmem:[#allocation2 + $0x188] sm:$0xff]  ;;  %v7418_v21 = vld [vmem:[#allocation3 + $0x190] sm:$0xff] }
 0x2a8   : > { %v2119_v20 = vld [vmem:[#allocation2 + $0x1b0] sm:$0xff]  ;;  %v7421_v1 = vld [vmem:[#allocation3 + $0x1c8] sm:$0xff] }
 0x2a9   : > { %v2123_v7 = vld [vmem:[#allocation2 + $0x1f0] sm:$0xff] }
 0x2ab   : > { %14944 = vmatmul.mubr.msk.bf16.gmra.mrb[24].mxu0 %vm381_vm1, %v7160_v10  ;;  %v7802_v10 = vsel %vm430_vm0, %v17892_v44, 0  ;;  %v7416_v44 = vld [vmem:[#allocation3 + $0x170] sm:$0xff] }
 0x2ac   : > { %14947 = vmatprep.mubr.msk.bf16.mxu0 %vm381_vm1, %v7161_v11  ;;  %v17963_v11 = vld [vmem:[%s20456_s3 + $0x1c] sm:$0x3]  ;;  %v7444_v17 = vpack.c.bf16 %v7416_v44, %v7415_v58  ;;  %v7426_v58 = vld [vmem:[#allocation3 + $0x210] sm:$0xff] }
 0x2ad   : > { %14370 = vmatmul.mubr.msk.bf16.gmra.mrb[60].mxu1 %vm381_vm1, %v17933_v41 }
 0x2ae   : > { %14375 = vmatprep.mubr.msk.bf16.mxu1 %vm381_vm1, %v2140_v48  ;;  %v17969_v48 = vpack.c.bf16 %v2117_v28, %v2116_v15  ;;  %v2125_v28 = vld [vmem:[#allocation2 + $0x210] sm:$0xff]  ;;  %v2124_v15 = vld [vmem:[#allocation2 + $0x208] sm:$0xff] }
 0x2af   : > { %v17991_v44 = vpack.c.bf16 %v2125_v28, %v2124_v15  ;;  %v2131_v28 = vld [vmem:[#allocation2 + $0x270] sm:$0xff] }
 0x2b0   : > { %v2133_v15 = vld [vmem:[#allocation2 + $0x290] sm:$0xff] }
 0x2b3   : > { %14948 = vmatmul.mubr.msk.bf16.gmra.mrb[28].mxu0 %vm381_vm1, %v7162_v2  ;;  %v7417_v2 = vld [vmem:[#allocation3 + $0x188] sm:$0xff] }
 0x2b4   : > { %14953 = vmatprep.mubr.msk.bf16.mxu0 %vm381_vm1, %v7441_v22  ;;  %v7445_v27 = vpack.c.bf16 %v7418_v21, %v7417_v2  ;;  %v2118_v22 = vld [vmem:[#allocation2 + $0x1a8] sm:$0xff]  ;;  %v7424_v21 = vld [vmem:[#allocation3 + $0x1f0] sm:$0xff] }
 0x2b5   : > { %14376 = vmatmul.mubr.msk.bf16.vlgmr.msra.gmra.mrb[32].mxu1 %vm381_vm1, %v17940_v53  ;;  %v17978_v6 = vpack.c.bf16 %v2119_v20, %v2118_v22  ;;  %v7423_v20 = vld [vmem:[#allocation3 + $0x1e8] sm:$0xff] }
 0x2b6   : > { %14408 = vmatpush3.bf16.msra.mxu1 %v2501_v31  ;;  %14379 = vmatprep.mubr.msk.bf16.mxu1 %vm381_vm1, %v17945_v47  ;;  %v2120_v31 = vld [vmem:[#allocation2 + $0x1c8] sm:$0xff]  ;;  %v7448_v2 = vpack.c.bf16 %v7424_v21, %v7423_v20 }
 0x2b7   : > { %16458 = vmatprep.subr.msk.bf16.mxu1 %vm430_vm0, %v17950_v0  ;;  %v17981_v49 = vpack.c.bf16 %v2121_v18, %v2120_v31  ;;  %v7425_v18 = vld [vmem:[#allocation3 + $0x208] sm:$0xff] }
 0x2b8   : > { %v7449_v22 = vpack.c.bf16 %v7426_v58, %v7425_v18  ;;  %v2126_v31 = vld [vmem:[#allocation2 + $0x228] sm:$0xff]  ;;  %v7432_v18 = vld [vmem:[#allocation3 + $0x270] sm:$0xff] }
 0x2b9   : > { %v2130_v58 = vld [vmem:[#allocation2 + $0x268] sm:$0xff] }
 0x2ba   : > { %v18008_v20 = vpack.c.bf16 %v2131_v28, %v2130_v58  ;;  %v2134_v28 = vld [vmem:[#allocation2 + $0x2a8] sm:$0xff]  ;;  %v7438_v58 = vld [vmem:[#allocation3 + $0x2d0] sm:$0xff] }
 0x2bb   : > { %14954 = vmatmul.mubr.msk.bf16.vlgmr.msra.gmra.mrb[0].mxu0 %vm381_vm1, %v7442_v9  ;;  %v7446_v9 = vpack.c.bf16 %v7420_v24, %v7419_v40 }
 0x2bc   : > { %14957 = vmatprep.mubr.msk.bf16.mxu0 %vm381_vm1, %v7443_v30  ;;  %14986 = vmatpush3.bf16.msra.mxu0 %v7802_v10  ;;  %v7447_v10 = vpack.c.bf16 %v7422_v36, %v7421_v1  ;;  %v2122_v30 = vld [vmem:[#allocation2 + $0x1e8] sm:$0xff] }
 0x2bd   : > { %14380 = vmatmul.mubr.msk.bf16.gmra.mrb[36].mxu1 %vm381_vm1, %v17966_v35  ;;  %16475 = vmatprep.subr.msk.bf16.mxu0 %vm430_vm0, %v17963_v11  ;;  %v17988_v16 = vpack.c.bf16 %v2123_v7, %v2122_v30  ;;  %v2128_v36 = vld [vmem:[#allocation2 + $0x248] sm:$0xff]  ;;  %v7428_v7 = vld [vmem:[#allocation3 + $0x230] sm:$0xff] }
 0x2be   : > { %14383 = vmatprep.mubr.msk.bf16.mxu1 %vm381_vm1, %v17969_v48  ;;  %v7427_v1 = vld [vmem:[#allocation3 + $0x228] sm:$0xff] }
 0x2bf   : > { %v7429_v30 = vld [vmem:[#allocation3 + $0x248] sm:$0xff] }
 0x2c3   : > { %14958 = vmatmul.mubr.msk.bf16.gmra.mrb[4].mxu0 %vm381_vm1, %v7444_v17  ;;  %v2127_v17 = vld [vmem:[#allocation2 + $0x230] sm:$0xff] }
 0x2c4   : > { %14961 = vmatprep.mubr.msk.bf16.mxu0 %vm381_vm1, %v7445_v27  ;;  %v2129_v27 = vld [vmem:[#allocation2 + $0x250] sm:$0xff]  ;;  %v17998_v24 = vpack.c.bf16 %v2127_v17, %v2126_v31  ;;  %v2132_v17 = vld [vmem:[#allocation2 + $0x288] sm:$0xff] }
 0x2c5   : > { %14384 = vmatmul.mubr.msk.bf16.gmra.mrb[40].mxu1 %vm381_vm1, %v17978_v6  ;;  %v18001_v40 = vpack.c.bf16 %v2129_v27, %v2128_v36  ;;  %v7434_v27 = vld [vmem:[#allocation3 + $0x290] sm:$0xff] }
 0x2c6   : > { %14387 = vmatprep.mubr.msk.bf16.mxu1 %vm381_vm1, %v17981_v49  ;;  %v2135_v31 = vld [vmem:[#allocation2 + $0x2b0] sm:$0xff] }
 0x2cb   : > { %14962 = vmatmul.mubr.msk.bf16.gmra.mrb[8].mxu0 %vm381_vm1, %v7446_v9  ;;  %v7430_v9 = vld [vmem:[#allocation3 + $0x250] sm:$0xff] }
 0x2cc   : > { %14965 = vmatprep.mubr.msk.bf16.mxu0 %vm381_vm1, %v7447_v10  ;;  %v7450_v10 = vpack.c.bf16 %v7428_v7, %v7427_v1  ;;  %v7451_v21 = vpack.c.bf16 %v7430_v9, %v7429_v30  ;;  %v7433_v7 = vld [vmem:[#allocation3 + $0x288] sm:$0xff]  ;;  %v2137_v9 = vld [vmem:[#allocation2 + $0x2d0] sm:$0xff] }
 0x2cd   : > { %14388 = vmatmul.mubr.msk.bf16.gmra.mrb[44].mxu1 %vm381_vm1, %v17988_v16  ;;  %v7453_v1 = vpack.c.bf16 %v7434_v27, %v7433_v7  ;;  %v2136_v30 = vld [vmem:[#allocation2 + $0x2c8] sm:$0xff] }
 0x2ce   : > { %14391 = vmatprep.mubr.msk.bf16.mxu1 %vm381_vm1, %v17991_v44 }
 0x2d3   : > { %14966 = vmatmul.mubr.msk.bf16.gmra.mrb[12].mxu0 %vm381_vm1, %v7448_v2  ;;  %v18011_v2 = vpack.c.bf16 %v2133_v15, %v2132_v17  ;;  %v18021_v15 = vpack.c.bf16 %v2137_v9, %v2136_v30  ;;  %v7435_v17 = vld [vmem:[#allocation3 + $0x2a8] sm:$0xff]  ;;  %v7440_v9 = vld [vmem:[#allocation3 + $0x2f0] sm:$0xff] }
 0x2d4   : > { %14969 = vmatprep.mubr.msk.bf16.mxu0 %vm381_vm1, %v7449_v22  ;;  %v7431_v22 = vld [vmem:[#allocation3 + $0x268] sm:$0xff] }
 0x2d5   : > { %14392 = vmatmul.mubr.msk.bf16.gmra.mrb[48].mxu1 %vm381_vm1, %v17998_v24  ;;  %v7452_v36 = vpack.c.bf16 %v7432_v18, %v7431_v22  ;;  %v2139_v18 = vld [vmem:[#allocation2 + $0x2f0] sm:$0xff]  ;;  %v7437_v22 = vld [vmem:[#allocation3 + $0x2c8] sm:$0xff] }
 0x2d6   : > { %14395 = vmatprep.mubr.msk.bf16.mxu1 %vm381_vm1, %v18001_v40  ;;  %v7439_v30 = vld [vmem:[#allocation3 + $0x2e8] sm:$0xff] }
 0x2db   : > { %14970 = vmatmul.mubr.msk.bf16.gmra.mrb[16].mxu0 %vm381_vm1, %v7450_v10  ;;  %v18018_v10 = vpack.c.bf16 %v2135_v31, %v2134_v28  ;;  %v2138_v31 = vld [vmem:[#allocation2 + $0x2e8] sm:$0xff]  ;;  %v7704_v28 = vld [vmem:[#allocation3 + $0x111] sm:$0xff] }
 0x2dc   : > { %14973 = vmatprep.mubr.msk.bf16.mxu0 %vm381_vm1, %v7451_v21  ;;  %v7436_v21 = vld [vmem:[#allocation3 + $0x2b0] sm:$0xff]  ;;  %v18028_v7 = vpack.c.bf16 %v2139_v18, %v2138_v31  ;;  %v18042_v18 = vld [vmem:[%s20455_s2 + $0xe] sm:$0x3]  ;;  %v8096_v31 = vsel %vm430_vm0, %v17963_v11, 0 }
 0x2dd   : > { %14396 = vmatmul.mubr.msk.bf16.gmra.mrb[52].mxu1 %vm381_vm1, %v18008_v20  ;;  %v7454_v27 = vpack.c.bf16 %v7436_v21, %v7435_v17  ;;  %v7456_v21 = vpack.c.bf16 %v7440_v9, %v7439_v30  ;;  %v7710_v11 = vld [vmem:[#allocation3 + $0x171] sm:$0xff] }
 0x2de   : > { %14399 = vmatprep.mubr.msk.bf16.mxu1 %vm381_vm1, %v18011_v2 }
 0x2e3   : > { %14974 = vmatmul.mubr.msk.bf16.gmra.mrb[20].mxu0 %vm381_vm1, %v7452_v36  ;;  %v7455_v36 = vpack.c.bf16 %v7438_v58, %v7437_v22  ;;  %v2796_v58 = vsel %vm430_vm0, %v17950_v0, 0  ;;  %v7707_v22 = vld [vmem:[#allocation3 + $0x149] sm:$0xff] }
 0x2e4   : > { %14977 = vmatprep.mubr.msk.bf16.mxu0 %vm381_vm1, %v7453_v1  ;;  %v7703_v1 = vld [vmem:[#allocation3 + $0x109] sm:$0xff] }
 0x2e5   : > { %14400 = vmatmul.mubr.msk.bf16.gmra.mrb[56].mxu1 %vm381_vm1, %v18018_v10  ;;  %v7735_v17 = vpack.c.bf16 %v7704_v28, %v7703_v1  ;;  %v7711_v1 = vld [vmem:[#allocation3 + $0x189] sm:$0xff]  ;;  %v7712_v28 = vld [vmem:[#allocation3 + $0x191] sm:$0xff] }
 0x2e6   : > { %14403 = vmatprep.mubr.msk.bf16.mxu1 %vm381_vm1, %v18021_v15 }
 0x2eb   : > { %14978 = vmatmul.mubr.msk.bf16.gmra.mrb[24].mxu0 %vm381_vm1, %v7454_v27  ;;  %v7706_v27 = vld [vmem:[#allocation3 + $0x131] sm:$0xff] }
 0x2ec   : > { %14981 = vmatprep.mubr.msk.bf16.mxu0 %vm381_vm1, %v7455_v36  ;;  %v7708_v36 = vld [vmem:[#allocation3 + $0x151] sm:$0xff] }
 0x2ed   : > { %14404 = vmatmul.mubr.msk.bf16.gmra.mrb[60].mxu1 %vm381_vm1, %v18028_v7  ;;  %v7737_v9 = vpack.c.bf16 %v7708_v36, %v7707_v22  ;;  %v7718_v22 = vld [vmem:[#allocation3 + $0x1f1] sm:$0xff]  ;;  %v7719_v36 = vld [vmem:[#allocation3 + $0x209] sm:$0xff] }
 0x2ee   : > { %14409 = vmatprep.mubr.msk.bf16.mxu1 %vm381_vm1, %v17777_v61  ;;  %v7705_v61 = vld [vmem:[#allocation3 + $0x129] sm:$0xff] }
 0x2ef   : > { %v7736_v0 = vpack.c.bf16 %v7706_v27, %v7705_v61 }
 0x2f3   : > { %14982 = vmatmul.mubr.msk.bf16.gmra.mrb[28].mxu0 %vm381_vm1, %v7456_v21  ;;  %v7739_v21 = vpack.c.bf16 %v7712_v28, %v7711_v1  ;;  %v7726_v28 = vld [vmem:[#allocation3 + $0x271] sm:$0xff] }
 0x2f4   : > { %14987 = vmatprep.mubr.msk.bf16.mxu0 %vm381_vm1, %v7735_v17  ;;  %v7714_v17 = vld [vmem:[#allocation3 + $0x1b1] sm:$0xff] }
 0x2f5   : > { %14410 = vmatmul.mubr.msk.bf16.vlgmr.msra.gmra.mrb[32].mxu1 %vm381_vm1, %v17782_v13  ;;  %v18055_v13 = vld [vmem:[%s20456_s3 + $0x1e] sm:$0x3] }
 0x2f6   : > { %14442 = vmatpush3.bf16.msra.mxu1 %v2796_v58  ;;  %14413 = vmatprep.mubr.msk.bf16.mxu1 %vm381_vm1, %v17803_v56  ;;  %v7709_v56 = vld [vmem:[#allocation3 + $0x169] sm:$0xff] }
 0x2f7   : > { %16459 = vmatprep.subr.msk.bf16.mxu1 %vm430_vm0, %v18042_v18  ;;  %v7738_v30 = vpack.c.bf16 %v7710_v11, %v7709_v56  ;;  %v7715_v58 = vld [vmem:[#allocation3 + $0x1c9] sm:$0xff] }
 0x2f8   : > { %v7723_v56 = vld [vmem:[#allocation3 + $0x249] sm:$0xff] }
 0x2fb   : > { %14988 = vmatmul.mubr.msk.bf16.vlgmr.msra.gmra.mrb[0].mxu0 %vm381_vm1, %v7736_v0 }
 0x2fc   : > { %14991 = vmatprep.mubr.msk.bf16.mxu0 %vm381_vm1, %v7737_v9  ;;  %15020 = vmatpush3.bf16.msra.mxu0 %v8096_v31  ;;  %v7722_v9 = vld [vmem:[#allocation3 + $0x231] sm:$0xff] }
 0x2fd   : > { %14414 = vmatmul.mubr.msk.bf16.gmra.mrb[36].mxu1 %vm381_vm1, %v17806_v62  ;;  %16476 = vmatprep.subr.msk.bf16.mxu0 %vm430_vm0, %v18055_v13  ;;  %v7713_v62 = vld [vmem:[#allocation3 + $0x1a9] sm:$0xff] }
 0x2fe   : > { %14417 = vmatprep.mubr.msk.bf16.mxu1 %vm381_vm1, %v17815_v54  ;;  %v7716_v54 = vld [vmem:[#allocation3 + $0x1d1] sm:$0xff]  ;;  %v7740_v61 = vpack.c.bf16 %v7714_v17, %v7713_v62 }
 0x2ff   : > { %v7741_v27 = vpack.c.bf16 %v7716_v54, %v7715_v58  ;;  %v7730_v17 = vld [vmem:[#allocation3 + $0x2b1] sm:$0xff]  ;;  %v7731_v58 = vld [vmem:[#allocation3 + $0x2c9] sm:$0xff] }
 0x300   : > { %v2432_v54 = vld [vmem:[#allocation2 + $0x2e9] sm:$0xff] }
 0x303   : > { %14992 = vmatmul.mubr.msk.bf16.gmra.mrb[4].mxu0 %vm381_vm1, %v7738_v30  ;;  %v7727_v30 = vld [vmem:[#allocation3 + $0x289] sm:$0xff] }
 0x304   : > { %14995 = vmatprep.mubr.msk.bf16.mxu0 %vm381_vm1, %v7739_v21 }
 0x305   : > { %14418 = vmatmul.mubr.msk.bf16.gmra.mrb[40].mxu1 %vm381_vm1, %v17818_v51  ;;  %v7717_v51 = vld [vmem:[#allocation3 + $0x1e9] sm:$0xff] }
 0x306   : > { %14421 = vmatprep.mubr.msk.bf16.mxu1 %vm381_vm1, %v17825_v38  ;;  %v7720_v38 = vld [vmem:[#allocation3 + $0x211] sm:$0xff]  ;;  %v7742_v0 = vpack.c.bf16 %v7718_v22, %v7717_v51 }
 0x307   : > { %v7743_v31 = vpack.c.bf16 %v7720_v38, %v7719_v36  ;;  %v2698_v51 = vld [vmem:[#allocation2 + $0x12f] sm:$0xff]  ;;  %v2697_v38 = vld [vmem:[#allocation2 + $0x127] sm:$0xff] }
 0x30b   : > { %14996 = vmatmul.mubr.msk.bf16.gmra.mrb[8].mxu0 %vm381_vm1, %v7740_v61  ;;  %v2433_v61 = vld [vmem:[#allocation2 + $0x2f1] sm:$0xff] }
 0x30c   : > { %14999 = vmatprep.mubr.msk.bf16.mxu0 %vm381_vm1, %v7741_v27  ;;  %v18096_v36 = vpack.c.bf16 %v2433_v61, %v2432_v54  ;;  %v2706_v54 = vld [vmem:[#allocation2 + $0x1af] sm:$0xff]  ;;  %v8391_v61 = vsel %vm430_vm0, %v18055_v13, 0 }
 0x30d   : > { %14422 = vmatmul.mubr.msk.bf16.gmra.mrb[44].mxu1 %vm381_vm1, %v17828_v43  ;;  %v7721_v43 = vld [vmem:[#allocation3 + $0x229] sm:$0xff] }
 0x30e   : > { %14425 = vmatprep.mubr.msk.bf16.mxu1 %vm381_vm1, %v17835_v52  ;;  %v7724_v52 = vld [vmem:[#allocation3 + $0x251] sm:$0xff]  ;;  %v7744_v11 = vpack.c.bf16 %v7722_v9, %v7721_v43 }
 0x30f   : > { %v7745_v1 = vpack.c.bf16 %v7724_v52, %v7723_v56  ;;  %v7998_v43 = vld [vmem:[#allocation3 + $0x112] sm:$0xff]  ;;  %v8003_v13 = vld [vmem:[#allocation3 + $0x16a] sm:$0xff] }
 0x310   : > { %v2700_v9 = vld [vmem:[#allocation2 + $0x14f] sm:$0xff] }
 0x311   : > { %v2702_v52 = vld [vmem:[#allocation2 + $0x16f] sm:$0xff] }
 0x313   : > { %15000 = vmatmul.mubr.msk.bf16.gmra.mrb[12].mxu0 %vm381_vm1, %v7742_v0  ;;  %v7734_v0 = vld [vmem:[#allocation3 + $0x2f1] sm:$0xff] }
 0x314   : > { %15003 = vmatprep.mubr.msk.bf16.mxu0 %vm381_vm1, %v7743_v31  ;;  %v7997_v31 = vld [vmem:[#allocation3 + $0x10a] sm:$0xff] }
 0x315   : > { %14426 = vmatmul.mubr.msk.bf16.gmra.mrb[48].mxu1 %vm381_vm1, %v17838_v46  ;;  %v7725_v46 = vld [vmem:[#allocation3 + $0x269] sm:$0xff] }
 0x316   : > { %14429 = vmatprep.mubr.msk.bf16.mxu1 %vm381_vm1, %v17845_v33  ;;  %v7728_v33 = vld [vmem:[#allocation3 + $0x291] sm:$0xff]  ;;  %v7746_v21 = vpack.c.bf16 %v7726_v28, %v7725_v46  ;;  %v3090_v28 = vsel %vm430_vm0, %v18042_v18, 0 }
 0x317   : > { %v7747_v62 = vpack.c.bf16 %v7728_v33, %v7727_v30  ;;  %v2701_v30 = vld [vmem:[#allocation2 + $0x167] sm:$0xff]  ;;  %v2704_v18 = vld [vmem:[#allocation2 + $0x18f] sm:$0xff] }
 0x318   : > { %v2731_v33 = vpack.c.bf16 %v2702_v52, %v2701_v30  ;;  %v2710_v52 = vld [vmem:[#allocation2 + $0x1ef] sm:$0xff] }
 0x31b   : > { %15004 = vmatmul.mubr.msk.bf16.gmra.mrb[16].mxu0 %vm381_vm1, %v7744_v11  ;;  %v8029_v11 = vpack.c.bf16 %v7998_v43, %v7997_v31  ;;  %v8005_v31 = vld [vmem:[#allocation3 + $0x18a] sm:$0xff]  ;;  %v8006_v43 = vld [vmem:[#allocation3 + $0x192] sm:$0xff] }
 0x31c   : > { %15007 = vmatprep.mubr.msk.bf16.mxu0 %vm381_vm1, %v7745_v1  ;;  %v2699_v1 = vld [vmem:[#allocation2 + $0x147] sm:$0xff] }
 0x31d   : > { %14430 = vmatmul.mubr.msk.bf16.gmra.mrb[52].mxu1 %vm381_vm1, %v17848_v59  ;;  %v7729_v59 = vld [vmem:[#allocation3 + $0x2a9] sm:$0xff]  ;;  %v2730_v46 = vpack.c.bf16 %v2700_v9, %v2699_v1 }
 0x31e   : > { %14433 = vmatprep.mubr.msk.bf16.mxu1 %vm381_vm1, %v17855_v4  ;;  %v7732_v4 = vld [vmem:[#allocation3 + $0x2d1] sm:$0xff]  ;;  %v7748_v27 = vpack.c.bf16 %v7730_v17, %v7729_v59  ;;  %v2707_v1 = vld [vmem:[#allocation2 + $0x1c7] sm:$0xff] }
 0x31f   : > { %v7749_v22 = vpack.c.bf16 %v7732_v4, %v7731_v58  ;;  %v8000_v59 = vld [vmem:[#allocation3 + $0x132] sm:$0xff]  ;;  %v8001_v17 = vld [vmem:[#allocation3 + $0x14a] sm:$0xff] }
 0x320   : > { %v8002_v58 = vld [vmem:[#allocation3 + $0x152] sm:$0xff] }
 0x321   : > { %v2708_v9 = vld [vmem:[#allocation2 + $0x1cf] sm:$0xff] }
 0x323   : > { %15008 = vmatmul.mubr.msk.bf16.gmra.mrb[20].mxu0 %vm381_vm1, %v7746_v21  ;;  %v18109_v21 = vld [vmem:[%s20455_s2 + $0x10] sm:$0x3] }
 0x324   : > { %15011 = vmatprep.mubr.msk.bf16.mxu0 %vm381_vm1, %v7747_v62  ;;  %v7999_v62 = vld [vmem:[#allocation3 + $0x12a] sm:$0xff] }
 0x325   : > { %14434 = vmatmul.mubr.msk.bf16.gmra.mrb[56].mxu1 %vm381_vm1, %v17858_v55  ;;  %v2729_v55 = vpack.c.bf16 %v2698_v51, %v2697_v38  ;;  %v8030_v4 = vpack.c.bf16 %v8000_v59, %v7999_v62  ;;  %v2703_v51 = vld [vmem:[#allocation2 + $0x187] sm:$0xff]  ;;  %v8008_v62 = vld [vmem:[#allocation3 + $0x1b2] sm:$0xff] }
 0x326   : > { %14437 = vmatprep.mubr.msk.bf16.mxu1 %vm381_vm1, %v17865_v32  ;;  %v7733_v32 = vld [vmem:[#allocation3 + $0x2e9] sm:$0xff]  ;;  %v2732_v38 = vpack.c.bf16 %v2704_v18, %v2703_v51 }
 0x327   : > { %v7750_v56 = vpack.c.bf16 %v7734_v0, %v7733_v32  ;;  %v8004_v0 = vld [vmem:[#allocation3 + $0x172] sm:$0xff]  ;;  %v8009_v59 = vld [vmem:[#allocation3 + $0x1ca] sm:$0xff] }
 0x328   : > { %v2713_v51 = vld [vmem:[#allocation2 + $0x227] sm:$0xff] }
 0x32b   : > { %15012 = vmatmul.mubr.msk.bf16.gmra.mrb[24].mxu0 %vm381_vm1, %v7748_v27  ;;  %v8031_v27 = vpack.c.bf16 %v8002_v58, %v8001_v17  ;;  %v8010_v17 = vld [vmem:[#allocation3 + $0x1d2] sm:$0xff] }
 0x32c   : > { %15015 = vmatprep.mubr.msk.bf16.mxu0 %vm381_vm1, %v7749_v22  ;;  %v18120_v22 = vld [vmem:[%s20456_s3 + $0x20] sm:$0x3]  ;;  %v2712_v58 = vld [vmem:[#allocation2 + $0x20f] sm:$0xff] }
 0x32d   : > { %14438 = vmatmul.mubr.msk.bf16.gmra.mrb[60].mxu1 %vm381_vm1, %v18096_v36 }
 0x32e   : > { %14443 = vmatprep.mubr.msk.bf16.mxu1 %vm381_vm1, %v2729_v55  ;;  %v2705_v55 = vld [vmem:[#allocation2 + $0x1a7] sm:$0xff] }
 0x32f   : > { %v2733_v32 = vpack.c.bf16 %v2706_v54, %v2705_v55  ;;  %v8035_v54 = vpack.c.bf16 %v8010_v17, %v8009_v59  ;;  %v8011_v55 = vld [vmem:[#allocation3 + $0x1ea] sm:$0xff] }
 0x330   : > { %v2720_v59 = vld [vmem:[#allocation2 + $0x28f] sm:$0xff] }
 0x333   : > { %15016 = vmatmul.mubr.msk.bf16.gmra.mrb[28].mxu0 %vm381_vm1, %v7750_v56  ;;  %v8032_v56 = vpack.c.bf16 %v8004_v0, %v8003_v13  ;;  %v8013_v13 = vld [vmem:[#allocation3 + $0x20a] sm:$0xff]  ;;  %v8014_v0 = vld [vmem:[#allocation3 + $0x212] sm:$0xff] }
 0x334   : > { %15021 = vmatprep.mubr.msk.bf16.mxu0 %vm381_vm1, %v8029_v11  ;;  %v8033_v11 = vpack.c.bf16 %v8006_v43, %v8005_v31  ;;  %v2716_v31 = vld [vmem:[#allocation2 + $0x24f] sm:$0xff] }
 0x335   : > { %14444 = vmatmul.mubr.msk.bf16.vlgmr.msra.gmra.mrb[32].mxu1 %vm381_vm1, %v2730_v46  ;;  %v2734_v46 = vpack.c.bf16 %v2708_v9, %v2707_v1  ;;  %v2718_v9 = vld [vmem:[#allocation2 + $0x26f] sm:$0xff]  ;;  %v2717_v1 = vld [vmem:[#allocation2 + $0x267] sm:$0xff] }
 0x336   : > { %14476 = vmatpush3.bf16.msra.mxu1 %v3090_v28  ;;  %14447 = vmatprep.mubr.msk.bf16.mxu1 %vm381_vm1, %v2731_v33  ;;  %v2709_v28 = vld [vmem:[#allocation2 + $0x1e7] sm:$0xff] }
 0x337   : > { %16460 = vmatprep.subr.msk.bf16.mxu1 %vm430_vm0, %v18109_v21  ;;  %v2735_v30 = vpack.c.bf16 %v2710_v52, %v2709_v28  ;;  %v8007_v33 = vld [vmem:[#allocation3 + $0x1aa] sm:$0xff] }
 0x338   : > { %v8034_v18 = vpack.c.bf16 %v8008_v62, %v8007_v33  ;;  %v2715_v52 = vld [vmem:[#allocation2 + $0x247] sm:$0xff]  ;;  %v8018_v62 = vld [vmem:[#allocation3 + $0x252] sm:$0xff] }
 0x339   : > { %v8015_v28 = vld [vmem:[#allocation3 + $0x22a] sm:$0xff] }
 0x33a   : > { %v8017_v33 = vld [vmem:[#allocation3 + $0x24a] sm:$0xff] }
 0x33b   : > { %15022 = vmatmul.mubr.msk.bf16.vlgmr.msra.gmra.mrb[0].mxu0 %vm381_vm1, %v8030_v4  ;;  %v2714_v4 = vld [vmem:[#allocation2 + $0x22f] sm:$0xff] }
 0x33c   : > { %15025 = vmatprep.mubr.msk.bf16.mxu0 %vm381_vm1, %v8031_v27  ;;  %15054 = vmatpush3.bf16.msra.mxu0 %v8391_v61  ;;  %v2711_v61 = vld [vmem:[#allocation2 + $0x207] sm:$0xff] }
 0x33d   : > { %14448 = vmatmul.mubr.msk.bf16.gmra.mrb[36].mxu1 %vm381_vm1, %v2732_v38  ;;  %16477 = vmatprep.subr.msk.bf16.mxu0 %vm430_vm0, %v18120_v22  ;;  %v2736_v27 = vpack.c.bf16 %v2712_v58, %v2711_v61  ;;  %v2737_v38 = vpack.c.bf16 %v2714_v4, %v2713_v51  ;;  %v2722_v58 = vld [vmem:[#allocation2 + $0x2af] sm:$0xff]  ;;  %v2719_v4 = vld [vmem:[#allocation2 + $0x287] sm:$0xff] }
 0x33e   : > { %14451 = vmatprep.mubr.msk.bf16.mxu1 %vm381_vm1, %v2733_v32  ;;  %v8012_v32 = vld [vmem:[#allocation3 + $0x1f2] sm:$0xff]  ;;  %v2721_v61 = vld [vmem:[#allocation2 + $0x2a7] sm:$0xff] }
 0x33f   : > { %v8036_v43 = vpack.c.bf16 %v8012_v32, %v8011_v55  ;;  %v8019_v51 = vld [vmem:[#allocation3 + $0x26a] sm:$0xff]  ;;  %v8022_v32 = vld [vmem:[#allocation3 + $0x292] sm:$0xff] }
 0x340   : > { %v8021_v55 = vld [vmem:[#allocation3 + $0x28a] sm:$0xff] }
 0x343   : > { %15026 = vmatmul.mubr.msk.bf16.gmra.mrb[4].mxu0 %vm381_vm1, %v8032_v56  ;;  %v8037_v56 = vpack.c.bf16 %v8014_v0, %v8013_v13  ;;  %v2724_v13 = vld [vmem:[#allocation2 + $0x2cf] sm:$0xff] }
 0x344   : > { %15029 = vmatprep.mubr.msk.bf16.mxu0 %vm381_vm1, %v8033_v11  ;;  %v2738_v11 = vpack.c.bf16 %v2716_v31, %v2715_v52  ;;  %v8041_v31 = vpack.c.bf16 %v8022_v32, %v8021_v55  ;;  %v8024_v52 = vld [vmem:[#allocation3 + $0x2b2] sm:$0xff]  ;;  %v8685_v55 = vsel %vm430_vm0, %v18120_v22, 0 }
 0x345   : > { %14452 = vmatmul.mubr.msk.bf16.gmra.mrb[40].mxu1 %vm381_vm1, %v2734_v46  ;;  %v2739_v46 = vpack.c.bf16 %v2718_v9, %v2717_v1  ;;  %v2728_v1 = vld [vmem:[#allocation2 + $0x30f] sm:$0xff] }
 0x346   : > { %14455 = vmatprep.mubr.msk.bf16.mxu1 %vm381_vm1, %v2735_v30  ;;  %v8016_v30 = vld [vmem:[#allocation3 + $0x232] sm:$0xff] }
 0x347   : > { %v8038_v17 = vpack.c.bf16 %v8016_v30, %v8015_v28  ;;  %v8026_v28 = vld [vmem:[#allocation3 + $0x2d2] sm:$0xff] }
 0x348   : > { %v8301_v22 = vld [vmem:[#allocation3 + $0x1ae] sm:$0xff] }
 0x34b   : > { %15030 = vmatmul.mubr.msk.bf16.gmra.mrb[8].mxu0 %vm381_vm1, %v8034_v18  ;;  %v8039_v18 = vpack.c.bf16 %v8018_v62, %v8017_v33 }
 0x34c   : > { %15033 = vmatprep.mubr.msk.bf16.mxu0 %vm381_vm1, %v8035_v54  ;;  %v2740_v54 = vpack.c.bf16 %v2720_v59, %v2719_v4  ;;  %v8027_v59 = vld [vmem:[#allocation3 + $0x2ea] sm:$0xff] }
 0x34d   : > { %14456 = vmatmul.mubr.msk.bf16.gmra.mrb[44].mxu1 %vm381_vm1, %v2736_v27  ;;  %v2741_v27 = vpack.c.bf16 %v2722_v58, %v2721_v61  ;;  %v18164_v61 = vld [vmem:[%s20456_s3 + $0x2] sm:$0x3] }
 0x34e   : > { %14459 = vmatprep.mubr.msk.bf16.mxu1 %vm381_vm1, %v2737_v38  ;;  %v8020_v38 = vld [vmem:[#allocation3 + $0x272] sm:$0xff] }
 0x34f   : > { %v8040_v0 = vpack.c.bf16 %v8020_v38, %v8019_v51  ;;  %v8296_v38 = vld [vmem:[#allocation3 + $0x166] sm:$0xff] }
 0x353   : > { %15034 = vmatmul.mubr.msk.bf16.gmra.mrb[12].mxu0 %vm381_vm1, %v8036_v43  ;;  %v2723_v43 = vld [vmem:[#allocation2 + $0x2c7] sm:$0xff] }
 0x354   : > { %15037 = vmatprep.mubr.msk.bf16.mxu0 %vm381_vm1, %v8037_v56  ;;  %v2742_v9 = vpack.c.bf16 %v2724_v13, %v2723_v43  ;;  %v8023_v56 = vld [vmem:[#allocation3 + $0x2aa] sm:$0xff] }
 0x355   : > { %14460 = vmatmul.mubr.msk.bf16.gmra.mrb[48].mxu1 %vm381_vm1, %v2738_v11  ;;  %v2727_v11 = vld [vmem:[#allocation2 + $0x307] sm:$0xff]  ;;  %v8042_v30 = vpack.c.bf16 %v8024_v52, %v8023_v56 }
 0x356   : > { %14463 = vmatprep.mubr.msk.bf16.mxu1 %vm381_vm1, %v2739_v46  ;;  %v8025_v46 = vld [vmem:[#allocation3 + $0x2ca] sm:$0xff]  ;;  %v2744_v33 = vpack.c.bf16 %v2728_v1, %v2727_v11 }
 0x357   : > { %v8043_v62 = vpack.c.bf16 %v8026_v28, %v8025_v46  ;;  %v8298_v13 = vld [vmem:[#allocation3 + $0x186] sm:$0xff] }
 0x358   : > { %v8304_v52 = vld [vmem:[#allocation3 + $0x1e6] sm:$0xff] }
 0x359   : > { %v8306_v1 = vld [vmem:[#allocation3 + $0x206] sm:$0xff] }
 0x35a   : > { %v8308_v28 = vld [vmem:[#allocation3 + $0x226] sm:$0xff] }
 0x35b   : > { %15038 = vmatmul.mubr.msk.bf16.gmra.mrb[16].mxu0 %vm381_vm1, %v8038_v17  ;;  %v8028_v17 = vld [vmem:[#allocation3 + $0x2f2] sm:$0xff] }
 0x35c   : > { %15041 = vmatprep.mubr.msk.bf16.mxu0 %vm381_vm1, %v8039_v18  ;;  %v8044_v58 = vpack.c.bf16 %v8028_v17, %v8027_v59  ;;  %v8292_v18 = vld [vmem:[#allocation3 + $0x126] sm:$0xff] }
 0x35d   : > { %14464 = vmatmul.mubr.msk.bf16.gmra.mrb[52].mxu1 %vm381_vm1, %v2740_v54  ;;  %v3384_v54 = vsel %vm430_vm0, %v18109_v21, 0  ;;  %v8294_v21 = vld [vmem:[#allocation3 + $0x146] sm:$0xff] }
 0x35e   : > { %14467 = vmatprep.mubr.msk.bf16.mxu1 %vm381_vm1, %v2741_v27  ;;  %v8297_v27 = vld [vmem:[#allocation3 + $0x16e] sm:$0xff]  ;;  %v8312_v59 = vld [vmem:[#allocation3 + $0x266] sm:$0xff] }
 0x35f   : > { %v18176_v32 = vpack.c.bf16 %v8297_v27, %v8296_v38  ;;  %v8321_v27 = vld [vmem:[#allocation3 + $0x2ee] sm:$0xff] }
 0x363   : > { %15042 = vmatmul.mubr.msk.bf16.gmra.mrb[20].mxu0 %vm381_vm1, %v8040_v0 }
 0x364   : > { %15045 = vmatprep.mubr.msk.bf16.mxu0 %vm381_vm1, %v8041_v31  ;;  %v8300_v31 = vld [vmem:[#allocation3 + $0x1a6] sm:$0xff] }
 0x365   : > { %14468 = vmatmul.mubr.msk.bf16.gmra.mrb[56].mxu1 %vm381_vm1, %v2742_v9  ;;  %v18195_v43 = vpack.c.bf16 %v8301_v22, %v8300_v31  ;;  %v8302_v9 = vld [vmem:[#allocation3 + $0x1c6] sm:$0xff] }
 0x366   : > { %14471 = vmatprep.mubr.msk.bf16.mxu1 %vm381_vm1, %v17933_v41  ;;  %v8293_v41 = vld [vmem:[#allocation3 + $0x12e] sm:$0xff] }
 0x367   : > { %v18154_v4 = vpack.c.bf16 %v8293_v41, %v8292_v18  ;;  %v8314_v41 = vld [vmem:[#allocation3 + $0x286] sm:$0xff] }
 0x368   : > { %v8316_v18 = vld [vmem:[#allocation3 + $0x2a6] sm:$0xff] }
 0x369   : > { %v3285_v22 = vld [vmem:[#allocation2 + $0x129] sm:$0xff] }
 0x36b   : > { %15046 = vmatmul.mubr.msk.bf16.gmra.mrb[24].mxu0 %vm381_vm1, %v8042_v30 }
 0x36c   : > { %15049 = vmatprep.mubr.msk.bf16.mxu0 %vm381_vm1, %v8043_v62 }
 0x36d   : > { %14472 = vmatmul.mubr.msk.bf16.gmra.mrb[60].mxu1 %vm381_vm1, %v2744_v33  ;;  %v8310_v33 = vld [vmem:[#allocation3 + $0x246] sm:$0xff] }
 0x36e   : > { %14477 = vmatprep.mubr.msk.bf16.mxu1 %vm381_vm1, %v17940_v53  ;;  %v8295_v53 = vld [vmem:[#allocation3 + $0x14e] sm:$0xff] }
 0x36f   : > { %v18172_v51 = vpack.c.bf16 %v8295_v53, %v8294_v21  ;;  %v3022_v53 = vld [vmem:[#allocation2 + $0x310] sm:$0xff]  ;;  %v8318_v21 = vld [vmem:[#allocation3 + $0x2c6] sm:$0xff] }
 0x373   : > { %15050 = vmatmul.mubr.msk.bf16.gmra.mrb[28].mxu0 %vm381_vm1, %v8044_v58 }
 0x374   : > { %15055 = vmatprep.mubr.msk.bf16.mxu0 %vm381_vm1, %v18154_v4 }
 0x375   : > { %14478 = vmatmul.mubr.msk.bf16.vlgmr.msra.gmra.mrb[32].mxu1 %vm381_vm1, %v17945_v47  ;;  %v18181_v47 = vld [vmem:[%s20456_s3 + $0x22] sm:$0x3] }
 0x376   : > { %14510 = vmatpush3.bf16.msra.mxu1 %v3384_v54  ;;  %14481 = vmatprep.mubr.msk.bf16.mxu1 %vm381_vm1, %v17966_v35  ;;  %v8299_v35 = vld [vmem:[#allocation3 + $0x18e] sm:$0xff] }
 0x377   : > { %16461 = vmatprep.subr.msk.bf16.mxu1 %vm430_vm0, %v18164_v61  ;;  %v18193_v0 = vpack.c.bf16 %v8299_v35, %v8298_v13  ;;  %v3286_v13 = vld [vmem:[#allocation2 + $0x131] sm:$0xff] }
 0x37b   : > { %15056 = vmatmul.mubr.msk.bf16.vlgmr.msra.gmra.mrb[0].mxu0 %vm381_vm1, %v18172_v51 }
 0x37c   : > { %15059 = vmatprep.mubr.msk.bf16.mxu0 %vm381_vm1, %v18176_v32  ;;  %15088 = vmatpush3.bf16.msra.mxu0 %v8685_v55  ;;  %v8320_v55 = vld [vmem:[#allocation3 + $0x2e6] sm:$0xff] }
 0x37d   : > { %14482 = vmatmul.mubr.msk.bf16.gmra.mrb[36].mxu1 %vm381_vm1, %v17969_v48  ;;  %16478 = vmatprep.subr.msk.bf16.mxu0 %vm430_vm0, %v18181_v47  ;;  %v8303_v48 = vld [vmem:[#allocation3 + $0x1ce] sm:$0xff]  ;;  %v8338_v31 = vpack.c.bf16 %v8321_v27, %v8320_v55 }
 0x37e   : > { %14485 = vmatprep.mubr.msk.bf16.mxu1 %vm381_vm1, %v17978_v6  ;;  %v8305_v6 = vld [vmem:[#allocation3 + $0x1ee] sm:$0xff]  ;;  %v18205_v56 = vpack.c.bf16 %v8303_v48, %v8302_v9  ;;  %v3317_v48 = vpack.c.bf16 %v3286_v13, %v3285_v22 }
 0x37f   : > { %v18207_v11 = vpack.c.bf16 %v8305_v6, %v8304_v52  ;;  %v8323_v6 = vld [vmem:[#allocation3 + $0x30e] sm:$0xff] }
 0x380   : > { %v8587_v9 = vld [vmem:[#allocation3 + $0x12f] sm:$0xff] }
 0x381   : > { %v3287_v52 = vld [vmem:[#allocation2 + $0x149] sm:$0xff] }
 0x382   : > { %v3293_v27 = vld [vmem:[#allocation2 + $0x1a9] sm:$0xff] }
 0x383   : > { %15060 = vmatmul.mubr.msk.bf16.gmra.mrb[4].mxu0 %vm381_vm1, %v18193_v0 }
 0x384   : > { %15063 = vmatprep.mubr.msk.bf16.mxu0 %vm381_vm1, %v18195_v43 }
 0x385   : > { %14486 = vmatmul.mubr.msk.bf16.gmra.mrb[40].mxu1 %vm381_vm1, %v17981_v49  ;;  %v8307_v49 = vld [vmem:[#allocation3 + $0x20e] sm:$0xff] }
 0x386   : > { %14489 = vmatprep.mubr.msk.bf16.mxu1 %vm381_vm1, %v17988_v16  ;;  %v8309_v16 = vld [vmem:[#allocation3 + $0x22e] sm:$0xff]  ;;  %v18217_v46 = vpack.c.bf16 %v8307_v49, %v8306_v1 }
 0x387   : > { %v18219_v30 = vpack.c.bf16 %v8309_v16, %v8308_v28  ;;  %v3288_v49 = vld [vmem:[#allocation2 + $0x151] sm:$0xff]  ;;  %v8586_v16 = vld [vmem:[#allocation3 + $0x127] sm:$0xff] }
 0x388   : > { %v3289_v1 = vld [vmem:[#allocation2 + $0x169] sm:$0xff]  ;;  %v3290_v28 = vld [vmem:[#allocation2 + $0x171] sm:$0xff] }
 0x38b   : > { %15064 = vmatmul.mubr.msk.bf16.gmra.mrb[8].mxu0 %vm381_vm1, %v18205_v56 }
 0x38c   : > { %15067 = vmatprep.mubr.msk.bf16.mxu0 %vm381_vm1, %v18207_v11 }
 0x38d   : > { %14490 = vmatmul.mubr.msk.bf16.gmra.mrb[44].mxu1 %vm381_vm1, %v17991_v44  ;;  %v8311_v44 = vld [vmem:[#allocation3 + $0x24e] sm:$0xff] }
 0x38e   : > { %14493 = vmatprep.mubr.msk.bf16.mxu1 %vm381_vm1, %v17998_v24  ;;  %v8313_v24 = vld [vmem:[#allocation3 + $0x26e] sm:$0xff]  ;;  %v18229_v62 = vpack.c.bf16 %v8311_v44, %v8310_v33  ;;  %v18257_v44 = vpack.c.bf16 %v8587_v9, %v8586_v16  ;;  %v4093_v33 = vsel %vm430_vm0, %v18164_v61, 0 }
 0x38f   : > { %v18231_v17 = vpack.c.bf16 %v8313_v24, %v8312_v59  ;;  %v3318_v24 = vpack.c.bf16 %v3288_v49, %v3287_v52  ;;  %v3319_v59 = vpack.c.bf16 %v3290_v28, %v3289_v1  ;;  %v8588_v61 = vld [vmem:[#allocation3 + $0x147] sm:$0xff]  ;;  %v3298_v49 = vld [vmem:[#allocation2 + $0x1f1] sm:$0xff] }
 0x390   : > { %v8594_v9 = vld [vmem:[#allocation3 + $0x1a7] sm:$0xff] }
 0x391   : > { %v3297_v52 = vld [vmem:[#allocation2 + $0x1e9] sm:$0xff] }
 0x392   : > { %v3323_v28 = vpack.c.bf16 %v3298_v49, %v3297_v52  ;;  %v3306_v52 = vld [vmem:[#allocation2 + $0x271] sm:$0xff] }
 0x393   : > { %15068 = vmatmul.mubr.msk.bf16.gmra.mrb[12].mxu0 %vm381_vm1, %v18217_v46 }
 0x394   : > { %15071 = vmatprep.mubr.msk.bf16.mxu0 %vm381_vm1, %v18219_v30 }
 0x395   : > { %14494 = vmatmul.mubr.msk.bf16.gmra.mrb[48].mxu1 %vm381_vm1, %v18001_v40  ;;  %v8315_v40 = vld [vmem:[#allocation3 + $0x28e] sm:$0xff] }
 0x396   : > { %14497 = vmatprep.mubr.msk.bf16.mxu1 %vm381_vm1, %v18008_v20  ;;  %v8317_v20 = vld [vmem:[#allocation3 + $0x2ae] sm:$0xff]  ;;  %v18241_v58 = vpack.c.bf16 %v8315_v40, %v8314_v41  ;;  %v18267_v40 = vld [vmem:[%s20456_s3] sm:$0x3] }
 0x397   : > { %v18243_v54 = vpack.c.bf16 %v8317_v20, %v8316_v18  ;;  %v8589_v20 = vld [vmem:[#allocation3 + $0x14f] sm:$0xff] }
 0x398   : > { %v8591_v41 = vld [vmem:[#allocation3 + $0x16f] sm:$0xff] }
 0x399   : > { %v3291_v18 = vld [vmem:[#allocation2 + $0x189] sm:$0xff] }
 0x39b   : > { %15072 = vmatmul.mubr.msk.bf16.gmra.mrb[16].mxu0 %vm381_vm1, %v18229_v62 }
 0x39c   : > { %15075 = vmatprep.mubr.msk.bf16.mxu0 %vm381_vm1, %v18231_v17 }
 0x39d   : > { %14498 = vmatmul.mubr.msk.bf16.gmra.mrb[52].mxu1 %vm381_vm1, %v18011_v2  ;;  %v8319_v2 = vld [vmem:[#allocation3 + $0x2ce] sm:$0xff] }
 0x39e   : > { %14501 = vmatprep.mubr.msk.bf16.mxu1 %vm381_vm1, %v18018_v10  ;;  %v3021_v10 = vld [vmem:[#allocation2 + $0x308] sm:$0xff]  ;;  %v8337_v38 = vpack.c.bf16 %v8319_v2, %v8318_v21  ;;  %v3292_v2 = vld [vmem:[#allocation2 + $0x191] sm:$0xff] }
 0x39f   : > { %v3038_v35 = vpack.c.bf16 %v3022_v53, %v3021_v10  ;;  %v18273_v10 = vpack.c.bf16 %v8589_v20, %v8588_v61  ;;  %v8590_v53 = vld [vmem:[#allocation3 + $0x167] sm:$0xff]  ;;  %v3294_v21 = vld [vmem:[#allocation2 + $0x1b1] sm:$0xff]  ;;  %v3320_v22 = vpack.c.bf16 %v3292_v2, %v3291_v18 }
 0x3a0   : > { %v18277_v55 = vpack.c.bf16 %v8591_v41, %v8590_v53  ;;  %v3321_v13 = vpack.c.bf16 %v3294_v21, %v3293_v27  ;;  %v3299_v20 = vld [vmem:[#allocation2 + $0x209] sm:$0xff]  ;;  %v3300_v41 = vld [vmem:[#allocation2 + $0x211] sm:$0xff] }
 0x3a1   : > { %v8598_v18 = vld [vmem:[#allocation3 + $0x1e7] sm:$0xff]  ;;  %v3302_v53 = vld [vmem:[#allocation2 + $0x231] sm:$0xff]  ;;  %v3324_v21 = vpack.c.bf16 %v3300_v41, %v3299_v20 }
 0x3a2   : > { %v3301_v2 = vld [vmem:[#allocation2 + $0x229] sm:$0xff]  ;;  %v3308_v41 = vld [vmem:[#allocation2 + $0x291] sm:$0xff] }
 0x3a3   : > { %15076 = vmatmul.mubr.msk.bf16.gmra.mrb[20].mxu0 %vm381_vm1, %v18241_v58  ;;  %v3307_v20 = vld [vmem:[#allocation2 + $0x289] sm:$0xff] }
 0x3a4   : > { %15079 = vmatprep.mubr.msk.bf16.mxu0 %vm381_vm1, %v18243_v54 }
 0x3a5   : > { %14502 = vmatmul.mubr.msk.bf16.gmra.mrb[56].mxu1 %vm381_vm1, %v18021_v15  ;;  %v8322_v15 = vld [vmem:[#allocation3 + $0x306] sm:$0xff] }
 0x3a6   : > { %14505 = vmatprep.mubr.msk.bf16.mxu1 %vm381_vm1, %v18028_v7  ;;  %v8339_v7 = vpack.c.bf16 %v8323_v6, %v8322_v15  ;;  %v3295_v15 = vld [vmem:[#allocation2 + $0x1c9] sm:$0xff]  ;;  %v3296_v6 = vld [vmem:[#allocation2 + $0x1d1] sm:$0xff] }
 0x3a7   : > { %v3322_v1 = vpack.c.bf16 %v3296_v6, %v3295_v15  ;;  %v8602_v6 = vld [vmem:[#allocation3 + $0x227] sm:$0xff] }
 0x3ab   : > { %15080 = vmatmul.mubr.msk.bf16.gmra.mrb[24].mxu0 %vm381_vm1, %v8337_v38  ;;  %v8979_v38 = vsel %vm430_vm0, %v18181_v47, 0  ;;  %v8593_v47 = vld [vmem:[#allocation3 + $0x18f] sm:$0xff] }
 0x3ac   : > { %15083 = vmatprep.mubr.msk.bf16.mxu0 %vm381_vm1, %v8338_v31  ;;  %v8595_v31 = vld [vmem:[#allocation3 + $0x1af] sm:$0xff] }
 0x3ad   : > { %14506 = vmatmul.mubr.msk.bf16.gmra.mrb[60].mxu1 %vm381_vm1, %v3038_v35  ;;  %v18282_v35 = vld [vmem:[%s20456_s3 + $0x24] sm:$0x3]  ;;  %v18294_v16 = vpack.c.bf16 %v8595_v31, %v8594_v9  ;;  %v3303_v31 = vld [vmem:[#allocation2 + $0x249] sm:$0xff] }
 0x3ae   : > { %14511 = vmatprep.mubr.msk.bf16.mxu1 %vm381_vm1, %v3317_v48  ;;  %v8592_v48 = vld [vmem:[#allocation3 + $0x187] sm:$0xff] }
 0x3af   : > { %v3305_v9 = vld [vmem:[#allocation2 + $0x269] sm:$0xff] }
 0x3b3   : > { %15084 = vmatmul.mubr.msk.bf16.gmra.mrb[28].mxu0 %vm381_vm1, %v8339_v7  ;;  %v18292_v7 = vpack.c.bf16 %v8593_v47, %v8592_v48  ;;  %v8600_v47 = vld [vmem:[#allocation3 + $0x207] sm:$0xff]  ;;  %v3304_v48 = vld [vmem:[#allocation2 + $0x251] sm:$0xff] }
 0x3b4   : > { %15089 = vmatprep.mubr.msk.bf16.mxu0 %vm381_vm1, %v18257_v44 }
 0x3b5   : > { %14512 = vmatmul.mubr.msk.bf16.vlgmr.msra.gmra.mrb[32].mxu1 %vm381_vm1, %v3318_v24  ;;  %v8597_v24 = vld [vmem:[#allocation3 + $0x1cf] sm:$0xff] }
 0x3b6   : > { %14544 = vmatpush3.bf16.msra.mxu1 %v4093_v33  ;;  %14515 = vmatprep.mubr.msk.bf16.mxu1 %vm381_vm1, %v3319_v59  ;;  %v8599_v33 = vld [vmem:[#allocation3 + $0x1ef] sm:$0xff]  ;;  %v8596_v59 = vld [vmem:[#allocation3 + $0x1c7] sm:$0xff] }
 0x3b7   : > { %16462 = vmatprep.subr.msk.bf16.mxu1 %vm430_vm0, %v18267_v40  ;;  %v18302_v61 = vpack.c.bf16 %v8597_v24, %v8596_v59  ;;  %v18304_v27 = vpack.c.bf16 %v8599_v33, %v8598_v18  ;;  %v8605_v24 = vld [vmem:[#allocation3 + $0x24f] sm:$0xff]  ;;  %v8604_v59 = vld [vmem:[#allocation3 + $0x247] sm:$0xff] }
 0x3b8   : > { %v8607_v33 = vld [vmem:[#allocation3 + $0x26f] sm:$0xff]  ;;  %v18322_v18 = vpack.c.bf16 %v8605_v24, %v8604_v59 }
 0x3b9   : > { %v3315_v59 = vld [vmem:[#allocation2 + $0x309] sm:$0xff] }
 0x3bb   : > { %15090 = vmatmul.mubr.msk.bf16.vlgmr.msra.gmra.mrb[0].mxu0 %vm381_vm1, %v18273_v10 }
 0x3bc   : > { %15093 = vmatprep.mubr.msk.bf16.mxu0 %vm381_vm1, %v18277_v55  ;;  %15122 = vmatpush3.bf16.msra.mxu0 %v8979_v38  ;;  %v3325_v38 = vpack.c.bf16 %v3302_v53, %v3301_v2  ;;  %v8606_v2 = vld [vmem:[#allocation3 + $0x267] sm:$0xff] }
 0x3bd   : > { %14516 = vmatmul.mubr.msk.bf16.gmra.mrb[36].mxu1 %vm381_vm1, %v3320_v22  ;;  %16479 = vmatprep.subr.msk.bf16.mxu0 %vm430_vm0, %v18282_v35  ;;  %v8601_v22 = vld [vmem:[#allocation3 + $0x20f] sm:$0xff] }
 0x3be   : > { %14519 = vmatprep.mubr.msk.bf16.mxu1 %vm381_vm1, %v3321_v13  ;;  %v8603_v13 = vld [vmem:[#allocation3 + $0x22f] sm:$0xff]  ;;  %v18312_v15 = vpack.c.bf16 %v8601_v22, %v8600_v47  ;;  %v3328_v22 = vpack.c.bf16 %v3308_v41, %v3307_v20 }
 0x3bf   : > { %v18314_v49 = vpack.c.bf16 %v8603_v13, %v8602_v6  ;;  %v3309_v53 = vld [vmem:[#allocation2 + $0x2a9] sm:$0xff]  ;;  %v3316_v20 = vld [vmem:[#allocation2 + $0x311] sm:$0xff] }
 0x3c0   : > { %v8609_v47 = vld [vmem:[#allocation3 + $0x28f] sm:$0xff] }
 0x3c1   : > { %v3311_v6 = vld [vmem:[#allocation2 + $0x2c9] sm:$0xff] }
 0x3c2   : > { %v8615_v41 = vld [vmem:[#allocation3 + $0x2ef] sm:$0xff] }
 0x3c3   : > { %15094 = vmatmul.mubr.msk.bf16.gmra.mrb[4].mxu0 %vm381_vm1, %v18292_v7 }
 0x3c4   : > { %15097 = vmatprep.mubr.msk.bf16.mxu0 %vm381_vm1, %v18294_v16 }
 0x3c5   : > { %14520 = vmatmul.mubr.msk.bf16.gmra.mrb[40].mxu1 %vm381_vm1, %v3322_v1  ;;  %v3326_v1 = vpack.c.bf16 %v3304_v48, %v3303_v31  ;;  %v8611_v31 = vld [vmem:[#allocation3 + $0x2af] sm:$0xff]  ;;  %v8608_v48 = vld [vmem:[#allocation3 + $0x287] sm:$0xff] }
 0x3c6   : > { %14523 = vmatprep.mubr.msk.bf16.mxu1 %vm381_vm1, %v3323_v28  ;;  %v3327_v28 = vpack.c.bf16 %v3306_v52, %v3305_v9  ;;  %v3312_v9 = vld [vmem:[#allocation2 + $0x2d1] sm:$0xff]  ;;  %v18332_v52 = vpack.c.bf16 %v8609_v47, %v8608_v48  ;;  %v3332_v47 = vpack.c.bf16 %v3316_v20, %v3315_v59  ;;  %v18347_v59 = vpack.c.bf16 %v8881_v25, %v8880_v19 }
 0x3c7   : > { %v3330_v24 = vpack.c.bf16 %v3312_v9, %v3311_v6  ;;  %v8616_v6 = vld [vmem:[#allocation3 + $0x307] sm:$0xff]  ;;  %v8617_v9 = vld [vmem:[#allocation3 + $0x30f] sm:$0xff]  ;;  %v4305_v20 = vsel %vm430_vm0, %v18267_v40, 0 }
 0x3c8   : > { %v8883_v19 = vld [vmem:[#allocation3 + $0x150] sm:$0xff]  ;;  %v8882_v40 = vld [vmem:[#allocation3 + $0x148] sm:$0xff] }
 0x3c9   : > { %v8885_v25 = vld [vmem:[#allocation3 + $0x170] sm:$0xff] }
 0x3cb   : > { %15098 = vmatmul.mubr.msk.bf16.gmra.mrb[8].mxu0 %vm381_vm1, %v18302_v61 }
 0x3cc   : > { %15101 = vmatprep.mubr.msk.bf16.mxu0 %vm381_vm1, %v18304_v27 }
 0x3cd   : > { %14524 = vmatmul.mubr.msk.bf16.gmra.mrb[44].mxu1 %vm381_vm1, %v3324_v21  ;;  %v3310_v21 = vld [vmem:[#allocation2 + $0x2b1] sm:$0xff] }
 0x3ce   : > { %14527 = vmatprep.mubr.msk.bf16.mxu1 %vm381_vm1, %v3325_v38  ;;  %v18324_v38 = vpack.c.bf16 %v8607_v33, %v8606_v2  ;;  %v3329_v13 = vpack.c.bf16 %v3310_v21, %v3309_v53  ;;  %v8613_v33 = vld [vmem:[#allocation3 + $0x2cf] sm:$0xff]  ;;  %v3994_v2 = vld [vmem:[#allocation3 + $0xc7] sm:$0xff] }
 0x3cf   : > { %v3995_v53 = vld [vmem:[#allocation3 + $0xcf] sm:$0xff]  ;;  %v8612_v21 = vld [vmem:[#allocation3 + $0x2c7] sm:$0xff] }
 0x3d0   : > { %v4026_v48 = vpack.c.bf16 %v3995_v53, %v3994_v2  ;;  %v18357_v53 = vld [vmem:[%s20456_s3 + $0x4] sm:$0x3] }
 0x3d3   : > { %15102 = vmatmul.mubr.msk.bf16.gmra.mrb[12].mxu0 %vm381_vm1, %v18312_v15 }
 0x3d4   : > { %15105 = vmatprep.mubr.msk.bf16.mxu0 %vm381_vm1, %v18314_v49 }
 0x3d5   : > { %14528 = vmatmul.mubr.msk.bf16.gmra.mrb[48].mxu1 %vm381_vm1, %v3326_v1  ;;  %v8610_v1 = vld [vmem:[#allocation3 + $0x2a7] sm:$0xff] }
 0x3d6   : > { %14531 = vmatprep.mubr.msk.bf16.mxu1 %vm381_vm1, %v3327_v28  ;;  %v18334_v28 = vpack.c.bf16 %v8611_v31, %v8610_v1  ;;  %v3997_v1 = vld [vmem:[#allocation3 + $0xef] sm:$0xff] }
 0x3db   : > { %15106 = vmatmul.mubr.msk.bf16.gmra.mrb[16].mxu0 %vm381_vm1, %v18322_v18 }
 0x3dc   : > { %15109 = vmatprep.mubr.msk.bf16.mxu0 %vm381_vm1, %v18324_v38 }
 0x3dd   : > { %14532 = vmatmul.mubr.msk.bf16.gmra.mrb[52].mxu1 %vm381_vm1, %v3328_v22  ;;  %v8631_v22 = vpack.c.bf16 %v8613_v33, %v8612_v21  ;;  %v3999_v21 = vld [vmem:[#allocation3 + $0x10f] sm:$0xff] }
 0x3de   : > { %14535 = vmatprep.mubr.msk.bf16.mxu1 %vm381_vm1, %v3329_v13  ;;  %v8614_v13 = vld [vmem:[#allocation3 + $0x2e7] sm:$0xff] }
 0x3df   : > { %v8632_v31 = vpack.c.bf16 %v8615_v41, %v8614_v13  ;;  %v3998_v41 = vld [vmem:[#allocation3 + $0x107] sm:$0xff] }
 0x3e0   : > { %v4028_v2 = vpack.c.bf16 %v3999_v21, %v3998_v41  ;;  %v8884_v13 = vld [vmem:[#allocation3 + $0x168] sm:$0xff]  ;;  %v8893_v21 = vld [vmem:[#allocation3 + $0x1f0] sm:$0xff] }
 0x3e3   : > { %15110 = vmatmul.mubr.msk.bf16.gmra.mrb[20].mxu0 %vm381_vm1, %v18332_v52 }
 0x3e4   : > { %15113 = vmatprep.mubr.msk.bf16.mxu0 %vm381_vm1, %v18334_v28 }
 0x3e5   : > { %14536 = vmatmul.mubr.msk.bf16.gmra.mrb[56].mxu1 %vm381_vm1, %v3330_v24  ;;  %v8633_v24 = vpack.c.bf16 %v8617_v9, %v8616_v6  ;;  %v8889_v6 = vld [vmem:[#allocation3 + $0x1b0] sm:$0xff]  ;;  %v8886_v9 = vld [vmem:[#allocation3 + $0x188] sm:$0xff] }
 0x3e6   : > { %14539 = vmatprep.mubr.msk.bf16.mxu1 %vm381_vm1, %v18096_v36  ;;  %v3996_v36 = vld [vmem:[#allocation3 + $0xe7] sm:$0xff] }
 0x3e7   : > { %v4027_v33 = vpack.c.bf16 %v3997_v1, %v3996_v36  ;;  %v8888_v1 = vld [vmem:[#allocation3 + $0x1a8] sm:$0xff] }
 0x3eb   : > { %15114 = vmatmul.mubr.msk.bf16.gmra.mrb[24].mxu0 %vm381_vm1, %v8631_v22  ;;  %v18363_v22 = vpack.c.bf16 %v8883_v19, %v8882_v40  ;;  %v8897_v19 = vld [vmem:[#allocation3 + $0x230] sm:$0xff] }
 0x3ec   : > { %15117 = vmatprep.mubr.msk.bf16.mxu0 %vm381_vm1, %v8632_v31  ;;  %v18367_v31 = vpack.c.bf16 %v8885_v25, %v8884_v13  ;;  %v8894_v25 = vld [vmem:[#allocation3 + $0x208] sm:$0xff] }
 0x3ed   : > { %14540 = vmatmul.mubr.msk.bf16.gmra.mrb[60].mxu1 %vm381_vm1, %v3332_v47  ;;  %v9273_v47 = vsel %vm430_vm0, %v18282_v35, 0  ;;  %v8887_v35 = vld [vmem:[#allocation3 + $0x190] sm:$0xff]  ;;  %v8896_v13 = vld [vmem:[#allocation3 + $0x228] sm:$0xff] }
 0x3ee   : > { %14545 = vmatprep.mubr.msk.bf16.mxu1 %vm381_vm1, %v4026_v48  ;;  %v18372_v48 = vld [vmem:[%s20456_s3 + $0x26] sm:$0x3]  ;;  %v18384_v36 = vpack.c.bf16 %v8887_v35, %v8886_v9  ;;  %v8898_v35 = vld [vmem:[#allocation3 + $0x248] sm:$0xff] }
 0x3ef   : > { %v8900_v9 = vld [vmem:[#allocation3 + $0x268] sm:$0xff] }
 0x3f3   : > { %15118 = vmatmul.mubr.msk.bf16.gmra.mrb[28].mxu0 %vm381_vm1, %v8633_v24  ;;  %v18386_v24 = vpack.c.bf16 %v8889_v6, %v8888_v1 }
 0x3f4   : > { %15123 = vmatprep.mubr.msk.bf16.mxu0 %vm381_vm1, %v18347_v59 }
 0x3f5   : > { %14546 = vmatmul.mubr.msk.bf16.vlgmr.msra.gmra.mrb[64].mxu1 %vm381_vm1, %v4027_v33  ;;  %v18404_v33 = vld [vmem:[%s20461_s8] ss:$0 sm:$0xff] }
 0x3f6   : > { %14578 = vmatpush3.bf16.msra.mxu1 %v4305_v20  ;;  %14549 = vmatprep.mubr.msk.bf16.mxu1 %vm381_vm1, %v4028_v2  ;;  %v8892_v20 = vld [vmem:[#allocation3 + $0x1e8] sm:$0xff]  ;;  %v8895_v2 = vld [vmem:[#allocation3 + $0x210] sm:$0xff] }
 0x3f7   : > { %16463 = vmatprep.subr.msk.bf16.mxu1 %vm430_vm0, %v18357_v53  ;;  %11268 = vrot.lane.b32.xlu1 %v18404_v33, %s16602_s29  ;;  %v18412_v41 = vpack.c.bf16 %v8893_v21, %v8892_v20  ;;  %v18424_v40 = vpack.c.bf16 %v8895_v2, %v8894_v25  ;;  %v3945_v2 = vld [vmem:[#allocation3 + $0xc6] sm:$0xff] }
 0x3f8   : > { %v8906_v25 = vld [vmem:[#allocation3 + $0x2c8] sm:$0xff] }
 0x3fb   : > { %15124 = vmatmul.mubr.msk.bf16.vlgmr.msra.gmra.mrb[0].mxu0 %vm381_vm1, %v18363_v22 }
 0x3fc   : > { %15127 = vmatprep.mubr.msk.bf16.mxu0 %vm381_vm1, %v18367_v31  ;;  %15156 = vmatpush3.bf16.msra.mxu0 %v9273_v47  ;;  %v18426_v47 = vpack.c.bf16 %v8897_v19, %v8896_v13  ;;  %v3946_v19 = vld [vmem:[#allocation3 + $0xce] sm:$0xff] }
 0x3fd   : > { %14550 = vmatmul.mubr.msk.bf16.gmra.mrb[68].mxu1 %vm381_vm1, %v18257_v44  ;;  %16480 = vmatprep.subr.msk.bf16.mxu0 %vm430_vm0, %v18372_v48  ;;  %v8891_v44 = vld [vmem:[#allocation3 + $0x1d0] sm:$0xff] }
 0x3fe   : > { %14553 = vmatprep.mubr.msk.bf16.mxu1 %vm381_vm1, %v18273_v10  ;;  %v18399_v10 = vld [vmem:[%s20460_s7] ss:$0 sm:$0xff] }
 0x3ff   : > { %11233 = vrot.lane.b32.xlu0 %v18399_v10, %s16602_s29  ;;  %s16603_s29 = smov 112  }
 0x400   : > { %12306 = vrot.lane.b32.xlu1 %v18404_v33, %s16603_s29 }
 0x403   : > { %15128 = vmatmul.mubr.msk.bf16.gmra.mrb[4].mxu0 %vm381_vm1, %v18384_v36  ;;  %12271 = vrot.lane.b32.xlu0 %v18399_v10, %s16603_s29  ;;  %s16606_s29 = smov 16  }
 0x404   : > { %15131 = vmatprep.mubr.msk.bf16.mxu0 %vm381_vm1, %v18386_v24 }
 0x405   : > { %14554 = vmatmul.mubr.msk.bf16.gmra.mrb[72].mxu1 %vm381_vm1, %v18277_v55  ;;  %v8890_v55 = vld [vmem:[#allocation3 + $0x1c8] sm:$0xff] }
 0x406   : > { %14557 = vmatprep.mubr.msk.bf16.mxu1 %vm381_vm1, %v18292_v7  ;;  %v18410_v7 = vpack.c.bf16 %v8891_v44, %v8890_v55  ;;  %v8902_v44 = vld [vmem:[#allocation3 + $0x288] sm:$0xff] }
 0x407   : > { %v8904_v55 = vld [vmem:[#allocation3 + $0x2a8] sm:$0xff] }
 0x40b   : > { %15132 = vmatmul.mubr.msk.bf16.gmra.mrb[8].mxu0 %vm381_vm1, %v18410_v7 }
 0x40c   : > { %15135 = vmatprep.mubr.msk.bf16.mxu0 %vm381_vm1, %v18412_v41 }
 0x40d   : > { %14558 = vmatmul.mubr.msk.bf16.gmra.mrb[76].mxu1 %vm381_vm1, %v18294_v16  ;;  %v8899_v16 = vld [vmem:[#allocation3 + $0x250] sm:$0xff] }
 0x40e   : > { %14561 = vmatprep.mubr.msk.bf16.mxu1 %vm381_vm1, %v18302_v61  ;;  %v8901_v61 = vld [vmem:[#allocation3 + $0x270] sm:$0xff]  ;;  %v18436_v6 = vpack.c.bf16 %v8899_v16, %v8898_v35  ;;  %v8908_v16 = vld [vmem:[#allocation3 + $0x2e8] sm:$0xff]  ;;  %v3977_v35 = vpack.c.bf16 %v3946_v19, %v3945_v2  ;;  %v4567_v2 = vsel %vm430_vm0, %v18357_v53, 0 }
 0x40f   : > { %v18438_v1 = vpack.c.bf16 %v8901_v61, %v8900_v9  ;;  %v8910_v9 = vld [vmem:[#allocation3 + $0x308] sm:$0xff] }
 0x410   : > { %v3949_v19 = vld [vmem:[#allocation3 + $0x106] sm:$0xff] }
 0x413   : > { %15136 = vmatmul.mubr.msk.bf16.gmra.mrb[12].mxu0 %vm381_vm1, %v18424_v40 }
 0x414   : > { %15139 = vmatprep.mubr.msk.bf16.mxu0 %vm381_vm1, %v18426_v47 }
 0x415   : > { %14562 = vmatmul.mubr.msk.bf16.gmra.mrb[80].mxu1 %vm381_vm1, %v18304_v27  ;;  %v8903_v27 = vld [vmem:[#allocation3 + $0x290] sm:$0xff] }
 0x416   : > { %14565 = vmatprep.mubr.msk.bf16.mxu1 %vm381_vm1, %v18312_v15  ;;  %v8905_v15 = vld [vmem:[#allocation3 + $0x2b0] sm:$0xff]  ;;  %v18448_v21 = vpack.c.bf16 %v8903_v27, %v8902_v44 }
 0x417   : > { %v18450_v20 = vpack.c.bf16 %v8905_v15, %v8904_v55  ;;  %v8911_v27 = vld [vmem:[#allocation3 + $0x310] sm:$0xff] }
 0x418   : > { %v8927_v15 = vpack.c.bf16 %v8911_v27, %v8910_v9  ;;  %v9174_v44 = vld [vmem:[#allocation3 + $0x129] sm:$0xff]  ;;  %v9175_v55 = vld [vmem:[#allocation3 + $0x131] sm:$0xff]  ;;  %v9567_v27 = vsel %vm430_vm0, %v18372_v48, 0 }
 0x419   : > { %v9179_v9 = vld [vmem:[#allocation3 + $0x171] sm:$0xff]  ;;  %v9180_v48 = vld [vmem:[#allocation3 + $0x189] sm:$0xff] }
 0x41b   : > { %15140 = vmatmul.mubr.msk.bf16.gmra.mrb[16].mxu0 %vm381_vm1, %v18436_v6 }
 0x41c   : > { %15143 = vmatprep.mubr.msk.bf16.mxu0 %vm381_vm1, %v18438_v1 }
 0x41d   : > { %14566 = vmatmul.mubr.msk.bf16.gmra.mrb[84].mxu1 %vm381_vm1, %v18314_v49  ;;  %v8907_v49 = vld [vmem:[#allocation3 + $0x2d0] sm:$0xff] }
 0x41e   : > { %14569 = vmatprep.mubr.msk.bf16.mxu1 %vm381_vm1, %v18322_v18  ;;  %v8909_v18 = vld [vmem:[#allocation3 + $0x2f0] sm:$0xff]  ;;  %v8925_v13 = vpack.c.bf16 %v8907_v49, %v8906_v25 }
 0x41f   : > { %v8926_v61 = vpack.c.bf16 %v8909_v18, %v8908_v16  ;;  %v3950_v25 = vld [vmem:[#allocation3 + $0x10e] sm:$0xff]  ;;  %v18465_v18 = vpack.c.bf16 %v9175_v55, %v9174_v44 }
 0x420   : > { %v9176_v16 = vld [vmem:[#allocation3 + $0x149] sm:$0xff]  ;;  %v9183_v55 = vld [vmem:[#allocation3 + $0x1b1] sm:$0xff] }
 0x421   : > { %v9182_v44 = vld [vmem:[#allocation3 + $0x1a9] sm:$0xff] }
 0x423   : > { %15144 = vmatmul.mubr.msk.bf16.gmra.mrb[20].mxu0 %vm381_vm1, %v18448_v21 }
 0x424   : > { %15147 = vmatprep.mubr.msk.bf16.mxu0 %vm381_vm1, %v18450_v20 }
 0x425   : > { %14570 = vmatmul.mubr.msk.bf16.gmra.mrb[88].mxu1 %vm381_vm1, %v18324_v38  ;;  %v3947_v38 = vld [vmem:[#allocation3 + $0xe6] sm:$0xff] }
 0x426   : > { %14573 = vmatprep.mubr.msk.bf16.mxu1 %vm381_vm1, %v18332_v52  ;;  %v3948_v52 = vld [vmem:[#allocation3 + $0xee] sm:$0xff] }
 0x427   : > { %v3978_v49 = vpack.c.bf16 %v3948_v52, %v3947_v38  ;;  %v18490_v52 = vld [vmem:[%s20456_s3 + $0x28] sm:$0x3] }
 0x42b   : > { %15148 = vmatmul.mubr.msk.bf16.gmra.mrb[24].mxu0 %vm381_vm1, %v8925_v13  ;;  %v18475_v13 = vld [vmem:[%s20456_s3 + $0x6] sm:$0x3] }
 0x42c   : > { %15151 = vmatprep.mubr.msk.bf16.mxu0 %vm381_vm1, %v8926_v61  ;;  %v9177_v61 = vld [vmem:[#allocation3 + $0x151] sm:$0xff] }
 0x42d   : > { %14574 = vmatmul.mubr.msk.bf16.gmra.mrb[92].mxu1 %vm381_vm1, %v18334_v28  ;;  %v3979_v28 = vpack.c.bf16 %v3950_v25, %v3949_v19  ;;  %v18481_v53 = vpack.c.bf16 %v9177_v61, %v9176_v16  ;;  %v18504_v25 = vpack.c.bf16 %v9183_v55, %v9182_v44  ;;  %v9187_v19 = vld [vmem:[#allocation3 + $0x1f1] sm:$0xff]  ;;  %v9190_v61 = vld [vmem:[#allocation3 + $0x229] sm:$0xff] }
 0x42e   : > { %14579 = vmatprep.mubr.msk.bf16.mxu1 %vm381_vm1, %v3977_v35  ;;  %v9178_v35 = vld [vmem:[#allocation3 + $0x169] sm:$0xff] }
 0x42f   : > { %v18485_v38 = vpack.c.bf16 %v9179_v9, %v9178_v35  ;;  %v9191_v35 = vld [vmem:[#allocation3 + $0x231] sm:$0xff] }
 0x433   : > { %15152 = vmatmul.mubr.msk.bf16.gmra.mrb[28].mxu0 %vm381_vm1, %v8927_v15  ;;  %v9181_v15 = vld [vmem:[#allocation3 + $0x191] sm:$0xff] }
 0x434   : > { %15157 = vmatprep.mubr.msk.bf16.mxu0 %vm381_vm1, %v18465_v18 }
 0x435   : > { %14580 = vmatmul.mubr.msk.bf16.vlgmr.msra.gmra.mrb[64].mxu1 %vm381_vm1, %v3978_v49  ;;  %v18502_v49 = vpack.c.bf16 %v9181_v15, %v9180_v48  ;;  %v9194_v48 = vld [vmem:[#allocation3 + $0x269] sm:$0xff]  ;;  %v9195_v15 = vld [vmem:[#allocation3 + $0x271] sm:$0xff] }
 0x436   : > { %14612 = vmatpush3.bf16.msra.mxu1 %v4567_v2  ;;  %14583 = vmatprep.mubr.msk.bf16.mxu1 %vm381_vm1, %v3979_v28  ;;  %v9186_v2 = vld [vmem:[#allocation3 + $0x1e9] sm:$0xff]  ;;  %v18540_v55 = vpack.c.bf16 %v9195_v15, %v9194_v48 }
 0x437   : > { %16464 = vmatprep.subr.msk.bf16.mxu1 %vm430_vm0, %v18475_v13  ;;  %v18516_v16 = vpack.c.bf16 %v9187_v19, %v9186_v2  ;;  %v9204_v15 = vld [vmem:[#allocation3 + $0x309] sm:$0xff] }
 0x43b   : > { %15158 = vmatmul.mubr.msk.bf16.vlgmr.msra.gmra.mrb[0].mxu0 %vm381_vm1, %v18481_v53 }
 0x43c   : > { %15161 = vmatprep.mubr.msk.bf16.mxu0 %vm381_vm1, %v18485_v38  ;;  %15190 = vmatpush3.bf16.msra.mxu0 %v9567_v27  ;;  %v18528_v27 = vpack.c.bf16 %v9191_v35, %v9190_v61  ;;  %v4468_v61 = vld [vmem:[#allocation3 + $0xc8] sm:$0xff]  ;;  %v4469_v35 = vld [vmem:[#allocation3 + $0xd0] sm:$0xff] }
 0x43d   : > { %14584 = vmatmul.mubr.msk.bf16.gmra.mrb[68].mxu1 %vm381_vm1, %v18154_v4  ;;  %16481 = vmatprep.subr.msk.bf16.mxu0 %vm430_vm0, %v18490_v52  ;;  %v9184_v4 = vld [vmem:[#allocation3 + $0x1c9] sm:$0xff]  ;;  %v4500_v48 = vpack.c.bf16 %v4469_v35, %v4468_v61 }
 0x43e   : > { %14587 = vmatprep.mubr.msk.bf16.mxu1 %vm381_vm1, %v18172_v51  ;;  %v9185_v51 = vld [vmem:[#allocation3 + $0x1d1] sm:$0xff]  ;;  %v18577_v61 = vld [vmem:[%s20456_s3 + $0x8] sm:$0x3] }
 0x43f   : > { %v18514_v28 = vpack.c.bf16 %v9185_v51, %v9184_v4  ;;  %v9198_v4 = vld [vmem:[#allocation3 + $0x2a9] sm:$0xff]  ;;  %v9199_v51 = vld [vmem:[#allocation3 + $0x2b1] sm:$0xff] }
 0x440   : > { %v18552_v19 = vpack.c.bf16 %v9199_v51, %v9198_v4  ;;  %v9468_v4 = vld [vmem:[#allocation3 + $0x12a] sm:$0xff]  ;;  %v9469_v51 = vld [vmem:[#allocation3 + $0x132] sm:$0xff] }
 0x441   : > { %v9470_v35 = vld [vmem:[#allocation3 + $0x14a] sm:$0xff] }
 0x443   : > { %15162 = vmatmul.mubr.msk.bf16.gmra.mrb[4].mxu0 %vm381_vm1, %v18502_v49 }
 0x444   : > { %15165 = vmatprep.mubr.msk.bf16.mxu0 %vm381_vm1, %v18504_v25 }
 0x445   : > { %14588 = vmatmul.mubr.msk.bf16.gmra.mrb[72].mxu1 %vm381_vm1, %v18176_v32  ;;  %v9188_v32 = vld [vmem:[#allocation3 + $0x209] sm:$0xff] }
 0x446   : > { %14591 = vmatprep.mubr.msk.bf16.mxu1 %vm381_vm1, %v18193_v0  ;;  %v9189_v0 = vld [vmem:[#allocation3 + $0x211] sm:$0xff] }
 0x447   : > { %v18526_v9 = vpack.c.bf16 %v9189_v0, %v9188_v32  ;;  %v9202_v32 = vld [vmem:[#allocation3 + $0x2e9] sm:$0xff]  ;;  %v9203_v0 = vld [vmem:[#allocation3 + $0x2f1] sm:$0xff] }
 0x44b   : > { %15166 = vmatmul.mubr.msk.bf16.gmra.mrb[8].mxu0 %vm381_vm1, %v18514_v28 }
 0x44c   : > { %15169 = vmatprep.mubr.msk.bf16.mxu0 %vm381_vm1, %v18516_v16 }
 0x44d   : > { %14592 = vmatmul.mubr.msk.bf16.gmra.mrb[76].mxu1 %vm381_vm1, %v18195_v43  ;;  %v9192_v43 = vld [vmem:[#allocation3 + $0x249] sm:$0xff] }
 0x44e   : > { %14595 = vmatprep.mubr.msk.bf16.mxu1 %vm381_vm1, %v18205_v56  ;;  %v9193_v56 = vld [vmem:[#allocation3 + $0x251] sm:$0xff] }
 0x44f   : > { %v18538_v44 = vpack.c.bf16 %v9193_v56, %v9192_v43  ;;  %v9220_v56 = vpack.c.bf16 %v9203_v0, %v9202_v32  ;;  %v4861_v32 = vsel %vm430_vm0, %v18475_v13, 0  ;;  %v4472_v0 = vld [vmem:[#allocation3 + $0x108] sm:$0xff] }
 0x453   : > { %15170 = vmatmul.mubr.msk.bf16.gmra.mrb[12].mxu0 %vm381_vm1, %v18526_v9 }
 0x454   : > { %15173 = vmatprep.mubr.msk.bf16.mxu0 %vm381_vm1, %v18528_v27 }
 0x455   : > { %14596 = vmatmul.mubr.msk.bf16.gmra.mrb[80].mxu1 %vm381_vm1, %v18207_v11  ;;  %v9196_v11 = vld [vmem:[#allocation3 + $0x289] sm:$0xff] }
 0x456   : > { %14599 = vmatprep.mubr.msk.bf16.mxu1 %vm381_vm1, %v18217_v46  ;;  %v9197_v46 = vld [vmem:[#allocation3 + $0x291] sm:$0xff] }
 0x457   : > { %v18550_v2 = vpack.c.bf16 %v9197_v46, %v9196_v11  ;;  %v9205_v11 = vld [vmem:[#allocation3 + $0x311] sm:$0xff] }
 0x458   : > { %v9221_v46 = vpack.c.bf16 %v9205_v11, %v9204_v15  ;;  %v9862_v15 = vsel %vm430_vm0, %v18490_v52, 0  ;;  %v9474_v52 = vld [vmem:[#allocation3 + $0x18a] sm:$0xff] }
 0x45b   : > { %15174 = vmatmul.mubr.msk.bf16.gmra.mrb[16].mxu0 %vm381_vm1, %v18538_v44 }
 0x45c   : > { %15177 = vmatprep.mubr.msk.bf16.mxu0 %vm381_vm1, %v18540_v55 }
 0x45d   : > { %14600 = vmatmul.mubr.msk.bf16.gmra.mrb[84].mxu1 %vm381_vm1, %v18219_v30  ;;  %v9200_v30 = vld [vmem:[#allocation3 + $0x2c9] sm:$0xff] }
 0x45e   : > { %14603 = vmatprep.mubr.msk.bf16.mxu1 %vm381_vm1, %v18229_v62  ;;  %v9201_v62 = vld [vmem:[#allocation3 + $0x2d1] sm:$0xff] }
 0x45f   : > { %v9219_v43 = vpack.c.bf16 %v9201_v62, %v9200_v30  ;;  %v4473_v30 = vld [vmem:[#allocation3 + $0x110] sm:$0xff]  ;;  %v18567_v62 = vpack.c.bf16 %v9469_v51, %v9468_v4 }
 0x463   : > { %15178 = vmatmul.mubr.msk.bf16.gmra.mrb[20].mxu0 %vm381_vm1, %v18550_v2 }
 0x464   : > { %15181 = vmatprep.mubr.msk.bf16.mxu0 %vm381_vm1, %v18552_v19 }
 0x465   : > { %14604 = vmatmul.mubr.msk.bf16.gmra.mrb[88].mxu1 %vm381_vm1, %v18231_v17  ;;  %v4470_v17 = vld [vmem:[#allocation3 + $0xe8] sm:$0xff] }
 0x466   : > { %14607 = vmatprep.mubr.msk.bf16.mxu1 %vm381_vm1, %v18241_v58  ;;  %v4471_v58 = vld [vmem:[#allocation3 + $0xf0] sm:$0xff] }
 0x467   : > { %v4501_v60 = vpack.c.bf16 %v4471_v58, %v4470_v17  ;;  %v9475_v17 = vld [vmem:[#allocation3 + $0x192] sm:$0xff]  ;;  %v9476_v58 = vld [vmem:[#allocation3 + $0x1aa] sm:$0xff] }
 0x468   : > { %v18604_v4 = vpack.c.bf16 %v9475_v17, %v9474_v52 }
 0x46b   : > { %15182 = vmatmul.mubr.msk.bf16.gmra.mrb[24].mxu0 %vm381_vm1, %v9219_v43  ;;  %v9471_v43 = vld [vmem:[#allocation3 + $0x152] sm:$0xff] }
 0x46c   : > { %15185 = vmatprep.mubr.msk.bf16.mxu0 %vm381_vm1, %v9220_v56  ;;  %v9472_v56 = vld [vmem:[#allocation3 + $0x16a] sm:$0xff]  ;;  %v18583_v13 = vpack.c.bf16 %v9471_v43, %v9470_v35 }
 0x46d   : > { %14608 = vmatmul.mubr.msk.bf16.gmra.mrb[92].mxu1 %vm381_vm1, %v18243_v54  ;;  %v4502_v54 = vpack.c.bf16 %v4473_v30, %v4472_v0  ;;  %v9480_v30 = vld [vmem:[#allocation3 + $0x1ea] sm:$0xff] }
 0x46e   : > { %14613 = vmatprep.mubr.msk.bf16.mxu1 %vm381_vm1, %v4500_v48  ;;  %v9473_v48 = vld [vmem:[#allocation3 + $0x172] sm:$0xff] }
 0x46f   : > { %v18587_v11 = vpack.c.bf16 %v9473_v48, %v9472_v56 }
 0x473   : > { %15186 = vmatmul.mubr.msk.bf16.gmra.mrb[28].mxu0 %vm381_vm1, %v9221_v46  ;;  %v9477_v46 = vld [vmem:[#allocation3 + $0x1b2] sm:$0xff] }
 0x474   : > { %15191 = vmatprep.mubr.msk.bf16.mxu0 %vm381_vm1, %v18567_v62  ;;  %v18606_v51 = vpack.c.bf16 %v9477_v46, %v9476_v58 }
 0x475   : > { %14614 = vmatmul.mubr.msk.bf16.vlgmr.msra.gmra.mrb[64].mxu1 %vm381_vm1, %v4501_v60  ;;  %v18592_v60 = vld [vmem:[%s20456_s3 + $0x2a] sm:$0x3] }
 0x476   : > { %14646 = vmatpush3.bf16.msra.mxu1 %v4861_v32  ;;  %14617 = vmatprep.mubr.msk.bf16.mxu1 %vm381_vm1, %v4502_v54  ;;  %v9481_v32 = vld [vmem:[#allocation3 + $0x1f2] sm:$0xff] }
 0x477   : > { %16465 = vmatprep.subr.msk.bf16.mxu1 %vm430_vm0, %v18577_v61 }
 0x47b   : > { %15192 = vmatmul.mubr.msk.bf16.vlgmr.msra.gmra.mrb[0].mxu0 %vm381_vm1, %v18583_v13 }
 0x47c   : > { %15195 = vmatprep.mubr.msk.bf16.mxu0 %vm381_vm1, %v18587_v11  ;;  %15224 = vmatpush3.bf16.msra.mxu0 %v9862_v15  ;;  %v18620_v15 = vpack.c.bf16 %v9481_v32, %v9480_v30  ;;  %v9483_v30 = vld [vmem:[#allocation3 + $0x212] sm:$0xff] }
 0x47d   : > { %14618 = vmatmul.mubr.msk.bf16.gmra.mrb[68].mxu1 %vm381_vm1, %v18347_v59  ;;  %16482 = vmatprep.subr.msk.bf16.mxu0 %vm430_vm0, %v18592_v60  ;;  %v9478_v59 = vld [vmem:[#allocation3 + $0x1ca] sm:$0xff] }
 0x47e   : > { %14621 = vmatprep.mubr.msk.bf16.mxu1 %vm381_vm1, %v18363_v22  ;;  %v9479_v22 = vld [vmem:[#allocation3 + $0x1d2] sm:$0xff] }
 0x47f   : > { %v18617_v43 = vpack.c.bf16 %v9479_v22, %v9478_v59  ;;  %v9482_v22 = vld [vmem:[#allocation3 + $0x20a] sm:$0xff] }
 0x483   : > { %15196 = vmatmul.mubr.msk.bf16.gmra.mrb[4].mxu0 %vm381_vm1, %v18604_v4 }
 0x484   : > { %15199 = vmatprep.mubr.msk.bf16.mxu0 %vm381_vm1, %v18606_v51 }
 0x485   : > { %14622 = vmatmul.mubr.msk.bf16.gmra.mrb[72].mxu1 %vm381_vm1, %v18367_v31 }
 0x486   : > { %14625 = vmatprep.mubr.msk.bf16.mxu1 %vm381_vm1, %v18384_v36 }
 0x488   : > { %v14513_v0 = vpop.f32.mrb[32].mxu1 }
 0x489   : > { %v3587_v54 = vmul.f32 %v14513_v0, %v18399_v10  ;;  %v3420_v35 = vpop.f32.mrb[33].mxu1 }
 0x48a   : > { %v3585_v56 = vmul.f32 %v18399_v10, %v3420_v35  ;;  %v14514_v48 = vpop.f32.mrb[34].mxu1  ;;  %v9485_v35 = vld [vmem:[#allocation3 + $0x232] sm:$0xff] }
 0x48b   : > { %v3625_v31 = vadd.f32 %v18404_v33, %v3587_v54  ;;  %v3588_v52 = vmul.f32 %v14514_v48, %v18399_v10  ;;  %v3423_v36 = vpop.f32.mrb[35].mxu1  ;;  %15200 = vmatmul.mubr.msk.bf16.gmra.mrb[8].mxu0 %vm381_vm1, %v18617_v43  ;;  %v9484_v54 = vld [vmem:[#allocation3 + $0x22a] sm:$0xff] }
 0x48c   : > { %v3586_v17 = vmul.f32 %v18399_v10, %v3423_v36  ;;  %15203 = vmatprep.mubr.msk.bf16.mxu0 %vm381_vm1, %v18620_v15  ;;  %v3623_v46 = vadd.f32 %v18404_v33, %v3585_v56 }
 0x48d   : > { %v3657_v58 = vmax.f32 %v3625_v31, 0.0  ;;  %v3626_v59 = vadd.f32 %v18404_v33, %v3588_v52  ;;  %14626 = vmatmul.mubr.msk.bf16.gmra.mrb[76].mxu1 %vm381_vm1, %v18386_v24  ;;  %v18639_v52 = vpack.c.bf16 %v9483_v30, %v9482_v22 }
 0x48e   : > { %14629 = vmatprep.mubr.msk.bf16.mxu1 %vm381_vm1, %v18410_v7  ;;  %v3624_v0 = vadd.f32 %v18404_v33, %v3586_v17  ;;  %v3655_v56 = vmax.f32 %v3623_v46, 0.0 }
 0x48f   : > { %v3658_v32 = vmax.f32 %v3626_v59, 0.0  ;;  %12409 = vrot.lane.b32.xlu0 %v3657_v58, %s16604_s28  ;;  %v18642_v59 = vpack.c.bf16 %v9485_v35, %v9484_v54  ;;  %v9486_v54 = vld [vmem:[#allocation3 + $0x24a] sm:$0xff]  ;;  %v9487_v35 = vld [vmem:[#allocation3 + $0x252] sm:$0xff] }
 0x490   : > { %v14517_v48 = vpop.f32.mrb[36].mxu1  ;;  %v3656_v17 = vmax.f32 %v3624_v0, 0.0 }
 0x491   : > { %v3591_v31 = vmul.f32 %v14517_v48, %v18399_v10  ;;  %12411 = vrot.lane.b32.xlu1 %v3658_v32, %s16604_s28  ;;  %v3436_v24 = vpop.f32.mrb[37].mxu1 }
 0x492   : > { %v3589_v7 = vmul.f32 %v18399_v10, %v3436_v24  ;;  %v14518_v36 = vpop.f32.mrb[38].mxu1 }
 0x493   : > { %v3629_v57 = vadd.f32 %v18404_v33, %v3591_v31  ;;  %v3592_v58 = vmul.f32 %v14518_v36, %v18399_v10  ;;  %15204 = vmatmul.mubr.msk.bf16.gmra.mrb[12].mxu0 %vm381_vm1, %v18639_v52  ;;  %12405 = vrot.lane.b32.xlu0 %v3655_v56, %s16604_s28  ;;  %v3439_v46 = vpop.f32.mrb[39].mxu1  ;;  %v9489_v31 = vld [vmem:[#allocation3 + $0x272] sm:$0xff] }
 0x494   : > { %v3590_v32 = vmul.f32 %v18399_v10, %v3439_v46  ;;  %15207 = vmatprep.mubr.msk.bf16.mxu0 %vm381_vm1, %v18642_v59  ;;  %v3627_v30 = vadd.f32 %v18404_v33, %v3589_v7 }
 0x495   : > { %v3661_v22 = vmax.f32 %v3629_v57, 0.0  ;;  %v3630_v0 = vadd.f32 %v18404_v33, %v3592_v58  ;;  %14630 = vmatmul.mubr.msk.bf16.gmra.mrb[80].mxu1 %vm381_vm1, %v18412_v41  ;;  %12407 = vrot.lane.b32.xlu1 %v3656_v17, %s16604_s28  ;;  %v9488_v57 = vld [vmem:[#allocation3 + $0x26a] sm:$0xff]  ;;  %v18663_v17 = vpack.c.bf16 %v9487_v35, %v9486_v54 }
 0x496   : > { %14633 = vmatprep.mubr.msk.bf16.mxu1 %vm381_vm1, %v18424_v40  ;;  %v3628_v56 = vadd.f32 %v18404_v33, %v3590_v32  ;;  %v3659_v7 = vmax.f32 %v3627_v30, 0.0  ;;  %v18666_v46 = vpack.c.bf16 %v9489_v31, %v9488_v57  ;;  %v9490_v57 = vld [vmem:[#allocation3 + $0x28a] sm:$0xff]  ;;  %v9491_v31 = vld [vmem:[#allocation3 + $0x292] sm:$0xff] }
 0x497   : > { %v3662_v48 = vmax.f32 %v3630_v0, 0.0  ;;  %12417 = vrot.lane.b32.xlu0 %v3661_v22, %s16604_s28 }
 0x498   : > { %v14521_v24 = vpop.f32.mrb[40].mxu1  ;;  %v3660_v0 = vmax.f32 %v3628_v56, 0.0 }
 0x499   : > { %v3595_v36 = vmul.f32 %v14521_v24, %v18399_v10  ;;  %12419 = vrot.lane.b32.xlu1 %v3662_v48, %s16604_s28  ;;  %v3452_v41 = vpop.f32.mrb[41].mxu1 }
 0x49a   : > { %v3593_v40 = vmul.f32 %v18399_v10, %v3452_v41  ;;  %v14522_v58 = vpop.f32.mrb[42].mxu1  ;;  %v9493_v41 = vld [vmem:[#allocation3 + $0x2b2] sm:$0xff] }
 0x49b   : > { %v3633_v32 = vadd.f32 %v18404_v33, %v3595_v36  ;;  %v3596_v22 = vmul.f32 %v14522_v58, %v18399_v10  ;;  %15208 = vmatmul.mubr.msk.bf16.gmra.mrb[16].mxu0 %vm381_vm1, %v18663_v17  ;;  %12413 = vrot.lane.b32.xlu0 %v3659_v7, %s16604_s28  ;;  %v3455_v30 = vpop.f32.mrb[43].mxu1  ;;  %v9492_v36 = vld [vmem:[#allocation3 + $0x2aa] sm:$0xff] }
 0x49c   : > { %v3594_v48 = vmul.f32 %v18399_v10, %v3455_v30  ;;  %15211 = vmatprep.mubr.msk.bf16.mxu0 %vm381_vm1, %v18666_v46  ;;  %v3631_v35 = vadd.f32 %v18404_v33, %v3593_v40  ;;  %v18690_v30 = vpack.c.bf16 %v9493_v41, %v9492_v36  ;;  %v9494_v36 = vld [vmem:[#allocation3 + $0x2ca] sm:$0xff]  ;;  %v9495_v41 = vld [vmem:[#allocation3 + $0x2d2] sm:$0xff] }
 0x49d   : > { %v3665_v54 = vmax.f32 %v3633_v32, 0.0  ;;  %v3634_v56 = vadd.f32 %v18404_v33, %v3596_v22  ;;  %14634 = vmatmul.mubr.msk.bf16.gmra.mrb[84].mxu1 %vm381_vm1, %v18426_v47  ;;  %12415 = vrot.lane.b32.xlu1 %v3660_v0, %s16604_s28  ;;  %v18687_v0 = vpack.c.bf16 %v9491_v31, %v9490_v57 }
 0x49e   : > { %14637 = vmatprep.mubr.msk.bf16.mxu1 %vm381_vm1, %v18436_v6  ;;  %v3632_v7 = vadd.f32 %v18404_v33, %v3594_v48  ;;  %v3663_v58 = vmax.f32 %v3631_v35, 0.0 }
 0x49f   : > { %v3666_v24 = vmax.f32 %v3634_v56, 0.0  ;;  %12425 = vrot.lane.b32.xlu0 %v3665_v54, %s16604_s28 }
 0x4a0   : > { %v14525_v40 = vpop.f32.mrb[44].mxu1  ;;  %v3664_v56 = vmax.f32 %v3632_v7, 0.0 }
 0x4a1   : > { %v3599_v32 = vmul.f32 %v14525_v40, %v18399_v10  ;;  %12427 = vrot.lane.b32.xlu1 %v3666_v24, %s16604_s28  ;;  %v3468_v47 = vpop.f32.mrb[45].mxu1  ;;  %v9496_v40 = vld [vmem:[#allocation3 + $0x2ea] sm:$0xff] }
 0x4a2   : > { %v3597_v6 = vmul.f32 %v18399_v10, %v3468_v47  ;;  %v14526_v22 = vpop.f32.mrb[46].mxu1  ;;  %v9497_v47 = vld [vmem:[#allocation3 + $0x2f2] sm:$0xff] }
 0x4a3   : > { %v3637_v48 = vadd.f32 %v18404_v33, %v3599_v32  ;;  %v3600_v54 = vmul.f32 %v14526_v22, %v18399_v10  ;;  %15212 = vmatmul.mubr.msk.bf16.gmra.mrb[20].mxu0 %vm381_vm1, %v18687_v0  ;;  %12421 = vrot.lane.b32.xlu0 %v3663_v58, %s16604_s28  ;;  %v3471_v35 = vpop.f32.mrb[47].mxu1  ;;  %v4763_v22 = vld [vmem:[#allocation3 + $0xd1] sm:$0xff]  ;;  %v9514_v63 = vpack.c.bf16 %v9497_v47, %v9496_v40 }
 0x4a4   : > { %v3598_v24 = vmul.f32 %v18399_v10, %v3471_v35  ;;  %15215 = vmatprep.mubr.msk.bf16.mxu0 %vm381_vm1, %v18690_v30  ;;  %v3635_v31 = vadd.f32 %v18404_v33, %v3597_v6  ;;  %v4762_v6 = vld [vmem:[#allocation3 + $0xc9] sm:$0xff]  ;;  %v9513_v35 = vpack.c.bf16 %v9495_v41, %v9494_v36  ;;  %v9499_v41 = vld [vmem:[#allocation3 + $0x312] sm:$0xff] }
 0x4a5   : > { %v3669_v57 = vmax.f32 %v3637_v48, 0.0  ;;  %v3638_v7 = vadd.f32 %v18404_v33, %v3600_v54  ;;  %14638 = vmatmul.mubr.msk.bf16.gmra.mrb[88].mxu1 %vm381_vm1, %v18438_v1  ;;  %12423 = vrot.lane.b32.xlu1 %v3664_v56, %s16604_s28  ;;  %v9498_v36 = vld [vmem:[#allocation3 + $0x30a] sm:$0xff] }
 0x4a6   : > { %14641 = vmatprep.mubr.msk.bf16.mxu1 %vm381_vm1, %v18448_v21  ;;  %v3636_v32 = vadd.f32 %v18404_v33, %v3598_v24  ;;  %v3667_v54 = vmax.f32 %v3635_v31, 0.0  ;;  %v4765_v47 = vld [vmem:[#allocation3 + $0xf1] sm:$0xff] }
 0x4a7   : > { %v3670_v58 = vmax.f32 %v3638_v7, 0.0  ;;  %12433 = vrot.lane.b32.xlu0 %v3669_v57, %s16604_s28  ;;  %v4794_v7 = vpack.c.bf16 %v4763_v22, %v4762_v6 }
 0x4a8   : > { %v14529_v48 = vpop.f32.mrb[48].mxu1  ;;  %v3668_v42 = vmax.f32 %v3636_v32, 0.0 }
 0x4a9   : > { %v3603_v1 = vmul.f32 %v14529_v48, %v18399_v10  ;;  %12435 = vrot.lane.b32.xlu1 %v3670_v58, %s16604_s28  ;;  %v3484_v56 = vpop.f32.mrb[49].mxu1 }
 0x4aa   : > { %v3601_v21 = vmul.f32 %v18399_v10, %v3484_v56  ;;  %v14530_v5 = vpop.f32.mrb[50].mxu1 }
 0x4ab   : > { %v3641_v24 = vadd.f32 %v18404_v33, %v3603_v1  ;;  %v3604_v57 = vmul.f32 %v14530_v5, %v18399_v10  ;;  %15216 = vmatmul.mubr.msk.bf16.gmra.mrb[24].mxu0 %vm381_vm1, %v9513_v35  ;;  %12429 = vrot.lane.b32.xlu0 %v3667_v54, %s16604_s28  ;;  %v3487_v31 = vpop.f32.mrb[51].mxu1  ;;  %v4764_v5 = vld [vmem:[#allocation3 + $0xe9] sm:$0xff] }
 0x4ac   : > { %v3602_v48 = vmul.f32 %v18399_v10, %v3487_v31  ;;  %15219 = vmatprep.mubr.msk.bf16.mxu0 %vm381_vm1, %v9514_v63  ;;  %v3639_v40 = vadd.f32 %v18404_v33, %v3601_v21  ;;  %v9515_v63 = vpack.c.bf16 %v9499_v41, %v9498_v36  ;;  %v9764_v54 = vld [vmem:[#allocation3 + $0x14e] sm:$0xff]  ;;  %v9763_v21 = vld [vmem:[#allocation3 + $0x146] sm:$0xff] }
 0x4ad   : > { %v3673_v58 = vmax.f32 %v3641_v24, 0.0  ;;  %v3642_v32 = vadd.f32 %v18404_v33, %v3604_v57  ;;  %14642 = vmatmul.mubr.msk.bf16.gmra.mrb[92].mxu1 %vm381_vm1, %v18450_v20  ;;  %12431 = vrot.lane.b32.xlu1 %v3668_v42, %s16604_s28  ;;  %v4795_v42 = vpack.c.bf16 %v4765_v47, %v4764_v5  ;;  %v4766_v24 = vld [vmem:[#allocation3 + $0x109] sm:$0xff] }
 0x4ae   : > { %14647 = vmatprep.mubr.msk.bf16.mxu1 %vm381_vm1, %v4794_v7  ;;  %v3640_v22 = vadd.f32 %v18404_v33, %v3602_v48  ;;  %v3671_v56 = vmax.f32 %v3639_v40, 0.0  ;;  %v4767_v7 = vld [vmem:[#allocation3 + $0x111] sm:$0xff]  ;;  %v5155_v40 = vsel %vm430_vm0, %v18577_v61, 0 }
 0x4af   : > { %v3674_v6 = vmax.f32 %v3642_v32, 0.0  ;;  %12441 = vrot.lane.b32.xlu0 %v3673_v58, %s16604_s28  ;;  %v18729_v32 = vpack.c.bf16 %v9764_v54, %v9763_v21  ;;  %v4796_v47 = vpack.c.bf16 %v4767_v7, %v4766_v24  ;;  %v9766_v61 = vld [vmem:[#allocation3 + $0x16e] sm:$0xff]  ;;  %v9765_v21 = vld [vmem:[#allocation3 + $0x166] sm:$0xff] }
 0x4b0   : > { %v14533_v1 = vpop.f32.mrb[52].mxu1  ;;  %v3672_v48 = vmax.f32 %v3640_v22, 0.0 }
 0x4b1   : > { %v3607_v35 = vmul.f32 %v14533_v1, %v18399_v10  ;;  %12443 = vrot.lane.b32.xlu1 %v3674_v6, %s16604_s28  ;;  %v3500_v20 = vpop.f32.mrb[53].mxu1  ;;  %v18743_v6 = vld [vmem:[%s20456_s3 + $0xa] sm:$0x3] }
 0x4b2   : > { %v3605_v57 = vmul.f32 %v18399_v10, %v3500_v20  ;;  %v14534_v31 = vpop.f32.mrb[54].mxu1 }
 0x4b3   : > { %v3645_v36 = vadd.f32 %v18404_v33, %v3607_v35  ;;  %v3608_v41 = vmul.f32 %v14534_v31, %v18399_v10  ;;  %15220 = vmatmul.mubr.msk.bf16.gmra.mrb[28].mxu0 %vm381_vm1, %v9515_v63  ;;  %12437 = vrot.lane.b32.xlu0 %v3671_v56, %s16604_s28  ;;  %v3503_v58 = vpop.f32.mrb[55].mxu1  ;;  %v9768_v35 = vld [vmem:[#allocation3 + $0x18e] sm:$0xff]  ;;  %v9767_v31 = vld [vmem:[#allocation3 + $0x186] sm:$0xff] }
 0x4b4   : > { %v3606_v5 = vmul.f32 %v18399_v10, %v3503_v58  ;;  %15225 = vmatprep.mubr.msk.bf16.mxu0 %vm381_vm1, %v18729_v32  ;;  %v3643_v63 = vadd.f32 %v18404_v33, %v3605_v57  ;;  %v18756_v57 = vpack.c.bf16 %v9766_v61, %v9765_v21  ;;  %v18761_v58 = vpack.c.bf16 %v9768_v35, %v9767_v31  ;;  %v9772_v21 = vld [vmem:[#allocation3 + $0x1ce] sm:$0xff] }
 0x4b5   : > { %v3677_v22 = vmax.f32 %v3645_v36, 0.0  ;;  %v3646_v54 = vadd.f32 %v18404_v33, %v3608_v41  ;;  %14648 = vmatmul.mubr.msk.bf16.vlgmr.msra.gmra.mrb[64].mxu1 %vm381_vm1, %v4795_v42  ;;  %12439 = vrot.lane.b32.xlu1 %v3672_v48, %s16604_s28  ;;  %v10156_v48 = vsel %vm430_vm0, %v18592_v60, 0  ;;  %v18771_v60 = vld [vmem:[%s20456_s3 + $0x2c] sm:$0x3] }
 0x4b6   : > { %14680 = vmatpush3.bf16.msra.mxu1 %v5155_v40  ;;  %14651 = vmatprep.mubr.msk.bf16.mxu1 %vm381_vm1, %v4796_v47  ;;  %v3644_v56 = vadd.f32 %v18404_v33, %v3606_v5  ;;  %v3675_v24 = vmax.f32 %v3643_v63, 0.0 }
 0x4b7   : > { %v3678_v1 = vmax.f32 %v3646_v54, 0.0  ;;  %12449 = vrot.lane.b32.xlu0 %v3677_v22, %s16604_s28  ;;  %16466 = vmatprep.subr.msk.bf16.mxu1 %vm430_vm0, %v18743_v6 }
 0x4b8   : > { %v14537_v20 = vpop.f32.mrb[56].mxu1  ;;  %v3676_v40 = vmax.f32 %v3644_v56, 0.0  ;;  %v9770_v56 = vld [vmem:[#allocation3 + $0x1ae] sm:$0xff] }
 0x4b9   : > { %v3611_v42 = vmul.f32 %v14537_v20, %v18399_v10  ;;  %12451 = vrot.lane.b32.xlu1 %v3678_v1, %s16604_s28  ;;  %v3516_v7 = vpop.f32.mrb[57].mxu1 }
 0x4ba   : > { %v3609_v36 = vmul.f32 %v18399_v10, %v3516_v7  ;;  %v14538_v41 = vpop.f32.mrb[58].mxu1 }
 0x4bb   : > { %v3649_v5 = vadd.f32 %v18404_v33, %v3611_v42  ;;  %v3612_v47 = vmul.f32 %v14538_v41, %v18399_v10  ;;  %15226 = vmatmul.mubr.msk.bf16.vlgmr.msra.gmra.mrb[0].mxu0 %vm381_vm1, %v18756_v57  ;;  %12445 = vrot.lane.b32.xlu0 %v3675_v24, %s16604_s28  ;;  %v3519_v22 = vpop.f32.mrb[59].mxu1  ;;  %v9769_v42 = vld [vmem:[#allocation3 + $0x1a6] sm:$0xff] }
 0x4bc   : > { %v3610_v63 = vmul.f32 %v18399_v10, %v3519_v22  ;;  %15229 = vmatprep.mubr.msk.bf16.mxu0 %vm381_vm1, %v18761_v58  ;;  %15258 = vmatpush3.bf16.msra.mxu0 %v10156_v48  ;;  %v3647_v61 = vadd.f32 %v18404_v33, %v3609_v36  ;;  %v18789_v48 = vpack.c.bf16 %v9770_v56, %v9769_v42 }
 0x4bd   : > { %v3681_v54 = vmax.f32 %v3649_v5, 0.0  ;;  %v3650_v1 = vadd.f32 %v18404_v33, %v3612_v47  ;;  %14652 = vmatmul.mubr.msk.bf16.gmra.mrb[68].mxu1 %vm381_vm1, %v18465_v18  ;;  %12447 = vrot.lane.b32.xlu1 %v3676_v40, %s16604_s28 }
 0x4be   : > { %14655 = vmatprep.mubr.msk.bf16.mxu1 %vm381_vm1, %v18481_v53  ;;  %16483 = vmatprep.subr.msk.bf16.mxu0 %vm430_vm0, %v18771_v60  ;;  %v3648_v20 = vadd.f32 %v18404_v33, %v3610_v63  ;;  %v3679_v7 = vmax.f32 %v3647_v61, 0.0  ;;  %v9771_v53 = vld [vmem:[#allocation3 + $0x1c6] sm:$0xff] }
 0x4bf   : > { %v3682_v35 = vmax.f32 %v3650_v1, 0.0  ;;  %12457 = vrot.lane.b32.xlu0 %v3681_v54, %s16604_s28  ;;  %v18792_v40 = vpack.c.bf16 %v9772_v21, %v9771_v53  ;;  %v9776_v21 = vld [vmem:[#allocation3 + $0x20e] sm:$0xff]  ;;  %v9777_v53 = vld [vmem:[#allocation3 + $0x226] sm:$0xff] }
 0x4c0   : > { %v14541_v24 = vpop.f32.mrb[60].mxu1  ;;  %v3680_v5 = vmax.f32 %v3648_v20, 0.0 }
 0x4c1   : > { %v3615_v18 = vmul.f32 %v14541_v24, %v18399_v10  ;;  %12459 = vrot.lane.b32.xlu1 %v3682_v35, %s16604_s28  ;;  %v3532_v31 = vpop.f32.mrb[61].mxu1  ;;  %v9774_v35 = vld [vmem:[#allocation3 + $0x1ee] sm:$0xff]  ;;  %v9773_v24 = vld [vmem:[#allocation3 + $0x1e6] sm:$0xff] }
 0x4c2   : > { %v3613_v36 = vmul.f32 %v18399_v10, %v3532_v31  ;;  %v14542_v41 = vpop.f32.mrb[62].mxu1 }
 0x4c3   : > { %v3653_v47 = vadd.f32 %v18404_v33, %v3615_v18  ;;  %v3616_v22 = vmul.f32 %v14542_v41, %v18399_v10  ;;  %15230 = vmatmul.mubr.msk.bf16.gmra.mrb[4].mxu0 %vm381_vm1, %v18789_v48  ;;  %12453 = vrot.lane.b32.xlu0 %v3679_v7, %s16604_s28  ;;  %v3535_v63 = vpop.f32.mrb[63].mxu1  ;;  %v18812_v7 = vpack.c.bf16 %v9774_v35, %v9773_v24  ;;  %v9775_v18 = vld [vmem:[#allocation3 + $0x206] sm:$0xff] }
 0x4c4   : > { %v3614_v54 = vmul.f32 %v18399_v10, %v3535_v63  ;;  %15233 = vmatprep.mubr.msk.bf16.mxu0 %vm381_vm1, %v18792_v40  ;;  %v3651_v1 = vadd.f32 %v18404_v33, %v3613_v36  ;;  %v9779_v41 = vld [vmem:[#allocation3 + $0x246] sm:$0xff] }
 0x4c5   : > { %v3685_v61 = vmax.f32 %v3653_v47, 0.0  ;;  %v3654_v56 = vadd.f32 %v18404_v33, %v3616_v22  ;;  %14656 = vmatmul.mubr.msk.bf16.gmra.mrb[72].mxu1 %vm381_vm1, %v18485_v38  ;;  %12455 = vrot.lane.b32.xlu1 %v3680_v5, %s16604_s28  ;;  %v18814_v38 = vpack.c.bf16 %v9776_v21, %v9775_v18  ;;  %v9781_v47 = vld [vmem:[#allocation3 + $0x266] sm:$0xff]  ;;  %v5057_v21 = vld [vmem:[#allocation3 + $0xd2] sm:$0xff] }
 0x4c6   : > { %14659 = vmatprep.mubr.msk.bf16.mxu1 %vm381_vm1, %v18502_v49  ;;  %v3652_v10 = vadd.f32 %v18404_v33, %v3614_v54  ;;  %v3683_v42 = vmax.f32 %v3651_v1, 0.0  ;;  %v9778_v33 = vld [vmem:[#allocation3 + $0x22e] sm:$0xff]  ;;  %v9783_v63 = vld [vmem:[#allocation3 + $0x286] sm:$0xff] }
 0x4c7   : > { %v3686_v20 = vmax.f32 %v3654_v56, 0.0  ;;  %12465 = vrot.lane.b32.xlu0 %v3685_v61, %s16604_s28  ;;  %v9780_v49 = vld [vmem:[#allocation3 + $0x24e] sm:$0xff]  ;;  %v18826_v36 = vpack.c.bf16 %v9778_v33, %v9777_v53  ;;  %v9785_v61 = vld [vmem:[#allocation3 + $0x2a6] sm:$0xff] }
 0x4c8   : > { %v3684_v31 = vmax.f32 %v3652_v10, 0.0  ;;  %v18828_v5 = vpack.c.bf16 %v9780_v49, %v9779_v41  ;;  %v9787_v56 = vld [vmem:[#allocation3 + $0x2c6] sm:$0xff]  ;;  %v9794_v49 = vld [vmem:[#allocation3 + $0x32e] sm:$0xff] }
 0x4c9   : > { %12467 = vrot.lane.b32.xlu1 %v3686_v20, %s16604_s28  ;;  %v9792_v20 = vld [vmem:[#allocation3 + $0x30e] sm:$0xff]  ;;  %v9789_v24 = vld [vmem:[#allocation3 + $0x2e6] sm:$0xff] }
 0x4ca   : > { %v5056_v10 = vld [vmem:[#allocation3 + $0xca] sm:$0xff] }
 0x4cb   : > { %15234 = vmatmul.mubr.msk.bf16.gmra.mrb[8].mxu0 %vm381_vm1, %v18812_v7  ;;  %12461 = vrot.lane.b32.xlu0 %v3683_v42, %s16604_s28  ;;  %v9793_v33 = vld [vmem:[#allocation3 + $0x326] sm:$0xff]  ;;  %v10058_v41 = vld [vmem:[#allocation3 + $0x14f] sm:$0xff] }
 0x4cc   : > { %15237 = vmatprep.mubr.msk.bf16.mxu0 %vm381_vm1, %v18814_v38  ;;  %v9810_v53 = vpack.c.bf16 %v9794_v49, %v9793_v33  ;;  %v10063_v33 = vld [vmem:[#allocation3 + $0x1a7] sm:$0xff] }
 0x4cd   : > { %14660 = vmatmul.mubr.msk.bf16.gmra.mrb[76].mxu1 %vm381_vm1, %v18504_v25  ;;  %12463 = vrot.lane.b32.xlu1 %v3684_v31, %s16604_s28  ;;  %v9782_v25 = vld [vmem:[#allocation3 + $0x26e] sm:$0xff]  ;;  %v5088_v31 = vpack.c.bf16 %v5057_v21, %v5056_v10  ;;  %v10450_v21 = vsel %vm430_vm0, %v18771_v60, 0 }
 0x4ce   : > { %14663 = vmatprep.mubr.msk.bf16.mxu1 %vm381_vm1, %v18514_v28  ;;  %v9784_v28 = vld [vmem:[#allocation3 + $0x28e] sm:$0xff]  ;;  %v18838_v22 = vpack.c.bf16 %v9782_v25, %v9781_v47 }
 0x4cf   : > { %v18840_v54 = vpack.c.bf16 %v9784_v28, %v9783_v63  ;;  %v10057_v25 = vld [vmem:[#allocation3 + $0x147] sm:$0xff]  ;;  %v5061_v63 = vld [vmem:[#allocation3 + $0x112] sm:$0xff] }
 0x4d0   : > { %v5060_v47 = vld [vmem:[#allocation3 + $0x10a] sm:$0xff] }
 0x4d1   : > { %v10061_v10 = vld [vmem:[#allocation3 + $0x187] sm:$0xff]  ;;  %v10064_v60 = vld [vmem:[#allocation3 + $0x1af] sm:$0xff] }
 0x4d2   : > { %v18908_v49 = vpack.c.bf16 %v10064_v60, %v10063_v33  ;;  %v10078_v60 = vld [vmem:[#allocation3 + $0x28f] sm:$0xff] }
 0x4d3   : > { %15238 = vmatmul.mubr.msk.bf16.gmra.mrb[12].mxu0 %vm381_vm1, %v18826_v36 }
 0x4d4   : > { %15241 = vmatprep.mubr.msk.bf16.mxu0 %vm381_vm1, %v18828_v5 }
 0x4d5   : > { %14664 = vmatmul.mubr.msk.bf16.gmra.mrb[80].mxu1 %vm381_vm1, %v18516_v16  ;;  %v9786_v16 = vld [vmem:[#allocation3 + $0x2ae] sm:$0xff] }
 0x4d6   : > { %14667 = vmatprep.mubr.msk.bf16.mxu1 %vm381_vm1, %v18526_v9  ;;  %v9788_v9 = vld [vmem:[#allocation3 + $0x2ce] sm:$0xff]  ;;  %v18850_v1 = vpack.c.bf16 %v9786_v16, %v9785_v61  ;;  %v18867_v16 = vpack.c.bf16 %v10058_v41, %v10057_v25  ;;  %v18877_v61 = vld [vmem:[%s20456_s3 + $0xc] sm:$0x3] }
 0x4d7   : > { %v18852_v35 = vpack.c.bf16 %v9788_v9, %v9787_v56  ;;  %v5450_v9 = vsel %vm430_vm0, %v18743_v6, 0  ;;  %v10060_v56 = vld [vmem:[#allocation3 + $0x16f] sm:$0xff]  ;;  %v10059_v6 = vld [vmem:[#allocation3 + $0x167] sm:$0xff] }
 0x4d8   : > { %v10070_v41 = vld [vmem:[#allocation3 + $0x20f] sm:$0xff]  ;;  %v10067_v25 = vld [vmem:[#allocation3 + $0x1e7] sm:$0xff] }
 0x4db   : > { %15242 = vmatmul.mubr.msk.bf16.gmra.mrb[16].mxu0 %vm381_vm1, %v18838_v22 }
 0x4dc   : > { %15245 = vmatprep.mubr.msk.bf16.mxu0 %vm381_vm1, %v18840_v54 }
 0x4dd   : > { %14668 = vmatmul.mubr.msk.bf16.gmra.mrb[84].mxu1 %vm381_vm1, %v18528_v27  ;;  %v9791_v27 = vld [vmem:[#allocation3 + $0x306] sm:$0xff] }
 0x4de   : > { %14671 = vmatprep.mubr.msk.bf16.mxu1 %vm381_vm1, %v18538_v44  ;;  %v9790_v44 = vld [vmem:[#allocation3 + $0x2ee] sm:$0xff]  ;;  %v9809_v42 = vpack.c.bf16 %v9792_v20, %v9791_v27  ;;  %v18881_v27 = vpop.permute.xlu1 %11268 }
 0x4df   : > { %v9808_v18 = vpack.c.bf16 %v9790_v44, %v9789_v24  ;;  %v10062_v20 = vld [vmem:[#allocation3 + $0x18f] sm:$0xff]  ;;  %v18885_v44 = vpack.c.bf16 %v10060_v56, %v10059_v6  ;;  %v10071_v56 = vld [vmem:[#allocation3 + $0x227] sm:$0xff] }
 0x4e0   : > { %v18889_v24 = vpack.c.bf16 %v10062_v20, %v10061_v10  ;;  %v10073_v6 = vld [vmem:[#allocation3 + $0x247] sm:$0xff] }
 0x4e3   : > { %15246 = vmatmul.mubr.msk.bf16.gmra.mrb[20].mxu0 %vm381_vm1, %v18850_v1 }
 0x4e4   : > { %15249 = vmatprep.mubr.msk.bf16.mxu0 %vm381_vm1, %v18852_v35 }
 0x4e5   : > { %14672 = vmatmul.mubr.msk.bf16.gmra.mrb[88].mxu1 %vm381_vm1, %v18540_v55  ;;  %v5058_v55 = vld [vmem:[#allocation3 + $0xea] sm:$0xff] }
 0x4e6   : > { %14675 = vmatprep.mubr.msk.bf16.mxu1 %vm381_vm1, %v18550_v2  ;;  %v5059_v2 = vld [vmem:[#allocation3 + $0xf2] sm:$0xff] }
 0x4e7   : > { %v5089_v28 = vpack.c.bf16 %v5059_v2, %v5058_v55  ;;  %v10065_v55 = vld [vmem:[#allocation3 + $0x1c7] sm:$0xff] }
 0x4eb   : > { %15250 = vmatmul.mubr.msk.bf16.gmra.mrb[24].mxu0 %vm381_vm1, %v9808_v18  ;;  %v18902_v18 = vpop.permute.xlu1 %12306 }
 0x4ec   : > { %15253 = vmatprep.mubr.msk.bf16.mxu0 %vm381_vm1, %v9809_v42  ;;  %v18894_v42 = vld [vmem:[%s20456_s3 + $0x2e] sm:$0x3] }
 0x4ed   : > { %14676 = vmatmul.mubr.msk.bf16.gmra.mrb[92].mxu1 %vm381_vm1, %v18552_v19  ;;  %v5090_v19 = vpack.c.bf16 %v5061_v63, %v5060_v47  ;;  %v10069_v47 = vld [vmem:[#allocation3 + $0x207] sm:$0xff] }
 0x4ee   : > { %14681 = vmatprep.mubr.msk.bf16.mxu1 %vm381_vm1, %v5088_v31  ;;  %v10066_v31 = vld [vmem:[#allocation3 + $0x1cf] sm:$0xff]  ;;  %v18926_v63 = vpack.c.bf16 %v10070_v41, %v10069_v47  ;;  %v10079_v47 = vld [vmem:[#allocation3 + $0x2a7] sm:$0xff] }
 0x4ef   : > { %v18910_v2 = vpack.c.bf16 %v10066_v31, %v10065_v55  ;;  %v10075_v31 = vld [vmem:[#allocation3 + $0x267] sm:$0xff] }
 0x4f0   : > { %v10077_v55 = vld [vmem:[#allocation3 + $0x287] sm:$0xff] }
 0x4f3   : > { %15254 = vmatmul.mubr.msk.bf16.gmra.mrb[28].mxu0 %vm381_vm1, %v9810_v53 }
 0x4f4   : > { %15259 = vmatprep.mubr.msk.bf16.mxu0 %vm381_vm1, %v18867_v16 }
 0x4f5   : > { %14682 = vmatmul.mubr.msk.bf16.vlgmr.msra.gmra.mrb[64].mxu1 %vm381_vm1, %v5089_v28 }
 0x4f6   : > { %14714 = vmatpush3.bf16.msra.mxu1 %v5450_v9  ;;  %14685 = vmatprep.mubr.msk.bf16.mxu1 %vm381_vm1, %v5090_v19  ;;  %v10074_v19 = vld [vmem:[#allocation3 + $0x24f] sm:$0xff] }
 0x4f7   : > { %16467 = vmatprep.subr.msk.bf16.mxu1 %vm430_vm0, %v18877_v61  ;;  %v18942_v10 = vpack.c.bf16 %v10074_v19, %v10073_v6  ;;  %v10081_v19 = vld [vmem:[#allocation3 + $0x2c7] sm:$0xff] }
 0x4fb   : > { %15260 = vmatmul.mubr.msk.bf16.vlgmr.msra.gmra.mrb[0].mxu0 %vm381_vm1, %v18885_v44 }
 0x4fc   : > { %15263 = vmatprep.mubr.msk.bf16.mxu0 %vm381_vm1, %v18889_v24  ;;  %15292 = vmatpush3.bf16.msra.mxu0 %v10450_v21 }
 0x4fd   : > { %14686 = vmatmul.mubr.msk.bf16.gmra.mrb[68].mxu1 %vm381_vm1, %v18567_v62  ;;  %16484 = vmatprep.subr.msk.bf16.mxu0 %vm430_vm0, %v18894_v42 }
 0x4fe   : > { %14689 = vmatprep.mubr.msk.bf16.mxu1 %vm381_vm1, %v18583_v13  ;;  %v10068_v13 = vld [vmem:[#allocation3 + $0x1ef] sm:$0xff] }
 0x4ff   : > { %v18924_v28 = vpack.c.bf16 %v10068_v13, %v10067_v25  ;;  %v18958_v13 = vpack.c.bf16 %v10078_v60, %v10077_v55  ;;  %v10082_v25 = vld [vmem:[#allocation3 + $0x2cf] sm:$0xff] }
 0x500   : > { %v5352_v55 = vld [vmem:[#allocation3 + $0xee] sm:$0xff] }
 0x503   : > { %15264 = vmatmul.mubr.msk.bf16.gmra.mrb[4].mxu0 %vm381_vm1, %v18908_v49  ;;  %v18914_v62 = vpop.permute.xlu1 %12411 }
 0x504   : > { %20527 = vst [vmem:[#allocation39_spill] sm:$0xff] %v18914_v62  ;;  %15267 = vmatprep.mubr.msk.bf16.mxu0 %vm381_vm1, %v18910_v2 }
 0x505   : > { %14690 = vmatmul.mubr.msk.bf16.gmra.mrb[72].mxu1 %vm381_vm1, %v18587_v11  ;;  %v10072_v11 = vld [vmem:[#allocation3 + $0x22f] sm:$0xff] }
 0x506   : > { %14693 = vmatprep.mubr.msk.bf16.mxu1 %vm381_vm1, %v18604_v4  ;;  %v18940_v20 = vpack.c.bf16 %v10072_v11, %v10071_v56  ;;  %v18974_v56 = vpack.c.bf16 %v10082_v25, %v10081_v19 }
 0x507   : > { %v18922_v53 = vpop.permute.xlu1 %12407 }
 0x508   : > { %20528 = vst [vmem:[#allocation40_spill] sm:$0xff] %v18922_v53 }
 0x50b   : > { %15268 = vmatmul.mubr.msk.bf16.gmra.mrb[8].mxu0 %vm381_vm1, %v18924_v28  ;;  %v18930_v9 = vpop.permute.xlu1 %12419 }
 0x50c   : > { %20529 = vst [vmem:[#allocation41_spill] sm:$0xff] %v18930_v9  ;;  %15271 = vmatprep.mubr.msk.bf16.mxu0 %vm381_vm1, %v18926_v63 }
 0x50d   : > { %14694 = vmatmul.mubr.msk.bf16.gmra.mrb[76].mxu1 %vm381_vm1, %v18606_v51  ;;  %v10076_v51 = vld [vmem:[#allocation3 + $0x26f] sm:$0xff] }
 0x50e   : > { %14697 = vmatprep.mubr.msk.bf16.mxu1 %vm381_vm1, %v18617_v43  ;;  %v18956_v33 = vpack.c.bf16 %v10076_v51, %v10075_v31  ;;  %v10084_v51 = vld [vmem:[#allocation3 + $0x2ef] sm:$0xff]  ;;  %v5351_v31 = vld [vmem:[#allocation3 + $0xe6] sm:$0xff] }
 0x50f   : > { %v18938_v4 = vpop.permute.xlu1 %12415  ;;  %v5383_v19 = vpack.c.bf16 %v5352_v55, %v5351_v31  ;;  %v5353_v55 = vld [vmem:[#allocation3 + $0x106] sm:$0xff] }
 0x510   : > { %20530 = vst [vmem:[#allocation42_spill] sm:$0xff] %v18938_v4  ;;  %v19191_v4 = vld [vmem:[#allocation4 + $0x1b0] sm:$0xff] }
 0x513   : > { %15272 = vmatmul.mubr.msk.bf16.gmra.mrb[12].mxu0 %vm381_vm1, %v18940_v20  ;;  %v18946_v21 = vpop.permute.xlu1 %12427 }
 0x514   : > { %20531 = vst [vmem:[#allocation43_spill] sm:$0xff] %v18946_v21  ;;  %15275 = vmatprep.mubr.msk.bf16.mxu0 %vm381_vm1, %v18942_v10 }
 0x515   : > { %14698 = vmatmul.mubr.msk.bf16.gmra.mrb[80].mxu1 %vm381_vm1, %v18620_v15  ;;  %v10080_v15 = vld [vmem:[#allocation3 + $0x2af] sm:$0xff] }
 0x516   : > { %14701 = vmatprep.mubr.msk.bf16.mxu1 %vm381_vm1, %v18639_v52  ;;  %v18972_v11 = vpack.c.bf16 %v10080_v15, %v10079_v47  ;;  %v10083_v15 = vld [vmem:[#allocation3 + $0x2e7] sm:$0xff] }
 0x517   : > { %v18954_v43 = vpop.permute.xlu1 %12423  ;;  %v10102_v47 = vpack.c.bf16 %v10084_v51, %v10083_v15  ;;  %v5356_v51 = vld [vmem:[#allocation3 + $0x12e] sm:$0xff] }
 0x518   : > { %20532 = vst [vmem:[#allocation44_spill] sm:$0xff] %v18954_v43  ;;  %v11855_v43 = vld [vmem:[#allocation4 + $0x16f] sm:$0xff] }
 0x51b   : > { %15276 = vmatmul.mubr.msk.bf16.gmra.mrb[16].mxu0 %vm381_vm1, %v18956_v33  ;;  %v18962_v41 = vpop.permute.xlu1 %12435 }
 0x51c   : > { %20533 = vst [vmem:[#allocation45_spill] sm:$0xff] %v18962_v41  ;;  %15279 = vmatprep.mubr.msk.bf16.mxu0 %vm381_vm1, %v18958_v13  ;;  %v10352_v41 = vld [vmem:[#allocation3 + $0x150] sm:$0xff] }
 0x51d   : > { %14702 = vmatmul.mubr.msk.bf16.gmra.mrb[84].mxu1 %vm381_vm1, %v18642_v59  ;;  %v10085_v59 = vld [vmem:[#allocation3 + $0x307] sm:$0xff] }
 0x51e   : > { %14705 = vmatprep.mubr.msk.bf16.mxu1 %vm381_vm1, %v18663_v17  ;;  %v10086_v17 = vld [vmem:[#allocation3 + $0x30f] sm:$0xff] }
 0x51f   : > { %v18970_v52 = vpop.permute.xlu1 %12431  ;;  %v10103_v25 = vpack.c.bf16 %v10086_v17, %v10085_v59  ;;  %v5354_v59 = vld [vmem:[#allocation3 + $0x10e] sm:$0xff] }
 0x520   : > { %20534 = vst [vmem:[#allocation46_spill] sm:$0xff] %v18970_v52  ;;  %v10088_v52 = vld [vmem:[#allocation3 + $0x32f] sm:$0xff] }
 0x521   : > { %v10351_v17 = vld [vmem:[#allocation3 + $0x148] sm:$0xff] }
 0x522   : > { %v10383_v31 = vpack.c.bf16 %v10352_v41, %v10351_v17  ;;  %v10354_v41 = vld [vmem:[#allocation3 + $0x170] sm:$0xff]  ;;  %v10355_v17 = vld [vmem:[#allocation3 + $0x188] sm:$0xff] }
 0x523   : > { %15280 = vmatmul.mubr.msk.bf16.gmra.mrb[20].mxu0 %vm381_vm1, %v18972_v11  ;;  %v18978_v6 = vpop.permute.xlu1 %12443 }
 0x524   : > { %20535 = vst [vmem:[#allocation47_spill] sm:$0xff] %v18978_v6  ;;  %15283 = vmatprep.mubr.msk.bf16.mxu0 %vm381_vm1, %v18974_v56 }
 0x525   : > { %14706 = vmatmul.mubr.msk.bf16.gmra.mrb[88].mxu1 %vm381_vm1, %v18666_v46  ;;  %v10087_v46 = vld [vmem:[#allocation3 + $0x327] sm:$0xff] }
 0x526   : > { %14709 = vmatprep.mubr.msk.bf16.mxu1 %vm381_vm1, %v18687_v0 }
 0x527   : > { %v18986_v60 = vpop.permute.xlu1 %12439 }
 0x528   : > { %20536 = vst [vmem:[#allocation48_spill] sm:$0xff] %v18986_v60  ;;  %v10104_v60 = vpack.c.bf16 %v10088_v52, %v10087_v46  ;;  %v19006_v52 = vld [vmem:[%s20457_s4] sm:$0x3]  ;;  %v10356_v46 = vld [vmem:[#allocation3 + $0x190] sm:$0xff] }
 0x52b   : > { %15284 = vmatmul.mubr.msk.bf16.gmra.mrb[24].mxu0 %vm381_vm1, %v10102_v47  ;;  %v18989_v6 = vpop.permute.xlu1 %12451  ;;  %v5744_v47 = vsel %vm430_vm0, %v18877_v61, 0  ;;  %v10353_v61 = vld [vmem:[#allocation3 + $0x168] sm:$0xff] }
 0x52c   : > { %20537 = vst [vmem:[#allocation49_spill] sm:$0xff] %v18989_v6  ;;  %15287 = vmatprep.mubr.msk.bf16.mxu0 %vm381_vm1, %v10103_v25  ;;  %v5384_v25 = vpack.c.bf16 %v5354_v59, %v5353_v55  ;;  %v10384_v59 = vpack.c.bf16 %v10354_v41, %v10353_v61  ;;  %v19019_v55 = vld [vmem:[%s20456_s3 + $0x30] sm:$0x3] }
 0x52d   : > { %14710 = vmatmul.mubr.msk.bf16.gmra.mrb[92].mxu1 %vm381_vm1, %v18690_v30  ;;  %v5355_v30 = vld [vmem:[#allocation3 + $0x126] sm:$0xff]  ;;  %v19159_v6 = vld [vmem:[#allocation3 + $0x2d1] sm:$0xff] }
 0x52e   : > { %14715 = vmatprep.mubr.msk.bf16.mxu1 %vm381_vm1, %v5383_v19  ;;  %v5385_v19 = vpack.c.bf16 %v5356_v51, %v5355_v30  ;;  %v10744_v51 = vsel %vm430_vm0, %v18894_v42, 0  ;;  %v10358_v42 = vld [vmem:[#allocation3 + $0x1b0] sm:$0xff] }
 0x52f   : > { %v18995_v0 = vpop.permute.xlu1 %12447  ;;  %v10360_v30 = vld [vmem:[#allocation3 + $0x1d0] sm:$0xff] }
 0x530   : > { %20538 = vst [vmem:[#allocation50_spill] sm:$0xff] %v18995_v0  ;;  %v19157_v0 = vld [vmem:[#allocation3 + $0x2c9] sm:$0xff] }
 0x533   : > { %15288 = vmatmul.mubr.msk.bf16.gmra.mrb[28].mxu0 %vm381_vm1, %v10104_v60  ;;  %v18998_v15 = vpop.permute.xlu1 %12459 }
 0x534   : > { %20539 = vst [vmem:[#allocation51_spill] sm:$0xff] %v18998_v15  ;;  %15293 = vmatprep.mubr.msk.bf16.mxu0 %vm381_vm1, %v10383_v31  ;;  %v10385_v31 = vpack.c.bf16 %v10356_v46, %v10355_v17  ;;  %v10359_v46 = vld [vmem:[#allocation3 + $0x1c8] sm:$0xff] }
 0x535   : > { %14716 = vmatmul.mubr.msk.bf16.vlgmr.msra.gmra.mrb[64].mxu1 %vm381_vm1, %v5384_v25  ;;  %v10387_v61 = vpack.c.bf16 %v10360_v30, %v10359_v46  ;;  %v10363_v17 = vld [vmem:[#allocation3 + $0x208] sm:$0xff] }
 0x536   : > { %14748 = vmatpush3.bf16.msra.mxu1 %v5744_v47  ;;  %14719 = vmatprep.mubr.msk.bf16.mxu1 %vm381_vm1, %v5385_v19  ;;  %v10357_v19 = vld [vmem:[#allocation3 + $0x1a8] sm:$0xff] }
 0x537   : > { %v19010_v60 = vpop.permute.xlu1 %12455  ;;  %16486 = vmatprep.subr.msk.bf16.mxu1 %vm430_vm0, %v19006_v52  ;;  %v10386_v41 = vpack.c.bf16 %v10358_v42, %v10357_v19  ;;  %v10367_v42 = vld [vmem:[#allocation3 + $0x248] sm:$0xff]  ;;  %v10372_v19 = vld [vmem:[#allocation3 + $0x290] sm:$0xff] }
 0x538   : > { %20540 = vst [vmem:[#allocation52_spill] sm:$0xff] %v19010_v60  ;;  %v10371_v46 = vld [vmem:[#allocation3 + $0x288] sm:$0xff] }
 0x539   : > { %v11854_v60 = vld [vmem:[#allocation4 + $0x167] sm:$0xff] }
 0x53a   : > { %v19153_v15 = vld [vmem:[#allocation4 + $0x187] sm:$0xff] }
 0x53b   : > { %15294 = vmatmul.mubr.msk.bf16.vlgmr.msra.gmra.mrb[0].mxu0 %vm381_vm1, %v10384_v59  ;;  %v12468_v25 = vpop.permute.xlu1 %12467  ;;  %v10361_v59 = vld [vmem:[#allocation3 + $0x1e8] sm:$0xff] }
 0x53c   : > { %v19024_v47 = vsel %vm12757_vm2, %v17538_v37, %v12468_v25  ;;  %15297 = vmatprep.mubr.msk.bf16.mxu0 %vm381_vm1, %v10385_v31  ;;  %15326 = vmatpush3.bf16.msra.mxu0 %v10744_v51  ;;  %v10362_v37 = vld [vmem:[#allocation3 + $0x1f0] sm:$0xff]  ;;  %v10365_v25 = vld [vmem:[#allocation3 + $0x228] sm:$0xff] }
 0x53d   : > { %20541 = vst [vmem:[#allocation53_spill] sm:$0xff] %v19024_v47  ;;  %14720 = vmatmul.mubr.msk.bf16.gmra.mrb[68].mxu1 %vm381_vm1, %v18729_v32  ;;  %16485 = vmatprep.subr.msk.bf16.mxu0 %vm430_vm0, %v19019_v55  ;;  %v10364_v32 = vld [vmem:[#allocation3 + $0x210] sm:$0xff] }
 0x53e   : > { %14723 = vmatprep.mubr.msk.bf16.mxu1 %vm381_vm1, %v18756_v57  ;;  %v10388_v57 = vpack.c.bf16 %v10362_v37, %v10361_v59  ;;  %v10389_v51 = vpack.c.bf16 %v10364_v32, %v10363_v17  ;;  %v10368_v31 = vld [vmem:[#allocation3 + $0x250] sm:$0xff]  ;;  %v10373_v32 = vld [vmem:[#allocation3 + $0x2a8] sm:$0xff] }
 0x53f   : > { %v10391_v30 = vpack.c.bf16 %v10368_v31, %v10367_v42  ;;  %v10376_v37 = vld [vmem:[#allocation3 + $0x2d0] sm:$0xff]  ;;  %v10375_v59 = vld [vmem:[#allocation3 + $0x2c8] sm:$0xff] }
 0x540   : > { %v10379_v17 = vld [vmem:[#allocation3 + $0x308] sm:$0xff] }
 0x541   : > { %v10377_v31 = vld [vmem:[#allocation3 + $0x2e8] sm:$0xff] }
 0x543   : > { %15298 = vmatmul.mubr.msk.bf16.gmra.mrb[4].mxu0 %vm381_vm1, %v10386_v41  ;;  %v10369_v41 = vld [vmem:[#allocation3 + $0x268] sm:$0xff] }
 0x544   : > { %15301 = vmatprep.mubr.msk.bf16.mxu0 %vm381_vm1, %v10387_v61  ;;  %v10393_v61 = vpack.c.bf16 %v10372_v19, %v10371_v46  ;;  %v10646_v19 = vld [vmem:[#allocation3 + $0x151] sm:$0xff] }
 0x545   : > { %14724 = vmatmul.mubr.msk.bf16.gmra.mrb[72].mxu1 %vm381_vm1, %v18761_v58  ;;  %v10366_v58 = vld [vmem:[#allocation3 + $0x230] sm:$0xff] }
 0x546   : > { %14727 = vmatprep.mubr.msk.bf16.mxu1 %vm381_vm1, %v18789_v48  ;;  %v10390_v48 = vpack.c.bf16 %v10366_v58, %v10365_v25  ;;  %v5646_v58 = vld [vmem:[#allocation3 + $0xef] sm:$0xff] }
 0x54b   : > { %15302 = vmatmul.mubr.msk.bf16.gmra.mrb[8].mxu0 %vm381_vm1, %v10388_v57  ;;  %v10395_v57 = vpack.c.bf16 %v10376_v37, %v10375_v59  ;;  %v12108_v37 = vsel %vm430_vm0, %v19006_v52, 0  ;;  %v10648_v59 = vld [vmem:[#allocation3 + $0x171] sm:$0xff]  ;;  %v10651_v52 = vld [vmem:[#allocation3 + $0x1a9] sm:$0xff] }
 0x54c   : > { %15305 = vmatprep.mubr.msk.bf16.mxu0 %vm381_vm1, %v10389_v51  ;;  %v10380_v51 = vld [vmem:[#allocation3 + $0x310] sm:$0xff] }
 0x54d   : > { %14728 = vmatmul.mubr.msk.bf16.gmra.mrb[76].mxu1 %vm381_vm1, %v18792_v40  ;;  %v10370_v40 = vld [vmem:[#allocation3 + $0x270] sm:$0xff]  ;;  %v10397_v25 = vpack.c.bf16 %v10380_v51, %v10379_v17 }
 0x54e   : > { %14731 = vmatprep.mubr.msk.bf16.mxu1 %vm381_vm1, %v18812_v7  ;;  %v10392_v7 = vpack.c.bf16 %v10370_v40, %v10369_v41  ;;  %v10382_v40 = vld [vmem:[#allocation3 + $0x330] sm:$0xff] }
 0x54f   : > { %v5648_v41 = vld [vmem:[#allocation3 + $0x10f] sm:$0xff] }
 0x550   : > { %v10650_v17 = vld [vmem:[#allocation3 + $0x191] sm:$0xff] }
 0x553   : > { %15306 = vmatmul.mubr.msk.bf16.gmra.mrb[12].mxu0 %vm381_vm1, %v10390_v48 }
 0x554   : > { %15309 = vmatprep.mubr.msk.bf16.mxu0 %vm381_vm1, %v10391_v30  ;;  %v10381_v30 = vld [vmem:[#allocation3 + $0x328] sm:$0xff] }
 0x555   : > { %14732 = vmatmul.mubr.msk.bf16.gmra.mrb[80].mxu1 %vm381_vm1, %v18814_v38  ;;  %v10374_v38 = vld [vmem:[#allocation3 + $0x2b0] sm:$0xff] }
 0x556   : > { %14735 = vmatprep.mubr.msk.bf16.mxu1 %vm381_vm1, %v18826_v36  ;;  %v10394_v36 = vpack.c.bf16 %v10374_v38, %v10373_v32  ;;  %v5649_v32 = vld [vmem:[#allocation3 + $0x127] sm:$0xff] }
 0x55b   : > { %15310 = vmatmul.mubr.msk.bf16.gmra.mrb[16].mxu0 %vm381_vm1, %v10392_v7  ;;  %v5650_v7 = vld [vmem:[#allocation3 + $0x12f] sm:$0xff] }
 0x55c   : > { %15313 = vmatprep.mubr.msk.bf16.mxu0 %vm381_vm1, %v10393_v61  ;;  %v5647_v61 = vld [vmem:[#allocation3 + $0x107] sm:$0xff] }
 0x55d   : > { %14736 = vmatmul.mubr.msk.bf16.gmra.mrb[84].mxu1 %vm381_vm1, %v18828_v5  ;;  %v10378_v5 = vld [vmem:[#allocation3 + $0x2f0] sm:$0xff]  ;;  %v5678_v38 = vpack.c.bf16 %v5648_v41, %v5647_v61 }
 0x55e   : > { %14739 = vmatprep.mubr.msk.bf16.mxu1 %vm381_vm1, %v18838_v22  ;;  %v5645_v22 = vld [vmem:[#allocation3 + $0xe7] sm:$0xff]  ;;  %v10396_v48 = vpack.c.bf16 %v10378_v5, %v10377_v31  ;;  %v11038_v5 = vsel %vm430_vm0, %v19019_v55, 0 }
 0x55f   : > { %v5677_v42 = vpack.c.bf16 %v5646_v58, %v5645_v22  ;;  %v10652_v58 = vld [vmem:[#allocation3 + $0x1b1] sm:$0xff]  ;;  %v10653_v31 = vld [vmem:[#allocation3 + $0x1c9] sm:$0xff] }
 0x560   : > { %v11497_v55 = vld [vmem:[#allocation4 + $0xe7] sm:$0xff] }
 0x561   : > { %v10657_v41 = vld [vmem:[#allocation3 + $0x209] sm:$0xff] }
 0x563   : > { %15314 = vmatmul.mubr.msk.bf16.gmra.mrb[20].mxu0 %vm381_vm1, %v10394_v36  ;;  %v5679_v36 = vpack.c.bf16 %v5650_v7, %v5649_v32  ;;  %v10658_v7 = vld [vmem:[#allocation3 + $0x211] sm:$0xff] }
 0x564   : > { %15317 = vmatprep.mubr.msk.bf16.mxu0 %vm381_vm1, %v10395_v57  ;;  %v10649_v57 = vld [vmem:[#allocation3 + $0x189] sm:$0xff] }
 0x565   : > { %14740 = vmatmul.mubr.msk.bf16.gmra.mrb[88].mxu1 %vm381_vm1, %v18840_v54  ;;  %v10398_v54 = vpack.c.bf16 %v10382_v40, %v10381_v30  ;;  %v10679_v22 = vpack.c.bf16 %v10650_v17, %v10649_v57  ;;  %v11498_v30 = vld [vmem:[#allocation4 + $0xef] sm:$0xff] }
 0x566   : > { %14743 = vmatprep.mubr.msk.bf16.mxu1 %vm381_vm1, %v18850_v1  ;;  %v10645_v1 = vld [vmem:[#allocation3 + $0x149] sm:$0xff] }
 0x567   : > { %v10677_v46 = vpack.c.bf16 %v10646_v19, %v10645_v1  ;;  %v11529_v40 = vld [vmem:[#allocation4 + $0xe8] sm:$0xff] }
 0x568   : > { %v11657_v1 = vld [vmem:[#allocation4 + $0x107] sm:$0xff] }
 0x569   : > { %v11721_v19 = vld [vmem:[#allocation4 + $0x108] sm:$0xff] }
 0x56a   : > { %v11563_v32 = vmax.f32 %v11657_v1, %v11721_v19  ;;  %v19090_v17 = vld [vmem:[#allocation4 + $0x128] sm:$0xff] }
 0x56b   : > { %15318 = vmatmul.mubr.msk.bf16.gmra.mrb[24].mxu0 %vm381_vm1, %v10396_v48  ;;  %v10680_v48 = vpack.c.bf16 %v10652_v58, %v10651_v52 }
 0x56c   : > { %15321 = vmatprep.mubr.msk.bf16.mxu0 %vm381_vm1, %v10397_v25  ;;  %v10654_v25 = vld [vmem:[#allocation3 + $0x1d1] sm:$0xff] }
 0x56d   : > { %14744 = vmatmul.mubr.msk.bf16.gmra.mrb[92].mxu1 %vm381_vm1, %v18852_v35  ;;  %v10647_v35 = vld [vmem:[#allocation3 + $0x169] sm:$0xff] }
 0x56e   : > { %14749 = vmatprep.mubr.msk.bf16.mxu1 %vm381_vm1, %v5677_v42  ;;  %v10678_v51 = vpack.c.bf16 %v10648_v59, %v10647_v35  ;;  %v10681_v42 = vpack.c.bf16 %v10654_v25, %v10653_v31  ;;  %v11722_v35 = vld [vmem:[#allocation4 + $0x110] sm:$0xff] }
 0x56f   : > { %v19088_v59 = vld [vmem:[#allocation4 + $0x109] sm:$0xff]  ;;  %v19099_v31 = vld [vmem:[#allocation4 + $0x111] sm:$0xff] }
 0x570   : > { %v11627_v58 = vmax.f32 %v11563_v32, %v19088_v59  ;;  %v19120_v32 = vld [vmem:[#allocation4 + $0x148] sm:$0xff] }
 0x573   : > { %15322 = vmatmul.mubr.msk.bf16.gmra.mrb[28].mxu0 %vm381_vm1, %v10398_v54  ;;  %v11530_v54 = vld [vmem:[#allocation4 + $0xf0] sm:$0xff] }
 0x574   : > { %15327 = vmatprep.mubr.msk.bf16.mxu0 %vm381_vm1, %v10677_v46  ;;  %v11561_v46 = vmax.f32 %v11497_v55, %v11529_v40  ;;  %v11562_v61 = vmax.f32 %v11498_v30, %v11530_v54  ;;  %v10659_v55 = vld [vmem:[#allocation3 + $0x229] sm:$0xff]  ;;  %v10660_v30 = vld [vmem:[#allocation3 + $0x231] sm:$0xff] }
 0x575   : > { %14750 = vmatmul.mubr.msk.bf16.vlgmr.msra.gmra.mrb[64].mxu1 %vm381_vm1, %v5678_v38  ;;  %v11593_v38 = vld [vmem:[#allocation4 + $0xe9] sm:$0xff] }
 0x576   : > { %15394 = vmatpush3.bf16.msra.mxu1 %v12108_v37  ;;  %14753 = vmatprep.mubr.msk.bf16.mxu1 %vm381_vm1, %v5679_v36  ;;  %v11594_v37 = vld [vmem:[#allocation4 + $0xf1] sm:$0xff]  ;;  %v10661_v54 = vld [vmem:[#allocation3 + $0x249] sm:$0xff] }
 0x577   : > { %v11658_v36 = vld [vmem:[#allocation4 + $0x10f] sm:$0xff] }
 0x578   : > { %v11564_v52 = vmax.f32 %v11658_v36, %v11722_v35 }
 0x57b   : > { %15328 = vmatmul.mubr.msk.bf16.vlgmr.msra.gmra.mrb[0].mxu0 %vm381_vm1, %v10678_v51  ;;  %v11626_v51 = vmax.f32 %v11562_v61, %v11594_v37  ;;  %v11852_v61 = vld [vmem:[#allocation4 + $0x147] sm:$0xff]  ;;  %v10684_v37 = vpack.c.bf16 %v10660_v30, %v10659_v55 }
 0x57c   : > { %15331 = vmatprep.mubr.msk.bf16.mxu0 %vm381_vm1, %v10679_v22  ;;  %15360 = vmatpush3.bf16.msra.mxu0 %v11038_v5  ;;  %v19093_v5 = vld [vmem:[#allocation4 + $0x127] sm:$0xff]  ;;  %v19095_v22 = vld [vmem:[#allocation4 + $0x130] sm:$0xff]  ;;  %v11567_v30 = vmax.f32 %v11852_v61, %v19120_v32 }
 0x57d   : > { %14754 = vmatmul.mubr.msk.bf16.gmra.mrb[68].mxu1 %vm381_vm1, %v18867_v16  ;;  %v10655_v16 = vld [vmem:[#allocation3 + $0x1e9] sm:$0xff]  ;;  %v11565_v25 = vmax.f32 %v19093_v5, %v19090_v17 }
 0x57e   : > { %14757 = vmatprep.mubr.msk.bf16.mxu1 %vm381_vm1, %v18885_v44  ;;  %v10656_v44 = vld [vmem:[#allocation3 + $0x1f1] sm:$0xff] }
 0x57f   : > { %v10682_v57 = vpack.c.bf16 %v10656_v44, %v10655_v16  ;;  %v10662_v16 = vld [vmem:[#allocation3 + $0x251] sm:$0xff] }
 0x583   : > { %15332 = vmatmul.mubr.msk.bf16.gmra.mrb[4].mxu0 %vm381_vm1, %v10680_v48  ;;  %v19105_v48 = vld [vmem:[#allocation4 + $0x12f] sm:$0xff] }
 0x584   : > { %15335 = vmatprep.mubr.msk.bf16.mxu0 %vm381_vm1, %v10681_v42  ;;  %v19107_v42 = vld [vmem:[#allocation4 + $0x129] sm:$0xff]  ;;  %v11566_v40 = vmax.f32 %v19105_v48, %v19095_v22 }
 0x585   : > { %14758 = vmatmul.mubr.msk.bf16.gmra.mrb[72].mxu1 %vm381_vm1, %v18889_v24  ;;  %v10683_v24 = vpack.c.bf16 %v10658_v7, %v10657_v41  ;;  %v11690_v41 = vmax.f32 %v11626_v51, %v11658_v36  ;;  %v19113_v7 = vld [vmem:[#allocation4 + $0x131] sm:$0xff] }
 0x586   : > { %14761 = vmatprep.mubr.msk.bf16.mxu1 %vm381_vm1, %v18908_v49  ;;  %v11625_v49 = vmax.f32 %v11561_v46, %v11593_v38  ;;  %v11691_v46 = vmax.f32 %v11627_v58, %v19093_v5  ;;  %v11629_v38 = vmax.f32 %v11565_v25, %v19107_v42  ;;  %v10663_v58 = vld [vmem:[#allocation3 + $0x269] sm:$0xff]  ;;  %v10664_v25 = vld [vmem:[#allocation3 + $0x271] sm:$0xff] }
 0x588   : > { %v11689_v44 = vmax.f32 %v11625_v49, %v11657_v1  ;;  %v11630_v1 = vmax.f32 %v11566_v40, %v19113_v7  ;;  %v11754_v49 = vmax.f32 %v11690_v41, %v11722_v35  ;;  %v11693_v55 = vmax.f32 %v11629_v38, %v11852_v61  ;;  %v10665_v40 = vld [vmem:[#allocation3 + $0x289] sm:$0xff] }
 0x589   : > { %v19134_v35 = vld [vmem:[#allocation4 + $0x149] sm:$0xff] }
 0x58a   : > { %v11753_v36 = vmax.f32 %v11689_v44, %v11721_v19  ;;  %v10666_v19 = vld [vmem:[#allocation3 + $0x291] sm:$0xff]  ;;  %v19138_v44 = vld [vmem:[#allocation4 + $0x168] sm:$0xff] }
 0x58b   : > { %15336 = vmatmul.mubr.msk.bf16.gmra.mrb[8].mxu0 %vm381_vm1, %v10682_v57  ;;  %v19122_v57 = vld [vmem:[#allocation4 + $0x150] sm:$0xff]  ;;  %v10687_v21 = vpack.c.bf16 %v10666_v19, %v10665_v40 }
 0x58c   : > { %15339 = vmatprep.mubr.msk.bf16.mxu0 %vm381_vm1, %v10683_v24  ;;  %v10685_v24 = vpack.c.bf16 %v10662_v16, %v10661_v54  ;;  %v19136_v16 = vld [vmem:[#allocation4 + $0x151] sm:$0xff]  ;;  %v19142_v41 = vld [vmem:[#allocation3 + $0x2a9] sm:$0xff] }
 0x58d   : > { %14762 = vmatmul.mubr.msk.bf16.gmra.mrb[76].mxu1 %vm381_vm1, %v18910_v2  ;;  %v11628_v2 = vmax.f32 %v11564_v52, %v19099_v31  ;;  %v11755_v52 = vmax.f32 %v11691_v46, %v19090_v17  ;;  %v19147_v38 = vld [vmem:[#allocation4 + $0x170] sm:$0xff] }
 0x58e   : > { %14765 = vmatprep.mubr.msk.bf16.mxu1 %vm381_vm1, %v18924_v28  ;;  %v19118_v28 = vld [vmem:[#allocation4 + $0x14f] sm:$0xff]  ;;  %v11570_v50 = vmax.f32 %v11855_v43, %v19147_v38 }
 0x58f   : > { %v11692_v51 = vmax.f32 %v11628_v2, %v19105_v48  ;;  %v11568_v54 = vmax.f32 %v19118_v28, %v19122_v57  ;;  %v19144_v2 = vld [vmem:[#allocation3 + $0x2b1] sm:$0xff]  ;;  %v11694_v46 = vmax.f32 %v11630_v1, %v19118_v28  ;;  %v11819_v47 = vmax.f32 %v11755_v52, %v19107_v42 }
 0x590   : > { %v11757_v1 = vmax.f32 %v11693_v55, %v19120_v32  ;;  %v19167_v52 = vld [vmem:[#allocation3 + $0x2f1] sm:$0xff]  ;;  %v10688_v55 = vpack.c.bf16 %v19144_v2, %v19142_v41  ;;  %v19187_v2 = vld [vmem:[#allocation4 + $0x189] sm:$0xff] }
 0x591   : > { %v11758_v45 = vmax.f32 %v11694_v46, %v19122_v57  ;;  %v11884_v41 = vmax.f32 %v11819_v47, %v11852_v61  ;;  %v19189_v46 = vld [vmem:[#allocation4 + $0x1a8] sm:$0xff]  ;;  %v10689_v47 = vpack.c.bf16 %v19159_v6, %v19157_v0  ;;  %v19204_v61 = vld [vmem:[#allocation3 + $0x152] sm:$0xff] }
 0x592   : > { %v11821_v34 = vmax.f32 %v11757_v1, %v19134_v35  ;;  %v19217_v6 = vld [vmem:[#allocation3 + $0x311] sm:$0xff] }
 0x593   : > { %15340 = vmatmul.mubr.msk.bf16.gmra.mrb[12].mxu0 %vm381_vm1, %v10684_v37  ;;  %v11818_v37 = vmax.f32 %v11754_v49, %v19099_v31  ;;  %v11632_v31 = vmax.f32 %v11568_v54, %v19136_v16  ;;  %v10686_v49 = vpack.c.bf16 %v10664_v25, %v10663_v58  ;;  %v19177_v54 = vld [vmem:[#allocation4 + $0x18f] sm:$0xff]  ;;  %v11822_v0 = vmax.f32 %v11758_v45, %v19136_v16 }
 0x594   : > { %15343 = vmatprep.mubr.msk.bf16.mxu0 %vm381_vm1, %v10685_v24  ;;  %v11756_v24 = vmax.f32 %v11692_v51, %v19095_v22  ;;  %v19165_v51 = vld [vmem:[#allocation3 + $0x2e9] sm:$0xff]  ;;  %v19220_v1 = vld [vmem:[#allocation4 + $0x191] sm:$0xff]  ;;  %v11948_v29 = vmax.f32 %v11884_v41, %v19120_v32  ;;  %v11886_v53 = vmax.f32 %v11821_v34, %v11854_v60 }
 0x595   : > { %14766 = vmatmul.mubr.msk.bf16.gmra.mrb[80].mxu1 %vm381_vm1, %v18926_v63  ;;  %v11817_v63 = vmax.f32 %v11753_v36, %v19088_v59  ;;  %v11631_v59 = vmax.f32 %v11567_v30, %v19134_v35  ;;  %v11569_v36 = vmax.f32 %v11854_v60, %v19138_v44  ;;  %v19175_v30 = vld [vmem:[#allocation4 + $0x171] sm:$0xff]  ;;  %v11883_v40 = vmax.f32 %v11818_v37, %v19105_v48 }
 0x596   : > { %14769 = vmatprep.mubr.msk.bf16.mxu1 %vm381_vm1, %v18940_v20  ;;  %v19155_v20 = vld [vmem:[#allocation4 + $0x188] sm:$0xff]  ;;  %v11820_v19 = vmax.f32 %v11756_v24, %v19113_v7  ;;  %v11696_v9 = vmax.f32 %v11632_v31, %v11855_v43  ;;  %v11572_v24 = vmax.f32 %v19177_v54, %v19179_v26  ;;  %v19233_v45 = vld [vmem:[#allocation4 + $0x1b1] sm:$0xff] }
 0x597   : > { %v11571_v58 = vmax.f32 %v19153_v15, %v19155_v20  ;;  %v11882_v25 = vmax.f32 %v11817_v63, %v19093_v5  ;;  %v11633_v5 = vmax.f32 %v11569_v36, %v19169_v39  ;;  %v19207_v63 = vld [vmem:[#allocation4 + $0x1a7] sm:$0xff]  ;;  %v19209_v37 = vld [vmem:[#allocation4 + $0x1af] sm:$0xff] }
 0x598   : > { %v11574_v31 = vmax.f32 %v19209_v37, %v19191_v4  ;;  %v11885_v48 = vmax.f32 %v11820_v19, %v19118_v28  ;;  %v11760_v8 = vmax.f32 %v11696_v9, %v19147_v38  ;;  %v11636_v32 = vmax.f32 %v11572_v24, %v19220_v1  ;;  %v19249_v9 = vld [vmem:[#allocation4 + $0x1c8] sm:$0xff]  ;;  %v19251_v19 = vld [vmem:[#allocation4 + $0x1d0] sm:$0xff] }
 0x599   : > { %v11946_v36 = vmax.f32 %v11882_v25, %v19090_v17  ;;  %v11697_v12 = vmax.f32 %v11633_v5, %v19153_v15  ;;  %v19244_v25 = vld [vmem:[#allocation4 + $0x1c7] sm:$0xff]  ;;  %v19264_v24 = vmax.f32 %v11948_v29, %v19134_v35 }
 0x59b   : > { %15344 = vmatmul.mubr.msk.bf16.gmra.mrb[16].mxu0 %vm381_vm1, %v10686_v49  ;;  %v11695_v49 = vmax.f32 %v11631_v59, %v11854_v60  ;;  %v11573_v59 = vmax.f32 %v19207_v63, %v19189_v46  ;;  %v19247_v60 = vld [vmem:[#allocation4 + $0x1cf] sm:$0xff]  ;;  %v19257_v5 = vmax.f32 %v11946_v36, %v19107_v42 }
 0x59c   : > { %15347 = vmatprep.mubr.msk.bf16.mxu0 %vm381_vm1, %v10687_v21  ;;  %v11634_v21 = vmax.f32 %v11570_v50, %v19175_v30  ;;  %v11635_v50 = vmax.f32 %v11571_v58, %v19187_v2  ;;  %v19271_v42 = vld [vmem:[#allocation4 + $0x1e8] sm:$0xff] }
 0x59d   : > { %14770 = vmatmul.mubr.msk.bf16.gmra.mrb[84].mxu1 %vm381_vm1, %v18942_v10  ;;  %v19215_v10 = vld [vmem:[#allocation3 + $0x309] sm:$0xff]  ;;  %v11759_v58 = vmax.f32 %v11695_v49, %v19138_v44  ;;  %v11637_v41 = vmax.f32 %v11573_v59, %v19231_v14  ;;  %v11638_v49 = vmax.f32 %v11574_v31, %v19233_v45  ;;  %v11824_v59 = vmax.f32 %v11760_v8, %v19175_v30 }
 0x59e   : > { %14773 = vmatprep.mubr.msk.bf16.mxu1 %vm381_vm1, %v18956_v33  ;;  %v11947_v33 = vmax.f32 %v11883_v40, %v19095_v22  ;;  %v11698_v28 = vmax.f32 %v11634_v21, %v19177_v54  ;;  %v11887_v40 = vmax.f32 %v11822_v0, %v11855_v43  ;;  %v11699_v34 = vmax.f32 %v11635_v50, %v19207_v63  ;;  %v19273_v31 = vld [vmem:[#allocation4 + $0x1f0] sm:$0xff] }
 0x59f   : > { %v11949_v43 = vmax.f32 %v11885_v48, %v19122_v57  ;;  %v11950_v0 = vmax.f32 %v11886_v53, %v19138_v44  ;;  %v11823_v50 = vmax.f32 %v11759_v58, %v19169_v39  ;;  %v19279_v57 = vld [vmem:[#allocation4 + $0x1c9] sm:$0xff]  ;;  %v11575_v53 = vmax.f32 %v19244_v25, %v19249_v9 }
 0x5a0   : > { %v19260_v21 = vmax.f32 %v11947_v33, %v19113_v7  ;;  %v11762_v29 = vmax.f32 %v11698_v28, %v19179_v26  ;;  %v11700_v7 = vmax.f32 %v11636_v32, %v19209_v37  ;;  %v11576_v8 = vmax.f32 %v19247_v60, %v19251_v19  ;;  %v19293_v48 = vld [vmem:[#allocation4 + $0x1e7] sm:$0xff]  ;;  %v19295_v36 = vld [vmem:[#allocation4 + $0x1ef] sm:$0xff] }
 0x5a1   : > { %v11763_v35 = vmax.f32 %v11699_v34, %v19189_v46  ;;  %v11701_v44 = vmax.f32 %v11637_v41, %v19244_v25  ;;  %v19297_v33 = vld [vmem:[#allocation3 + $0x329] sm:$0xff]  ;;  %v19306_v28 = vld [vmem:[#allocation3 + $0x172] sm:$0xff]  ;;  %v11577_v32 = vmax.f32 %v19293_v48, %v19271_v42  ;;  %v19315_v41 = vmax.f32 %v11950_v0, %v19169_v39 }
 0x5a2   : > { %v12042_v58 = vpack.c.bf16 %v19260_v21, %v19257_v5  ;;  %v19312_v34 = vld [vmem:[#allocation3 + $0x331] sm:$0xff]  ;;  %v19320_v21 = vld [vmem:[#allocation4 + $0x1e9] sm:$0xff]  ;;  %v11826_v22 = vmax.f32 %v11762_v29, %v19220_v1  ;;  %v11764_v17 = vmax.f32 %v11700_v7, %v19191_v4  ;;  %v11639_v62 = vmax.f32 %v11575_v53, %v19279_v57 }
 0x5a3   : > { %15348 = vmatmul.mubr.msk.bf16.gmra.mrb[20].mxu0 %vm381_vm1, %v10688_v55  ;;  %v11761_v55 = vmax.f32 %v11697_v12, %v19155_v20  ;;  %v11951_v12 = vmax.f32 %v11887_v40, %v19147_v38  ;;  %v19304_v38 = vld [vmem:[#allocation3 + $0x16a] sm:$0xff]  ;;  %v11578_v40 = vmax.f32 %v19295_v36, %v19273_v31  ;;  %v20543_v53 = vpack.c.bf16 %v19217_v6, %v19215_v10 }
 0x5a4   : > { %15351 = vmatprep.mubr.msk.bf16.mxu0 %vm381_vm1, %v10689_v47  ;;  %v11702_v47 = vmax.f32 %v11638_v49, %v19247_v60  ;;  %v11888_v49 = vmax.f32 %v11823_v50, %v19153_v15  ;;  %v11827_v15 = vmax.f32 %v11763_v35, %v19231_v14  ;;  %v20542_v50 = vpack.c.bf16 %v19167_v52, %v19165_v51  ;;  %v19342_v29 = vld [vmem:[#allocation4 + $0x207] sm:$0xff]  ;;  %v19355_v35 = vld [vmem:[#allocation4 + $0x20f] sm:$0xff] }
 0x5a5   : > { %14774 = vmatmul.mubr.msk.bf16.gmra.mrb[88].mxu1 %vm381_vm1, %v18958_v13  ;;  %v19289_v13 = vld [vmem:[#allocation4 + $0x1d1] sm:$0xff]  ;;  %v11825_v5 = vmax.f32 %v11761_v55, %v19187_v2  ;;  %v19329_v39 = vmax.f32 %v11951_v12, %v19175_v30  ;;  %v10972_v55 = vpack.c.bf16 %v19306_v28, %v19304_v38  ;;  %v11641_v30 = vmax.f32 %v11577_v32, %v19320_v21 }
 0x5a6   : > { %14777 = vmatprep.mubr.msk.bf16.mxu1 %vm381_vm1, %v18972_v11  ;;  %v19302_v11 = vmax.f32 %v11949_v43, %v19136_v16  ;;  %v11889_v16 = vmax.f32 %v11824_v59, %v19177_v54  ;;  %v19322_v43 = vld [vmem:[#allocation4 + $0x1f1] sm:$0xff]  ;;  %v11640_v3 = vmax.f32 %v11576_v8, %v19289_v13  ;;  %v11765_v54 = vmax.f32 %v11701_v44, %v19249_v9  ;;  %v19357_v44 = vld [vmem:[#allocation4 + $0x208] sm:$0xff] }
 0x5a7   : > { %v11766_v0 = vmax.f32 %v11702_v47, %v19251_v19  ;;  %v10692_v59 = vpack.c.bf16 %v19312_v34, %v19297_v33  ;;  %v11642_v7 = vmax.f32 %v11578_v40, %v19322_v43  ;;  %v11952_v52 = vmax.f32 %v11888_v49, %v19155_v20  ;;  %v19359_v47 = vld [vmem:[#allocation4 + $0x210] sm:$0xff] }
 0x5a8   : > { %v12043_v51 = vpack.c.bf16 %v19302_v11, %v19264_v24  ;;  %v11953_v8 = vmax.f32 %v11889_v16, %v19179_v26  ;;  %v11890_v12 = vmax.f32 %v11825_v5, %v19207_v63  ;;  %v11891_v10 = vmax.f32 %v11826_v22, %v19209_v37  ;;  %v19367_v26 = vld [vmem:[#allocation4 + $0x228] sm:$0xff]  ;;  %v19369_v63 = vld [vmem:[#allocation4 + $0x230] sm:$0xff] }
 0x5a9   : > { %v11828_v6 = vmax.f32 %v11764_v17, %v19233_v45  ;;  %v11703_v24 = vmax.f32 %v11639_v62, %v19293_v48  ;;  %v11704_v20 = vmax.f32 %v11640_v3, %v19295_v36  ;;  %v12044_v33 = vpack.c.bf16 %v19329_v39, %v19315_v41  ;;  %v19379_v3 = vld [vmem:[#allocation4 + $0x227] sm:$0xff]  ;;  %v19381_v22 = vld [vmem:[#allocation4 + $0x22f] sm:$0xff] }
 0x5aa   : > { %v11892_v11 = vmax.f32 %v11827_v15, %v19244_v25  ;;  %v11830_v37 = vmax.f32 %v11766_v0, %v19289_v13  ;;  %v11705_v17 = vmax.f32 %v11641_v30, %v19342_v29  ;;  %v11706_v62 = vmax.f32 %v11642_v7, %v19355_v35  ;;  %v19387_v40 = vld [vmem:[#allocation3 + $0x18a] sm:$0xff]  ;;  %v19401_v39 = vld [vmem:[#allocation3 + $0x192] sm:$0xff] }
 0x5ab   : > { %15352 = vmatmul.mubr.msk.bf16.gmra.mrb[24].mxu0 %vm381_vm1, %v20542_v50  ;;  %v11580_v32 = vmax.f32 %v19355_v35, %v19359_v47  ;;  %v19390_v25 = vmax.f32 %v11952_v52, %v19187_v2  ;;  %v11954_v34 = vmax.f32 %v11890_v12, %v19189_v46  ;;  %v19393_v41 = vld [vmem:[#allocation4 + $0x209] sm:$0xff]  ;;  %v19395_v49 = vld [vmem:[#allocation4 + $0x211] sm:$0xff]  ;;  %v11581_v16 = vmax.f32 %v19379_v3, %v19367_v26 }
 0x5ac   : > { %15355 = vmatprep.mubr.msk.bf16.mxu0 %vm381_vm1, %v20543_v53  ;;  %v11582_v5 = vmax.f32 %v19381_v22, %v19369_v63  ;;  %v11955_v15 = vmax.f32 %v11891_v10, %v19191_v4  ;;  %v11767_v2 = vmax.f32 %v11703_v24, %v19271_v42  ;;  %v11768_v46 = vmax.f32 %v11704_v20, %v19273_v31  ;;  %v19407_v0 = vld [vmem:[#allocation4 + $0x229] sm:$0xff]  ;;  %v19409_v50 = vld [vmem:[#allocation4 + $0x231] sm:$0xff] }
 0x5ad   : > { %14778 = vmatmul.mubr.msk.bf16.gmra.mrb[92].mxu1 %vm381_vm1, %v18974_v56  ;;  %v11829_v56 = vmax.f32 %v11765_v54, %v19279_v57  ;;  %v11893_v54 = vmax.f32 %v11828_v6, %v19247_v60  ;;  %v19412_v30 = vmax.f32 %v11953_v8, %v19220_v1  ;;  %v11956_v7 = vmax.f32 %v11892_v11, %v19249_v9  ;;  %v19438_v20 = vld [vmem:[#allocation4 + $0x24f] sm:$0xff] }
 0x5ae   : > { %15395 = vmatprep.mubr.msk.bf16.mxu1 %vm381_vm1, %v12042_v58  ;;  %v11579_v58 = vmax.f32 %v19342_v29, %v19357_v44  ;;  %v11895_v52 = vmax.f32 %v11830_v37, %v19295_v36  ;;  %v11769_v4 = vmax.f32 %v11705_v17, %v19357_v44  ;;  %v11770_v60 = vmax.f32 %v11706_v62, %v19359_v47  ;;  %v19429_v36 = vld [vmem:[#allocation4 + $0x247] sm:$0xff] }
 0x5af   : > { %v11894_v53 = vmax.f32 %v11829_v56, %v19293_v48  ;;  %v11644_v10 = vmax.f32 %v11580_v32, %v19395_v49  ;;  %v20544_v1 = vpack.c.bf16 %v19204_v61, %v19194_v23  ;;  %v10973_v9 = vpack.c.bf16 %v19401_v39, %v19387_v40  ;;  %v19440_v11 = vld [vmem:[#allocation4 + $0x248] sm:$0xff] }
 0x5b0   : > { %v11643_v12 = vmax.f32 %v11579_v58, %v19393_v41  ;;  %v12018_v48 = vmax.f32 %v11954_v34, %v19231_v14  ;;  %v11646_v8 = vmax.f32 %v11582_v5, %v19409_v50  ;;  %v12019_v6 = vmax.f32 %v11955_v15, %v19233_v45  ;;  %v19442_v14 = vld [vmem:[#allocation4 + $0x250] sm:$0xff]  ;;  %v19456_v32 = vld [vmem:[#allocation4 + $0x268] sm:$0xff] }
 0x5b1   : > { %v11957_v24 = vmax.f32 %v11893_v54, %v19251_v19  ;;  %v11831_v23 = vmax.f32 %v11767_v2, %v19320_v21  ;;  %v11832_v61 = vmax.f32 %v11768_v46, %v19322_v43  ;;  %v12045_v56 = vpack.c.bf16 %v19412_v30, %v19390_v25  ;;  %v19460_v40 = vld [vmem:[#allocation3 + $0x1aa] sm:$0xff]  ;;  %v10946_v30 = vld [vmem:[#allocation3 + $0x1b2] sm:$0xff] }
 0x5b2   : > { %v11958_v45 = vmax.f32 %v11894_v53, %v19271_v42  ;;  %v11959_v19 = vmax.f32 %v11895_v52, %v19273_v31  ;;  %v11833_v37 = vmax.f32 %v11769_v4, %v19393_v41  ;;  %v11834_v17 = vmax.f32 %v11770_v60, %v19395_v49  ;;  %v19475_v54 = vld [vmem:[#allocation4 + $0x251] sm:$0xff]  ;;  %v19477_v2 = vld [vmem:[#allocation4 + $0x267] sm:$0xff] }
 0x5b3   : > { %15356 = vmatmul.mubr.msk.bf16.gmra.mrb[28].mxu0 %vm381_vm1, %v10692_v59  ;;  %v11645_v59 = vmax.f32 %v11581_v16, %v19407_v0  ;;  %v11707_v62 = vmax.f32 %v11643_v12, %v19379_v3  ;;  %v11708_v58 = vmax.f32 %v11644_v10, %v19381_v22  ;;  %v11710_v31 = vmax.f32 %v11646_v8, %v19438_v20  ;;  %v19479_v46 = vld [vmem:[#allocation4 + $0x26f] sm:$0xff] }
 0x5b4   : > { %15361 = vmatprep.mubr.msk.bf16.mxu0 %vm381_vm1, %v20544_v1  ;;  %v11583_v25 = vmax.f32 %v19429_v36, %v19440_v11  ;;  %v11584_v34 = vmax.f32 %v19438_v20, %v19442_v14  ;;  %v12046_v16 = vpack.c.bf16 %v12019_v6, %v12018_v48  ;;  %v19471_v5 = vmax.f32 %v11957_v24, %v19289_v13  ;;  %v19483_v53 = vld [vmem:[#allocation3 + $0x1d2] sm:$0xff]  ;;  %v19503_v12 = vld [vmem:[#allocation4 + $0x269] sm:$0xff] }
 0x5b5   : > { %15396 = vmatmul.mubr.msk.bf16.vlgmr.msra.gmra.mrb[96].mxu1 %vm381_vm1, %v12043_v51  ;;  %v19448_v51 = vmax.f32 %v11956_v7, %v19279_v57  ;;  %v19462_v57 = vld [vmem:[#allocation4 + $0x249] sm:$0xff]  ;;  %v11709_v42 = vmax.f32 %v11645_v59, %v19429_v36  ;;  %v11896_v39 = vmax.f32 %v11831_v23, %v19342_v29  ;;  %v11897_v15 = vmax.f32 %v11832_v61, %v19355_v35  ;;  %v19505_v10 = vld [vmem:[#allocation4 + $0x271] sm:$0xff] }
 0x5b6   : > { %15399 = vmatprep.mubr.msk.bf16.mxu1 %vm381_vm1, %v12044_v33  ;;  %v19458_v33 = vld [vmem:[#allocation4 + $0x270] sm:$0xff]  ;;  %v19486_v52 = vmax.f32 %v11958_v45, %v19320_v21  ;;  %v19489_v13 = vmax.f32 %v11959_v19, %v19322_v43  ;;  %v11585_v29 = vmax.f32 %v19477_v2, %v19456_v32  ;;  %v11898_v4 = vmax.f32 %v11833_v37, %v19379_v3  ;;  %v19527_v23 = vld [vmem:[#allocation4 + $0x288] sm:$0xff] }
 0x5b7   : > { %v19481_v7 = vld [vmem:[#allocation3 + $0x1ca] sm:$0xff]  ;;  %v11586_v35 = vmax.f32 %v19479_v46, %v19458_v33  ;;  %v11899_v60 = vmax.f32 %v11834_v17, %v19381_v22  ;;  %v11771_v21 = vmax.f32 %v11707_v62, %v19367_v26  ;;  %v11772_v43 = vmax.f32 %v11708_v58, %v19369_v63  ;;  %v19543_v58 = vld [vmem:[#allocation3 + $0x1f2] sm:$0xff] }
 0x5b8   : > { %v11773_v1 = vmax.f32 %v11709_v42, %v19440_v11  ;;  %v11774_v38 = vmax.f32 %v11710_v31, %v19442_v14  ;;  %v11647_v28 = vmax.f32 %v11583_v25, %v19462_v57  ;;  %v10974_v3 = vpack.c.bf16 %v10946_v30, %v19460_v40  ;;  %v19525_v24 = vld [vmem:[#allocation4 + $0x28f] sm:$0xff] }
 0x5b9   : > { %v10975_v22 = vpack.c.bf16 %v19483_v53, %v19481_v7  ;;  %v11960_v48 = vmax.f32 %v11896_v39, %v19357_v44  ;;  %v11961_v59 = vmax.f32 %v11897_v15, %v19359_v47  ;;  %v12047_v8 = vpack.c.bf16 %v19471_v5, %v19448_v51  ;;  %v19529_v61 = vld [vmem:[#allocation4 + $0x290] sm:$0xff]  ;;  %v19537_v37 = vld [vmem:[#allocation4 + $0x2a8] sm:$0xff] }
 0x5ba   : > { %v12048_v6 = vpack.c.bf16 %v19489_v13, %v19486_v52  ;;  %v11649_v44 = vmax.f32 %v11585_v29, %v19503_v12  ;;  %v11650_v47 = vmax.f32 %v11586_v35, %v19505_v10  ;;  %v11963_v45 = vmax.f32 %v11899_v60, %v19369_v63  ;;  %v19539_v17 = vld [vmem:[#allocation4 + $0x2b0] sm:$0xff] }
 0x5bb   : > { %15362 = vmatmul.mubr.msk.bf16.vlgmr.msra.gmra.mrb[0].mxu0 %vm381_vm1, %v10972_v55  ;;  %v11648_v55 = vmax.f32 %v11584_v34, %v19475_v54  ;;  %v11835_v19 = vmax.f32 %v11771_v21, %v19407_v0  ;;  %v11836_v51 = vmax.f32 %v11772_v43, %v19409_v50  ;;  %v19541_v62 = vld [vmem:[#allocation3 + $0x1ea] sm:$0xff]  ;;  %v11837_v40 = vmax.f32 %v11773_v1, %v19462_v57  ;;  %v10952_v30 = vld [vmem:[#allocation3 + $0x212] sm:$0xff] }
 0x5bc   : > { %15365 = vmatprep.mubr.msk.bf16.mxu0 %vm381_vm1, %v10973_v9  ;;  %v19518_v9 = vld [vmem:[#allocation4 + $0x287] sm:$0xff]  ;;  %v11838_v42 = vmax.f32 %v11774_v38, %v19475_v54  ;;  %v19552_v25 = vmax.f32 %v11960_v48, %v19393_v41  ;;  %v19555_v34 = vmax.f32 %v11961_v59, %v19395_v49  ;;  %v19559_v5 = vld [vmem:[#allocation4 + $0x2af] sm:$0xff]  ;;  %v11588_v15 = vmax.f32 %v19525_v24, %v19529_v61 }
 0x5bd   : > { %15400 = vmatmul.mubr.msk.bf16.gmra.mrb[100].mxu1 %vm381_vm1, %v12045_v56  ;;  %v11962_v56 = vmax.f32 %v11898_v4, %v19367_v26  ;;  %v11711_v26 = vmax.f32 %v11647_v28, %v19477_v2  ;;  %v11712_v63 = vmax.f32 %v11648_v55, %v19479_v46  ;;  %v19549_v31 = vld [vmem:[#allocation3 + $0x20a] sm:$0xff]  ;;  %v11587_v39 = vmax.f32 %v19518_v9, %v19527_v23 }
 0x5be   : > { %15403 = vmatprep.mubr.msk.bf16.mxu1 %vm381_vm1, %v12046_v16  ;;  %v19557_v16 = vld [vmem:[#allocation4 + $0x2a7] sm:$0xff]  ;;  %v19567_v53 = vld [vmem:[#allocation4 + $0x291] sm:$0xff]  ;;  %v11713_v41 = vmax.f32 %v11649_v44, %v19518_v9  ;;  %v11714_v49 = vmax.f32 %v11650_v47, %v19525_v24  ;;  %v11590_v13 = vmax.f32 %v19559_v5, %v19539_v17  ;;  %v12027_v35 = vmax.f32 %v11963_v45, %v19409_v50 }
 0x5bf   : > { %v19565_v7 = vld [vmem:[#allocation4 + $0x289] sm:$0xff]  ;;  %v11589_v52 = vmax.f32 %v19557_v16, %v19537_v37  ;;  %v12026_v29 = vmax.f32 %v11962_v56, %v19407_v0  ;;  %v11900_v4 = vmax.f32 %v11835_v19, %v19429_v36  ;;  %v11901_v60 = vmax.f32 %v11836_v51, %v19438_v20  ;;  %v19582_v43 = vld [vmem:[#allocation4 + $0x2b1] sm:$0xff] }
 0x5c0   : > { %v19580_v21 = vld [vmem:[#allocation4 + $0x2a9] sm:$0xff]  ;;  %v11902_v1 = vmax.f32 %v11837_v40, %v19477_v2  ;;  %v11903_v38 = vmax.f32 %v11838_v42, %v19479_v46  ;;  %v11775_v28 = vmax.f32 %v11711_v26, %v19456_v32  ;;  %v11776_v0 = vmax.f32 %v11712_v63, %v19458_v33 }
 0x5c1   : > { %v10976_v50 = vpack.c.bf16 %v19543_v58, %v19541_v62  ;;  %v10977_v36 = vpack.c.bf16 %v10952_v30, %v19549_v31  ;;  %v11651_v20 = vmax.f32 %v11587_v39, %v19565_v7  ;;  %v11652_v55 = vmax.f32 %v11588_v15, %v19567_v53  ;;  %v19602_v48 = vld [vmem:[#allocation4 + $0x2c8] sm:$0xff]  ;;  %v19604_v59 = vld [vmem:[#allocation4 + $0x2d0] sm:$0xff] }
 0x5c2   : > { %v11777_v2 = vmax.f32 %v11713_v41, %v19527_v23  ;;  %v11778_v46 = vmax.f32 %v11714_v49, %v19529_v61  ;;  %v11654_v44 = vmax.f32 %v11590_v13, %v19582_v43  ;;  %v12049_v47 = vpack.c.bf16 %v19555_v34, %v19552_v25  ;;  %v19624_v63 = vld [vmem:[#allocation4 + $0x2c9] sm:$0xff]  ;;  %v10954_v30 = vld [vmem:[#allocation3 + $0x232] sm:$0xff] }
 0x5c3   : > { %15366 = vmatmul.mubr.msk.bf16.gmra.mrb[4].mxu0 %vm381_vm1, %v10974_v3  ;;  %v19595_v3 = vld [vmem:[#allocation4 + $0x2c7] sm:$0xff]  ;;  %v12050_v56 = vpack.c.bf16 %v12027_v35, %v12026_v29  ;;  %v11965_v45 = vmax.f32 %v11901_v60, %v19442_v14  ;;  %v11966_v19 = vmax.f32 %v11902_v1, %v19456_v32  ;;  %v11967_v51 = vmax.f32 %v11903_v38, %v19458_v33  ;;  %v19626_v33 = vld [vmem:[#allocation4 + $0x2d1] sm:$0xff] }
 0x5c4   : > { %15369 = vmatprep.mubr.msk.bf16.mxu0 %vm381_vm1, %v10975_v22  ;;  %v19600_v22 = vld [vmem:[#allocation4 + $0x2cf] sm:$0xff]  ;;  %v11839_v62 = vmax.f32 %v11775_v28, %v19503_v12  ;;  %v11840_v58 = vmax.f32 %v11776_v0, %v19505_v10  ;;  %v11715_v40 = vmax.f32 %v11651_v20, %v19557_v16  ;;  %v11716_v42 = vmax.f32 %v11652_v55, %v19559_v5  ;;  %v11878_v1 = vld [vmem:[#allocation4 + $0x2e7] sm:$0xff] }
 0x5c5   : > { %15404 = vmatmul.mubr.msk.bf16.gmra.mrb[104].mxu1 %vm381_vm1, %v12047_v8  ;;  %v11653_v8 = vmax.f32 %v11589_v52, %v19580_v21  ;;  %v11591_v26 = vmax.f32 %v19595_v3, %v19602_v48  ;;  %v11841_v14 = vmax.f32 %v11777_v2, %v19565_v7  ;;  %v11842_v32 = vmax.f32 %v11778_v46, %v19567_v53  ;;  %v10953_v34 = vld [vmem:[#allocation3 + $0x22a] sm:$0xff]  ;;  %v10956_v49 = vld [vmem:[#allocation3 + $0x252] sm:$0xff] }
 0x5c6   : > { %15407 = vmatprep.mubr.msk.bf16.mxu1 %vm381_vm1, %v12048_v6  ;;  %v11964_v6 = vmax.f32 %v11900_v4, %v19440_v11  ;;  %v11592_v11 = vmax.f32 %v19600_v22, %v19604_v59  ;;  %v11718_v25 = vmax.f32 %v11654_v44, %v19600_v22  ;;  %v12029_v15 = vmax.f32 %v11965_v45, %v19475_v54  ;;  %v10955_v41 = vld [vmem:[#allocation3 + $0x24a] sm:$0xff] }
 0x5c7   : > { %v11717_v31 = vmax.f32 %v11653_v8, %v19595_v3  ;;  %v12030_v52 = vmax.f32 %v11966_v19, %v19503_v12  ;;  %v12031_v13 = vmax.f32 %v11967_v51, %v19505_v10  ;;  %v11904_v29 = vmax.f32 %v11839_v62, %v19518_v9  ;;  %v11879_v38 = vld [vmem:[#allocation4 + $0x2ef] sm:$0xff] }
 0x5c8   : > { %v12028_v39 = vmax.f32 %v11964_v6, %v19462_v57  ;;  %v11905_v35 = vmax.f32 %v11840_v58, %v19525_v24  ;;  %v11779_v4 = vmax.f32 %v11715_v40, %v19537_v37  ;;  %v11780_v57 = vmax.f32 %v11716_v42, %v19539_v17  ;;  %v11942_v6 = vld [vmem:[#allocation4 + $0x2e8] sm:$0xff]  ;;  %v11943_v45 = vld [vmem:[#allocation4 + $0x2f0] sm:$0xff] }
 0x5c9   : > { %v11655_v54 = vmax.f32 %v11591_v26, %v19624_v63  ;;  %v11656_v60 = vmax.f32 %v11592_v11, %v19626_v33  ;;  %v11906_v12 = vmax.f32 %v11841_v14, %v19557_v16  ;;  %v11907_v10 = vmax.f32 %v11842_v32, %v19559_v5  ;;  %v10957_v19 = vld [vmem:[#allocation3 + $0x26a] sm:$0xff]  ;;  %v10960_v32 = vld [vmem:[#allocation3 + $0x292] sm:$0xff] }
 0x5ca   : > { %v11781_v9 = vmax.f32 %v11717_v31, %v19602_v48  ;;  %v11782_v24 = vmax.f32 %v11718_v25, %v19604_v59  ;;  %v10978_v28 = vpack.c.bf16 %v10954_v30, %v10953_v34  ;;  %v10979_v0 = vpack.c.bf16 %v10956_v49, %v10955_v41  ;;  %v12006_v11 = vld [vmem:[#allocation4 + $0x2e9] sm:$0xff] }
 0x5cb   : > { %15370 = vmatmul.mubr.msk.bf16.gmra.mrb[8].mxu0 %vm381_vm1, %v10976_v50  ;;  %v12051_v50 = vpack.c.bf16 %v12029_v15, %v12028_v39  ;;  %v11968_v20 = vmax.f32 %v11904_v29, %v19527_v23  ;;  %v11969_v55 = vmax.f32 %v11905_v35, %v19529_v61  ;;  %v11843_v2 = vmax.f32 %v11779_v4, %v19580_v21  ;;  %v10959_v14 = vld [vmem:[#allocation3 + $0x28a] sm:$0xff]  ;;  %v10962_v35 = vld [vmem:[#allocation3 + $0x2b2] sm:$0xff] }
 0x5cc   : > { %15373 = vmatprep.mubr.msk.bf16.mxu0 %vm381_vm1, %v10977_v36  ;;  %v12052_v36 = vpack.c.bf16 %v12031_v13, %v12030_v52  ;;  %v11844_v16 = vmax.f32 %v11780_v57, %v19582_v43  ;;  %v11719_v46 = vmax.f32 %v11655_v54, %v11878_v1  ;;  %v11720_v5 = vmax.f32 %v11656_v60, %v11879_v38  ;;  %v11880_v49 = vld [vmem:[#allocation4 + $0x307] sm:$0xff]  ;;  %v11945_v60 = vld [vmem:[#allocation4 + $0x310] sm:$0xff] }
 0x5cd   : > { %15408 = vmatmul.mubr.msk.bf16.gmra.mrb[108].mxu1 %vm381_vm1, %v12049_v47  ;;  %v11970_v8 = vmax.f32 %v11906_v12, %v19537_v37  ;;  %v11971_v44 = vmax.f32 %v11907_v10, %v19539_v17  ;;  %v11845_v47 = vmax.f32 %v11781_v9, %v19624_v63  ;;  %v12032_v23 = vmax.f32 %v11968_v20, %v19565_v7  ;;  %v10958_v37 = vld [vmem:[#allocation3 + $0x272] sm:$0xff]  ;;  %v10961_v52 = vld [vmem:[#allocation3 + $0x2aa] sm:$0xff] }
 0x5ce   : > { %15411 = vmatprep.mubr.msk.bf16.mxu1 %vm381_vm1, %v12050_v56  ;;  %v11846_v56 = vmax.f32 %v11782_v24, %v19626_v33  ;;  %v12033_v61 = vmax.f32 %v11969_v55, %v19567_v53  ;;  %v11908_v17 = vmax.f32 %v11843_v2, %v19595_v3  ;;  %v11909_v51 = vmax.f32 %v11844_v16, %v19600_v22  ;;  %v12007_v53 = vld [vmem:[#allocation4 + $0x2f1] sm:$0xff]  ;;  %v11944_v54 = vld [vmem:[#allocation4 + $0x308] sm:$0xff] }
 0x5cf   : > { %v11783_v62 = vmax.f32 %v11719_v46, %v11942_v6  ;;  %v11784_v58 = vmax.f32 %v11720_v5, %v11943_v45  ;;  %v12034_v40 = vmax.f32 %v11970_v8, %v19580_v21  ;;  %v12035_v42 = vmax.f32 %v11971_v44, %v19582_v43  ;;  %v11881_v43 = vld [vmem:[#allocation4 + $0x30f] sm:$0xff] }
 0x5d0   : > { %v11910_v26 = vmax.f32 %v11845_v47, %v11878_v1  ;;  %v11911_v7 = vmax.f32 %v11846_v56, %v11879_v38  ;;  %v10980_v31 = vpack.c.bf16 %v10958_v37, %v10957_v19  ;;  %v12053_v25 = vpack.c.bf16 %v12033_v61, %v12032_v23  ;;  %v10963_v12 = vld [vmem:[#allocation3 + $0x2ca] sm:$0xff]  ;;  %v10964_v10 = vld [vmem:[#allocation3 + $0x2d2] sm:$0xff] }
 0x5d1   : > { %v11972_v3 = vmax.f32 %v11908_v17, %v19602_v48  ;;  %v11973_v22 = vmax.f32 %v11909_v51, %v19604_v59  ;;  %v11847_v34 = vmax.f32 %v11783_v62, %v12006_v11  ;;  %v11848_v39 = vmax.f32 %v11784_v58, %v12007_v53  ;;  %v10967_v20 = vld [vmem:[#allocation3 + $0x30a] sm:$0xff]  ;;  %v10968_v55 = vld [vmem:[#allocation3 + $0x312] sm:$0xff] }
 0x5d2   : > { %v10981_v15 = vpack.c.bf16 %v10960_v32, %v10959_v14  ;;  %v12054_v30 = vpack.c.bf16 %v12035_v42, %v12034_v40  ;;  %v11974_v41 = vmax.f32 %v11910_v26, %v11942_v6  ;;  %v11975_v21 = vmax.f32 %v11911_v7, %v11943_v45  ;;  %v10965_v2 = vld [vmem:[#allocation3 + $0x2ea] sm:$0xff]  ;;  %v10966_v16 = vld [vmem:[#allocation3 + $0x2f2] sm:$0xff] }
 0x5d3   : > { %15374 = vmatmul.mubr.msk.bf16.gmra.mrb[12].mxu0 %vm381_vm1, %v10978_v28  ;;  %v12036_v13 = vmax.f32 %v11972_v3, %v19624_v63  ;;  %v12037_v48 = vmax.f32 %v11973_v22, %v19626_v33  ;;  %v11912_v59 = vmax.f32 %v11847_v34, %v11880_v49  ;;  %v11913_v29 = vmax.f32 %v11848_v39, %v11881_v43  ;;  %v12008_v63 = vld [vmem:[#allocation4 + $0x309] sm:$0xff]  ;;  %v10970_v47 = vld [vmem:[#allocation3 + $0x332] sm:$0xff] }
 0x5d4   : > { %15377 = vmatprep.mubr.msk.bf16.mxu0 %vm381_vm1, %v10979_v0  ;;  %v12038_v4 = vmax.f32 %v11974_v41, %v12006_v11  ;;  %v12039_v57 = vmax.f32 %v11975_v21, %v12007_v53  ;;  %v10982_v9 = vpack.c.bf16 %v10962_v35, %v10961_v52  ;;  %v10983_v28 = vpack.c.bf16 %v10964_v10, %v10963_v12  ;;  %v10969_v44 = vld [vmem:[#allocation3 + $0x32a] sm:$0xff]  ;;  %v19734_v52 = vpop.permute.xlu0 %11233 }
 0x5d5   : > { %15412 = vmatmul.mubr.msk.bf16.gmra.mrb[112].mxu1 %vm381_vm1, %v12051_v50  ;;  %v12055_v24 = vpack.c.bf16 %v12037_v48, %v12036_v13  ;;  %v11976_v1 = vmax.f32 %v11912_v59, %v11944_v54  ;;  %v11977_v38 = vmax.f32 %v11913_v29, %v11945_v60  ;;  %v12009_v50 = vld [vmem:[#allocation4 + $0x311] sm:$0xff]  ;;  %v10985_v46 = vpack.c.bf16 %v10968_v55, %v10967_v20 }
 0x5d6   : > { %15415 = vmatprep.mubr.msk.bf16.mxu1 %vm381_vm1, %v12052_v36  ;;  %v12056_v0 = vpack.c.bf16 %v12039_v57, %v12038_v4  ;;  %v10984_v5 = vpack.c.bf16 %v10966_v16, %v10965_v2  ;;  %v10986_v56 = vpack.c.bf16 %v10970_v47, %v10969_v44 }
 0x5d7   : > { %v12040_v33 = vmax.f32 %v11976_v1, %v12008_v63  ;;  %v12041_v36 = vmax.f32 %v11977_v38, %v12009_v50 }
 0x5d8   : > { %v19740_v59 = vpop.permute.xlu0 %12271 }
 0x5d9   : > { %v12057_v8 = vpack.c.bf16 %v12041_v36, %v12040_v33 }
 0x5db   : > { %15378 = vmatmul.mubr.msk.bf16.gmra.mrb[16].mxu0 %vm381_vm1, %v10980_v31 }
 0x5dc   : > { %15381 = vmatprep.mubr.msk.bf16.mxu0 %vm381_vm1, %v10981_v15 }
 0x5dd   : > { %15416 = vmatmul.mubr.msk.bf16.gmra.mrb[116].mxu1 %vm381_vm1, %v12053_v25 }
 0x5de   : > { %15419 = vmatprep.mubr.msk.bf16.mxu1 %vm381_vm1, %v12054_v30 }
 0x5e3   : > { %15382 = vmatmul.mubr.msk.bf16.gmra.mrb[20].mxu0 %vm381_vm1, %v10982_v9 }
 0x5e4   : > { %15385 = vmatprep.mubr.msk.bf16.mxu0 %vm381_vm1, %v10983_v28 }
 0x5e5   : > { %15420 = vmatmul.mubr.msk.bf16.gmra.mrb[120].mxu1 %vm381_vm1, %v12055_v24 }
 0x5e6   : > { %15423 = vmatprep.mubr.msk.bf16.mxu1 %vm381_vm1, %v12056_v0 }
 0x5eb   : > { %15386 = vmatmul.mubr.msk.bf16.gmra.mrb[24].mxu0 %vm381_vm1, %v10984_v5 }
 0x5ec   : > { %15389 = vmatprep.mubr.msk.bf16.mxu0 %vm381_vm1, %v10985_v46 }
 0x5ed   : > { %15424 = vmatmul.mubr.msk.bf16.gmra.mrb[124].mxu1 %vm381_vm1, %v12057_v8 }
 0x5f3   : > { %15390 = vmatmul.mubr.msk.bf16.gmra.mrb[28].mxu0 %vm381_vm1, %v10986_v56 }
 0x648   : > { %v14751_v6 = vpop.f32.mrb[64].mxu1 }
 0x649   : > { %v5780_v45 = vpop.f32.mrb[65].mxu1 }
 0x64a   : > { %v14752_v23 = vpop.f32.mrb[66].mxu1 }
 0x64b   : > { %v5783_v61 = vpop.f32.mrb[67].mxu1 }
 0x650   : > { %v19682_v19 = vpop.f32.mrb[68].mxu1 }
 0x651   : > { %v19684_v37 = vpop.f32.mrb[69].mxu1 }
 0x652   : > { %v19686_v17 = vpop.f32.mrb[70].mxu1 }
 0x653   : > { %v19688_v51 = vpop.f32.mrb[71].mxu1 }
 0x658   : > { %v19690_v62 = vpop.f32.mrb[72].mxu1 }
 0x659   : > { %v19692_v58 = vpop.f32.mrb[73].mxu1 }
 0x65a   : > { %v19694_v40 = vpop.f32.mrb[74].mxu1 }
 0x65b   : > { %v19696_v42 = vpop.f32.mrb[75].mxu1 }
 0x660   : > { %v19698_v26 = vpop.f32.mrb[76].mxu1 }
 0x661   : > { %v19700_v7 = vpop.f32.mrb[77].mxu1 }
 0x662   : > { %v19702_v11 = vpop.f32.mrb[78].mxu1 }
 0x663   : > { %v19704_v53 = vpop.f32.mrb[79].mxu1 }
 0x668   : > { %v19706_v14 = vpop.f32.mrb[80].mxu1 }
 0x669   : > { %v19708_v32 = vpop.f32.mrb[81].mxu1 }
 0x66a   : > { %v19710_v31 = vpop.f32.mrb[82].mxu1 }
 0x66b   : > { %v19712_v25 = vpop.f32.mrb[83].mxu1 }
 0x670   : > { %v19714_v3 = vpop.f32.mrb[84].mxu1 }
 0x671   : > { %v19716_v22 = vpop.f32.mrb[85].mxu1 }
 0x672   : > { %v19718_v34 = vpop.f32.mrb[86].mxu1 }
 0x673   : > { %v19720_v39 = vpop.f32.mrb[87].mxu1 }
 0x678   : > { %v19722_v15 = vpop.f32.mrb[88].mxu1 }
 0x679   : > { %v19724_v30 = vpop.f32.mrb[89].mxu1 }
 0x67a   : > { %v19726_v41 = vpop.f32.mrb[90].mxu1 }
 0x67b   : > { %v19728_v21 = vpop.f32.mrb[91].mxu1 }
 0x680   : > { %v19730_v49 = vpop.f32.mrb[92].mxu1 }
 0x681   : > { %v19732_v43 = vpop.f32.mrb[93].mxu1 }
 0x682   : > { %v19736_v13 = vpop.f32.mrb[94].mxu1 }
 0x683   : > { %v19738_v48 = vpop.f32.mrb[95].mxu1 }
 0x688   : > { %v15397_v29 = vpop.f32.mrb[96].mxu1 }
 0x689   : > { %v12276_v35 = vmul.f32 %v15397_v29, %v19740_v59  ;;  %v12144_v4 = vpop.f32.mrb[97].mxu1 }
 0x68a   : > { %v12274_v57 = vmul.f32 %v19740_v59, %v12144_v4  ;;  %v15398_v54 = vpop.f32.mrb[98].mxu1 }
 0x68b   : > { %v12311_v60 = vadd.f32 %v18902_v18, %v12276_v35  ;;  %v12277_v12 = vmul.f32 %v15398_v54, %v19740_v59  ;;  %v12147_v10 = vpop.f32.mrb[99].mxu1 }
 0x68c   : > { %v12275_v9 = vmul.f32 %v19740_v59, %v12147_v10  ;;  %v12309_v1 = vadd.f32 %v18902_v18, %v12274_v57 }
 0x68d   : > { %v12343_v24 = vmax.f32 %v12311_v60, 0.0  ;;  %v12312_v38 = vadd.f32 %v18902_v18, %v12277_v12  ;;  %v19769_v60 = vpop.permute.xlu0 %12409 }
 0x68e   : > { %v15363_v28 = vpop.f32.mrb[0].mxu0  ;;  %v12310_v63 = vadd.f32 %v18902_v18, %v12275_v9  ;;  %v12341_v2 = vmax.f32 %v12309_v1, 0.0 }
 0x68f   : > { %v12344_v0 = vmax.f32 %v12312_v38, 0.0  ;;  %v19750_v50 = vadd.f32 %v15363_v28, %v14751_v6  ;;  %v11074_v33 = vpop.f32.mrb[1].mxu0  ;;  %12665 = vrot.lane.b32.xlu0 %v12343_v24, %s16605_s16 }
 0x690   : > { %v19753_v36 = vadd.f32 %v11074_v33, %v5780_v45  ;;  %v15364_v20 = vpop.f32.mrb[2].mxu0  ;;  %v15401_v55 = vpop.f32.mrb[100].mxu1  ;;  %v12342_v6 = vmax.f32 %v12310_v63, 0.0 }
 0x691   : > { %v19755_v16 = vadd.f32 %v15364_v20, %v14752_v23  ;;  %v12280_v46 = vmul.f32 %v15401_v55, %v19740_v59  ;;  %v11077_v5 = vpop.f32.mrb[3].mxu0  ;;  %v12160_v8 = vpop.f32.mrb[101].mxu1  ;;  %12667 = vrot.lane.b32.xlu1 %v12344_v0, %s16605_s16 }
 0x692   : > { %v19759_v44 = vadd.f32 %v11077_v5, %v5783_v61  ;;  %v12278_v47 = vmul.f32 %v19740_v59, %v12160_v8  ;;  %v15402_v56 = vpop.f32.mrb[102].mxu1 }
 0x693   : > { %v12315_v45 = vadd.f32 %v18902_v18, %v12280_v46  ;;  %v12281_v29 = vmul.f32 %v15402_v56, %v19740_v59  ;;  %v12163_v35 = vpop.f32.mrb[103].mxu1  ;;  %12661 = vrot.lane.b32.xlu0 %v12341_v2, %s16605_s16 }
 0x694   : > { %v12279_v23 = vmul.f32 %v19740_v59, %v12163_v35  ;;  %v12313_v57 = vadd.f32 %v18902_v18, %v12278_v47 }
 0x695   : > { %v12347_v4 = vmax.f32 %v12315_v45, 0.0  ;;  %v12316_v54 = vadd.f32 %v18902_v18, %v12281_v29  ;;  %12663 = vrot.lane.b32.xlu1 %v12342_v6, %s16605_s16  ;;  %v19795_v29 = vpop.permute.xlu0 %12405 }
 0x696   : > { %v15367_v61 = vpop.f32.mrb[4].mxu0  ;;  %v12314_v10 = vadd.f32 %v18902_v18, %v12279_v23  ;;  %v12345_v0 = vmax.f32 %v12313_v57, 0.0 }
 0x697   : > { %v12348_v12 = vmax.f32 %v12316_v54, 0.0  ;;  %v19773_v9 = vadd.f32 %v15367_v61, %v19682_v19  ;;  %v11090_v24 = vpop.f32.mrb[5].mxu0  ;;  %12673 = vrot.lane.b32.xlu0 %v12347_v4, %s16605_s16 }
 0x698   : > { %v19777_v1 = vadd.f32 %v11090_v24, %v19684_v37  ;;  %v15368_v38 = vpop.f32.mrb[6].mxu0  ;;  %v15405_v28 = vpop.f32.mrb[104].mxu1  ;;  %v12346_v37 = vmax.f32 %v12314_v10, 0.0 }
 0x699   : > { %v19780_v63 = vadd.f32 %v15368_v38, %v19686_v17  ;;  %v12284_v33 = vmul.f32 %v15405_v28, %v19740_v59  ;;  %v11093_v20 = vpop.f32.mrb[7].mxu0  ;;  %v12176_v55 = vpop.f32.mrb[105].mxu1  ;;  %12675 = vrot.lane.b32.xlu1 %v12348_v12, %s16605_s16 }
 0x69a   : > { %v19785_v19 = vadd.f32 %v11093_v20, %v19688_v51  ;;  %v12282_v2 = vmul.f32 %v19740_v59, %v12176_v55  ;;  %v15406_v46 = vpop.f32.mrb[106].mxu1 }
 0x69b   : > { %v12319_v5 = vadd.f32 %v18902_v18, %v12284_v33  ;;  %v12285_v8 = vmul.f32 %v15406_v46, %v19740_v59  ;;  %v12179_v47 = vpop.f32.mrb[107].mxu1  ;;  %12669 = vrot.lane.b32.xlu0 %v12345_v0, %s16605_s16 }
 0x69c   : > { %v12283_v17 = vmul.f32 %v19740_v59, %v12179_v47  ;;  %v12317_v6 = vadd.f32 %v18902_v18, %v12282_v2  ;;  %v19821_v47 = vpop.permute.xlu0 %12417 }
 0x69d   : > { %v12351_v56 = vmax.f32 %v12319_v5, 0.0  ;;  %v12320_v45 = vadd.f32 %v18902_v18, %v12285_v8  ;;  %12671 = vrot.lane.b32.xlu1 %v12346_v37, %s16605_s16 }
 0x69e   : > { %v15371_v51 = vpop.f32.mrb[8].mxu0  ;;  %v12318_v23 = vadd.f32 %v18902_v18, %v12283_v17  ;;  %v12349_v10 = vmax.f32 %v12317_v6, 0.0 }
 0x69f   : > { %v12352_v35 = vmax.f32 %v12320_v45, 0.0  ;;  %v19799_v4 = vadd.f32 %v15371_v51, %v19690_v62  ;;  %v11106_v57 = vpop.f32.mrb[9].mxu0  ;;  %12681 = vrot.lane.b32.xlu0 %v12351_v56, %s16605_s16 }
 0x6a0   : > { %v19803_v54 = vadd.f32 %v11106_v57, %v19692_v58  ;;  %v15372_v61 = vpop.f32.mrb[10].mxu0  ;;  %v15409_v12 = vpop.f32.mrb[108].mxu1  ;;  %v12350_v58 = vmax.f32 %v12318_v23, 0.0 }
 0x6a1   : > { %v19806_v24 = vadd.f32 %v15372_v61, %v19694_v40  ;;  %v12288_v38 = vmul.f32 %v15409_v12, %v19740_v59  ;;  %v11109_v28 = vpop.f32.mrb[11].mxu0  ;;  %v12192_v0 = vpop.f32.mrb[109].mxu1  ;;  %12683 = vrot.lane.b32.xlu1 %v12352_v35, %s16605_s16 }
 0x6a2   : > { %v19811_v62 = vadd.f32 %v11109_v28, %v19696_v42  ;;  %v12286_v33 = vmul.f32 %v19740_v59, %v12192_v0  ;;  %v15410_v20 = vpop.f32.mrb[110].mxu1 }
 0x6a3   : > { %v12323_v55 = vadd.f32 %v18902_v18, %v12288_v38  ;;  %v12289_v2 = vmul.f32 %v15410_v20, %v19740_v59  ;;  %v12195_v46 = vpop.f32.mrb[111].mxu1  ;;  %12677 = vrot.lane.b32.xlu0 %v12349_v10, %s16605_s16 }
 0x6a4   : > { %v12287_v40 = vmul.f32 %v19740_v59, %v12195_v46  ;;  %v12321_v5 = vadd.f32 %v18902_v18, %v12286_v33 }
 0x6a5   : > { %v12355_v37 = vmax.f32 %v12323_v55, 0.0  ;;  %v12324_v8 = vadd.f32 %v18902_v18, %v12289_v2  ;;  %12679 = vrot.lane.b32.xlu1 %v12350_v58, %s16605_s16 }
 0x6a6   : > { %v15375_v42 = vpop.f32.mrb[12].mxu0  ;;  %v12322_v56 = vadd.f32 %v18902_v18, %v12287_v40  ;;  %v12353_v57 = vmax.f32 %v12321_v5, 0.0  ;;  %v19847_v40 = vpop.permute.xlu0 %12413 }
 0x6a7   : > { %v12356_v17 = vmax.f32 %v12324_v8, 0.0  ;;  %v19825_v6 = vadd.f32 %v15375_v42, %v19698_v26  ;;  %v11122_v45 = vpop.f32.mrb[13].mxu0  ;;  %12689 = vrot.lane.b32.xlu0 %v12355_v37, %s16605_s16 }
 0x6a8   : > { %v19829_v51 = vadd.f32 %v11122_v45, %v19700_v7  ;;  %v15376_v35 = vpop.f32.mrb[14].mxu0  ;;  %v15413_v23 = vpop.f32.mrb[112].mxu1  ;;  %v12354_v7 = vmax.f32 %v12322_v56, 0.0 }
 0x6a9   : > { %v19832_v61 = vadd.f32 %v15376_v35, %v19702_v11  ;;  %v12292_v12 = vmul.f32 %v15413_v23, %v19740_v59  ;;  %v11125_v10 = vpop.f32.mrb[15].mxu0  ;;  %v12208_v38 = vpop.f32.mrb[113].mxu1  ;;  %12691 = vrot.lane.b32.xlu1 %v12356_v17, %s16605_s16 }
 0x6aa   : > { %v19837_v26 = vadd.f32 %v11125_v10, %v19704_v53  ;;  %v12290_v28 = vmul.f32 %v19740_v59, %v12208_v38  ;;  %v15414_v0 = vpop.f32.mrb[114].mxu1 }
 0x6ab   : > { %v12327_v33 = vadd.f32 %v18902_v18, %v12292_v12  ;;  %v12293_v20 = vmul.f32 %v15414_v0, %v19740_v59  ;;  %v12211_v58 = vpop.f32.mrb[115].mxu1  ;;  %12685 = vrot.lane.b32.xlu0 %v12353_v57, %s16605_s16 }
 0x6ac   : > { %v12291_v11 = vmul.f32 %v19740_v59, %v12211_v58  ;;  %v12325_v2 = vadd.f32 %v18902_v18, %v12290_v28 }
 0x6ad   : > { %v12359_v55 = vmax.f32 %v12327_v33, 0.0  ;;  %v12328_v46 = vadd.f32 %v18902_v18, %v12293_v20  ;;  %12687 = vrot.lane.b32.xlu1 %v12354_v7, %s16605_s16 }
 0x6ae   : > { %v15379_v53 = vpop.f32.mrb[16].mxu0  ;;  %v12326_v5 = vadd.f32 %v18902_v18, %v12291_v11  ;;  %v12357_v35 = vmax.f32 %v12325_v2, 0.0 }
 0x6af   : > { %v12360_v37 = vmax.f32 %v12328_v46, 0.0  ;;  %v19851_v8 = vadd.f32 %v15379_v53, %v19706_v14  ;;  %v11138_v42 = vpop.f32.mrb[17].mxu0  ;;  %12697 = vrot.lane.b32.xlu0 %v12359_v55, %s16605_s16  ;;  %v19873_v55 = vpop.permute.xlu0 %12425 }
 0x6b0   : > { %v19855_v17 = vadd.f32 %v11138_v42, %v19708_v32  ;;  %v15380_v56 = vpop.f32.mrb[18].mxu0  ;;  %v15417_v45 = vpop.f32.mrb[116].mxu1  ;;  %v12358_v32 = vmax.f32 %v12326_v5, 0.0 }
 0x6b1   : > { %v19858_v23 = vadd.f32 %v15380_v56, %v19710_v31  ;;  %v12296_v57 = vmul.f32 %v15417_v45, %v19740_v59  ;;  %v11141_v12 = vpop.f32.mrb[19].mxu0  ;;  %v12224_v10 = vpop.f32.mrb[117].mxu1  ;;  %12699 = vrot.lane.b32.xlu1 %v12360_v37, %s16605_s16 }
 0x6b2   : > { %v19863_v14 = vadd.f32 %v11141_v12, %v19712_v25  ;;  %v12294_v38 = vmul.f32 %v19740_v59, %v12224_v10  ;;  %v15418_v28 = vpop.f32.mrb[118].mxu1 }
 0x6b3   : > { %v12331_v0 = vadd.f32 %v18902_v18, %v12296_v57  ;;  %v12297_v7 = vmul.f32 %v15418_v28, %v19740_v59  ;;  %v12227_v33 = vpop.f32.mrb[119].mxu1  ;;  %12693 = vrot.lane.b32.xlu0 %v12357_v35, %s16605_s16 }
 0x6b4   : > { %v12295_v31 = vmul.f32 %v19740_v59, %v12227_v33  ;;  %v12329_v58 = vadd.f32 %v18902_v18, %v12294_v38 }
 0x6b5   : > { %v12363_v20 = vmax.f32 %v12331_v0, 0.0  ;;  %v12332_v11 = vadd.f32 %v18902_v18, %v12297_v7  ;;  %12695 = vrot.lane.b32.xlu1 %v12358_v32, %s16605_s16 }
 0x6b6   : > { %v15383_v25 = vpop.f32.mrb[20].mxu0  ;;  %v12330_v46 = vadd.f32 %v18902_v18, %v12295_v31  ;;  %v12361_v45 = vmax.f32 %v12329_v58, 0.0  ;;  %v19899_v58 = vpop.permute.xlu0 %12421 }
 0x6b7   : > { %v12364_v2 = vmax.f32 %v12332_v11, 0.0  ;;  %v19877_v53 = vadd.f32 %v15383_v25, %v19714_v3  ;;  %v11154_v37 = vpop.f32.mrb[21].mxu0  ;;  %12705 = vrot.lane.b32.xlu0 %v12363_v20, %s16605_s16 }
 0x6b8   : > { %v19881_v5 = vadd.f32 %v11154_v37, %v19716_v22  ;;  %v15384_v42 = vpop.f32.mrb[22].mxu0  ;;  %v15421_v56 = vpop.f32.mrb[120].mxu1  ;;  %v12362_v22 = vmax.f32 %v12330_v46, 0.0 }
 0x6b9   : > { %v19884_v35 = vadd.f32 %v15384_v42, %v19718_v34  ;;  %v12300_v57 = vmul.f32 %v15421_v56, %v19740_v59  ;;  %v11157_v12 = vpop.f32.mrb[23].mxu0  ;;  %v12240_v10 = vpop.f32.mrb[121].mxu1  ;;  %12707 = vrot.lane.b32.xlu1 %v12364_v2, %s16605_s16 }
 0x6ba   : > { %v19889_v3 = vadd.f32 %v11157_v12, %v19720_v39  ;;  %v12298_v38 = vmul.f32 %v19740_v59, %v12240_v10  ;;  %v15422_v28 = vpop.f32.mrb[122].mxu1 }
 0x6bb   : > { %v12335_v32 = vadd.f32 %v18902_v18, %v12300_v57  ;;  %v12301_v0 = vmul.f32 %v15422_v28, %v19740_v59  ;;  %v12243_v7 = vpop.f32.mrb[123].mxu1  ;;  %12701 = vrot.lane.b32.xlu0 %v12361_v45, %s16605_s16 }
 0x6bc   : > { %v12299_v34 = vmul.f32 %v19740_v59, %v12243_v7  ;;  %v12333_v31 = vadd.f32 %v18902_v18, %v12298_v38 }
 0x6bd   : > { %v12367_v33 = vmax.f32 %v12335_v32, 0.0  ;;  %v12336_v20 = vadd.f32 %v18902_v18, %v12301_v0  ;;  %12703 = vrot.lane.b32.xlu1 %v12362_v22, %s16605_s16 }
 0x6be   : > { %v15387_v39 = vpop.f32.mrb[24].mxu0  ;;  %v12334_v25 = vadd.f32 %v18902_v18, %v12299_v34  ;;  %v12365_v45 = vmax.f32 %v12333_v31, 0.0 }
 0x6bf   : > { %v12368_v11 = vmax.f32 %v12336_v20, 0.0  ;;  %v19903_v2 = vadd.f32 %v15387_v39, %v19722_v15  ;;  %v11170_v46 = vpop.f32.mrb[25].mxu0  ;;  %12713 = vrot.lane.b32.xlu0 %v12367_v33, %s16605_s16  ;;  %v11238_v15 = vmul.f32 %v19750_v50, %v19734_v52  ;;  %v11236_v50 = vmul.f32 %v19753_v36, %v19734_v52  ;;  %v19933_v20 = vpop.permute.xlu0 %12433 }
 0x6c0   : > { %v19907_v37 = vadd.f32 %v11170_v46, %v19724_v30  ;;  %v15388_v42 = vpop.f32.mrb[26].mxu0  ;;  %v19909_v56 = vpop.f32.mrb[124].mxu1  ;;  %v12366_v22 = vmax.f32 %v12334_v25, 0.0  ;;  %v11237_v25 = vmul.f32 %v19759_v44, %v19734_v52 }
 0x6c1   : > { %v19912_v57 = vadd.f32 %v15388_v42, %v19726_v41  ;;  %v11173_v12 = vpop.f32.mrb[27].mxu0  ;;  %v12256_v10 = vpop.f32.mrb[125].mxu1  ;;  %12715 = vrot.lane.b32.xlu1 %v12368_v11, %s16605_s16  ;;  %v11239_v41 = vmul.f32 %v19755_v16, %v19734_v52 }
 0x6c2   : > { %v19918_v38 = vadd.f32 %v11173_v12, %v19728_v21  ;;  %v12302_v30 = vmul.f32 %v19740_v59, %v12256_v10  ;;  %v19921_v28 = vpop.f32.mrb[126].mxu1  ;;  %v11273_v21 = vadd.f32 %v18881_v27, %v11238_v15  ;;  %v11242_v15 = vmul.f32 %v19773_v9, %v19734_v52 }
 0x6c3   : > { %v12259_v32 = vpop.f32.mrb[127].mxu1  ;;  %12709 = vrot.lane.b32.xlu0 %v12365_v45, %s16605_s16  ;;  %v11274_v11 = vadd.f32 %v18881_v27, %v11239_v41  ;;  %v11272_v44 = vadd.f32 %v18881_v27, %v11237_v25 }
 0x6c4   : > { %v12337_v0 = vadd.f32 %v18902_v18, %v12302_v30  ;;  %v12303_v7 = vmul.f32 %v19740_v59, %v12259_v32  ;;  %v11305_v10 = vmax.f32 %v11273_v21, 0.0  ;;  %v11277_v41 = vadd.f32 %v18881_v27, %v11242_v15 }
 0x6c5   : > { %12711 = vrot.lane.b32.xlu1 %v12366_v22, %s16605_s16  ;;  %v11243_v22 = vmul.f32 %v19780_v63, %v19734_v52  ;;  %v11304_v9 = vmax.f32 %v11272_v44, 0.0  ;;  %v11251_v15 = vmul.f32 %v19832_v61, %v19734_v52  ;;  %v11248_v44 = vmul.f32 %v19829_v51, %v19734_v52 }
 0x6c6   : > { %v12369_v34 = vmax.f32 %v12337_v0, 0.0  ;;  %v12338_v33 = vadd.f32 %v18902_v18, %v12303_v7  ;;  %v15391_v31 = vpop.f32.mrb[28].mxu0  ;;  %v11241_v7 = vmul.f32 %v19785_v19, %v19734_v52  ;;  %v11309_v63 = vmax.f32 %v11277_v41, 0.0 }
 0x6c7   : > { %v19936_v39 = vadd.f32 %v15391_v31, %v19730_v49  ;;  %v11186_v16 = vpop.f32.mrb[29].mxu0  ;;  %v11271_v49 = vadd.f32 %v18881_v27, %v11236_v50  ;;  %v11278_v0 = vadd.f32 %v18881_v27, %v11243_v22  ;;  %v11246_v50 = vmul.f32 %v19799_v4, %v19734_v52 }
 0x6c8   : > { %v12370_v46 = vmax.f32 %v12338_v33, 0.0  ;;  %v19942_v42 = vadd.f32 %v11186_v16, %v19732_v43  ;;  %v15392_v36 = vpop.f32.mrb[30].mxu0  ;;  %12717 = vrot.lane.b32.xlu0 %v12369_v34, %s16605_s16  ;;  %v11306_v43 = vmax.f32 %v11274_v11, 0.0  ;;  %v11276_v33 = vadd.f32 %v18881_v27, %v11241_v7 }
 0x6c9   : > { %v19946_v45 = vadd.f32 %v15392_v36, %v19736_v13  ;;  %v11189_v12 = vpop.f32.mrb[31].mxu0  ;;  %v19959_v13 = vpop.permute.xlu0 %12429  ;;  %v11303_v32 = vmax.f32 %v11271_v49, 0.0  ;;  %v11247_v31 = vmul.f32 %v19806_v24, %v19734_v52  ;;  %v11281_v16 = vadd.f32 %v18881_v27, %v11246_v50 }
 0x6ca   : > { %v19952_v30 = vadd.f32 %v11189_v12, %v19738_v48  ;;  %12719 = vrot.lane.b32.xlu1 %v12370_v46, %s16605_s16  ;;  %v11240_v48 = vmul.f32 %v19777_v1, %v19734_v52  ;;  %v11310_v1 = vmax.f32 %v11278_v0, 0.0  ;;  %v11244_v11 = vmul.f32 %v19803_v54, %v19734_v52 }
 0x6cb   : > { %v11308_v4 = vmax.f32 %v11276_v33, 0.0  ;;  %v11282_v25 = vadd.f32 %v18881_v27, %v11247_v31  ;;  %v11245_v46 = vmul.f32 %v19811_v62, %v19734_v52  ;;  %v11313_v24 = vmax.f32 %v11281_v16, 0.0 }
 0x6cc   : > { %12537 = vrot.lane.b32.xlu0 %v11305_v10, %s16606_s29  ;;  %v11275_v21 = vadd.f32 %v18881_v27, %v11240_v48  ;;  %v11279_v12 = vadd.f32 %v18881_v27, %v11244_v11  ;;  %v11250_v10 = vmul.f32 %v19825_v6, %v19734_v52  ;;  %v11249_v41 = vmul.f32 %v19837_v26, %v19734_v52 }
 0x6cd   : > { %v19973_v34 = vpop.permute.xlu0 %12441  ;;  %v11314_v54 = vmax.f32 %v11282_v25, 0.0  ;;  %v11280_v49 = vadd.f32 %v18881_v27, %v11245_v46  ;;  %v11283_v48 = vadd.f32 %v18881_v27, %v11248_v44  ;;  %v11255_v7 = vmul.f32 %v19858_v23, %v19734_v52 }
 0x6ce   : > { %12539 = vrot.lane.b32.xlu1 %v11306_v43, %s16606_s29  ;;  %v11307_v19 = vmax.f32 %v11275_v21, 0.0  ;;  %v11311_v62 = vmax.f32 %v11279_v12, 0.0  ;;  %v11285_v43 = vadd.f32 %v18881_v27, %v11250_v10  ;;  %v11284_v0 = vadd.f32 %v18881_v27, %v11249_v41 }
 0x6cf   : > { %v11312_v6 = vmax.f32 %v11280_v49, 0.0  ;;  %v11315_v26 = vmax.f32 %v11283_v48, 0.0  ;;  %v11252_v50 = vmul.f32 %v19855_v17, %v19734_v52  ;;  %v11253_v33 = vmul.f32 %v19863_v14, %v19734_v52 }
 0x6d0   : > { %12533 = vrot.lane.b32.xlu0 %v11303_v32, %s16606_s29  ;;  %v11286_v32 = vadd.f32 %v18881_v27, %v11251_v15  ;;  %v11317_v61 = vmax.f32 %v11285_v43, 0.0  ;;  %v11256_v46 = vmul.f32 %v19881_v5, %v19734_v52  ;;  %v11257_v12 = vmul.f32 %v19889_v3, %v19734_v52 }
 0x6d1   : > { %v19987_v36 = vpop.permute.xlu0 %12437  ;;  %v11287_v31 = vadd.f32 %v18881_v27, %v11252_v50  ;;  %v11288_v11 = vadd.f32 %v18881_v27, %v11253_v33  ;;  %v11262_v49 = vmul.f32 %v19903_v2, %v19734_v52  ;;  %v11260_v44 = vmul.f32 %v19907_v37, %v19734_v52 }
 0x6d2   : > { %12535 = vrot.lane.b32.xlu1 %v11304_v9, %s16606_s29  ;;  %v11254_v9 = vmul.f32 %v19851_v8, %v19734_v52  ;;  %v11318_v51 = vmax.f32 %v11286_v32, 0.0  ;;  %v11316_v8 = vmax.f32 %v11284_v0, 0.0  ;;  %v11292_v15 = vadd.f32 %v18881_v27, %v11257_v12 }
 0x6d3   : > { %v11319_v14 = vmax.f32 %v11287_v31, 0.0  ;;  %v11297_v43 = vadd.f32 %v18881_v27, %v11262_v49  ;;  %v11261_v41 = vmul.f32 %v19918_v38, %v19734_v52  ;;  %v11266_v48 = vmul.f32 %v19936_v39, %v19734_v52  ;;  %v20077_v39 = vpop.permute.xlu1 %12463 }
 0x6d4   : > { %12545 = vrot.lane.b32.xlu0 %v11309_v63, %s16606_s29  ;;  %v11289_v21 = vadd.f32 %v18881_v27, %v11254_v9  ;;  %v11324_v2 = vmax.f32 %v11292_v15, 0.0  ;;  %v12305_v31 = vmul.f32 %v19921_v28, %v19740_v59 }
 0x6d5   : > { %v20001_v22 = vpop.permute.xlu0 %12449  ;;  %v11296_v9 = vadd.f32 %v18881_v27, %v11261_v41 }
 0x6d6   : > { %12547 = vrot.lane.b32.xlu1 %v11310_v1, %s16606_s29  ;;  %v11290_v1 = vadd.f32 %v18881_v27, %v11255_v7  ;;  %v11321_v23 = vmax.f32 %v11289_v21, 0.0  ;;  %v11301_v7 = vadd.f32 %v18881_v27, %v11266_v48 }
 0x6d7   : > { %v11328_v21 = vmax.f32 %v11296_v9, 0.0 }
 0x6d8   : > { %12541 = vrot.lane.b32.xlu0 %v11307_v19, %s16606_s29  ;;  %v11258_v19 = vmul.f32 %v19877_v53, %v19734_v52  ;;  %v11322_v17 = vmax.f32 %v11290_v1, 0.0  ;;  %v11320_v53 = vmax.f32 %v11288_v11, 0.0  ;;  %v12304_v1 = vmul.f32 %v19909_v56, %v19740_v59 }
 0x6d9   : > { %v20015_v63 = vpop.permute.xlu0 %12445  ;;  %v11333_v33 = vmax.f32 %v11301_v7, 0.0  ;;  %v20545_v7 = vld [vmem:[#allocation8_spill] sm:$0xff] }
 0x6da   : > { %12543 = vrot.lane.b32.xlu1 %v11308_v4, %s16606_s29  ;;  %v11259_v4 = vmul.f32 %v19884_v35, %v19734_v52  ;;  %v11293_v25 = vadd.f32 %v18881_v27, %v11258_v19 }
 0x6dc   : > { %12553 = vrot.lane.b32.xlu0 %v11313_v24, %s16606_s29  ;;  %v11294_v24 = vadd.f32 %v18881_v27, %v11259_v4  ;;  %v11325_v35 = vmax.f32 %v11293_v25, 0.0  ;;  %v12340_v4 = vadd.f32 %v18902_v18, %v12305_v31 }
 0x6dd   : > { %v20029_v16 = vpop.permute.xlu0 %12457 }
 0x6de   : > { %12555 = vrot.lane.b32.xlu1 %v11314_v54, %s16606_s29  ;;  %v11291_v54 = vadd.f32 %v18881_v27, %v11256_v46  ;;  %v11326_v5 = vmax.f32 %v11294_v24, 0.0 }
 0x6e0   : > { %12549 = vrot.lane.b32.xlu0 %v11311_v62, %s16606_s29  ;;  %v11263_v62 = vmul.f32 %v19912_v57, %v19734_v52  ;;  %v11323_v3 = vmax.f32 %v11291_v54, 0.0  ;;  %v11329_v57 = vmax.f32 %v11297_v43, 0.0 }
 0x6e1   : > { %v20043_v10 = vpop.permute.xlu0 %12453 }
 0x6e2   : > { %12551 = vrot.lane.b32.xlu1 %v11312_v6, %s16606_s29  ;;  %v11298_v32 = vadd.f32 %v18881_v27, %v11263_v62 }
 0x6e4   : > { %12561 = vrot.lane.b32.xlu0 %v11317_v61, %s16606_s29  ;;  %v11295_v61 = vadd.f32 %v18881_v27, %v11260_v44  ;;  %v11330_v37 = vmax.f32 %v11298_v32, 0.0 }
 0x6e5   : > { %v20057_v6 = vpop.permute.xlu0 %12465 }
 0x6e6   : > { %12563 = vrot.lane.b32.xlu1 %v11318_v51, %s16606_s29  ;;  %v11267_v51 = vmul.f32 %v19946_v45, %v19734_v52  ;;  %v11327_v38 = vmax.f32 %v11295_v61, 0.0  ;;  %v11265_v45 = vmul.f32 %v19952_v30, %v19734_v52  ;;  %v12339_v30 = vadd.f32 %v18902_v18, %v12304_v1  ;;  %v20547_v1 = vld [vmem:[#allocation10_spill] sm:$0xff] }
 0x6e8   : > { %12557 = vrot.lane.b32.xlu0 %v11315_v26, %s16606_s29  ;;  %v11264_v26 = vmul.f32 %v19942_v42, %v19734_v52  ;;  %v11302_v50 = vadd.f32 %v18881_v27, %v11267_v51  ;;  %v12371_v46 = vmax.f32 %v12339_v30, 0.0 }
 0x6e9   : > { %v20071_v0 = vpop.permute.xlu0 %12461 }
 0x6ea   : > { %12559 = vrot.lane.b32.xlu1 %v11316_v8, %s16606_s29  ;;  %v11334_v19 = vmax.f32 %v11302_v50, 0.0 }
 0x6ec   : > { %12569 = vrot.lane.b32.xlu0 %v11321_v23, %s16606_s29  ;;  %v11299_v23 = vadd.f32 %v18881_v27, %v11264_v26  ;;  %v12760_v26 = vsel %vm12757_vm2, %v20545_v7, %v19769_v60 }
 0x6ee   : > { %12571 = vrot.lane.b32.xlu1 %v11322_v17, %s16606_s29  ;;  %v11300_v17 = vadd.f32 %v18881_v27, %v11265_v45  ;;  %v11331_v11 = vmax.f32 %v11299_v23, 0.0  ;;  %v12372_v27 = vmax.f32 %v12340_v4, 0.0  ;;  %v20546_v45 = vld [vmem:[#allocation39_spill] sm:$0xff]  ;;  %v20549_v4 = vld [vmem:[#allocation40_spill] sm:$0xff] }
 0x6f0   : > { %12565 = vrot.lane.b32.xlu0 %v11319_v14, %s16606_s29  ;;  %v11332_v14 = vmax.f32 %v11300_v17, 0.0 }
 0x6f2   : > { %12567 = vrot.lane.b32.xlu1 %v11320_v53, %s16606_s29 }
 0x6f4   : > { %12577 = vrot.lane.b32.xlu0 %v11325_v35, %s16606_s29 }
 0x6f6   : > { %12579 = vrot.lane.b32.xlu1 %v11326_v5, %s16606_s29 }
 0x6f8   : > { %12573 = vrot.lane.b32.xlu0 %v11323_v3, %s16606_s29 }
 0x6fa   : > { %12575 = vrot.lane.b32.xlu1 %v11324_v2, %s16606_s29 }
 0x6fc   : > { %12585 = vrot.lane.b32.xlu0 %v11329_v57, %s16606_s29 }
 0x6fe   : > { %12587 = vrot.lane.b32.xlu1 %v11330_v37, %s16606_s29 }
 0x700   : > { %12581 = vrot.lane.b32.xlu0 %v11327_v38, %s16606_s29 }
 0x701   : > { %v12666_v8 = vpop.permute.xlu0 %12665 }
 0x702   : > { %12583 = vrot.lane.b32.xlu1 %v11328_v21, %s16606_s29 }
 0x703   : > { %v12668_v42 = vpop.permute.xlu1 %12667 }
 0x704   : > { %12593 = vrot.lane.b32.xlu0 %v11333_v33, %s16606_s29  ;;  %v12761_v33 = vsel %vm12757_vm2, %v20547_v1, %v20546_v45  ;;  %v20552_v1 = vld [vmem:[#allocation41_spill] sm:$0xff] }
 0x705   : > { %v12662_v52 = vpop.permute.xlu0 %12661 }
 0x706   : > { %12595 = vrot.lane.b32.xlu1 %v11334_v19, %s16606_s29  ;;  %v20548_v19 = vld [vmem:[#allocation9_spill] sm:$0xff] }
 0x707   : > { %v12664_v56 = vpop.permute.xlu1 %12663  ;;  %v12758_v17 = vsel %vm12757_vm2, %v20548_v19, %v19795_v29 }
 0x708   : > { %12589 = vrot.lane.b32.xlu0 %v11331_v11, %s16606_s29 }
 0x709   : > { %v12674_v25 = vpop.permute.xlu0 %12673 }
 0x70a   : > { %12591 = vrot.lane.b32.xlu1 %v11332_v14, %s16606_s29  ;;  %v20550_v14 = vld [vmem:[#allocation11_spill] sm:$0xff] }
 0x70b   : > { %v20096_v59 = vpop.permute.xlu1 %12675 }
 0x70c   : > { %12721 = vrot.lane.b32.xlu0 %v12371_v46, %s16605_s16  ;;  %v12759_v46 = vsel %vm12757_vm2, %v20550_v14, %v20549_v4 }
 0x70d   : > { %v20099_v28 = vpop.permute.xlu0 %12669 }
 0x70e   : > { %12723 = vrot.lane.b32.xlu1 %v12372_v27, %s16605_s16  ;;  %s16607_s16 = smov [#allocation5]  }
 0x70f   : > { %v20102_v53 = vpop.permute.xlu1 %12671  ;;  %s16539_s29 = sshll.u32 %s16607_s16, 4  ;;  %s16540_s29 = int_to_ptr.vmem [resolvable:$false] %s16539_s29 }
 0x710   : > { %s16541_s21 = scalar_lea.vmem %s16540_s29, 8192  ;;  %p16542_p0 = scmp.lt.s32.totalorder %s20404_s24, %s16540_s29 }
 0x711   : > { %v20104_v24 = vpop.permute.xlu0 %12681  ;;  %p16543_p1 = scmp.lt.s32.totalorder %s16541_s21, %s16535_s14 }
 0x713   : > { %v20106_v18 = vpop.permute.xlu1 %12683  ;;  %p16544_p2 = por %p16543_p1, %p16542_p0 }
 0x715   : > { %v20108_v12 = vpop.permute.xlu0 %12677  ;;  %p16545_p3 = pnand %p16544_p2, %p16538_p13 }
 0x717   : > { %v20110_v35 = vpop.permute.xlu1 %12679 }
 0x719   : > { %v20112_v54 = vpop.permute.xlu0 %12689 }
 0x71b   : > { %v20114_v49 = vpop.permute.xlu1 %12691 }
 0x71d   : > { %v20116_v5 = vpop.permute.xlu0 %12685 }
 0x71f   : > { %v20118_v15 = vpop.permute.xlu1 %12687 }
 0x721   : > { %v20120_v62 = vpop.permute.xlu0 %12697 }
 0x723   : > { %v20122_v3 = vpop.permute.xlu1 %12699 }
 0x725   : > { %v20124_v43 = vpop.permute.xlu0 %12693 }
 0x727   : > { %v20126_v44 = vpop.permute.xlu1 %12695 }
 0x729   : > { %v20128_v2 = vpop.permute.xlu0 %12705 }
 0x72b   : > { %v20130_v32 = vpop.permute.xlu1 %12707 }
 0x72d   : > { %v20132_v41 = vpop.permute.xlu0 %12701 }
 0x72f   : > { %v20134_v57 = vpop.permute.xlu1 %12703 }
 0x731   : > { %v20136_v61 = vpop.permute.xlu0 %12713 }
 0x733   : > { %v20138_v48 = vpop.permute.xlu1 %12715 }
 0x735   : > { %v20140_v37 = vpop.permute.xlu0 %12709 }
 0x737   : > { %v20142_v9 = vpop.permute.xlu1 %12711 }
 0x73a   : > { %v20145_v51 = vpop.permute.xlu0 %12717 }
 0x73c   : > { %v20149_v38 = vpop.permute.xlu1 %12719 }
 0x73e   : > { %v12538_v21 = vpop.permute.xlu0 %12537 }
 0x73f   : > { %v12793_v50 = vsel %vm12790_vm3, %v12760_v26, %v12538_v21 }
 0x740   : > { %v12826_v23 = vsel %vm12823_vm4, %v12793_v50, %v12666_v8  ;;  %v12540_v31 = vpop.permute.xlu1 %12539 }
 0x741   : > { %12859 = vst.msk [vmem:[%s20159_s22 + $0x10] sm:$0xff] %vm12856_vm5, %v12826_v23  ;;  %v12794_v60 = vsel %vm12790_vm3, %v12761_v33, %v12540_v31 }
 0x742   : > { %v12827_v30 = vsel %vm12823_vm4, %v12794_v60, %v12668_v42  ;;  %v12534_v11 = vpop.permute.xlu0 %12533  ;;  %v20551_v42 = vld [vmem:[#allocation14_spill] sm:$0xff] }
 0x743   : > { %12860 = vst.msk [vmem:[%s20159_s22 + $0x18] sm:$0xff] %vm12856_vm5, %v12827_v30  ;;  %v12791_v8 = vsel %vm12790_vm3, %v12758_v17, %v12534_v11  ;;  %v12764_v26 = vsel %vm12757_vm2, %v20551_v42, %v19821_v47  ;;  %v20556_v11 = vld [vmem:[#allocation13_spill] sm:$0xff]  ;;  %v20559_v42 = vld [vmem:[#allocation19_spill] sm:$0xff] }
 0x744   : > { %v12824_v27 = vsel %vm12823_vm4, %v12791_v8, %v12662_v52  ;;  %v12536_v7 = vpop.permute.xlu1 %12535  ;;  %v20553_v52 = vld [vmem:[#allocation15_spill] sm:$0xff] }
 0x745   : > { %12857 = vst.msk [vmem:[%s20159_s22] sm:$0xff] %vm12856_vm5, %v12824_v27  ;;  %v12792_v29 = vsel %vm12790_vm3, %v12759_v46, %v12536_v7  ;;  %v12765_v33 = vsel %vm12757_vm2, %v20553_v52, %v20552_v1 }
 0x746   : > { %v12825_v21 = vsel %vm12823_vm4, %v12792_v29, %v12664_v56  ;;  %v12546_v50 = vpop.permute.xlu0 %12545  ;;  %v20554_v56 = vld [vmem:[#allocation12_spill] sm:$0xff] }
 0x747   : > { %12858 = vst.msk [vmem:[%s20159_s22 + $0x8] sm:$0xff] %vm12856_vm5, %v12825_v21  ;;  %v12797_v45 = vsel %vm12790_vm3, %v12764_v26, %v12546_v50  ;;  %v12762_v60 = vsel %vm12757_vm2, %v20554_v56, %v19847_v40 }
 0x748   : > { %v12830_v23 = vsel %vm12823_vm4, %v12797_v45, %v12674_v25  ;;  %v12548_v31 = vpop.permute.xlu1 %12547  ;;  %v20555_v25 = vld [vmem:[#allocation42_spill] sm:$0xff] }
 0x749   : > { %12863 = vst.msk [vmem:[%s20159_s22 + $0x30] sm:$0xff] %vm12856_vm5, %v12830_v23  ;;  %v12798_v47 = vsel %vm12790_vm3, %v12765_v33, %v12548_v31  ;;  %v12763_v8 = vsel %vm12757_vm2, %v20556_v11, %v20555_v25  ;;  %v20562_v23 = vld [vmem:[#allocation17_spill] sm:$0xff]  ;;  %v20565_v25 = vld [vmem:[#allocation23_spill] sm:$0xff] }
 0x74a   : > { %v12831_v19 = vsel %vm12823_vm4, %v12798_v47, %v20096_v59  ;;  %v12542_v17 = vpop.permute.xlu0 %12541  ;;  %v20557_v59 = vld [vmem:[#allocation18_spill] sm:$0xff] }
 0x74b   : > { %12864 = vst.msk [vmem:[%s20159_s22 + $0x38] sm:$0xff] %vm12856_vm5, %v12831_v19  ;;  %v12795_v30 = vsel %vm12790_vm3, %v12762_v60, %v12542_v17  ;;  %v12768_v46 = vsel %vm12757_vm2, %v20557_v59, %v19873_v55 }
 0x74c   : > { %v12828_v4 = vsel %vm12823_vm4, %v12795_v30, %v20099_v28  ;;  %v12544_v14 = vpop.permute.xlu1 %12543  ;;  %v20558_v28 = vld [vmem:[#allocation43_spill] sm:$0xff] }
 0x74d   : > { %12861 = vst.msk [vmem:[%s20159_s22 + $0x20] sm:$0xff] %vm12856_vm5, %v12828_v4  ;;  %v12796_v40 = vsel %vm12790_vm3, %v12763_v8, %v12544_v14  ;;  %v12769_v26 = vsel %vm12757_vm2, %v20559_v42, %v20558_v28 }
 0x74e   : > { %v12829_v27 = vsel %vm12823_vm4, %v12796_v40, %v20102_v53  ;;  %v12554_v7 = vpop.permute.xlu0 %12553  ;;  %v20560_v53 = vld [vmem:[#allocation16_spill] sm:$0xff] }
 0x74f   : > { %12862 = vst.msk [vmem:[%s20159_s22 + $0x28] sm:$0xff] %vm12856_vm5, %v12829_v27  ;;  %v12801_v29 = vsel %vm12790_vm3, %v12768_v46, %v12554_v7  ;;  %v12766_v45 = vsel %vm12757_vm2, %v20560_v53, %v19899_v58  ;;  %v20568_v27 = vld [vmem:[#allocation21_spill] sm:$0xff] }
 0x750   : > { %v12834_v21 = vsel %vm12823_vm4, %v12801_v29, %v20104_v24  ;;  %v12556_v50 = vpop.permute.xlu1 %12555  ;;  %v20561_v24 = vld [vmem:[#allocation44_spill] sm:$0xff] }
 0x751   : > { %12867 = vst.msk [vmem:[%s20159_s22 + $0x50] sm:$0xff] %vm12856_vm5, %v12834_v21  ;;  %v12802_v55 = vsel %vm12790_vm3, %v12769_v26, %v12556_v50  ;;  %v12767_v31 = vsel %vm12757_vm2, %v20562_v23, %v20561_v24 }
 0x752   : > { %v12835_v1 = vsel %vm12823_vm4, %v12802_v55, %v20106_v18  ;;  %v12550_v52 = vpop.permute.xlu0 %12549  ;;  %v20563_v18 = vld [vmem:[#allocation22_spill] sm:$0xff]  ;;  %v20571_v55 = vld [vmem:[#allocation27_spill] sm:$0xff] }
 0x753   : > { %12868 = vst.msk [vmem:[%s20159_s22 + $0x58] sm:$0xff] %vm12856_vm5, %v12835_v1  ;;  %v12799_v33 = vsel %vm12790_vm3, %v12766_v45, %v12550_v52  ;;  %v12772_v60 = vsel %vm12757_vm2, %v20563_v18, %v19933_v20 }
 0x754   : > { %v12832_v47 = vsel %vm12823_vm4, %v12799_v33, %v20108_v12  ;;  %v12552_v56 = vpop.permute.xlu1 %12551  ;;  %v20564_v12 = vld [vmem:[#allocation45_spill] sm:$0xff] }
 0x755   : > { %12865 = vst.msk [vmem:[%s20159_s22 + $0x40] sm:$0xff] %vm12856_vm5, %v12832_v47  ;;  %v12800_v58 = vsel %vm12790_vm3, %v12767_v31, %v12552_v56  ;;  %v12773_v11 = vsel %vm12757_vm2, %v20565_v25, %v20564_v12  ;;  %v20574_v31 = vld [vmem:[#allocation25_spill] sm:$0xff] }
 0x756   : > { %v12833_v19 = vsel %vm12823_vm4, %v12800_v58, %v20110_v35  ;;  %v12562_v17 = vpop.permute.xlu0 %12561  ;;  %v20566_v35 = vld [vmem:[#allocation20_spill] sm:$0xff] }
 0x757   : > { %12866 = vst.msk [vmem:[%s20159_s22 + $0x48] sm:$0xff] %vm12856_vm5, %v12833_v19  ;;  %v12805_v30 = vsel %vm12790_vm3, %v12772_v60, %v12562_v17  ;;  %v12770_v14 = vsel %vm12757_vm2, %v20566_v35, %v19959_v13 }
 0x758   : > { %v12838_v8 = vsel %vm12823_vm4, %v12805_v30, %v20112_v54  ;;  %v12564_v4 = vpop.permute.xlu1 %12563  ;;  %v20567_v54 = vld [vmem:[#allocation46_spill] sm:$0xff]  ;;  %v20577_v30 = vld [vmem:[#allocation31_spill] sm:$0xff] }
 0x759   : > { %12871 = vst.msk [vmem:[%s20159_s22 + $0x70] sm:$0xff] %vm12856_vm5, %v12838_v8  ;;  %v12806_v20 = vsel %vm12790_vm3, %v12773_v11, %v12564_v4  ;;  %v12771_v7 = vsel %vm12757_vm2, %v20568_v27, %v20567_v54 }
 0x75a   : > { %v12839_v40 = vsel %vm12823_vm4, %v12806_v20, %v20114_v49  ;;  %v12558_v59 = vpop.permute.xlu0 %12557  ;;  %v20569_v49 = vld [vmem:[#allocation26_spill] sm:$0xff] }
 0x75b   : > { %12872 = vst.msk [vmem:[%s20159_s22 + $0x78] sm:$0xff] %vm12856_vm5, %v12839_v40  ;;  %v12803_v46 = vsel %vm12790_vm3, %v12770_v14, %v12558_v59  ;;  %v12776_v42 = vsel %vm12757_vm2, %v20569_v49, %v19973_v34  ;;  %v20580_v14 = vld [vmem:[#allocation29_spill] sm:$0xff] }
 0x75c   : > { %v12836_v29 = vsel %vm12823_vm4, %v12803_v46, %v20116_v5  ;;  %v12560_v28 = vpop.permute.xlu1 %12559  ;;  %v20570_v5 = vld [vmem:[#allocation47_spill] sm:$0xff] }
 0x75d   : > { %12869 = vst.msk [vmem:[%s20159_s22 + $0x60] sm:$0xff] %vm12856_vm5, %v12836_v29  ;;  %v12804_v13 = vsel %vm12790_vm3, %v12771_v7, %v12560_v28  ;;  %v12777_v53 = vsel %vm12757_vm2, %v20571_v55, %v20570_v5  ;;  %v20583_v28 = vld [vmem:[#allocation35_spill] sm:$0xff]  ;;  %v20585_v55 = vld [vmem:[#allocation52_spill] sm:$0xff] }
 0x75e   : > { %v12837_v26 = vsel %vm12823_vm4, %v12804_v13, %v20118_v15  ;;  %v12570_v21 = vpop.permute.xlu0 %12569  ;;  %v20572_v15 = vld [vmem:[#allocation24_spill] sm:$0xff] }
 0x75f   : > { %12870 = vst.msk [vmem:[%s20159_s22 + $0x68] sm:$0xff] %vm12856_vm5, %v12837_v26  ;;  %v12809_v50 = vsel %vm12790_vm3, %v12776_v42, %v12570_v21  ;;  %v12774_v52 = vsel %vm12757_vm2, %v20572_v15, %v19987_v36 }
 0x760   : > { %v12842_v45 = vsel %vm12823_vm4, %v12809_v50, %v20120_v62  ;;  %v12572_v1 = vpop.permute.xlu1 %12571  ;;  %v20573_v62 = vld [vmem:[#allocation48_spill] sm:$0xff] }
 0x761   : > { %12875 = vst.msk [vmem:[%s20159_s22 + $0x90] sm:$0xff] %vm12856_vm5, %v12842_v45  ;;  %v12810_v34 = vsel %vm12790_vm3, %v12777_v53, %v12572_v1  ;;  %v12775_v47 = vsel %vm12757_vm2, %v20574_v31, %v20573_v62  ;;  %v20589_v31 = vld [vmem:[#allocation37_spill] sm:$0xff] }
 0x762   : > { %v12843_v33 = vsel %vm12823_vm4, %v12810_v34, %v20122_v3  ;;  %v12566_v24 = vpop.permute.xlu0 %12565  ;;  %v20575_v3 = vld [vmem:[#allocation30_spill] sm:$0xff] }
 0x763   : > { %12876 = vst.msk [vmem:[%s20159_s22 + $0x98] sm:$0xff] %vm12856_vm5, %v12843_v33  ;;  %v12807_v23 = vsel %vm12790_vm3, %v12774_v52, %v12566_v24  ;;  %v12780_v18 = vsel %vm12757_vm2, %v20575_v3, %v20001_v22  ;;  %v20587_v52 = vld [vmem:[#allocation53_spill] sm:$0xff] }
 0x764   : > { %v12840_v56 = vsel %vm12823_vm4, %v12807_v23, %v20124_v43  ;;  %v12568_v58 = vpop.permute.xlu1 %12567  ;;  %v20576_v43 = vld [vmem:[#allocation49_spill] sm:$0xff] }
 0x765   : > { %12873 = vst.msk [vmem:[%s20159_s22 + $0x80] sm:$0xff] %vm12856_vm5, %v12840_v56  ;;  %v12808_v36 = vsel %vm12790_vm3, %v12775_v47, %v12568_v58  ;;  %v12781_v12 = vsel %vm12757_vm2, %v20577_v30, %v20576_v43  ;;  %v20590_v58 = vld [vmem:[#allocation38_spill] sm:$0xff] }
 0x766   : > { %v12841_v60 = vsel %vm12823_vm4, %v12808_v36, %v20126_v44  ;;  %v12578_v19 = vpop.permute.xlu0 %12577  ;;  %v20578_v44 = vld [vmem:[#allocation28_spill] sm:$0xff]  ;;  %v12788_v36 = vsel %vm12757_vm2, %v20590_v58, %v20057_v6 }
 0x767   : > { %12874 = vst.msk [vmem:[%s20159_s22 + $0x88] sm:$0xff] %vm12856_vm5, %v12841_v60  ;;  %v12813_v17 = vsel %vm12790_vm3, %v12780_v18, %v12578_v19  ;;  %v12778_v8 = vsel %vm12757_vm2, %v20578_v44, %v20015_v63 }
 0x768   : > { %v12846_v25 = vsel %vm12823_vm4, %v12813_v17, %v20128_v2  ;;  %v12580_v11 = vpop.permute.xlu1 %12579  ;;  %v20579_v2 = vld [vmem:[#allocation50_spill] sm:$0xff] }
 0x769   : > { %12879 = vst.msk [vmem:[%s20159_s22 + $0xb0] sm:$0xff] %vm12856_vm5, %v12846_v25  ;;  %v12814_v22 = vsel %vm12790_vm3, %v12781_v12, %v12580_v11  ;;  %v12779_v40 = vsel %vm12757_vm2, %v20580_v14, %v20579_v2 }
 0x76a   : > { %v12847_v4 = vsel %vm12823_vm4, %v12814_v22, %v20130_v32  ;;  %v12574_v20 = vpop.permute.xlu0 %12573  ;;  %v20581_v32 = vld [vmem:[#allocation34_spill] sm:$0xff] }
 0x76b   : > { %12880 = vst.msk [vmem:[%s20159_s22 + $0xb8] sm:$0xff] %vm12856_vm5, %v12847_v4  ;;  %v12811_v35 = vsel %vm12790_vm3, %v12778_v8, %v12574_v20  ;;  %v12784_v54 = vsel %vm12757_vm2, %v20581_v32, %v20029_v16 }
 0x76c   : > { %v12844_v59 = vsel %vm12823_vm4, %v12811_v35, %v20132_v41  ;;  %v12576_v46 = vpop.permute.xlu1 %12575  ;;  %v20582_v41 = vld [vmem:[#allocation51_spill] sm:$0xff] }
 0x76d   : > { %12877 = vst.msk [vmem:[%s20159_s22 + $0xa0] sm:$0xff] %vm12856_vm5, %v12844_v59  ;;  %v12812_v63 = vsel %vm12790_vm3, %v12779_v40, %v12576_v46  ;;  %v12785_v13 = vsel %vm12757_vm2, %v20583_v28, %v20582_v41 }
 0x76e   : > { %v12845_v27 = vsel %vm12823_vm4, %v12812_v63, %v20134_v57  ;;  %v12586_v7 = vpop.permute.xlu0 %12585  ;;  %v20584_v57 = vld [vmem:[#allocation32_spill] sm:$0xff] }
 0x76f   : > { %12878 = vst.msk [vmem:[%s20159_s22 + $0xa8] sm:$0xff] %vm12856_vm5, %v12845_v27  ;;  %v12817_v29 = vsel %vm12790_vm3, %v12784_v54, %v12586_v7  ;;  %v12782_v26 = vsel %vm12757_vm2, %v20584_v57, %v20043_v10 }
 0x770   : > { %v12850_v49 = vsel %vm12823_vm4, %v12817_v29, %v20136_v61  ;;  %v12588_v42 = vpop.permute.xlu1 %12587  ;;  %v20586_v61 = vld [vmem:[#allocation33_spill] sm:$0xff] }
 0x771   : > { %12883 = vst.msk [vmem:[%s20159_s22 + $0xd0] sm:$0xff] %vm12856_vm5, %v12850_v49  ;;  %v12818_v16 = vsel %vm12790_vm3, %v12785_v13, %v12588_v42  ;;  %v12783_v53 = vsel %vm12757_vm2, %v20586_v61, %v20585_v55 }
 0x772   : > { %v12851_v21 = vsel %vm12823_vm4, %v12818_v16, %v20138_v48  ;;  %v12582_v50 = vpop.permute.xlu0 %12581 }
 0x773   : > { %12884 = vst.msk [vmem:[%s20159_s22 + $0xd8] sm:$0xff] %vm12856_vm5, %v12851_v21  ;;  %v12815_v5 = vsel %vm12790_vm3, %v12782_v26, %v12582_v50 }
 0x774   : > { %v12848_v45 = vsel %vm12823_vm4, %v12815_v5, %v20140_v37  ;;  %v12584_v1 = vpop.permute.xlu1 %12583  ;;  %v20588_v37 = vld [vmem:[#allocation36_spill] sm:$0xff] }
 0x775   : > { %12881 = vst.msk [vmem:[%s20159_s22 + $0xc0] sm:$0xff] %vm12856_vm5, %v12848_v45  ;;  %v12816_v10 = vsel %vm12790_vm3, %v12783_v53, %v12584_v1  ;;  %v12786_v24 = vsel %vm12757_vm2, %v20588_v37, %v20071_v0 }
 0x776   : > { %v12849_v48 = vsel %vm12823_vm4, %v12816_v10, %v20142_v9  ;;  %v12594_v34 = vpop.permute.xlu0 %12593  ;;  %v12787_v9 = vsel %vm12757_vm2, %v20589_v31, %v20077_v39 }
 0x777   : > { %12882 = vst.msk [vmem:[%s20159_s22 + $0xc8] sm:$0xff] %vm12856_vm5, %v12849_v48  ;;  %v12821_v3 = vsel %vm12790_vm3, %v12788_v36, %v12594_v34 }
 0x778   : > { %v12596_v15 = vpop.permute.xlu1 %12595 }
 0x779   : > { %v12822_v33 = vsel %vm12790_vm3, %v20587_v52, %v12596_v15 }
 0x77a   : > { %v12590_v23 = vpop.permute.xlu0 %12589 }
 0x77b   : > { %v12819_v62 = vsel %vm12790_vm3, %v12786_v24, %v12590_v23 }
 0x77c   : > { %v12852_v47 = vsel %vm12823_vm4, %v12819_v62, %v20145_v51  ;;  %v12592_v56 = vpop.permute.xlu1 %12591 }
 0x77d   : > { %12885 = vst.msk [vmem:[%s20159_s22 + $0xe0] sm:$0xff] %vm12856_vm5, %v12852_v47  ;;  %v12820_v0 = vsel %vm12790_vm3, %v12787_v9, %v12592_v56 }
 0x77e   : > { %v12853_v39 = vsel %vm12823_vm4, %v12820_v0, %v20149_v38  ;;  %v12722_v51 = vpop.permute.xlu0 %12721 }
 0x77f   : > { %12886 = vst.msk [vmem:[%s20159_s22 + $0xe8] sm:$0xff] %vm12856_vm5, %v12853_v39  ;;  %v12854_v18 = vsel %vm12823_vm4, %v12821_v3, %v12722_v51 }
 0x780   : > { %12887 = vst.msk [vmem:[%s20159_s22 + $0xf0] sm:$0xff] %vm12856_vm5, %v12854_v18  ;;  %v12724_v6 = vpop.permute.xlu1 %12723 }
 0x781   : > { %v12855_v38 = vsel %vm12823_vm4, %v12822_v33, %v12724_v6 }
 0x782   : > { %12888 = vst.msk [vmem:[%s20159_s22 + $0xf8] sm:$0xff] %vm12856_vm5, %v12855_v38 }
 0x783   : > { %16548 = shalt.err (!%p16545_p3)
}
 0x784   : > { %s16549_s17 = scalar_lea.hbm %s20400_s26, 4096  ;;  %s16553_s13 = scalar_lea.hbm %s20462_s9, 8192 }
 0x785   : > { %p16550_p4 = scmp.ne.s32.totalorder %s20400_s26, %s16549_s17  ;;  %p16554_p9 = scmp.lt.u32.totalorder %s20400_s26, %s20462_s9 }
 0x786   : > { %p16555_p10 = scmp.lt.u32.totalorder %s16553_s13, %s16549_s17  ;;  %p16557_p12 = scmp.lt.u32.totalorder %s16549_s17, %s20400_s26 }
 0x787   : > { %p16551_p7 = pnand %p16550_p4, %p16697_p5 }
 0x788   : > { %p16556_p11 = por %p16555_p10, %p16554_p9 }
 0x789   : > { %p16552_p8 = pneg %p16551_p7 }
 0x78a   : > { %p16558_p13 = por %p16557_p12, %p16556_p11 }
 0x78c   : > { %p16559_p0 = pnand %p16558_p13, %p16552_p8 }
 0x78e   : > { %16562 = shalt.err (!%p16559_p0)
}
 0x78f   : > { %s16608_s14 = smov 128  }
 0x790   : > { %16487 = dma.vmem_to_hbm [thread:$0]  (%p16697_p5), %s20404_s24, 4096, %s20400_s26, %s20411_s27, %s16608_s14, %s16608_s14, %s16604_s28  }
 0x791 PF: > { %p16493_p1 = scmp.ge.s32.totalorder %s16597_s12, 2  ;;  %s12918_s29 = sand.u32 1, %s16585_s30  }
 0x792   : > { %s12919_s21 = scalar_lea.sflag [#allocation6], %s12918_s29 }
 0x793   : > { %p16490_p2 = pnand %p16493_p1, %p16701_p6 }
 0x795   : > { %16580 = dma.done.wait (!%p16490_p2), %s12919_s21, 4096  }
 0x796   : > { %16582 = vsyncadd (!%p16490_p2), %s12919_s21, 4294963200  ;;  %p19_p3 = scmp.ge.s32.totalorder %s16684_s15, 4   ;;  %s20591_s30 = smov %s16589_s10 }
 0x797   : > { %s20592_s10 = smov %s16593_s11  ;;  %s20593_s11 = smov %s16695_s18 }
 0x798   : > { %s20594_s12 = smov %s16684_s15  ;;  %21 = sbr.rel (!%p19_p3) target bundleno = 3 (0x3), region = 134 }
 0x79f   :  { %12924 = vsyncpa [#allocation6], 1 }
 0x7a0   :  { %12926 = vsyncpa [#allocation6 + $0x1], 1 }

</bundles_post_ra>
